<compile_context>
chip_gen: v5e
topology: v5e:2x2
jax: 0.10.0
libtpu: 0.0.40
codegen_flags: <defaults>
</compile_context>

<pallas_src>
import numpy as np
import jax
import jax.numpy as jnp
from jax.experimental import pallas as pl
from jax.experimental.pallas import tpu as pltpu

# ----------------------- module defaults (StreamableCQT.__init__) ------------
SR = 44100
HOP = 256
NBINS = 72
FMIN_INDEX = 2
BINS_PER_OCTAVE = 12
NFFT = 32768 // FMIN_INDEX          # 16384; streaming buffer holds NFFT-HOP samples
FMIN = FMIN_INDEX * 32.7

_LANE = 128                         # all K offsets / extents aligned to lanes
_SUBLANE = 8
_K_CHUNK = 2048                     # static unroll chunk for the in-kernel K loop


# ----------------------- deterministic CQT kernel construction ---------------
def _hann_periodic(n):
    return 0.5 - 0.5 * np.cos(2.0 * np.pi * np.arange(n) / n)


def create_cqt_kernels(Q, fs, fmin, n_bins, bins_per_octave):
    """Mirrors nnAudio.utils.create_cqt_kernels (norm=False, window='hann').

    Returns (complex kernels, fft_len, per-bin lengths, per-bin support starts).
    The support of bin k is exactly [starts[k], starts[k] + lengths[k])."""
    fft_len = 2 ** int(np.ceil(np.log2(np.ceil(Q * fs / fmin))))
    freqs = fmin * 2.0 ** (np.arange(n_bins) / float(bins_per_octave))
    lengths = np.ceil(Q * fs / freqs)
    kern = np.zeros((n_bins, fft_len), dtype=np.complex64)
    starts = np.zeros(n_bins, dtype=np.int64)
    for k in range(n_bins):
        freq = freqs[k]
        l = int(np.ceil(Q * fs / freq))
        start = int(np.ceil(fft_len / 2.0 - l / 2.0)) - (1 if l % 2 == 1 else 0)
        win = _hann_periodic(l)
        sig = win * np.exp(np.arange(-l // 2, l // 2) * 1j * 2 * np.pi * freq / fs) / l
        kern[k, start:start + l] = sig                      # norm=False -> no L-norm
        starts[k] = start
    return kern, fft_len, lengths.astype(np.float32), starts


# ----------------------- Pallas kernel ---------------------------------------
def _make_cqt_kernel(band_meta, k_chunk=_K_CHUNK):
    """band_meta: tuple of (frame_col_offset, n_bins_in_band, k_extent), all static."""

    def kernel(*refs):
        f_ref = refs[0]                           # (M, Kf) bf16 frames
        w_refs = refs[1:1 + len(band_meta)]       # per-band (K_b, 2*nb) bf16
        o_ref = refs[1 + len(band_meta)]          # (M, n_bins) f32
        m = f_ref.shape[0]
        mags = []
        for (f_off, nb, kb), w_ref in zip(band_meta, w_refs):
            acc = jnp.zeros((m, 2 * nb), jnp.float32)
            c = 0
            while c < kb:                          # static Python unroll
                step = min(k_chunk, kb - c)
                f = f_ref[:, f_off + c:f_off + c + step]     # (M, step) bf16
                w = w_ref[c:c + step, :]                     # (step, 2*nb) bf16
                acc = acc + jnp.dot(f, w, preferred_element_type=jnp.float32)
                c += step
            real = acc[:, :nb]
            imag = acc[:, nb:]                     # sign dropped (squared anyway)
            # sqrt(length) normalization is pre-folded into the weight columns
            mags.append(jnp.sqrt(real * real + imag * imag))
        o_ref[...] = jnp.concatenate(mags, axis=1)           # single lane-dense store

    return kernel


def cqt_magnitude_pallas(frames, band_weights, band_meta, n_bins):
    """frames: (M, Kf) bf16; band_weights[b]: (K_b, 2*nb) bf16 (trimmed, scaled)."""
    m = frames.shape[0]
    kernel = _make_cqt_kernel(band_meta)
    vmem = pl.BlockSpec(memory_space=pltpu.MemorySpace.VMEM)
    return pl.pallas_call(
        kernel,
        out_shape=jax.ShapeDtypeStruct((m, n_bins), jnp.float32),
        in_specs=[vmem] * (1 + len(band_weights)),
        out_specs=vmem,
    )(frames, *band_weights)


# ----------------------- StreamableCQT wrapper -------------------------------
class StreamableCQTPallas:
    def __init__(self, sr=SR, hop_size=HOP, nbins=NBINS, fmin_index=FMIN_INDEX,
                 stream=True, bins_per_octave=BINS_PER_OCTAVE):
        self.nfft = 32768 // fmin_index
        self.hop = hop_size
        self.stream = stream
        self.n_bins = nbins
        fmin = fmin_index * 32.7
        Q = 1.0 / (2.0 ** (1.0 / bins_per_octave) - 1.0)
        kern, fft_len, lengths, starts = create_cqt_kernels(
            Q, sr, fmin, nbins, bins_per_octave)
        self.fft_len = fft_len

        # Fold the 'librosa' sqrt(length) magnitude normalization into the weights.
        scale = np.sqrt(lengths)[:, None]
        wr = (np.real(kern) * scale).astype(np.float32)      # (nbins, fft_len)
        wi = (np.imag(kern) * scale).astype(np.float32)
        ends = starts + lengths.astype(np.int64)

        # Per-octave band-sparse packing: trim each band's K window to the union
        # of its bins' supports (128-aligned), fuse real|imag columns, cast bf16.
        bands = [list(range(b, min(b + bins_per_octave, nbins)))
                 for b in range(0, nbins, bins_per_octave)]
        lo_a, hi_a = [], []
        for bins in bands:
            lo = max(0, int(starts[bins].min()))
            hi = min(fft_len, int(ends[bins].max()))
            lo_a.append((lo // _LANE) * _LANE)
            hi_a.append(min(fft_len, ((hi + _LANE - 1) // _LANE) * _LANE))
        self.k_lo = min(lo_a)                       # global trimmed frame window
        self.k_frames = max(hi_a) - self.k_lo
        self.w_bands = []
        band_meta = []
        for bins, lo, hi in zip(bands, lo_a, hi_a):
            wb = np.concatenate([wr[bins, lo:hi].T, wi[bins, lo:hi].T], axis=1)
            self.w_bands.append(jnp.asarray(wb, jnp.bfloat16))
            band_meta.append((lo - self.k_lo, len(bins), hi - lo))
        self.band_meta = tuple(band_meta)

        # register_buffer('audio_buffer', zeros(1,1,nfft-hop)) -> host-held state
        self.audio_buffer = jnp.zeros((1, 1, self.nfft - self.hop), jnp.float32)
        self._fwd = jax.jit(self._forward)

    # framing: static strided slices of the bf16 signal over the trimmed window
    # (replaces the XLA im2col gather of the full (n_frames, 16384) matrix)
    def _frames(self, sig_f32, n_frames):
        m_pad = max(_SUBLANE, ((n_frames + _SUBLANE - 1) // _SUBLANE) * _SUBLANE)
        sig = sig_f32.astype(jnp.bfloat16)
        need = (m_pad - 1) * self.hop + self.k_lo + self.k_frames
        if need > sig.shape[0]:                     # keep padded rows in bounds
            sig = jnp.pad(sig, (0, need - sig.shape[0]))
        rows = [sig[m * self.hop + self.k_lo:
                    m * self.hop + self.k_lo + self.k_frames]
                for m in range(m_pad)]
        return jnp.stack(rows, axis=0)              # (m_pad, k_frames) bf16

    def _forward(self, buf, x):
        if self.stream:                              # center=False
            x_cat = jnp.concatenate([buf, x], axis=-1)
        else:                                        # center=True, constant pad
            p = self.fft_len // 2
            x_cat = jnp.pad(x, ((0, 0), (0, 0), (p, p)))
        sig = x_cat[0, 0]
        n_frames = (sig.shape[0] - self.fft_len) // self.hop + 1
        frames = self._frames(sig, n_frames)
        mag = cqt_magnitude_pallas(frames, self.w_bands, self.band_meta, self.n_bins)
        spec = jnp.transpose(mag[:n_frames], (1, 0))[None]   # (1, n_bins, n_frames)
        new_buf = x_cat[..., -(self.nfft - self.hop):]
        return spec, new_buf

    def __call__(self, x):
        spec, new_buf = self._fwd(self.audio_buffer, x)
        if self.stream:
            self.audio_buffer = new_buf              # torch register_buffer mutation
            return spec
        # non-stream path implemented (center=True, constant pad) but not
        # exercised by __main__; module default is stream=True.
        return spec[..., :-1]


# ----------------------- test / demo ------------------------------------------
if __name__ == "__main__":
    key = jax.random.PRNGKey(0)
    L = 1024                                       # small streamed chunk (4 hops)
    x = jax.random.normal(key, (1, 1, L), dtype=jnp.float32)

    mod = StreamableCQTPallas()
    spec = jax.block_until_ready(mod(x))

    assert spec.shape == (1, NBINS, L // HOP), spec.shape
    assert mod.audio_buffer.shape == (1, 1, mod.nfft - mod.hop)

    # ------------------ references -------------------------------------------
    x_cat = jnp.concatenate(
        [jnp.zeros((1, 1, mod.nfft - mod.hop), jnp.float32), x], axis=-1)
    sig = x_cat[0, 0]
    n_frames = L // HOP
    hi_prec = jax.lax.Precision.HIGHEST

    # (a) tight check: same bf16-quantized inputs, f32 math -> validates the
    #     Pallas kernel itself (band trimming, fused weights, accumulation).
    sig_b = sig.astype(jnp.bfloat16).astype(jnp.float32)
    ft = jnp.stack([sig_b[m * HOP + mod.k_lo:m * HOP + mod.k_lo + mod.k_frames]
                    for m in range(n_frames)], axis=0)
    mags = []
    for (f_off, nb, kb), w in zip(mod.band_meta, mod.w_bands):
        acc = jnp.dot(ft[:, f_off:f_off + kb], w.astype(jnp.float32),
                      precision=hi_prec)
        mags.append(jnp.sqrt(acc[:, :nb] ** 2 + acc[:, nb:] ** 2))
    ref_tight = jnp.transpose(jnp.concatenate(mags, axis=1), (1, 0))[None]
    np.testing.assert_allclose(np.asarray(spec), np.asarray(ref_tight),
                               rtol=1e-2, atol=1e-4)

    # (b) loose check: dense full-precision f32 reference (original nnAudio math,
    #     no trimming / folding); slack covers bf16 input+weight quantization.
    Q = 1.0 / (2.0 ** (1.0 / BINS_PER_OCTAVE) - 1.0)
    kern, fft_len, lengths, _ = create_cqt_kernels(Q, SR, FMIN, NBINS,
                                                   BINS_PER_OCTAVE)
    wr_t = jnp.asarray(np.ascontiguousarray(kern.real.T), jnp.float32)
    wi_t = jnp.asarray(np.ascontiguousarray(kern.imag.T), jnp.float32)
    sl = jnp.asarray(np.sqrt(lengths)[None, :], jnp.float32)
    ff = jnp.stack([sig[m * HOP:m * HOP + fft_len] for m in range(n_frames)], 0)
    real = jnp.dot(ff, wr_t, precision=hi_prec)
    imag = -jnp.dot(ff, wi_t, precision=hi_prec)
    ref_f32 = jnp.transpose(jnp.sqrt(real * real + imag * imag) * sl, (1, 0))[None]
    np.testing.assert_allclose(np.asarray(spec), np.asarray(ref_f32),
                               rtol=5e-2, atol=5e-3)

    print("KERNEL_OK")
</pallas_src>

<mosaic_0001>
module attributes {stable_mosaic.version = 11 : i64} {
  func.func @kernel(%arg0: memref<8x11520xbf16, #tpu.memory_space<vmem>>, %arg1: memref<11520x24xbf16, #tpu.memory_space<vmem>>, %arg2: memref<5888x24xbf16, #tpu.memory_space<vmem>>, %arg3: memref<3072x24xbf16, #tpu.memory_space<vmem>>, %arg4: memref<1536x24xbf16, #tpu.memory_space<vmem>>, %arg5: memref<768x24xbf16, #tpu.memory_space<vmem>>, %arg6: memref<512x24xbf16, #tpu.memory_space<vmem>>, %arg7: memref<8x72xf32, #tpu.memory_space<vmem>>) attributes {dimension_semantics = [], scalar_prefetch = 0 : i64, scratch_operands = 0 : i64, tpu.core_type = #tpu.core_type<tc>} {
    %cst = arith.constant 0.000000e+00 : f32
    %0 = vector.broadcast %cst : f32 to vector<8x24xf32>
    %c0 = arith.constant 0 : index
    %c0_0 = arith.constant 0 : index
    %1 = vector.load %arg0[%c0, %c0_0] : memref<8x11520xbf16, #tpu.memory_space<vmem>>, vector<8x2048xbf16>
    %c0_1 = arith.constant 0 : index
    %c0_2 = arith.constant 0 : index
    %2 = vector.load %arg1[%c0_1, %c0_2] : memref<11520x24xbf16, #tpu.memory_space<vmem>>, vector<2048x24xbf16>
    %cst_3 = arith.constant dense<0.000000e+00> : vector<8x24xf32>
    %3 = tpu.matmul %1, %2, %cst_3 {dimension_numbers = #tpu.dot_dimension_numbers<[1], [0], [0], [1], [0, 0, 1, 1], [], []>} : vector<8x2048xbf16>, vector<2048x24xbf16>, vector<8x24xf32> -> vector<8x24xf32>
    %4 = arith.addf %0, %3 : vector<8x24xf32>
    %c0_4 = arith.constant 0 : index
    %c2048 = arith.constant 2048 : index
    %5 = vector.load %arg0[%c0_4, %c2048] : memref<8x11520xbf16, #tpu.memory_space<vmem>>, vector<8x2048xbf16>
    %c2048_5 = arith.constant 2048 : index
    %c0_6 = arith.constant 0 : index
    %6 = vector.load %arg1[%c2048_5, %c0_6] : memref<11520x24xbf16, #tpu.memory_space<vmem>>, vector<2048x24xbf16>
    %cst_7 = arith.constant dense<0.000000e+00> : vector<8x24xf32>
    %7 = tpu.matmul %5, %6, %cst_7 {dimension_numbers = #tpu.dot_dimension_numbers<[1], [0], [0], [1], [0, 0, 1, 1], [], []>} : vector<8x2048xbf16>, vector<2048x24xbf16>, vector<8x24xf32> -> vector<8x24xf32>
    %8 = arith.addf %4, %7 : vector<8x24xf32>
    %c0_8 = arith.constant 0 : index
    %c4096 = arith.constant 4096 : index
    %9 = vector.load %arg0[%c0_8, %c4096] : memref<8x11520xbf16, #tpu.memory_space<vmem>>, vector<8x2048xbf16>
    %c4096_9 = arith.constant 4096 : index
    %c0_10 = arith.constant 0 : index
    %10 = vector.load %arg1[%c4096_9, %c0_10] : memref<11520x24xbf16, #tpu.memory_space<vmem>>, vector<2048x24xbf16>
    %cst_11 = arith.constant dense<0.000000e+00> : vector<8x24xf32>
    %11 = tpu.matmul %9, %10, %cst_11 {dimension_numbers = #tpu.dot_dimension_numbers<[1], [0], [0], [1], [0, 0, 1, 1], [], []>} : vector<8x2048xbf16>, vector<2048x24xbf16>, vector<8x24xf32> -> vector<8x24xf32>
    %12 = arith.addf %8, %11 : vector<8x24xf32>
    %c0_12 = arith.constant 0 : index
    %c6144 = arith.constant 6144 : index
    %13 = vector.load %arg0[%c0_12, %c6144] : memref<8x11520xbf16, #tpu.memory_space<vmem>>, vector<8x2048xbf16>
    %c6144_13 = arith.constant 6144 : index
    %c0_14 = arith.constant 0 : index
    %14 = vector.load %arg1[%c6144_13, %c0_14] : memref<11520x24xbf16, #tpu.memory_space<vmem>>, vector<2048x24xbf16>
    %cst_15 = arith.constant dense<0.000000e+00> : vector<8x24xf32>
    %15 = tpu.matmul %13, %14, %cst_15 {dimension_numbers = #tpu.dot_dimension_numbers<[1], [0], [0], [1], [0, 0, 1, 1], [], []>} : vector<8x2048xbf16>, vector<2048x24xbf16>, vector<8x24xf32> -> vector<8x24xf32>
    %16 = arith.addf %12, %15 : vector<8x24xf32>
    %c0_16 = arith.constant 0 : index
    %c8192 = arith.constant 8192 : index
    %17 = vector.load %arg0[%c0_16, %c8192] : memref<8x11520xbf16, #tpu.memory_space<vmem>>, vector<8x2048xbf16>
    %c8192_17 = arith.constant 8192 : index
    %c0_18 = arith.constant 0 : index
    %18 = vector.load %arg1[%c8192_17, %c0_18] : memref<11520x24xbf16, #tpu.memory_space<vmem>>, vector<2048x24xbf16>
    %cst_19 = arith.constant dense<0.000000e+00> : vector<8x24xf32>
    %19 = tpu.matmul %17, %18, %cst_19 {dimension_numbers = #tpu.dot_dimension_numbers<[1], [0], [0], [1], [0, 0, 1, 1], [], []>} : vector<8x2048xbf16>, vector<2048x24xbf16>, vector<8x24xf32> -> vector<8x24xf32>
    %20 = arith.addf %16, %19 : vector<8x24xf32>
    %c0_20 = arith.constant 0 : index
    %c10240 = arith.constant 10240 : index
    %21 = vector.load %arg0[%c0_20, %c10240] : memref<8x11520xbf16, #tpu.memory_space<vmem>>, vector<8x1280xbf16>
    %c10240_21 = arith.constant 10240 : index
    %c0_22 = arith.constant 0 : index
    %22 = vector.load %arg1[%c10240_21, %c0_22] : memref<11520x24xbf16, #tpu.memory_space<vmem>>, vector<1280x24xbf16>
    %cst_23 = arith.constant dense<0.000000e+00> : vector<8x24xf32>
    %23 = tpu.matmul %21, %22, %cst_23 {dimension_numbers = #tpu.dot_dimension_numbers<[1], [0], [0], [1], [0, 0, 1, 1], [], []>} : vector<8x1280xbf16>, vector<1280x24xbf16>, vector<8x24xf32> -> vector<8x24xf32>
    %24 = arith.addf %20, %23 : vector<8x24xf32>
    %25 = vector.extract_strided_slice %24 {offsets = [0, 0], sizes = [8, 12], strides = [1, 1]} : vector<8x24xf32> to vector<8x12xf32>
    %26 = vector.extract_strided_slice %24 {offsets = [0, 12], sizes = [8, 12], strides = [1, 1]} : vector<8x24xf32> to vector<8x12xf32>
    %27 = arith.mulf %25, %25 : vector<8x12xf32>
    %28 = arith.mulf %26, %26 : vector<8x12xf32>
    %29 = arith.addf %27, %28 : vector<8x12xf32>
    %30 = math.sqrt %29 : vector<8x12xf32>
    %cst_24 = arith.constant 0.000000e+00 : f32
    %31 = vector.broadcast %cst_24 : f32 to vector<8x24xf32>
    %c0_25 = arith.constant 0 : index
    %c2816 = arith.constant 2816 : index
    %32 = vector.load %arg0[%c0_25, %c2816] : memref<8x11520xbf16, #tpu.memory_space<vmem>>, vector<8x2048xbf16>
    %c0_26 = arith.constant 0 : index
    %c0_27 = arith.constant 0 : index
    %33 = vector.load %arg2[%c0_26, %c0_27] : memref<5888x24xbf16, #tpu.memory_space<vmem>>, vector<2048x24xbf16>
    %cst_28 = arith.constant dense<0.000000e+00> : vector<8x24xf32>
    %34 = tpu.matmul %32, %33, %cst_28 {dimension_numbers = #tpu.dot_dimension_numbers<[1], [0], [0], [1], [0, 0, 1, 1], [], []>} : vector<8x2048xbf16>, vector<2048x24xbf16>, vector<8x24xf32> -> vector<8x24xf32>
    %35 = arith.addf %31, %34 : vector<8x24xf32>
    %c0_29 = arith.constant 0 : index
    %c4864 = arith.constant 4864 : index
    %36 = vector.load %arg0[%c0_29, %c4864] : memref<8x11520xbf16, #tpu.memory_space<vmem>>, vector<8x2048xbf16>
    %c2048_30 = arith.constant 2048 : index
    %c0_31 = arith.constant 0 : index
    %37 = vector.load %arg2[%c2048_30, %c0_31] : memref<5888x24xbf16, #tpu.memory_space<vmem>>, vector<2048x24xbf16>
    %cst_32 = arith.constant dense<0.000000e+00> : vector<8x24xf32>
    %38 = tpu.matmul %36, %37, %cst_32 {dimension_numbers = #tpu.dot_dimension_numbers<[1], [0], [0], [1], [0, 0, 1, 1], [], []>} : vector<8x2048xbf16>, vector<2048x24xbf16>, vector<8x24xf32> -> vector<8x24xf32>
    %39 = arith.addf %35, %38 : vector<8x24xf32>
    %c0_33 = arith.constant 0 : index
    %c6912 = arith.constant 6912 : index
    %40 = vector.load %arg0[%c0_33, %c6912] : memref<8x11520xbf16, #tpu.memory_space<vmem>>, vector<8x1792xbf16>
    %c4096_34 = arith.constant 4096 : index
    %c0_35 = arith.constant 0 : index
    %41 = vector.load %arg2[%c4096_34, %c0_35] : memref<5888x24xbf16, #tpu.memory_space<vmem>>, vector<1792x24xbf16>
    %cst_36 = arith.constant dense<0.000000e+00> : vector<8x24xf32>
    %42 = tpu.matmul %40, %41, %cst_36 {dimension_numbers = #tpu.dot_dimension_numbers<[1], [0], [0], [1], [0, 0, 1, 1], [], []>} : vector<8x1792xbf16>, vector<1792x24xbf16>, vector<8x24xf32> -> vector<8x24xf32>
    %43 = arith.addf %39, %42 : vector<8x24xf32>
    %44 = vector.extract_strided_slice %43 {offsets = [0, 0], sizes = [8, 12], strides = [1, 1]} : vector<8x24xf32> to vector<8x12xf32>
    %45 = vector.extract_strided_slice %43 {offsets = [0, 12], sizes = [8, 12], strides = [1, 1]} : vector<8x24xf32> to vector<8x12xf32>
    %46 = arith.mulf %44, %44 : vector<8x12xf32>
    %47 = arith.mulf %45, %45 : vector<8x12xf32>
    %48 = arith.addf %46, %47 : vector<8x12xf32>
    %49 = math.sqrt %48 : vector<8x12xf32>
    %cst_37 = arith.constant 0.000000e+00 : f32
    %50 = vector.broadcast %cst_37 : f32 to vector<8x24xf32>
    %c0_38 = arith.constant 0 : index
    %c4224 = arith.constant 4224 : index
    %51 = vector.load %arg0[%c0_38, %c4224] : memref<8x11520xbf16, #tpu.memory_space<vmem>>, vector<8x2048xbf16>
    %c0_39 = arith.constant 0 : index
    %c0_40 = arith.constant 0 : index
    %52 = vector.load %arg3[%c0_39, %c0_40] : memref<3072x24xbf16, #tpu.memory_space<vmem>>, vector<2048x24xbf16>
    %cst_41 = arith.constant dense<0.000000e+00> : vector<8x24xf32>
    %53 = tpu.matmul %51, %52, %cst_41 {dimension_numbers = #tpu.dot_dimension_numbers<[1], [0], [0], [1], [0, 0, 1, 1], [], []>} : vector<8x2048xbf16>, vector<2048x24xbf16>, vector<8x24xf32> -> vector<8x24xf32>
    %54 = arith.addf %50, %53 : vector<8x24xf32>
    %c0_42 = arith.constant 0 : index
    %c6272 = arith.constant 6272 : index
    %55 = vector.load %arg0[%c0_42, %c6272] : memref<8x11520xbf16, #tpu.memory_space<vmem>>, vector<8x1024xbf16>
    %c2048_43 = arith.constant 2048 : index
    %c0_44 = arith.constant 0 : index
    %56 = vector.load %arg3[%c2048_43, %c0_44] : memref<3072x24xbf16, #tpu.memory_space<vmem>>, vector<1024x24xbf16>
    %cst_45 = arith.constant dense<0.000000e+00> : vector<8x24xf32>
    %57 = tpu.matmul %55, %56, %cst_45 {dimension_numbers = #tpu.dot_dimension_numbers<[1], [0], [0], [1], [0, 0, 1, 1], [], []>} : vector<8x1024xbf16>, vector<1024x24xbf16>, vector<8x24xf32> -> vector<8x24xf32>
    %58 = arith.addf %54, %57 : vector<8x24xf32>
    %59 = vector.extract_strided_slice %58 {offsets = [0, 0], sizes = [8, 12], strides = [1, 1]} : vector<8x24xf32> to vector<8x12xf32>
    %60 = vector.extract_strided_slice %58 {offsets = [0, 12], sizes = [8, 12], strides = [1, 1]} : vector<8x24xf32> to vector<8x12xf32>
    %61 = arith.mulf %59, %59 : vector<8x12xf32>
    %62 = arith.mulf %60, %60 : vector<8x12xf32>
    %63 = arith.addf %61, %62 : vector<8x12xf32>
    %64 = math.sqrt %63 : vector<8x12xf32>
    %cst_46 = arith.constant 0.000000e+00 : f32
    %65 = vector.broadcast %cst_46 : f32 to vector<8x24xf32>
    %c0_47 = arith.constant 0 : index
    %c4992 = arith.constant 4992 : index
    %66 = vector.load %arg0[%c0_47, %c4992] : memref<8x11520xbf16, #tpu.memory_space<vmem>>, vector<8x1536xbf16>
    %c0_48 = arith.constant 0 : index
    %c0_49 = arith.constant 0 : index
    %67 = vector.load %arg4[%c0_48, %c0_49] : memref<1536x24xbf16, #tpu.memory_space<vmem>>, vector<1536x24xbf16>
    %cst_50 = arith.constant dense<0.000000e+00> : vector<8x24xf32>
    %68 = tpu.matmul %66, %67, %cst_50 {dimension_numbers = #tpu.dot_dimension_numbers<[1], [0], [0], [1], [0, 0, 1, 1], [], []>} : vector<8x1536xbf16>, vector<1536x24xbf16>, vector<8x24xf32> -> vector<8x24xf32>
    %69 = arith.addf %65, %68 : vector<8x24xf32>
    %70 = vector.extract_strided_slice %69 {offsets = [0, 0], sizes = [8, 12], strides = [1, 1]} : vector<8x24xf32> to vector<8x12xf32>
    %71 = vector.extract_strided_slice %69 {offsets = [0, 12], sizes = [8, 12], strides = [1, 1]} : vector<8x24xf32> to vector<8x12xf32>
    %72 = arith.mulf %70, %70 : vector<8x12xf32>
    %73 = arith.mulf %71, %71 : vector<8x12xf32>
    %74 = arith.addf %72, %73 : vector<8x12xf32>
    %75 = math.sqrt %74 : vector<8x12xf32>
    %cst_51 = arith.constant 0.000000e+00 : f32
    %76 = vector.broadcast %cst_51 : f32 to vector<8x24xf32>
    %c0_52 = arith.constant 0 : index
    %c5376 = arith.constant 5376 : index
    %77 = vector.load %arg0[%c0_52, %c5376] : memref<8x11520xbf16, #tpu.memory_space<vmem>>, vector<8x768xbf16>
    %c0_53 = arith.constant 0 : index
    %c0_54 = arith.constant 0 : index
    %78 = vector.load %arg5[%c0_53, %c0_54] : memref<768x24xbf16, #tpu.memory_space<vmem>>, vector<768x24xbf16>
    %cst_55 = arith.constant dense<0.000000e+00> : vector<8x24xf32>
    %79 = tpu.matmul %77, %78, %cst_55 {dimension_numbers = #tpu.dot_dimension_numbers<[1], [0], [0], [1], [0, 0, 1, 1], [], []>} : vector<8x768xbf16>, vector<768x24xbf16>, vector<8x24xf32> -> vector<8x24xf32>
    %80 = arith.addf %76, %79 : vector<8x24xf32>
    %81 = vector.extract_strided_slice %80 {offsets = [0, 0], sizes = [8, 12], strides = [1, 1]} : vector<8x24xf32> to vector<8x12xf32>
    %82 = vector.extract_strided_slice %80 {offsets = [0, 12], sizes = [8, 12], strides = [1, 1]} : vector<8x24xf32> to vector<8x12xf32>
    %83 = arith.mulf %81, %81 : vector<8x12xf32>
    %84 = arith.mulf %82, %82 : vector<8x12xf32>
    %85 = arith.addf %83, %84 : vector<8x12xf32>
    %86 = math.sqrt %85 : vector<8x12xf32>
    %cst_56 = arith.constant 0.000000e+00 : f32
    %87 = vector.broadcast %cst_56 : f32 to vector<8x24xf32>
    %c0_57 = arith.constant 0 : index
    %c5504 = arith.constant 5504 : index
    %88 = vector.load %arg0[%c0_57, %c5504] : memref<8x11520xbf16, #tpu.memory_space<vmem>>, vector<8x512xbf16>
    %c0_58 = arith.constant 0 : index
    %c0_59 = arith.constant 0 : index
    %89 = vector.load %arg6[%c0_58, %c0_59] : memref<512x24xbf16, #tpu.memory_space<vmem>>, vector<512x24xbf16>
    %cst_60 = arith.constant dense<0.000000e+00> : vector<8x24xf32>
    %90 = tpu.matmul %88, %89, %cst_60 {dimension_numbers = #tpu.dot_dimension_numbers<[1], [0], [0], [1], [0, 0, 1, 1], [], []>} : vector<8x512xbf16>, vector<512x24xbf16>, vector<8x24xf32> -> vector<8x24xf32>
    %91 = arith.addf %87, %90 : vector<8x24xf32>
    %92 = vector.extract_strided_slice %91 {offsets = [0, 0], sizes = [8, 12], strides = [1, 1]} : vector<8x24xf32> to vector<8x12xf32>
    %93 = vector.extract_strided_slice %91 {offsets = [0, 12], sizes = [8, 12], strides = [1, 1]} : vector<8x24xf32> to vector<8x12xf32>
    %94 = arith.mulf %92, %92 : vector<8x12xf32>
    %95 = arith.mulf %93, %93 : vector<8x12xf32>
    %96 = arith.addf %94, %95 : vector<8x12xf32>
    %97 = math.sqrt %96 : vector<8x12xf32>
    %98 = tpu.concatenate %30, %49, %64, %75, %86, %97 in 1 : vector<8x12xf32>, vector<8x12xf32>, vector<8x12xf32>, vector<8x12xf32>, vector<8x12xf32>, vector<8x12xf32> -> vector<8x72xf32>
    %c0_61 = arith.constant 0 : index
    %c0_62 = arith.constant 0 : index
    %99 = vector.load %arg7[%c0_61, %c0_62] : memref<8x72xf32, #tpu.memory_space<vmem>>, vector<8x72xf32>
    tpu.vector_store %arg7[%c0_61, %c0_62], %98 {strides = array<i32>} : memref<8x72xf32, #tpu.memory_space<vmem>>, vector<8x72xf32>,
    return
  }
}

</mosaic_0001>

<bundles_post_ra>
// kernel: _forward.1
= control target key start
LH: loop header
LB: loop body
LE: loop exit
PB: predicated region body
PF: predicated region fallthrough
CT: control target
= control target key end

     0   :  { %12 = vsyncpa [#allocation3], 0  ;;  %s23011_s0 = inlined_call_operand.vmem [shape: bf16[8,11520], index: 0, kind: input, shape index: {}]   ;;  %s23012_s1 = inlined_call_operand.hbm [shape: bf16[11520,24], index: 1, kind: input, shape index: {}]   ;;  %s23013_s2 = inlined_call_operand.hbm [shape: bf16[5888,24], index: 2, kind: input, shape index: {}]   ;;  %s23014_s3 = inlined_call_operand.hbm [shape: bf16[3072,24], index: 3, kind: input, shape index: {}]   ;;  %s23015_s4 = inlined_call_operand.hbm [shape: bf16[1536,24], index: 4, kind: input, shape index: {}]   ;;  %s23016_s5 = inlined_call_operand.hbm [shape: bf16[768,24], index: 5, kind: input, shape index: {}]   ;;  %s23017_s6 = inlined_call_operand.hbm [shape: bf16[512,24], index: 6, kind: input, shape index: {}]   ;;  %s23018_s7 = inlined_call_operand.vmem [shape: f32[8,72], index: 7, kind: output, shape index: {}]  }
   0x1   :  { %13 = vsyncpa [#allocation5], 0 }
   0x2   :  { %14 = vsyncpa [#allocation8], 0 }
   0x3   :  { %15 = vsyncpa [#allocation11], 0  ;;  %s35_s26 = sshll.u32 %s23013_s2, 4  ;;  %s22449_s27 = smov [#allocation4]   ;;  %s36_s26 = int_to_ptr.hbm [resolvable:$true] %s35_s26 }
   0x4   :  { %s37_s28 = sshll.u32 %s22449_s27, 4  ;;  %s61_s8 = sshll.u32 %s23015_s4, 4  ;;  %s38_s28 = int_to_ptr.vmem [resolvable:$true] %s37_s28  ;;  %s62_s8 = int_to_ptr.hbm [resolvable:$true] %s61_s8 }
   0x5   :  { %s22450_s9 = smov 64   ;;  %s22451_s10 = smov 4  }
   0x6   :  { %43 = dma.hbm_to_vmem [thread:$0]  %s36_s26, 47104, %s38_s28, [#allocation5], %s22450_s9, %s22450_s9, %s22451_s10  }
   0x7   :  { %s22452_s11 = smov [#allocation7]   ;;  %s22_s2 = sshll.u32 %s23012_s1, 4  ;;  %s23_s2 = int_to_ptr.hbm [resolvable:$true] %s22_s2 }
   0x8   :  { %s63_s12 = sshll.u32 %s22452_s11, 4  ;;  %s48_s16 = sshll.u32 %s23014_s3, 4  ;;  %s64_s12 = int_to_ptr.vmem [resolvable:$true] %s63_s12  ;;  %s49_s16 = int_to_ptr.hbm [resolvable:$true] %s48_s16 }
   0x9   :  { %69 = dma.hbm_to_vmem [thread:$0]  %s62_s8, 12288, %s64_s12, [#allocation8], %s22450_s9, %s22450_s9, %s22451_s10  }
   0xa   :  { %s22453_s17 = smov [#allocation2]   ;;  %s22454_s19 = smov [#allocation6]  }
   0xb   :  { %s24_s18 = sshll.u32 %s22453_s17, 4  ;;  %s50_s1 = sshll.u32 %s22454_s19, 4  ;;  %s25_s18 = int_to_ptr.vmem [resolvable:$true] %s24_s18  ;;  %s51_s1 = int_to_ptr.vmem [resolvable:$true] %s50_s1 }
   0xc   :  { %30 = dma.hbm_to_vmem [thread:$0]  %s23_s2, 92160, %s25_s18, [#allocation3], %s22450_s9, %s22450_s9, %s22451_s10  }
   0xd   :  { %s74_s22 = sshll.u32 %s23016_s5, 4  ;;  %s87_s24 = sshll.u32 %s23017_s6, 4  ;;  %s75_s22 = int_to_ptr.hbm [resolvable:$true] %s74_s22  ;;  %s88_s24 = int_to_ptr.hbm [resolvable:$true] %s87_s24 }
   0xe   :  { %56 = dma.hbm_to_vmem [thread:$0]  %s49_s16, 24576, %s51_s1, [#allocation5], %s22450_s9, %s22450_s9, %s22451_s10  }
   0xf   :  { %s22455_s25 = smov [#allocation9]   ;;  %s22456_s27 = smov [#allocation10]  }
  0x10   :  { %s76_s26 = sshll.u32 %s22455_s25, 4  ;;  %s89_s5 = sshll.u32 %s22456_s27, 4  ;;  %s77_s26 = int_to_ptr.vmem [resolvable:$true] %s76_s26  ;;  %s90_s5 = int_to_ptr.vmem [resolvable:$true] %s89_s5 }
  0x11   :  { %82 = dma.hbm_to_vmem [thread:$0]  %s75_s22, 6144, %s77_s26, [#allocation8], %s22450_s9, %s22450_s9, %s22451_s10  }
  0x12   :  { %95 = dma.hbm_to_vmem [thread:$0]  %s88_s24, 4096, %s90_s5, [#allocation11], %s22450_s9, %s22450_s9, %s22451_s10  }
  0x13   :  { %22441 = dma.done.wait [#allocation3], 92160  }
  0x14   :  { %22442 = vsyncadd [#allocation3], 4294875136 }
  0x15   :  { %22443 = dma.done.wait [#allocation5], 71680  }
  0x16   :  { %22444 = vsyncadd [#allocation5], 4294895616 }
  0x17   :  { %22445 = dma.done.wait [#allocation8], 18432  }
  0x18   :  { %22446 = vsyncadd [#allocation8], 4294948864 }
  0x19   :  { %22447 = dma.done.wait [#allocation11], 4096  }
  0x1a   :  { %22448 = vsyncadd [#allocation11], 4294963200  ;;  %v20950_v0 = vld [vmem:[#allocation2 + $0x438] sm:$0xff]  ;;  %v20949_v4 = vld [vmem:[#allocation2 + $0x430] sm:$0xff]  ;;  %s22457_s2 = smov 116   ;;  %s22458_s3 = smov 12  }
  0x1b   :  { %v20958_v1 = vld [vmem:[#allocation2 + $0x478] sm:$0xff]  ;;  %1472 = vmatpush.bf16.msra.mxu0 %v20950_v0  ;;  %v20957_v5 = vld [vmem:[#allocation2 + $0x470] sm:$0xff]  ;;  %v20948_v8 = vld [vmem:[#allocation2 + $0x428] sm:$0xff]  ;;  %s22460_s25 = smov 36   ;;  %s22461_s26 = smov 48   ;;  %vm14971_vm12 = vcmask 97280  }
  0x1c   :  { %v20966_v2 = vld [vmem:[#allocation2 + $0x4b8] sm:$0xff]  ;;  %1485 = vmatpush.bf16.msra.mxu1 %v20958_v1  ;;  %v20965_v6 = vld [vmem:[#allocation2 + $0x4b0] sm:$0xff]  ;;  %v20956_v9 = vld [vmem:[#allocation2 + $0x468] sm:$0xff]  ;;  %s22462_s27 = smov 60   ;;  %vm14973_vm13 = vcmask 195584   ;;  %vm14975_vm14 = vcmask 293888  }
  0x1d   :  { %v20974_v3 = vld [vmem:[#allocation2 + $0x4f8] sm:$0xff]  ;;  %1498 = vmatpush.bf16.msra.mxu2 %v20966_v2  ;;  %v20973_v7 = vld [vmem:[#allocation2 + $0x4f0] sm:$0xff]  ;;  %v20964_v10 = vld [vmem:[#allocation2 + $0x4a8] sm:$0xff]  ;;  %vm14977_vm15 = vcmask 392192  }
  0x1e   :  { %1511 = vmatpush.bf16.msra.mxu3 %v20974_v3  ;;  %v20972_v11 = vld [vmem:[#allocation2 + $0x4e8] sm:$0xff]  ;;  %v20947_v12 = vld [vmem:[#allocation2 + $0x420] sm:$0xff]  ;;  %v20946_v16 = vld [vmem:[#allocation2 + $0x418] sm:$0xff] }
  0x1f   :  { %1473 = vmatpush.bf16.msra.mxu0 %v20949_v4  ;;  %v20955_v13 = vld [vmem:[#allocation2 + $0x460] sm:$0xff]  ;;  %v20954_v17 = vld [vmem:[#allocation2 + $0x458] sm:$0xff]  ;;  %v20945_v20 = vld [vmem:[#allocation2 + $0x410] sm:$0xff] }
  0x20   :  { %1486 = vmatpush.bf16.msra.mxu1 %v20957_v5  ;;  %v20963_v14 = vld [vmem:[#allocation2 + $0x4a0] sm:$0xff]  ;;  %v20962_v18 = vld [vmem:[#allocation2 + $0x498] sm:$0xff]  ;;  %v20953_v21 = vld [vmem:[#allocation2 + $0x450] sm:$0xff] }
  0x21   :  { %1499 = vmatpush.bf16.msra.mxu2 %v20965_v6  ;;  %v20971_v15 = vld [vmem:[#allocation2 + $0x4e0] sm:$0xff]  ;;  %v20970_v19 = vld [vmem:[#allocation2 + $0x4d8] sm:$0xff]  ;;  %v20961_v22 = vld [vmem:[#allocation2 + $0x490] sm:$0xff] }
  0x22   :  { %1512 = vmatpush.bf16.msra.mxu3 %v20973_v7  ;;  %v20969_v23 = vld [vmem:[#allocation2 + $0x4d0] sm:$0xff]  ;;  %v20944_v24 = vld [vmem:[#allocation2 + $0x408] sm:$0xff]  ;;  %v384_v26 = vld [vmem:[%s23011_s0 + $0x40] sm:$0xff] }
  0x23   :  { %1474 = vmatpush.bf16.msra.mxu0 %v20948_v8  ;;  %v20952_v25 = vld [vmem:[#allocation2 + $0x448] sm:$0xff]  ;;  %v656_v30 = vunpack.c.l.b16 %v384_v26  ;;  %v20943_v31 = vld [vmem:[#allocation2 + $0x400] sm:$0xff]  ;;  %v20982_v35 = vld [vmem:[#allocation2 + $0x538] sm:$0xff]  ;;  %v657_v36 = vunpack.c.h.b16 %v384_v26 }
  0x24   :  { %1487 = vmatpush.bf16.msra.mxu1 %v20956_v9  ;;  %v20960_v27 = vld [vmem:[#allocation2 + $0x488] sm:$0xff]  ;;  %v20951_v32 = vld [vmem:[#allocation2 + $0x440] sm:$0xff]  ;;  %v20990_v37 = vld [vmem:[#allocation2 + $0x578] sm:$0xff] }
  0x25   :  { %1500 = vmatpush.bf16.msra.mxu2 %v20964_v10  ;;  %v20968_v28 = vld [vmem:[#allocation2 + $0x4c8] sm:$0xff]  ;;  %v20959_v34 = vld [vmem:[#allocation2 + $0x480] sm:$0xff]  ;;  %v20998_v38 = vld [vmem:[#allocation2 + $0x5b8] sm:$0xff]  ;;  %v672_v40 = vpack.c.b16 %v656_v30, %v656_v30  ;;  %v673_v45 = vpack.c.b16 %v657_v36, %v657_v36 }
  0x26   :  { %1513 = vmatpush.bf16.msra.mxu3 %v20972_v11  ;;  %v385_v29 = vld [vmem:[%s23011_s0 + $0x48] sm:$0xff]  ;;  %v20967_v39 = vld [vmem:[#allocation2 + $0x4c0] sm:$0xff]  ;;  %v21006_v42 = vld [vmem:[#allocation2 + $0x5f8] sm:$0xff] }
  0x27   :  { %1475 = vmatpush.bf16.msra.mxu0 %v20947_v12  ;;  %v658_v33 = vunpack.c.l.b16 %v385_v29  ;;  %v659_v41 = vunpack.c.h.b16 %v385_v29  ;;  %v20981_v44 = vld [vmem:[#allocation2 + $0x530] sm:$0xff]  ;;  %v20980_v50 = vld [vmem:[#allocation2 + $0x528] sm:$0xff]  ;;  %v20979_v54 = vld [vmem:[#allocation2 + $0x520] sm:$0xff] }
  0x28   :  { %1488 = vmatpush.bf16.msra.mxu1 %v20955_v13  ;;  %v20989_v46 = vld [vmem:[#allocation2 + $0x570] sm:$0xff]  ;;  %v20988_v51 = vld [vmem:[#allocation2 + $0x568] sm:$0xff]  ;;  %v20987_v55 = vld [vmem:[#allocation2 + $0x560] sm:$0xff] }
  0x29   :  { %1501 = vmatpush.bf16.msra.mxu2 %v20963_v14  ;;  %v674_v43 = vpack.c.b16 %v658_v33, %v658_v33  ;;  %v20997_v47 = vld [vmem:[#allocation2 + $0x5b0] sm:$0xff]  ;;  %v675_v48 = vpack.c.b16 %v659_v41, %v659_v41  ;;  %v20996_v52 = vld [vmem:[#allocation2 + $0x5a8] sm:$0xff]  ;;  %v20995_v56 = vld [vmem:[#allocation2 + $0x5a0] sm:$0xff] }
  0x2a   :  { %1514 = vmatpush.bf16.msra.mxu3 %v20971_v15  ;;  %v21005_v49 = vld [vmem:[#allocation2 + $0x5f0] sm:$0xff]  ;;  %v21004_v53 = vld [vmem:[#allocation2 + $0x5e8] sm:$0xff]  ;;  %v21003_v57 = vld [vmem:[#allocation2 + $0x5e0] sm:$0xff] }
  0x2b   :  { %1476 = vmatpush.bf16.msra.mxu0 %v20946_v16  ;;  %v20978_v58 = vld [vmem:[#allocation2 + $0x518] sm:$0xff]  ;;  %v20977_v62 = vld [vmem:[#allocation2 + $0x510] sm:$0xff]  ;;  %v20976_v2 = vld [vmem:[#allocation2 + $0x508] sm:$0xff] }
  0x2c   :  { %1489 = vmatpush.bf16.msra.mxu1 %v20954_v17  ;;  %v20986_v59 = vld [vmem:[#allocation2 + $0x558] sm:$0xff]  ;;  %v20985_v63 = vld [vmem:[#allocation2 + $0x550] sm:$0xff]  ;;  %v20984_v3 = vld [vmem:[#allocation2 + $0x548] sm:$0xff] }
  0x2d   :  { %1502 = vmatpush.bf16.msra.mxu2 %v20962_v18  ;;  %v20994_v60 = vld [vmem:[#allocation2 + $0x598] sm:$0xff]  ;;  %v20993_v0 = vld [vmem:[#allocation2 + $0x590] sm:$0xff]  ;;  %v20992_v4 = vld [vmem:[#allocation2 + $0x588] sm:$0xff] }
  0x2e   :  { %1515 = vmatpush.bf16.msra.mxu3 %v20970_v19  ;;  %v21002_v61 = vld [vmem:[#allocation2 + $0x5d8] sm:$0xff]  ;;  %v21001_v1 = vld [vmem:[#allocation2 + $0x5d0] sm:$0xff]  ;;  %v21000_v7 = vld [vmem:[#allocation2 + $0x5c8] sm:$0xff] }
  0x2f   :  { %1477 = vmatpush.bf16.msra.mxu0 %v20945_v20  ;;  %v387_v5 = vld [vmem:[%s23011_s0 + $0x58] sm:$0xff]  ;;  %v386_v6 = vld [vmem:[%s23011_s0 + $0x50] sm:$0xff]  ;;  %v20975_v8 = vld [vmem:[#allocation2 + $0x500] sm:$0xff] }
  0x30   :  { %1490 = vmatpush.bf16.msra.mxu1 %v20953_v21  ;;  %v662_v9 = vunpack.c.l.b16 %v387_v5  ;;  %v20983_v10 = vld [vmem:[#allocation2 + $0x540] sm:$0xff]  ;;  %v660_v12 = vunpack.c.l.b16 %v386_v6  ;;  %v661_v13 = vunpack.c.h.b16 %v386_v6  ;;  %v21014_v14 = vld [vmem:[#allocation2 + $0x638] sm:$0xff]  ;;  %v663_v18 = vunpack.c.h.b16 %v387_v5  ;;  %v21020_v29 = vld [vmem:[#allocation2 + $0x668] sm:$0xff] }
  0x31   :  { %1503 = vmatpush.bf16.msra.mxu2 %v20961_v22  ;;  %v20991_v11 = vld [vmem:[#allocation2 + $0x580] sm:$0xff]  ;;  %v21022_v15 = vld [vmem:[#allocation2 + $0x678] sm:$0xff]  ;;  %v21028_v30 = vld [vmem:[#allocation2 + $0x6a8] sm:$0xff] }
  0x32   :  { %1516 = vmatpush.bf16.msra.mxu3 %v20969_v23  ;;  %v21030_v16 = vld [vmem:[#allocation2 + $0x6b8] sm:$0xff]  ;;  %v20999_v17 = vld [vmem:[#allocation2 + $0x5c0] sm:$0xff]  ;;  %v678_v20 = vpack.c.b16 %v662_v9, %v662_v9  ;;  %v676_v21 = vpack.c.b16 %v660_v12, %v660_v12  ;;  %v677_v22 = vpack.c.b16 %v661_v13, %v661_v13  ;;  %v21013_v23 = vld [vmem:[#allocation2 + $0x630] sm:$0xff]  ;;  %v679_v26 = vpack.c.b16 %v663_v18, %v663_v18 }
  0x33   :  { %1478 = vmatpush.bf16.msra.mxu0 %v20944_v24  ;;  %v21038_v19 = vld [vmem:[#allocation2 + $0x6f8] sm:$0xff]  ;;  %v21021_v24 = vld [vmem:[#allocation2 + $0x670] sm:$0xff]  ;;  %v21019_v33 = vld [vmem:[#allocation2 + $0x660] sm:$0xff] }
  0x34   :  { %1491 = vmatpush.bf16.msra.mxu1 %v20952_v25  ;;  %v21029_v25 = vld [vmem:[#allocation2 + $0x6b0] sm:$0xff]  ;;  %v21010_v36 = vld [vmem:[#allocation2 + $0x618] sm:$0xff]  ;;  %v21044_v6 = vld [vmem:[#allocation2 + $0x728] sm:$0xff] }
  0x35   :  { %1504 = vmatpush.bf16.msra.mxu2 %v20960_v27  ;;  %v21037_v27 = vld [vmem:[#allocation2 + $0x6f0] sm:$0xff]  ;;  %v21068_v9 = vld [vmem:[#allocation2 + $0x7e8] sm:$0xff]  ;;  %v21059_v12 = vld [vmem:[#allocation2 + $0x7a0] sm:$0xff] }
  0x36   :  { %1517 = vmatpush.bf16.msra.mxu3 %v20968_v28  ;;  %v21012_v28 = vld [vmem:[#allocation2 + $0x628] sm:$0xff]  ;;  %v21017_v41 = vld [vmem:[#allocation2 + $0x650] sm:$0xff]  ;;  %v21067_v13 = vld [vmem:[#allocation2 + $0x7e0] sm:$0xff] }
  0x37   :  { %1479 = vmatpush.bf16.msra.mxu0 %v20943_v31  ;;  %v21036_v31 = vld [vmem:[#allocation2 + $0x6e8] sm:$0xff]  ;;  %v21069_v5 = vld [vmem:[#allocation2 + $0x7f0] sm:$0xff] }
  0x38   :  { %1492 = vmatpush.bf16.msra.mxu1 %v20951_v32  ;;  %v21011_v32 = vld [vmem:[#allocation2 + $0x620] sm:$0xff]  ;;  %v21041_v18 = vld [vmem:[#allocation2 + $0x710] sm:$0xff] }
  0x39   :  { %1505 = vmatpush.bf16.msra.mxu2 %v20959_v34  ;;  %v21027_v34 = vld [vmem:[#allocation2 + $0x6a0] sm:$0xff] }
  0x3a   :  { %1518 = vmatpush.bf16.msra.mxu3 %v20967_v39  ;;  %1480 = vmatmul.bf16.vlgmr.msra.gmra.mxu0 %v672_v40  ;;  %v21034_v39 = vld [vmem:[#allocation2 + $0x6d8] sm:$0xff]  ;;  %v21009_v40 = vld [vmem:[#allocation2 + $0x610] sm:$0xff] }
  0x3b   :  { %1524 = vmatpush.bf16.msrb.mxu0 %v20982_v35  ;;  %1493 = vmatmul.bf16.vlgmr.msra.gmra.mxu1 %v673_v45  ;;  %v21035_v35 = vld [vmem:[#allocation2 + $0x6e0] sm:$0xff]  ;;  %v21016_v45 = vld [vmem:[#allocation2 + $0x648] sm:$0xff] }
  0x3c   :  { %1537 = vmatpush.bf16.msrb.mxu1 %v20990_v37  ;;  %1506 = vmatmul.bf16.vlgmr.msra.gmra.mxu2 %v674_v43  ;;  %v21018_v37 = vld [vmem:[#allocation2 + $0x658] sm:$0xff]  ;;  %v21033_v43 = vld [vmem:[#allocation2 + $0x6d0] sm:$0xff] }
  0x3d   :  { %1550 = vmatpush.bf16.msrb.mxu2 %v20998_v38  ;;  %1519 = vmatmul.bf16.vlgmr.msra.gmra.mxu3 %v675_v48  ;;  %v21026_v38 = vld [vmem:[#allocation2 + $0x698] sm:$0xff]  ;;  %v389_v48 = vld [vmem:[%s23011_s0 + $0x68] sm:$0xff] }
  0x3e   :  { %1563 = vmatpush.bf16.msrb.mxu3 %v21006_v42  ;;  %v21025_v42 = vld [vmem:[#allocation2 + $0x690] sm:$0xff] }
  0x3f   :  { %1525 = vmatpush.bf16.msrb.mxu0 %v20981_v44  ;;  %v21008_v44 = vld [vmem:[#allocation2 + $0x608] sm:$0xff] }
  0x40   :  { %1538 = vmatpush.bf16.msrb.mxu1 %v20989_v46  ;;  %v388_v46 = vld [vmem:[%s23011_s0 + $0x60] sm:$0xff] }
  0x41   :  { %1551 = vmatpush.bf16.msrb.mxu2 %v20997_v47  ;;  %v21024_v47 = vld [vmem:[#allocation2 + $0x688] sm:$0xff] }
  0x42   :  { %1564 = vmatpush.bf16.msrb.mxu3 %v21005_v49  ;;  %v21032_v49 = vld [vmem:[#allocation2 + $0x6c8] sm:$0xff] }
  0x43   :  { %1526 = vmatpush.bf16.msrb.mxu0 %v20980_v50  ;;  %v664_v50 = vunpack.c.l.b16 %v388_v46 }
  0x44   :  { %1539 = vmatpush.bf16.msrb.mxu1 %v20988_v51  ;;  %v21007_v51 = vld [vmem:[#allocation2 + $0x600] sm:$0xff] }
  0x45   :  { %1552 = vmatpush.bf16.msrb.mxu2 %v20996_v52  ;;  %v21015_v52 = vld [vmem:[#allocation2 + $0x640] sm:$0xff] }
  0x46   :  { %1565 = vmatpush.bf16.msrb.mxu3 %v21004_v53  ;;  %v666_v53 = vunpack.c.l.b16 %v389_v48 }
  0x47   :  { %1527 = vmatpush.bf16.msrb.mxu0 %v20979_v54  ;;  %v21023_v54 = vld [vmem:[#allocation2 + $0x680] sm:$0xff] }
  0x48   :  { %1540 = vmatpush.bf16.msrb.mxu1 %v20987_v55  ;;  %v21046_v55 = vld [vmem:[#allocation2 + $0x738] sm:$0xff] }
  0x49   :  { %1553 = vmatpush.bf16.msrb.mxu2 %v20995_v56  ;;  %v665_v56 = vunpack.c.h.b16 %v388_v46  ;;  %v20837_v46 = vld [vmem:[#allocation2 + $0xb0] sm:$0xff] }
  0x4a   :  { %1566 = vmatpush.bf16.msrb.mxu3 %v21003_v57  ;;  %v21054_v57 = vld [vmem:[#allocation2 + $0x778] sm:$0xff] }
  0x4b   :  { %1528 = vmatpush.bf16.msrb.mxu0 %v20978_v58  ;;  %v21062_v58 = vld [vmem:[#allocation2 + $0x7b8] sm:$0xff] }
  0x4c   :  { %1541 = vmatpush.bf16.msrb.mxu1 %v20986_v59  ;;  %v667_v59 = vunpack.c.h.b16 %v389_v48  ;;  %v20820_v48 = vld [vmem:[#allocation2 + $0x28] sm:$0xff] }
  0x4d   :  { %1554 = vmatpush.bf16.msrb.mxu2 %v20994_v60  ;;  %v21031_v60 = vld [vmem:[#allocation2 + $0x6c0] sm:$0xff] }
  0x4e   :  { %1567 = vmatpush.bf16.msrb.mxu3 %v21002_v61  ;;  %v680_v61 = vpack.c.b16 %v664_v50, %v664_v50  ;;  %v20836_v50 = vld [vmem:[#allocation2 + $0xa8] sm:$0xff] }
  0x4f   :  { %1529 = vmatpush.bf16.msrb.mxu0 %v20977_v62  ;;  %v682_v62 = vpack.c.b16 %v666_v53, %v666_v53  ;;  %v20827_v53 = vld [vmem:[#allocation2 + $0x60] sm:$0xff] }
  0x50   :  { %1542 = vmatpush.bf16.msrb.mxu1 %v20985_v63  ;;  %v21070_v63 = vld [vmem:[#allocation2 + $0x7f8] sm:$0xff] }
  0x51   :  { %1555 = vmatpush.bf16.msrb.mxu2 %v20993_v0  ;;  %v681_v0 = vpack.c.b16 %v665_v56, %v665_v56  ;;  %v20818_v56 = vld [vmem:[#allocation2 + $0x18] sm:$0xff] }
  0x52   :  { %1568 = vmatpush.bf16.msrb.mxu3 %v21001_v1  ;;  %v21045_v1 = vld [vmem:[#allocation2 + $0x730] sm:$0xff] }
  0x53   :  { %1530 = vmatpush.bf16.msrb.mxu0 %v20976_v2  ;;  %v683_v2 = vpack.c.b16 %v667_v59, %v667_v59  ;;  %v20842_v59 = vld [vmem:[#allocation2 + $0xd8] sm:$0xff] }
  0x54   :  { %1543 = vmatpush.bf16.msrb.mxu1 %v20984_v3  ;;  %v21053_v3 = vld [vmem:[#allocation2 + $0x770] sm:$0xff] }
  0x55   :  { %1556 = vmatpush.bf16.msrb.mxu2 %v20992_v4  ;;  %v21061_v4 = vld [vmem:[#allocation2 + $0x7b0] sm:$0xff] }
  0x56   :  { %1569 = vmatpush.bf16.msrb.mxu3 %v21000_v7  ;;  %v21052_v7 = vld [vmem:[#allocation2 + $0x768] sm:$0xff] }
  0x57   :  { %1531 = vmatpush.bf16.msrb.mxu0 %v20975_v8  ;;  %v21060_v8 = vld [vmem:[#allocation2 + $0x7a8] sm:$0xff] }
  0x58   :  { %1544 = vmatpush.bf16.msrb.mxu1 %v20983_v10  ;;  %v21043_v10 = vld [vmem:[#allocation2 + $0x720] sm:$0xff] }
  0x59   :  { %1557 = vmatpush.bf16.msrb.mxu2 %v20991_v11  ;;  %v21051_v11 = vld [vmem:[#allocation2 + $0x760] sm:$0xff] }
  0x5a   :  { %1570 = vmatpush.bf16.msrb.mxu3 %v20999_v17  ;;  %1532 = vmatmul.bf16.vlgmr.msrb.gmra.mxu0 %v676_v21  ;;  %v21066_v17 = vld [vmem:[#allocation2 + $0x7d8] sm:$0xff]  ;;  %v21065_v21 = vld [vmem:[#allocation2 + $0x7d0] sm:$0xff] }
  0x5b   :  { %1576 = vmatpush.bf16.msra.mxu0 %v21014_v14  ;;  %1545 = vmatmul.bf16.vlgmr.msrb.gmra.mxu1 %v677_v22  ;;  %v21042_v14 = vld [vmem:[#allocation2 + $0x718] sm:$0xff]  ;;  %v21040_v22 = vld [vmem:[#allocation2 + $0x708] sm:$0xff] }
  0x5c   :  { %1589 = vmatpush.bf16.msra.mxu1 %v21022_v15  ;;  %1558 = vmatmul.bf16.vlgmr.msrb.gmra.mxu2 %v678_v20  ;;  %v21050_v15 = vld [vmem:[#allocation2 + $0x758] sm:$0xff]  ;;  %v21057_v20 = vld [vmem:[#allocation2 + $0x790] sm:$0xff] }
  0x5d   :  { %1602 = vmatpush.bf16.msra.mxu2 %v21030_v16  ;;  %1571 = vmatmul.bf16.vlgmr.msrb.gmra.mxu3 %v679_v26  ;;  %v21058_v16 = vld [vmem:[#allocation2 + $0x798] sm:$0xff] }
  0x5e   :  { %1615 = vmatpush.bf16.msra.mxu3 %v21038_v19  ;;  %v21049_v19 = vld [vmem:[#allocation2 + $0x750] sm:$0xff]  ;;  %v391_v26 = vld [vmem:[%s23011_s0 + $0x78] sm:$0xff] }
  0x5f   :  { %1577 = vmatpush.bf16.msra.mxu0 %v21013_v23  ;;  %v21048_v23 = vld [vmem:[#allocation2 + $0x748] sm:$0xff] }
  0x60   :  { %1590 = vmatpush.bf16.msra.mxu1 %v21021_v24  ;;  %v390_v24 = vld [vmem:[%s23011_s0 + $0x70] sm:$0xff] }
  0x61   :  { %1603 = vmatpush.bf16.msra.mxu2 %v21029_v25  ;;  %v21056_v25 = vld [vmem:[#allocation2 + $0x788] sm:$0xff] }
  0x62   :  { %1616 = vmatpush.bf16.msra.mxu3 %v21037_v27  ;;  %v21064_v27 = vld [vmem:[#allocation2 + $0x7c8] sm:$0xff] }
  0x63   :  { %1578 = vmatpush.bf16.msra.mxu0 %v21012_v28  ;;  %v21039_v28 = vld [vmem:[#allocation2 + $0x700] sm:$0xff] }
  0x64   :  { %1591 = vmatpush.bf16.msra.mxu1 %v21020_v29  ;;  %v668_v29 = vunpack.c.l.b16 %v390_v24 }
  0x65   :  { %1604 = vmatpush.bf16.msra.mxu2 %v21028_v30  ;;  %v21047_v30 = vld [vmem:[#allocation2 + $0x740] sm:$0xff] }
  0x66   :  { %1617 = vmatpush.bf16.msra.mxu3 %v21036_v31  ;;  %v20822_v31 = vld [vmem:[#allocation2 + $0x38] sm:$0xff] }
  0x67   :  { %1579 = vmatpush.bf16.msra.mxu0 %v21011_v32  ;;  %v670_v32 = vunpack.c.l.b16 %v391_v26 }
  0x68   :  { %1592 = vmatpush.bf16.msra.mxu1 %v21019_v33  ;;  %v669_v33 = vunpack.c.h.b16 %v390_v24  ;;  %v20869_v24 = vld [vmem:[#allocation2 + $0x1b0] sm:$0xff] }
  0x69   :  { %1605 = vmatpush.bf16.msra.mxu2 %v21027_v34  ;;  %v21055_v34 = vld [vmem:[#allocation2 + $0x780] sm:$0xff] }
  0x6a   :  { %1618 = vmatpush.bf16.msra.mxu3 %v21035_v35  ;;  %v20830_v35 = vld [vmem:[#allocation2 + $0x78] sm:$0xff] }
  0x6b   :  { %1580 = vmatpush.bf16.msra.mxu0 %v21010_v36  ;;  %v671_v36 = vunpack.c.h.b16 %v391_v26  ;;  %v20852_v26 = vld [vmem:[#allocation2 + $0x128] sm:$0xff] }
  0x6c   :  { %1593 = vmatpush.bf16.msra.mxu1 %v21018_v37  ;;  %v20838_v37 = vld [vmem:[#allocation2 + $0xb8] sm:$0xff] }
  0x6d   :  { %1606 = vmatpush.bf16.msra.mxu2 %v21026_v38  ;;  %v21063_v38 = vld [vmem:[#allocation2 + $0x7c0] sm:$0xff] }
  0x6e   :  { %1619 = vmatpush.bf16.msra.mxu3 %v21034_v39  ;;  %v684_v39 = vpack.c.b16 %v668_v29, %v668_v29  ;;  %v20876_v29 = vld [vmem:[#allocation2 + $0x1e8] sm:$0xff] }
  0x6f   :  { %1581 = vmatpush.bf16.msra.mxu0 %v21009_v40  ;;  %v20846_v40 = vld [vmem:[#allocation2 + $0xf8] sm:$0xff] }
  0x70   :  { %1594 = vmatpush.bf16.msra.mxu1 %v21017_v41  ;;  %v686_v41 = vpack.c.b16 %v670_v32, %v670_v32  ;;  %v20859_v32 = vld [vmem:[#allocation2 + $0x160] sm:$0xff] }
  0x71   :  { %1607 = vmatpush.bf16.msra.mxu2 %v21025_v42  ;;  %v685_v42 = vpack.c.b16 %v669_v33, %v669_v33  ;;  %v20867_v33 = vld [vmem:[#allocation2 + $0x1a0] sm:$0xff] }
  0x72   :  { %1620 = vmatpush.bf16.msra.mxu3 %v21033_v43  ;;  %v687_v43 = vpack.c.b16 %v671_v36, %v671_v36 }
  0x73   :  { %1582 = vmatpush.bf16.msra.mxu0 %v21008_v44  ;;  %v20821_v44 = vld [vmem:[#allocation2 + $0x30] sm:$0xff] }
  0x74   :  { %1595 = vmatpush.bf16.msra.mxu1 %v21016_v45  ;;  %v20829_v45 = vld [vmem:[#allocation2 + $0x70] sm:$0xff] }
  0x75   :  { %1608 = vmatpush.bf16.msra.mxu2 %v21024_v47  ;;  %v20845_v47 = vld [vmem:[#allocation2 + $0xf0] sm:$0xff] }
  0x76   :  { %1621 = vmatpush.bf16.msra.mxu3 %v21032_v49  ;;  %v20828_v49 = vld [vmem:[#allocation2 + $0x68] sm:$0xff] }
  0x77   :  { %1583 = vmatpush.bf16.msra.mxu0 %v21007_v51  ;;  %v20844_v51 = vld [vmem:[#allocation2 + $0xe8] sm:$0xff] }
  0x78   :  { %1596 = vmatpush.bf16.msra.mxu1 %v21015_v52  ;;  %v20819_v52 = vld [vmem:[#allocation2 + $0x20] sm:$0xff] }
  0x79   :  { %1609 = vmatpush.bf16.msra.mxu2 %v21023_v54  ;;  %v20835_v54 = vld [vmem:[#allocation2 + $0xa0] sm:$0xff] }
  0x7a   :  { %1622 = vmatpush.bf16.msra.mxu3 %v21031_v60  ;;  %1584 = vmatmul.bf16.vlgmr.msra.gmra.mxu0 %v680_v61  ;;  %v20817_v60 = vld [vmem:[#allocation2 + $0x10] sm:$0xff] }
  0x7b   :  { %1628 = vmatpush.bf16.msrb.mxu0 %v21046_v55  ;;  %1597 = vmatmul.bf16.vlgmr.msra.gmra.mxu1 %v681_v0  ;;  %v20843_v55 = vld [vmem:[#allocation2 + $0xe0] sm:$0xff]  ;;  %v20825_v61 = vld [vmem:[#allocation2 + $0x50] sm:$0xff]  ;;  %v20816_v0 = vld [vmem:[#allocation2 + $0x8] sm:$0xff] }
  0x7c   :  { %1641 = vmatpush.bf16.msrb.mxu1 %v21054_v57  ;;  %1610 = vmatmul.bf16.vlgmr.msra.gmra.mxu2 %v682_v62  ;;  %v20826_v57 = vld [vmem:[#allocation2 + $0x58] sm:$0xff]  ;;  %v20833_v62 = vld [vmem:[#allocation2 + $0x90] sm:$0xff] }
  0x7d   :  { %1654 = vmatpush.bf16.msrb.mxu2 %v21062_v58  ;;  %1623 = vmatmul.bf16.vlgmr.msra.gmra.mxu3 %v683_v2  ;;  %v20834_v58 = vld [vmem:[#allocation2 + $0x98] sm:$0xff]  ;;  %v20832_v2 = vld [vmem:[#allocation2 + $0x88] sm:$0xff] }
  0x7e   :  { %1667 = vmatpush.bf16.msrb.mxu3 %v21070_v63  ;;  %v20841_v63 = vld [vmem:[#allocation2 + $0xd0] sm:$0xff] }
  0x7f   :  { %1629 = vmatpush.bf16.msrb.mxu0 %v21045_v1  ;;  %v20824_v1 = vld [vmem:[#allocation2 + $0x48] sm:$0xff] }
  0x80   :  { %1642 = vmatpush.bf16.msrb.mxu1 %v21053_v3  ;;  %v120_v3 = vld [vmem:[%s23011_s0] sm:$0xff] }
  0x81   :  { %1655 = vmatpush.bf16.msrb.mxu2 %v21061_v4  ;;  %v121_v4 = vld [vmem:[%s23011_s0 + $0x8] sm:$0xff] }
  0x82   :  { %1668 = vmatpush.bf16.msrb.mxu3 %v21069_v5  ;;  %v20840_v5 = vld [vmem:[#allocation2 + $0xc8] sm:$0xff] }
  0x83   :  { %1630 = vmatpush.bf16.msrb.mxu0 %v21044_v6  ;;  %v20815_v6 = vld [vmem:[#allocation2] sm:$0xff] }
  0x84   :  { %1643 = vmatpush.bf16.msrb.mxu1 %v21052_v7  ;;  %v1688_v7 = vunpack.c.l.b16 %v120_v3 }
  0x85   :  { %1656 = vmatpush.bf16.msrb.mxu2 %v21060_v8  ;;  %v1690_v8 = vunpack.c.l.b16 %v121_v4 }
  0x86   :  { %1669 = vmatpush.bf16.msrb.mxu3 %v21068_v9  ;;  %v20823_v9 = vld [vmem:[#allocation2 + $0x40] sm:$0xff] }
  0x87   :  { %1631 = vmatpush.bf16.msrb.mxu0 %v21043_v10  ;;  %v20831_v10 = vld [vmem:[#allocation2 + $0x80] sm:$0xff] }
  0x88   :  { %1644 = vmatpush.bf16.msrb.mxu1 %v21051_v11  ;;  %v1689_v11 = vunpack.c.h.b16 %v120_v3 }
  0x89   :  { %1657 = vmatpush.bf16.msrb.mxu2 %v21059_v12  ;;  %v20854_v12 = vld [vmem:[#allocation2 + $0x138] sm:$0xff] }
  0x8a   :  { %1670 = vmatpush.bf16.msrb.mxu3 %v21067_v13  ;;  %v20862_v13 = vld [vmem:[#allocation2 + $0x178] sm:$0xff] }
  0x8b   :  { %1632 = vmatpush.bf16.msrb.mxu0 %v21042_v14  ;;  %v1691_v14 = vunpack.c.h.b16 %v121_v4  ;;  %v20902_v4 = vld [vmem:[#allocation2 + $0x2b8] sm:$0xff] }
  0x8c   :  { %1645 = vmatpush.bf16.msrb.mxu1 %v21050_v15  ;;  %v20870_v15 = vld [vmem:[#allocation2 + $0x1b8] sm:$0xff] }
  0x8d   :  { %1658 = vmatpush.bf16.msrb.mxu2 %v21058_v16  ;;  %v20839_v16 = vld [vmem:[#allocation2 + $0xc0] sm:$0xff] }
  0x8e   :  { %1671 = vmatpush.bf16.msrb.mxu3 %v21066_v17  ;;  %v1704_v17 = vpack.c.b16 %v1688_v7, %v1688_v7 }
  0x8f   :  { %1633 = vmatpush.bf16.msrb.mxu0 %v21041_v18  ;;  %v1706_v18 = vpack.c.b16 %v1690_v8, %v1690_v8  ;;  %v20910_v8 = vld [vmem:[#allocation2 + $0x2f8] sm:$0xff] }
  0x90   :  { %1646 = vmatpush.bf16.msrb.mxu1 %v21049_v19  ;;  %v20878_v19 = vld [vmem:[#allocation2 + $0x1f8] sm:$0xff] }
  0x91   :  { %1659 = vmatpush.bf16.msrb.mxu2 %v21057_v20  ;;  %v1705_v20 = vpack.c.b16 %v1689_v11, %v1689_v11  ;;  %v20885_v11 = vld [vmem:[#allocation2 + $0x230] sm:$0xff] }
  0x92   :  { %1672 = vmatpush.bf16.msrb.mxu3 %v21065_v21  ;;  %v1707_v21 = vpack.c.b16 %v1691_v14, %v1691_v14  ;;  %v20909_v14 = vld [vmem:[#allocation2 + $0x2f0] sm:$0xff] }
  0x93   :  { %1634 = vmatpush.bf16.msrb.mxu0 %v21040_v22  ;;  %v20853_v22 = vld [vmem:[#allocation2 + $0x130] sm:$0xff] }
  0x94   :  { %1647 = vmatpush.bf16.msrb.mxu1 %v21048_v23  ;;  %v20861_v23 = vld [vmem:[#allocation2 + $0x170] sm:$0xff] }
  0x95   :  { %1660 = vmatpush.bf16.msrb.mxu2 %v21056_v25  ;;  %v20877_v25 = vld [vmem:[#allocation2 + $0x1f0] sm:$0xff] }
  0x96   :  { %1673 = vmatpush.bf16.msrb.mxu3 %v21064_v27  ;;  %v20860_v27 = vld [vmem:[#allocation2 + $0x168] sm:$0xff] }
  0x97   :  { %1635 = vmatpush.bf16.msrb.mxu0 %v21039_v28  ;;  %v20868_v28 = vld [vmem:[#allocation2 + $0x1a8] sm:$0xff] }
  0x98   :  { %1648 = vmatpush.bf16.msrb.mxu1 %v21047_v30  ;;  %v20851_v30 = vld [vmem:[#allocation2 + $0x120] sm:$0xff] }
  0x99   :  { %1661 = vmatpush.bf16.msrb.mxu2 %v21055_v34 }
  0x9a   :  { %1674 = vmatpush.bf16.msrb.mxu3 %v21063_v38  ;;  %1636 = vmatmul.bf16.vlgmr.msrb.gmra.mxu0 %v684_v39  ;;  %v20858_v38 = vld [vmem:[#allocation2 + $0x158] sm:$0xff] }
  0x9b   :  { %2504 = vmatpush.bf16.msra.mxu0 %v20822_v31  ;;  %1649 = vmatmul.bf16.vlgmr.msrb.gmra.mxu1 %v685_v42  ;;  %v20866_v39 = vld [vmem:[#allocation2 + $0x198] sm:$0xff]  ;;  %v20849_v42 = vld [vmem:[#allocation2 + $0x110] sm:$0xff] }
  0x9c   :  { %2517 = vmatpush.bf16.msra.mxu1 %v20830_v35  ;;  %1662 = vmatmul.bf16.vlgmr.msrb.gmra.mxu2 %v686_v41  ;;  %v20875_v35 = vld [vmem:[#allocation2 + $0x1e0] sm:$0xff] }
  0x9d   :  { %2530 = vmatpush.bf16.msra.mxu2 %v20838_v37  ;;  %1675 = vmatmul.bf16.vlgmr.msrb.gmra.mxu3 %v687_v43  ;;  %v20850_v37 = vld [vmem:[#allocation2 + $0x118] sm:$0xff] }
  0x9e   :  { %2543 = vmatpush.bf16.msra.mxu3 %v20846_v40  ;;  %v20874_v40 = vld [vmem:[#allocation2 + $0x1d8] sm:$0xff] }
  0x9f   :  { %2505 = vmatpush.bf16.msra.mxu0 %v20821_v44 }
  0xa0   :  { %2518 = vmatpush.bf16.msra.mxu1 %v20829_v45  ;;  %v20857_v45 = vld [vmem:[#allocation2 + $0x150] sm:$0xff] }
  0xa1   :  { %2531 = vmatpush.bf16.msra.mxu2 %v20837_v46  ;;  %v20865_v46 = vld [vmem:[#allocation2 + $0x190] sm:$0xff] }
  0xa2   :  { %2544 = vmatpush.bf16.msra.mxu3 %v20845_v47 }
  0xa3   :  { %2506 = vmatpush.bf16.msra.mxu0 %v20820_v48 }
  0xa4   :  { %2519 = vmatpush.bf16.msra.mxu1 %v20828_v49  ;;  %v20873_v49 = vld [vmem:[#allocation2 + $0x1d0] sm:$0xff] }
  0xa5   :  { %2532 = vmatpush.bf16.msra.mxu2 %v20836_v50 }
  0xa6   :  { %2545 = vmatpush.bf16.msra.mxu3 %v20844_v51  ;;  %v20848_v51 = vld [vmem:[#allocation2 + $0x108] sm:$0xff] }
  0xa7   :  { %2507 = vmatpush.bf16.msra.mxu0 %v20819_v52  ;;  %v20856_v52 = vld [vmem:[#allocation2 + $0x148] sm:$0xff] }
  0xa8   :  { %2520 = vmatpush.bf16.msra.mxu1 %v20827_v53  ;;  %v20864_v53 = vld [vmem:[#allocation2 + $0x188] sm:$0xff] }
  0xa9   :  { %2533 = vmatpush.bf16.msra.mxu2 %v20835_v54  ;;  %v122_v54 = vld [vmem:[%s23011_s0 + $0x10] sm:$0xff] }
  0xaa   :  { %2546 = vmatpush.bf16.msra.mxu3 %v20843_v55  ;;  %v123_v55 = vld [vmem:[%s23011_s0 + $0x18] sm:$0xff] }
  0xab   :  { %2508 = vmatpush.bf16.msra.mxu0 %v20818_v56  ;;  %v20872_v56 = vld [vmem:[#allocation2 + $0x1c8] sm:$0xff] }
  0xac   :  { %2521 = vmatpush.bf16.msra.mxu1 %v20826_v57 }
  0xad   :  { %2534 = vmatpush.bf16.msra.mxu2 %v20834_v58  ;;  %v20847_v58 = vld [vmem:[#allocation2 + $0x100] sm:$0xff] }
  0xae   :  { %2547 = vmatpush.bf16.msra.mxu3 %v20842_v59  ;;  %v1692_v59 = vunpack.c.l.b16 %v122_v54 }
  0xaf   :  { %2509 = vmatpush.bf16.msra.mxu0 %v20817_v60  ;;  %v1694_v60 = vunpack.c.l.b16 %v123_v55 }
  0xb0   :  { %2522 = vmatpush.bf16.msra.mxu1 %v20825_v61  ;;  %v20855_v61 = vld [vmem:[#allocation2 + $0x140] sm:$0xff] }
  0xb1   :  { %2535 = vmatpush.bf16.msra.mxu2 %v20833_v62  ;;  %v20863_v62 = vld [vmem:[#allocation2 + $0x180] sm:$0xff]  ;;  %v1710_v7 = vpack.c.b16 %v1694_v60, %v1694_v60 }
  0xb2   :  { %2548 = vmatpush.bf16.msra.mxu3 %v20841_v63  ;;  %v1693_v63 = vunpack.c.h.b16 %v122_v54 }
  0xb3   :  { %2510 = vmatpush.bf16.msra.mxu0 %v20816_v0  ;;  %v20886_v0 = vld [vmem:[#allocation2 + $0x238] sm:$0xff] }
  0xb4   :  { %2523 = vmatpush.bf16.msra.mxu1 %v20824_v1  ;;  %v20894_v1 = vld [vmem:[#allocation2 + $0x278] sm:$0xff] }
  0xb5   :  { %2536 = vmatpush.bf16.msra.mxu2 %v20832_v2  ;;  %v1695_v2 = vunpack.c.h.b16 %v123_v55  ;;  %v20918_v55 = vld [vmem:[#allocation2 + $0x338] sm:$0xff] }
  0xb6   :  { %2549 = vmatpush.bf16.msra.mxu3 %v20840_v5  ;;  %v20871_v5 = vld [vmem:[#allocation2 + $0x1c0] sm:$0xff] }
  0xb7   :  { %2511 = vmatpush.bf16.msra.mxu0 %v20815_v6  ;;  %v1481_v31 = vpop.f32.mrf.mxu0  ;;  %v1708_v6 = vpack.c.b16 %v1692_v59, %v1692_v59  ;;  %v20903_v59 = vld [vmem:[#allocation2 + $0x2c0] sm:$0xff] }
  0xb8   :  { %2524 = vmatpush.bf16.msra.mxu1 %v20823_v9  ;;  %v1494_v34 = vpop.f32.mrf.mxu1  ;;  %v1709_v9 = vpack.c.b16 %v1693_v63, %v1693_v63 }
  0xb9   :  { %2537 = vmatpush.bf16.msra.mxu2 %v20831_v10  ;;  %v1495_v36 = vadd.f32 %v1494_v34, %v1481_v31  ;;  %v1711_v10 = vpack.c.b16 %v1695_v2, %v1695_v2  ;;  %v20906_v31 = vld [vmem:[#allocation2 + $0x2d8] sm:$0xff]  ;;  %v20889_v34 = vld [vmem:[#allocation2 + $0x250] sm:$0xff] }
  0xba   :  { %2550 = vmatpush.bf16.msra.mxu3 %v20839_v16  ;;  %2512 = vmatmul.bf16.vlgmr.msra.gmra.mxu0 %v1704_v17  ;;  %v20892_v16 = vld [vmem:[#allocation2 + $0x268] sm:$0xff]  ;;  %v20925_v2 = vld [vmem:[#allocation2 + $0x370] sm:$0xff] }
  0xbb   :  { %2556 = vmatpush.bf16.msrb.mxu0 %v20854_v12  ;;  %2525 = vmatmul.bf16.vlgmr.msra.gmra.mxu1 %v1705_v20  ;;  %v20893_v12 = vld [vmem:[#allocation2 + $0x270] sm:$0xff]  ;;  %v20900_v17 = vld [vmem:[#allocation2 + $0x2a8] sm:$0xff]  ;;  %v20891_v20 = vld [vmem:[#allocation2 + $0x260] sm:$0xff] }
  0xbc   :  { %2569 = vmatpush.bf16.msrb.mxu1 %v20862_v13  ;;  %2538 = vmatmul.bf16.vlgmr.msra.gmra.mxu2 %v1706_v18  ;;  %v20901_v13 = vld [vmem:[#allocation2 + $0x2b0] sm:$0xff]  ;;  %v20908_v18 = vld [vmem:[#allocation2 + $0x2e8] sm:$0xff] }
  0xbd   :  { %2582 = vmatpush.bf16.msrb.mxu2 %v20870_v15  ;;  %2551 = vmatmul.bf16.vlgmr.msra.gmra.mxu3 %v1707_v21  ;;  %v20884_v15 = vld [vmem:[#allocation2 + $0x228] sm:$0xff]  ;;  %v20899_v21 = vld [vmem:[#allocation2 + $0x2a0] sm:$0xff] }
  0xbe   :  { %2595 = vmatpush.bf16.msrb.mxu3 %v20878_v19  ;;  %v20883_v19 = vld [vmem:[#allocation2 + $0x220] sm:$0xff] }
  0xbf   :  { %2557 = vmatpush.bf16.msrb.mxu0 %v20853_v22  ;;  %v1507_v41 = vpop.f32.mrf.mxu2  ;;  %v1483_v44 = vpop.f32.mrf.mxu0 }
  0xc0   :  { %2570 = vmatpush.bf16.msrb.mxu1 %v20861_v23  ;;  %v1508_v43 = vadd.f32 %v1507_v41, %v1495_v36  ;;  %v1520_v47 = vpop.f32.mrf.mxu3  ;;  %v1496_v48 = vpop.f32.mrf.mxu1  ;;  %v20880_v41 = vld [vmem:[#allocation2 + $0x208] sm:$0xff]  ;;  %v124_v44 = vld [vmem:[%s23011_s0 + $0x20] sm:$0xff] }
  0xc1   :  { %2583 = vmatpush.bf16.msrb.mxu2 %v20869_v24  ;;  %v20879_v48 = vld [vmem:[#allocation2 + $0x200] sm:$0xff] }
  0xc2   :  { %2596 = vmatpush.bf16.msrb.mxu3 %v20877_v25  ;;  %v22569_v50 = vadd.f32 %v1520_v47, %v1508_v43  ;;  %v20907_v25 = vld [vmem:[#allocation2 + $0x2e0] sm:$0xff]  ;;  %v20896_v43 = vld [vmem:[#allocation2 + $0x288] sm:$0xff] }
  0xc3   :  { %2558 = vmatpush.bf16.msrb.mxu0 %v20852_v26  ;;  %v20882_v26 = vld [vmem:[#allocation2 + $0x218] sm:$0xff]  ;;  %v20904_v47 = vld [vmem:[#allocation2 + $0x2c8] sm:$0xff] }
  0xc4   :  { %2571 = vmatpush.bf16.msrb.mxu1 %v20860_v27 }
  0xc5   :  { %2584 = vmatpush.bf16.msrb.mxu2 %v20868_v28  ;;  %v20890_v28 = vld [vmem:[#allocation2 + $0x258] sm:$0xff] }
  0xc6   :  { %2597 = vmatpush.bf16.msrb.mxu3 %v20876_v29  ;;  %v20898_v29 = vld [vmem:[#allocation2 + $0x298] sm:$0xff] }
  0xc7   :  { %2559 = vmatpush.bf16.msrb.mxu0 %v20851_v30  ;;  %v1509_v57 = vpop.f32.mrf.mxu2 }
  0xc8   :  { %2572 = vmatpush.bf16.msrb.mxu1 %v20859_v32  ;;  %v1522_v3 = vpop.f32.mrf.mxu3 }
  0xc9   :  { %2585 = vmatpush.bf16.msrb.mxu2 %v20867_v33  ;;  %v20881_v33 = vld [vmem:[#allocation2 + $0x210] sm:$0xff] }
  0xca   :  { %2598 = vmatpush.bf16.msrb.mxu3 %v20875_v35  ;;  %v20897_v35 = vld [vmem:[#allocation2 + $0x290] sm:$0xff] }
  0xcb   :  { %2560 = vmatpush.bf16.msrb.mxu0 %v20850_v37  ;;  %v20933_v3 = vld [vmem:[#allocation2 + $0x3b0] sm:$0xff] }
  0xcc   :  { %2573 = vmatpush.bf16.msrb.mxu1 %v20858_v38 }
  0xcd   :  { %2586 = vmatpush.bf16.msrb.mxu2 %v20866_v39 }
  0xce   :  { %2599 = vmatpush.bf16.msrb.mxu3 %v20874_v40  ;;  %v20905_v40 = vld [vmem:[#allocation2 + $0x2d0] sm:$0xff] }
  0xcf   :  { %2561 = vmatpush.bf16.msrb.mxu0 %v20849_v42  ;;  %v20888_v42 = vld [vmem:[#allocation2 + $0x248] sm:$0xff] }
  0xd0   :  { %2574 = vmatpush.bf16.msrb.mxu1 %v20857_v45  ;;  %v125_v45 = vld [vmem:[%s23011_s0 + $0x28] sm:$0xff] }
  0xd1   :  { %2587 = vmatpush.bf16.msrb.mxu2 %v20865_v46  ;;  %v1699_v57 = vunpack.c.h.b16 %v125_v45 }
  0xd2   :  { %2600 = vmatpush.bf16.msrb.mxu3 %v20873_v49  ;;  %v1696_v49 = vunpack.c.l.b16 %v124_v44 }
  0xd3   :  { %2562 = vmatpush.bf16.msrb.mxu0 %v20848_v51  ;;  %v20887_v51 = vld [vmem:[#allocation2 + $0x240] sm:$0xff] }
  0xd4   :  { %2575 = vmatpush.bf16.msrb.mxu1 %v20856_v52  ;;  %v20895_v52 = vld [vmem:[#allocation2 + $0x280] sm:$0xff]  ;;  %v1712_v60 = vpack.c.b16 %v1696_v49, %v1696_v49 }
  0xd5   :  { %2588 = vmatpush.bf16.msrb.mxu2 %v20864_v53  ;;  %v1697_v53 = vunpack.c.h.b16 %v124_v44  ;;  %v20935_v49 = vld [vmem:[#allocation2 + $0x3c0] sm:$0xff] }
  0xd6   :  { %2601 = vmatpush.bf16.msrb.mxu3 %v20872_v56  ;;  %v20926_v56 = vld [vmem:[#allocation2 + $0x378] sm:$0xff] }
  0xd7   :  { %2563 = vmatpush.bf16.msrb.mxu0 %v20847_v58  ;;  %v1533_v22 = vpop.f32.mrf.mxu0  ;;  %v20934_v58 = vld [vmem:[#allocation2 + $0x3b8] sm:$0xff]  ;;  %v1713_v63 = vpack.c.b16 %v1697_v53, %v1697_v53 }
  0xd8   :  { %2576 = vmatpush.bf16.msrb.mxu1 %v20855_v61  ;;  %v1546_v23 = vpop.f32.mrf.mxu1  ;;  %v1534_v24 = vadd.f32 %v1533_v22, %v22569_v50  ;;  %v1698_v50 = vunpack.c.l.b16 %v125_v45  ;;  %v20938_v22 = vld [vmem:[#allocation2 + $0x3d8] sm:$0xff] }
  0xd9   :  { %2589 = vmatpush.bf16.msrb.mxu2 %v20863_v62  ;;  %v20942_v62 = vld [vmem:[#allocation2 + $0x3f8] sm:$0xff] }
  0xda   :  { %2602 = vmatpush.bf16.msrb.mxu3 %v20871_v5  ;;  %2564 = vmatmul.bf16.vlgmr.msrb.gmra.mxu0 %v1708_v6  ;;  %v1547_v27 = vadd.f32 %v1546_v23, %v1534_v24  ;;  %v1714_v61 = vpack.c.b16 %v1698_v50, %v1698_v50  ;;  %v20916_v5 = vld [vmem:[#allocation2 + $0x328] sm:$0xff]  ;;  %v21078_v45 = vld [vmem:[#allocation2 + $0x838] sm:$0xff] }
  0xdb   :  { %2608 = vmatpush.bf16.msra.mxu0 %v20886_v0  ;;  %2577 = vmatmul.bf16.vlgmr.msrb.gmra.mxu1 %v1709_v9  ;;  %v1715_v0 = vpack.c.b16 %v1699_v57, %v1699_v57  ;;  %v20924_v6 = vld [vmem:[#allocation2 + $0x368] sm:$0xff]  ;;  %v21093_v57 = vld [vmem:[#allocation2 + $0x8b0] sm:$0xff] }
  0xdc   :  { %2621 = vmatpush.bf16.msra.mxu1 %v20894_v1  ;;  %2590 = vmatmul.bf16.vlgmr.msrb.gmra.mxu2 %v1710_v7  ;;  %v20917_v1 = vld [vmem:[#allocation2 + $0x330] sm:$0xff]  ;;  %v20932_v7 = vld [vmem:[#allocation2 + $0x3a8] sm:$0xff] }
  0xdd   :  { %2634 = vmatpush.bf16.msra.mxu2 %v20902_v4  ;;  %2603 = vmatmul.bf16.vlgmr.msrb.gmra.mxu3 %v1711_v10  ;;  %v20941_v4 = vld [vmem:[#allocation2 + $0x3f0] sm:$0xff] }
  0xde   :  { %2647 = vmatpush.bf16.msra.mxu3 %v20910_v8  ;;  %v20940_v8 = vld [vmem:[#allocation2 + $0x3e8] sm:$0xff] }
  0xdf   :  { %2609 = vmatpush.bf16.msra.mxu0 %v20885_v11  ;;  %v1559_v30 = vpop.f32.mrf.mxu2  ;;  %v1535_v37 = vpop.f32.mrf.mxu0  ;;  %v20915_v11 = vld [vmem:[#allocation2 + $0x320] sm:$0xff] }
  0xe0   :  { %2622 = vmatpush.bf16.msra.mxu1 %v20893_v12  ;;  %v1560_v32 = vadd.f32 %v1559_v30, %v1547_v27  ;;  %v1572_v36 = vpop.f32.mrf.mxu3  ;;  %v1548_v39 = vpop.f32.mrf.mxu1  ;;  %v20923_v12 = vld [vmem:[#allocation2 + $0x360] sm:$0xff]  ;;  %v20921_v27 = vld [vmem:[#allocation2 + $0x350] sm:$0xff]  ;;  %v20936_v37 = vld [vmem:[#allocation2 + $0x3c8] sm:$0xff] }
  0xe1   :  { %2635 = vmatpush.bf16.msra.mxu2 %v20901_v13  ;;  %v20931_v13 = vld [vmem:[#allocation2 + $0x3a0] sm:$0xff]  ;;  %v20937_v30 = vld [vmem:[#allocation2 + $0x3d0] sm:$0xff] }
  0xe2   :  { %2648 = vmatpush.bf16.msra.mxu3 %v20909_v14  ;;  %v1573_v38 = vadd.f32 %v1572_v36, %v1560_v32  ;;  %v20920_v32 = vld [vmem:[#allocation2 + $0x348] sm:$0xff] }
  0xe3   :  { %2610 = vmatpush.bf16.msra.mxu0 %v20884_v15 }
  0xe4   :  { %2623 = vmatpush.bf16.msra.mxu1 %v20892_v16  ;;  %v20939_v16 = vld [vmem:[#allocation2 + $0x3e0] sm:$0xff] }
  0xe5   :  { %2636 = vmatpush.bf16.msra.mxu2 %v20900_v17  ;;  %v20914_v17 = vld [vmem:[#allocation2 + $0x318] sm:$0xff] }
  0xe6   :  { %2649 = vmatpush.bf16.msra.mxu3 %v20908_v18  ;;  %v20922_v18 = vld [vmem:[#allocation2 + $0x358] sm:$0xff] }
  0xe7   :  { %2611 = vmatpush.bf16.msra.mxu0 %v20883_v19  ;;  %v1561_v46 = vpop.f32.mrf.mxu2  ;;  %v20930_v19 = vld [vmem:[#allocation2 + $0x398] sm:$0xff] }
  0xe8   :  { %2624 = vmatpush.bf16.msra.mxu1 %v20891_v20  ;;  %v1574_v54 = vpop.f32.mrf.mxu3  ;;  %v21086_v46 = vld [vmem:[#allocation2 + $0x878] sm:$0xff] }
  0xe9   :  { %2637 = vmatpush.bf16.msra.mxu2 %v20899_v21 }
  0xea   :  { %2650 = vmatpush.bf16.msra.mxu3 %v20907_v25  ;;  %v20913_v25 = vld [vmem:[#allocation2 + $0x310] sm:$0xff] }
  0xeb   :  { %2612 = vmatpush.bf16.msra.mxu0 %v20882_v26 }
  0xec   :  { %2625 = vmatpush.bf16.msra.mxu1 %v20890_v28  ;;  %v20929_v28 = vld [vmem:[#allocation2 + $0x390] sm:$0xff] }
  0xed   :  { %2638 = vmatpush.bf16.msra.mxu2 %v20898_v29 }
  0xee   :  { %2651 = vmatpush.bf16.msra.mxu3 %v20906_v31  ;;  %v20912_v31 = vld [vmem:[#allocation2 + $0x308] sm:$0xff] }
  0xef   :  { %2613 = vmatpush.bf16.msra.mxu0 %v20881_v33  ;;  %v20928_v33 = vld [vmem:[#allocation2 + $0x388] sm:$0xff] }
  0xf0   :  { %2626 = vmatpush.bf16.msra.mxu1 %v20889_v34  ;;  %v126_v34 = vld [vmem:[%s23011_s0 + $0x30] sm:$0xff] }
  0xf1   :  { %2639 = vmatpush.bf16.msra.mxu2 %v20897_v35  ;;  %v127_v35 = vld [vmem:[%s23011_s0 + $0x38] sm:$0xff]  ;;  %v1700_v39 = vunpack.c.l.b16 %v126_v34  ;;  %v1701_v44 = vunpack.c.h.b16 %v126_v34 }
  0xf2   :  { %2652 = vmatpush.bf16.msra.mxu3 %v20905_v40  ;;  %v1702_v40 = vunpack.c.l.b16 %v127_v35 }
  0xf3   :  { %2614 = vmatpush.bf16.msra.mxu0 %v20880_v41  ;;  %v1716_v50 = vpack.c.b16 %v1700_v39, %v1700_v39  ;;  %v1717_v53 = vpack.c.b16 %v1701_v44, %v1701_v44  ;;  %v21109_v44 = vld [vmem:[#allocation2 + $0x930] sm:$0xff] }
  0xf4   :  { %2627 = vmatpush.bf16.msra.mxu1 %v20888_v42  ;;  %v20919_v42 = vld [vmem:[#allocation2 + $0x340] sm:$0xff] }
  0xf5   :  { %2640 = vmatpush.bf16.msra.mxu2 %v20896_v43  ;;  %v20927_v43 = vld [vmem:[#allocation2 + $0x380] sm:$0xff] }
  0xf6   :  { %2653 = vmatpush.bf16.msra.mxu3 %v20904_v47  ;;  %v1703_v47 = vunpack.c.h.b16 %v127_v35  ;;  %v21110_v35 = vld [vmem:[#allocation2 + $0x938] sm:$0xff] }
  0xf7   :  { %2615 = vmatpush.bf16.msra.mxu0 %v20879_v48  ;;  %v1585_v9 = vpop.f32.mrf.mxu0  ;;  %v21094_v48 = vld [vmem:[#allocation2 + $0x8b8] sm:$0xff] }
  0xf8   :  { %2628 = vmatpush.bf16.msra.mxu1 %v20887_v51  ;;  %v1586_v10 = vadd.f32 %v1585_v9, %v1573_v38  ;;  %v1598_v14 = vpop.f32.mrf.mxu1  ;;  %v20911_v38 = vld [vmem:[#allocation2 + $0x300] sm:$0xff]  ;;  %v1718_v51 = vpack.c.b16 %v1702_v40, %v1702_v40  ;;  %v1719_v54 = vpack.c.b16 %v1703_v47, %v1703_v47  ;;  %v21090_v9 = vld [vmem:[#allocation2 + $0x898] sm:$0xff] }
  0xf9   :  { %2641 = vmatpush.bf16.msra.mxu2 %v20895_v52  ;;  %v21102_v52 = vld [vmem:[#allocation2 + $0x8f8] sm:$0xff] }
  0xfa   :  { %2654 = vmatpush.bf16.msra.mxu3 %v20903_v59  ;;  %2616 = vmatmul.bf16.vlgmr.msra.gmra.mxu0 %v1712_v60  ;;  %v1599_v15 = vadd.f32 %v1598_v14, %v1586_v10  ;;  %v21076_v59 = vld [vmem:[#allocation2 + $0x828] sm:$0xff]  ;;  %v21134_v40 = vld [vmem:[#allocation2 + $0x9f8] sm:$0xff] }
  0xfb   :  { %2660 = vmatpush.bf16.msrb.mxu0 %v20918_v55  ;;  %2629 = vmatmul.bf16.vlgmr.msra.gmra.mxu1 %v1713_v63  ;;  %v21077_v55 = vld [vmem:[#allocation2 + $0x830] sm:$0xff]  ;;  %v21084_v60 = vld [vmem:[#allocation2 + $0x868] sm:$0xff] }
  0xfc   :  { %2673 = vmatpush.bf16.msrb.mxu1 %v20926_v56  ;;  %2642 = vmatmul.bf16.vlgmr.msra.gmra.mxu2 %v1714_v61  ;;  %v21085_v56 = vld [vmem:[#allocation2 + $0x870] sm:$0xff]  ;;  %v21092_v61 = vld [vmem:[#allocation2 + $0x8a8] sm:$0xff] }
  0xfd   :  { %2686 = vmatpush.bf16.msrb.mxu2 %v20934_v58  ;;  %2655 = vmatmul.bf16.vlgmr.msra.gmra.mxu3 %v1715_v0  ;;  %v21101_v58 = vld [vmem:[#allocation2 + $0x8f0] sm:$0xff] }
  0xfe   :  { %2699 = vmatpush.bf16.msrb.mxu3 %v20942_v62  ;;  %v21100_v62 = vld [vmem:[#allocation2 + $0x8e8] sm:$0xff] }
  0xff   :  { %2661 = vmatpush.bf16.msrb.mxu0 %v20917_v1  ;;  %v1611_v20 = vpop.f32.mrf.mxu2  ;;  %v1587_v23 = vpop.f32.mrf.mxu0  ;;  %v21075_v1 = vld [vmem:[#allocation2 + $0x820] sm:$0xff] }
 0x100   :  { %2674 = vmatpush.bf16.msrb.mxu1 %v20925_v2  ;;  %v1612_v21 = vadd.f32 %v1611_v20, %v1599_v15  ;;  %v1624_v24 = vpop.f32.mrf.mxu3  ;;  %v1600_v29 = vpop.f32.mrf.mxu1  ;;  %v21073_v15 = vld [vmem:[#allocation2 + $0x810] sm:$0xff]  ;;  %v21088_v23 = vld [vmem:[#allocation2 + $0x888] sm:$0xff] }
 0x101   :  { %2687 = vmatpush.bf16.msrb.mxu2 %v20933_v3  ;;  %v21083_v3 = vld [vmem:[#allocation2 + $0x860] sm:$0xff]  ;;  %v21097_v20 = vld [vmem:[#allocation2 + $0x8d0] sm:$0xff] }
 0x102   :  { %2700 = vmatpush.bf16.msrb.mxu3 %v20941_v4  ;;  %v22584_v26 = vadd.f32 %v1624_v24, %v1612_v21  ;;  %v21091_v4 = vld [vmem:[#allocation2 + $0x8a0] sm:$0xff]  ;;  %v21072_v21 = vld [vmem:[#allocation2 + $0x808] sm:$0xff] }
 0x103   :  { %2662 = vmatpush.bf16.msrb.mxu0 %v20916_v5  ;;  %v2713_v24 = vld [vmem:[%s23011_s0 + $0x88] sm:$0xff]  ;;  %v21071_v29 = vld [vmem:[#allocation2 + $0x800] sm:$0xff] }
 0x104   :  { %2675 = vmatpush.bf16.msrb.mxu1 %v20924_v6  ;;  %v21099_v6 = vld [vmem:[#allocation2 + $0x8e0] sm:$0xff]  ;;  %v2987_v39 = vunpack.c.h.b16 %v2713_v24 }
 0x105   :  { %2688 = vmatpush.bf16.msrb.mxu2 %v20932_v7  ;;  %v21074_v7 = vld [vmem:[#allocation2 + $0x818] sm:$0xff] }
 0x106   :  { %2701 = vmatpush.bf16.msrb.mxu3 %v20940_v8  ;;  %v21082_v8 = vld [vmem:[#allocation2 + $0x858] sm:$0xff]  ;;  %v3003_v47 = vpack.c.b16 %v2987_v39, %v2987_v39  ;;  %v21140_v39 = vld [vmem:[#allocation2 + $0xa28] sm:$0xff] }
 0x107   :  { %2663 = vmatpush.bf16.msrb.mxu0 %v20915_v11  ;;  %v1613_v36 = vpop.f32.mrf.mxu2 }
 0x108   :  { %2676 = vmatpush.bf16.msrb.mxu1 %v20923_v12  ;;  %v1626_v41 = vpop.f32.mrf.mxu3  ;;  %v21098_v12 = vld [vmem:[#allocation2 + $0x8d8] sm:$0xff] }
 0x109   :  { %2689 = vmatpush.bf16.msrb.mxu2 %v20931_v13  ;;  %v21118_v36 = vld [vmem:[#allocation2 + $0x978] sm:$0xff] }
 0x10a   :  { %2702 = vmatpush.bf16.msrb.mxu3 %v20939_v16 }
 0x10b   :  { %2664 = vmatpush.bf16.msrb.mxu0 %v20914_v17 }
 0x10c   :  { %2677 = vmatpush.bf16.msrb.mxu1 %v20922_v18  ;;  %v21081_v18 = vld [vmem:[#allocation2 + $0x850] sm:$0xff] }
 0x10d   :  { %2690 = vmatpush.bf16.msrb.mxu2 %v20930_v19  ;;  %v21089_v19 = vld [vmem:[#allocation2 + $0x890] sm:$0xff] }
 0x10e   :  { %2703 = vmatpush.bf16.msrb.mxu3 %v20938_v22  ;;  %v21080_v22 = vld [vmem:[#allocation2 + $0x848] sm:$0xff] }
 0x10f   :  { %2665 = vmatpush.bf16.msrb.mxu0 %v20913_v25 }
 0x110   :  { %2678 = vmatpush.bf16.msrb.mxu1 %v20921_v27  ;;  %v21096_v27 = vld [vmem:[#allocation2 + $0x8c8] sm:$0xff] }
 0x111   :  { %2691 = vmatpush.bf16.msrb.mxu2 %v20929_v28 }
 0x112   :  { %2704 = vmatpush.bf16.msrb.mxu3 %v20937_v30  ;;  %v2986_v30 = vunpack.c.l.b16 %v2713_v24  ;;  %v21142_v24 = vld [vmem:[#allocation2 + $0xa38] sm:$0xff] }
 0x113   :  { %2666 = vmatpush.bf16.msrb.mxu0 %v20912_v31  ;;  %v21079_v31 = vld [vmem:[#allocation2 + $0x840] sm:$0xff] }
 0x114   :  { %2679 = vmatpush.bf16.msrb.mxu1 %v20920_v32  ;;  %v21087_v32 = vld [vmem:[#allocation2 + $0x880] sm:$0xff]  ;;  %v3002_v41 = vpack.c.b16 %v2986_v30, %v2986_v30 }
 0x115   :  { %2692 = vmatpush.bf16.msrb.mxu2 %v20928_v33 }
 0x116   :  { %2705 = vmatpush.bf16.msrb.mxu3 %v20936_v37  ;;  %v21126_v37 = vld [vmem:[#allocation2 + $0x9b8] sm:$0xff] }
 0x117   :  { %2667 = vmatpush.bf16.msrb.mxu0 %v20911_v38  ;;  %v1637_v63 = vpop.f32.mrf.mxu0  ;;  %v21095_v38 = vld [vmem:[#allocation2 + $0x8c0] sm:$0xff] }
 0x118   :  { %2680 = vmatpush.bf16.msrb.mxu1 %v20919_v42  ;;  %v1638_v0 = vadd.f32 %v1637_v63, %v22584_v26  ;;  %v1650_v2 = vpop.f32.mrf.mxu1  ;;  %v2712_v26 = vld [vmem:[%s23011_s0 + $0x80] sm:$0xff]  ;;  %v21122_v63 = vld [vmem:[#allocation2 + $0x998] sm:$0xff] }
 0x119   :  { %2693 = vmatpush.bf16.msrb.mxu2 %v20927_v43  ;;  %v2984_v33 = vunpack.c.l.b16 %v2712_v26  ;;  %v2985_v34 = vunpack.c.h.b16 %v2712_v26  ;;  %v21150_v26 = vld [vmem:[#allocation2 + $0xa78] sm:$0xff] }
 0x11a   :  { %2706 = vmatpush.bf16.msrb.mxu3 %v20935_v49  ;;  %2668 = vmatmul.bf16.vlgmr.msrb.gmra.mxu0 %v1716_v50  ;;  %v1651_v5 = vadd.f32 %v1650_v2, %v1638_v0  ;;  %v21108_v49 = vld [vmem:[#allocation2 + $0x928] sm:$0xff]  ;;  %v21130_v2 = vld [vmem:[#allocation2 + $0x9d8] sm:$0xff] }
 0x11b   :  { %3800 = vmatpush.bf16.msra.mxu0 %v21078_v45  ;;  %2681 = vmatmul.bf16.vlgmr.msrb.gmra.mxu1 %v1717_v53  ;;  %v3000_v42 = vpack.c.b16 %v2984_v33, %v2984_v33  ;;  %v3001_v43 = vpack.c.b16 %v2985_v34, %v2985_v34  ;;  %v21117_v45 = vld [vmem:[#allocation2 + $0x970] sm:$0xff]  ;;  %v21116_v50 = vld [vmem:[#allocation2 + $0x968] sm:$0xff] }
 0x11c   :  { %3813 = vmatpush.bf16.msra.mxu1 %v21086_v46  ;;  %2694 = vmatmul.bf16.vlgmr.msrb.gmra.mxu2 %v1718_v51  ;;  %v21125_v46 = vld [vmem:[#allocation2 + $0x9b0] sm:$0xff]  ;;  %v21124_v51 = vld [vmem:[#allocation2 + $0x9a8] sm:$0xff] }
 0x11d   :  { %3826 = vmatpush.bf16.msra.mxu2 %v21094_v48  ;;  %2707 = vmatmul.bf16.vlgmr.msrb.gmra.mxu3 %v1719_v54  ;;  %v21133_v48 = vld [vmem:[#allocation2 + $0x9f0] sm:$0xff] }
 0x11e   :  { %3839 = vmatpush.bf16.msra.mxu3 %v21102_v52  ;;  %v21132_v52 = vld [vmem:[#allocation2 + $0x9e8] sm:$0xff]  ;;  %v21141_v33 = vld [vmem:[#allocation2 + $0xa30] sm:$0xff] }
 0x11f   :  { %3801 = vmatpush.bf16.msra.mxu0 %v21077_v55  ;;  %v1663_v10 = vpop.f32.mrf.mxu2  ;;  %v1639_v14 = vpop.f32.mrf.mxu0  ;;  %v21107_v55 = vld [vmem:[#allocation2 + $0x920] sm:$0xff] }
 0x120   :  { %3814 = vmatpush.bf16.msra.mxu1 %v21085_v56  ;;  %v1664_v11 = vadd.f32 %v1663_v10, %v1651_v5  ;;  %v1676_v13 = vpop.f32.mrf.mxu3  ;;  %v1652_v16 = vpop.f32.mrf.mxu1  ;;  %v21115_v56 = vld [vmem:[#allocation2 + $0x960] sm:$0xff]  ;;  %v21129_v10 = vld [vmem:[#allocation2 + $0x9d0] sm:$0xff]  ;;  %v21120_v14 = vld [vmem:[#allocation2 + $0x988] sm:$0xff] }
 0x121   :  { %3827 = vmatpush.bf16.msra.mxu2 %v21093_v57 }
 0x122   :  { %3840 = vmatpush.bf16.msra.mxu3 %v21101_v58  ;;  %v22593_v17 = vadd.f32 %v1676_v13, %v1664_v11  ;;  %v21123_v58 = vld [vmem:[#allocation2 + $0x9a0] sm:$0xff]  ;;  %v21104_v11 = vld [vmem:[#allocation2 + $0x908] sm:$0xff]  ;;  %v2714_v13 = vld [vmem:[%s23011_s0 + $0x90] sm:$0xff] }
 0x123   :  { %3802 = vmatpush.bf16.msra.mxu0 %v21076_v59 }
 0x124   :  { %3815 = vmatpush.bf16.msra.mxu1 %v21084_v60  ;;  %v21131_v60 = vld [vmem:[#allocation2 + $0x9e0] sm:$0xff] }
 0x125   :  { %3828 = vmatpush.bf16.msra.mxu2 %v21092_v61  ;;  %v21106_v61 = vld [vmem:[#allocation2 + $0x918] sm:$0xff] }
 0x126   :  { %3841 = vmatpush.bf16.msra.mxu3 %v21100_v62  ;;  %v21114_v62 = vld [vmem:[#allocation2 + $0x958] sm:$0xff] }
 0x127   :  { %3803 = vmatpush.bf16.msra.mxu0 %v21075_v1  ;;  %v1665_v25 = vpop.f32.mrf.mxu2 }
 0x128   :  { %3816 = vmatpush.bf16.msra.mxu1 %v21083_v3  ;;  %v1678_v28 = vpop.f32.mrf.mxu3  ;;  %v2989_v25 = vunpack.c.h.b16 %v2714_v13 }
 0x129   :  { %3829 = vmatpush.bf16.msra.mxu2 %v21091_v4  ;;  %v21127_v28 = vld [vmem:[#allocation2 + $0x9c0] sm:$0xff] }
 0x12a   :  { %3842 = vmatpush.bf16.msra.mxu3 %v21099_v6  ;;  %v21105_v6 = vld [vmem:[#allocation2 + $0x910] sm:$0xff]  ;;  %v3005_v34 = vpack.c.b16 %v2989_v25, %v2989_v25 }
 0x12b   :  { %3804 = vmatpush.bf16.msra.mxu0 %v21074_v7  ;;  %v21113_v7 = vld [vmem:[#allocation2 + $0x950] sm:$0xff] }
 0x12c   :  { %3817 = vmatpush.bf16.msra.mxu1 %v21082_v8  ;;  %v21173_v25 = vld [vmem:[#allocation2 + $0xb30] sm:$0xff] }
 0x12d   :  { %3830 = vmatpush.bf16.msra.mxu2 %v21090_v9  ;;  %v21121_v9 = vld [vmem:[#allocation2 + $0x990] sm:$0xff] }
 0x12e   :  { %3843 = vmatpush.bf16.msra.mxu3 %v21098_v12  ;;  %v21112_v12 = vld [vmem:[#allocation2 + $0x948] sm:$0xff] }
 0x12f   :  { %3805 = vmatpush.bf16.msra.mxu0 %v21073_v15  ;;  %v2715_v15 = vld [vmem:[%s23011_s0 + $0x98] sm:$0xff] }
 0x130   :  { %3818 = vmatpush.bf16.msra.mxu1 %v21081_v18  ;;  %v2988_v18 = vunpack.c.l.b16 %v2714_v13  ;;  %v2991_v30 = vunpack.c.h.b16 %v2715_v15  ;;  %v21151_v13 = vld [vmem:[#allocation2 + $0xa80] sm:$0xff] }
 0x131   :  { %3831 = vmatpush.bf16.msra.mxu2 %v21089_v19 }
 0x132   :  { %3844 = vmatpush.bf16.msra.mxu3 %v21097_v20  ;;  %v21103_v20 = vld [vmem:[#allocation2 + $0x900] sm:$0xff] }
 0x133   :  { %3806 = vmatpush.bf16.msra.mxu0 %v21072_v21  ;;  %v21111_v21 = vld [vmem:[#allocation2 + $0x940] sm:$0xff] }
 0x134   :  { %3819 = vmatpush.bf16.msra.mxu1 %v21080_v22  ;;  %v2990_v22 = vunpack.c.l.b16 %v2715_v15  ;;  %v21174_v15 = vld [vmem:[#allocation2 + $0xb38] sm:$0xff] }
 0x135   :  { %3832 = vmatpush.bf16.msra.mxu2 %v21088_v23  ;;  %v21119_v23 = vld [vmem:[#allocation2 + $0x980] sm:$0xff] }
 0x136   :  { %3845 = vmatpush.bf16.msra.mxu3 %v21096_v27  ;;  %v21158_v27 = vld [vmem:[#allocation2 + $0xab8] sm:$0xff] }
 0x137   :  { %3807 = vmatpush.bf16.msra.mxu0 %v21071_v29  ;;  %v2513_v53 = vpop.f32.mrf.mxu0  ;;  %v3004_v29 = vpack.c.b16 %v2988_v18, %v2988_v18  ;;  %v21190_v18 = vld [vmem:[#allocation2 + $0xbb8] sm:$0xff] }
 0x138   :  { %3820 = vmatpush.bf16.msra.mxu1 %v21079_v31  ;;  %v2514_v54 = vadd.f32 %v2513_v53, %v22593_v17  ;;  %v2526_v57 = vpop.f32.mrf.mxu1  ;;  %v21128_v17 = vld [vmem:[#allocation2 + $0x9c8] sm:$0xff]  ;;  %v21166_v31 = vld [vmem:[#allocation2 + $0xaf8] sm:$0xff] }
 0x139   :  { %3833 = vmatpush.bf16.msra.mxu2 %v21087_v32  ;;  %v3006_v32 = vpack.c.b16 %v2990_v22, %v2990_v22  ;;  %v21154_v53 = vld [vmem:[#allocation2 + $0xa98] sm:$0xff] }
 0x13a   :  { %3846 = vmatpush.bf16.msra.mxu3 %v21095_v38  ;;  %3808 = vmatmul.bf16.vlgmr.msra.gmra.mxu0 %v3000_v42  ;;  %v2527_v59 = vadd.f32 %v2526_v57, %v2514_v54  ;;  %v21165_v38 = vld [vmem:[#allocation2 + $0xaf0] sm:$0xff]  ;;  %v21164_v42 = vld [vmem:[#allocation2 + $0xae8] sm:$0xff]  ;;  %v21198_v22 = vld [vmem:[#allocation2 + $0xbf8] sm:$0xff] }
 0x13b   :  { %3852 = vmatpush.bf16.msrb.mxu0 %v21110_v35  ;;  %3821 = vmatmul.bf16.vlgmr.msra.gmra.mxu1 %v3001_v43  ;;  %v21149_v35 = vld [vmem:[#allocation2 + $0xa70] sm:$0xff] }
 0x13c   :  { %3865 = vmatpush.bf16.msrb.mxu1 %v21118_v36  ;;  %3834 = vmatmul.bf16.vlgmr.msra.gmra.mxu2 %v3002_v41  ;;  %v21157_v36 = vld [vmem:[#allocation2 + $0xab0] sm:$0xff]  ;;  %v21156_v41 = vld [vmem:[#allocation2 + $0xaa8] sm:$0xff] }
 0x13d   :  { %3878 = vmatpush.bf16.msrb.mxu2 %v21126_v37  ;;  %3847 = vmatmul.bf16.vlgmr.msra.gmra.mxu3 %v3003_v47  ;;  %v3007_v37 = vpack.c.b16 %v2991_v30, %v2991_v30  ;;  %v21155_v47 = vld [vmem:[#allocation2 + $0xaa0] sm:$0xff]  ;;  %v21180_v30 = vld [vmem:[#allocation2 + $0xb68] sm:$0xff] }
 0x13e   :  { %3891 = vmatpush.bf16.msrb.mxu3 %v21134_v40  ;;  %v21148_v40 = vld [vmem:[#allocation2 + $0xa68] sm:$0xff] }
 0x13f   :  { %3853 = vmatpush.bf16.msrb.mxu0 %v21109_v44  ;;  %v2539_v0 = vpop.f32.mrf.mxu2  ;;  %v2515_v4 = vpop.f32.mrf.mxu0  ;;  %v21139_v44 = vld [vmem:[#allocation2 + $0xa20] sm:$0xff] }
 0x140   :  { %3866 = vmatpush.bf16.msrb.mxu1 %v21117_v45  ;;  %v2540_v1 = vadd.f32 %v2539_v0, %v2527_v59  ;;  %v2552_v3 = vpop.f32.mrf.mxu3  ;;  %v2528_v8 = vpop.f32.mrf.mxu1  ;;  %v21161_v0 = vld [vmem:[#allocation2 + $0xad0] sm:$0xff]  ;;  %v2716_v4 = vld [vmem:[%s23011_s0 + $0xa0] sm:$0xff] }
 0x141   :  { %3879 = vmatpush.bf16.msrb.mxu2 %v21125_v46  ;;  %v21147_v46 = vld [vmem:[#allocation2 + $0xa60] sm:$0xff] }
 0x142   :  { %3892 = vmatpush.bf16.msrb.mxu3 %v21133_v48  ;;  %v22602_v5 = vadd.f32 %v2552_v3, %v2540_v1  ;;  %v21136_v1 = vld [vmem:[#allocation2 + $0xa08] sm:$0xff]  ;;  %v21135_v8 = vld [vmem:[#allocation2 + $0xa00] sm:$0xff] }
 0x143   :  { %3854 = vmatpush.bf16.msrb.mxu0 %v21108_v49  ;;  %v21152_v3 = vld [vmem:[#allocation2 + $0xa88] sm:$0xff] }
 0x144   :  { %3867 = vmatpush.bf16.msrb.mxu1 %v21116_v50  ;;  %v21163_v50 = vld [vmem:[#allocation2 + $0xae0] sm:$0xff] }
 0x145   :  { %3880 = vmatpush.bf16.msrb.mxu2 %v21124_v51  ;;  %v21138_v51 = vld [vmem:[#allocation2 + $0xa18] sm:$0xff] }
 0x146   :  { %3893 = vmatpush.bf16.msrb.mxu3 %v21132_v52  ;;  %v21146_v52 = vld [vmem:[#allocation2 + $0xa58] sm:$0xff] }
 0x147   :  { %3855 = vmatpush.bf16.msrb.mxu0 %v21107_v55  ;;  %v2541_v16 = vpop.f32.mrf.mxu2 }
 0x148   :  { %3868 = vmatpush.bf16.msrb.mxu1 %v21115_v56  ;;  %v2554_v19 = vpop.f32.mrf.mxu3  ;;  %v21162_v56 = vld [vmem:[#allocation2 + $0xad8] sm:$0xff] }
 0x149   :  { %3881 = vmatpush.bf16.msrb.mxu2 %v21123_v58  ;;  %v21137_v58 = vld [vmem:[#allocation2 + $0xa10] sm:$0xff]  ;;  %v21182_v16 = vld [vmem:[#allocation2 + $0xb78] sm:$0xff]  ;;  %v21159_v19 = vld [vmem:[#allocation2 + $0xac0] sm:$0xff] }
 0x14a   :  { %3894 = vmatpush.bf16.msrb.mxu3 %v21131_v60 }
 0x14b   :  { %3856 = vmatpush.bf16.msrb.mxu0 %v21106_v61  ;;  %v21145_v61 = vld [vmem:[#allocation2 + $0xa50] sm:$0xff] }
 0x14c   :  { %3869 = vmatpush.bf16.msrb.mxu1 %v21114_v62  ;;  %v21153_v62 = vld [vmem:[#allocation2 + $0xa90] sm:$0xff] }
 0x14d   :  { %3882 = vmatpush.bf16.msrb.mxu2 %v21122_v63 }
 0x14e   :  { %3895 = vmatpush.bf16.msrb.mxu3 %v21130_v2  ;;  %v21144_v2 = vld [vmem:[#allocation2 + $0xa48] sm:$0xff] }
 0x14f   :  { %3857 = vmatpush.bf16.msrb.mxu0 %v21105_v6 }
 0x150   :  { %3870 = vmatpush.bf16.msrb.mxu1 %v21113_v7  ;;  %v21160_v7 = vld [vmem:[#allocation2 + $0xac8] sm:$0xff] }
 0x151   :  { %3883 = vmatpush.bf16.msrb.mxu2 %v21121_v9  ;;  %v2992_v9 = vunpack.c.l.b16 %v2716_v4 }
 0x152   :  { %3896 = vmatpush.bf16.msrb.mxu3 %v21129_v10 }
 0x153   :  { %3858 = vmatpush.bf16.msrb.mxu0 %v21104_v11 }
 0x154   :  { %3871 = vmatpush.bf16.msrb.mxu1 %v21112_v12  ;;  %v21143_v12 = vld [vmem:[#allocation2 + $0xa40] sm:$0xff] }
 0x155   :  { %3884 = vmatpush.bf16.msrb.mxu2 %v21120_v14  ;;  %v2993_v14 = vunpack.c.h.b16 %v2716_v4 }
 0x156   :  { %3897 = vmatpush.bf16.msrb.mxu3 %v21128_v17 }
 0x157   :  { %3859 = vmatpush.bf16.msrb.mxu0 %v21103_v20  ;;  %v2565_v43 = vpop.f32.mrf.mxu0  ;;  %v3008_v20 = vpack.c.b16 %v2992_v9, %v2992_v9  ;;  %v21191_v9 = vld [vmem:[#allocation2 + $0xbc0] sm:$0xff] }
 0x158   :  { %3872 = vmatpush.bf16.msrb.mxu1 %v21111_v21  ;;  %v2566_v45 = vadd.f32 %v2565_v43, %v22602_v5  ;;  %v2578_v48 = vpop.f32.mrf.mxu1  ;;  %v2717_v5 = vld [vmem:[%s23011_s0 + $0xa8] sm:$0xff]  ;;  %v21186_v43 = vld [vmem:[#allocation2 + $0xb98] sm:$0xff] }
 0x159   :  { %3885 = vmatpush.bf16.msrb.mxu2 %v21119_v23  ;;  %v2994_v10 = vunpack.c.l.b16 %v2717_v5  ;;  %v2995_v17 = vunpack.c.h.b16 %v2717_v5  ;;  %v3009_v23 = vpack.c.b16 %v2993_v14, %v2993_v14  ;;  %v21206_v5 = vld [vmem:[#allocation2 + $0xc38] sm:$0xff] }
 0x15a   :  { %3898 = vmatpush.bf16.msrb.mxu3 %v21127_v28  ;;  %3860 = vmatmul.bf16.vlgmr.msrb.gmra.mxu0 %v3004_v29  ;;  %v2579_v49 = vadd.f32 %v2578_v48, %v2566_v45  ;;  %v21197_v28 = vld [vmem:[#allocation2 + $0xbf0] sm:$0xff]  ;;  %v21172_v29 = vld [vmem:[#allocation2 + $0xb28] sm:$0xff] }
 0x15b   :  { %3904 = vmatpush.bf16.msra.mxu0 %v21142_v24  ;;  %3873 = vmatmul.bf16.vlgmr.msrb.gmra.mxu1 %v3005_v34  ;;  %v22619_v21 = vpack.c.b16 %v2994_v10, %v2994_v10  ;;  %v22621_v24 = vpack.c.b16 %v2995_v17, %v2995_v17  ;;  %v21171_v34 = vld [vmem:[#allocation2 + $0xb20] sm:$0xff]  ;;  %v21169_v48 = vld [vmem:[#allocation2 + $0xb10] sm:$0xff] }
 0x15c   :  { %3917 = vmatpush.bf16.msra.mxu1 %v21150_v26  ;;  %3886 = vmatmul.bf16.vlgmr.msrb.gmra.mxu2 %v3006_v32  ;;  %v21181_v26 = vld [vmem:[#allocation2 + $0xb70] sm:$0xff]  ;;  %v21196_v32 = vld [vmem:[#allocation2 + $0xbe8] sm:$0xff] }
 0x15d   :  { %3930 = vmatpush.bf16.msra.mxu2 %v21158_v27  ;;  %3899 = vmatmul.bf16.vlgmr.msrb.gmra.mxu3 %v3007_v37  ;;  %v21189_v27 = vld [vmem:[#allocation2 + $0xbb0] sm:$0xff]  ;;  %v21187_v37 = vld [vmem:[#allocation2 + $0xba0] sm:$0xff] }
 0x15e   :  { %3943 = vmatpush.bf16.msra.mxu3 %v21166_v31  ;;  %v21188_v31 = vld [vmem:[#allocation2 + $0xba8] sm:$0xff]  ;;  %v21221_v17 = vld [vmem:[#allocation2 + $0xcb0] sm:$0xff] }
 0x15f   :  { %3905 = vmatpush.bf16.msra.mxu0 %v21141_v33  ;;  %v2591_v54 = vpop.f32.mrf.mxu2  ;;  %v2567_v59 = vpop.f32.mrf.mxu0 }
 0x160   :  { %3918 = vmatpush.bf16.msra.mxu1 %v21149_v35  ;;  %v2592_v55 = vadd.f32 %v2591_v54, %v2579_v49  ;;  %v2604_v57 = vpop.f32.mrf.mxu3  ;;  %v2580_v63 = vpop.f32.mrf.mxu1  ;;  %v21193_v54 = vld [vmem:[#allocation2 + $0xbd0] sm:$0xff]  ;;  %v2719_v59 = vld [vmem:[%s23011_s0 + $0xb8] sm:$0xff] }
 0x161   :  { %3931 = vmatpush.bf16.msra.mxu2 %v21157_v36  ;;  %v21179_v36 = vld [vmem:[#allocation2 + $0xb60] sm:$0xff] }
 0x162   :  { %3944 = vmatpush.bf16.msra.mxu3 %v21165_v38  ;;  %v22611_v60 = vadd.f32 %v2604_v57, %v2592_v55  ;;  %v21168_v55 = vld [vmem:[#allocation2 + $0xb08] sm:$0xff] }
 0x163   :  { %3906 = vmatpush.bf16.msra.mxu0 %v21140_v39  ;;  %v21184_v57 = vld [vmem:[#allocation2 + $0xb88] sm:$0xff] }
 0x164   :  { %3919 = vmatpush.bf16.msra.mxu1 %v21148_v40  ;;  %v21195_v40 = vld [vmem:[#allocation2 + $0xbe0] sm:$0xff] }
 0x165   :  { %3932 = vmatpush.bf16.msra.mxu2 %v21156_v41  ;;  %v21170_v41 = vld [vmem:[#allocation2 + $0xb18] sm:$0xff] }
 0x166   :  { %3945 = vmatpush.bf16.msra.mxu3 %v21164_v42  ;;  %v21178_v42 = vld [vmem:[#allocation2 + $0xb58] sm:$0xff] }
 0x167   :  { %3907 = vmatpush.bf16.msra.mxu0 %v21139_v44  ;;  %v2593_v6 = vpop.f32.mrf.mxu2 }
 0x168   :  { %3920 = vmatpush.bf16.msra.mxu1 %v21147_v46  ;;  %v2606_v11 = vpop.f32.mrf.mxu3  ;;  %v21194_v46 = vld [vmem:[#allocation2 + $0xbd8] sm:$0xff] }
 0x169   :  { %3933 = vmatpush.bf16.msra.mxu2 %v21155_v47  ;;  %v21214_v6 = vld [vmem:[#allocation2 + $0xc78] sm:$0xff] }
 0x16a   :  { %3946 = vmatpush.bf16.msra.mxu3 %v21163_v50 }
 0x16b   :  { %3908 = vmatpush.bf16.msra.mxu0 %v21138_v51  ;;  %v21177_v51 = vld [vmem:[#allocation2 + $0xb50] sm:$0xff] }
 0x16c   :  { %3921 = vmatpush.bf16.msra.mxu1 %v21146_v52  ;;  %v21185_v52 = vld [vmem:[#allocation2 + $0xb90] sm:$0xff] }
 0x16d   :  { %3934 = vmatpush.bf16.msra.mxu2 %v21154_v53 }
 0x16e   :  { %3947 = vmatpush.bf16.msra.mxu3 %v21162_v56  ;;  %v21176_v56 = vld [vmem:[#allocation2 + $0xb48] sm:$0xff] }
 0x16f   :  { %3909 = vmatpush.bf16.msra.mxu0 %v21137_v58  ;;  %v2718_v58 = vld [vmem:[%s23011_s0 + $0xb0] sm:$0xff] }
 0x170   :  { %3922 = vmatpush.bf16.msra.mxu1 %v21145_v61  ;;  %v21192_v61 = vld [vmem:[#allocation2 + $0xbc8] sm:$0xff]  ;;  %v2996_v63 = vunpack.c.l.b16 %v2718_v58  ;;  %v2997_v4 = vunpack.c.h.b16 %v2718_v58  ;;  %v21215_v58 = vld [vmem:[#allocation2 + $0xc80] sm:$0xff] }
 0x171   :  { %3935 = vmatpush.bf16.msra.mxu2 %v21153_v62  ;;  %v21167_v62 = vld [vmem:[#allocation2 + $0xb00] sm:$0xff] }
 0x172   :  { %3948 = vmatpush.bf16.msra.mxu3 %v21161_v0  ;;  %v2998_v0 = vunpack.c.l.b16 %v2719_v59  ;;  %v22634_v10 = vpack.c.b16 %v2996_v63, %v2996_v63  ;;  %v21254_v63 = vld [vmem:[#allocation2 + $0xdb8] sm:$0xff] }
 0x173   :  { %3910 = vmatpush.bf16.msra.mxu0 %v21136_v1 }
 0x174   :  { %3923 = vmatpush.bf16.msra.mxu1 %v21144_v2  ;;  %v21175_v2 = vld [vmem:[#allocation2 + $0xb40] sm:$0xff]  ;;  %v22636_v11 = vpack.c.b16 %v2998_v0, %v2998_v0 }
 0x175   :  { %3936 = vmatpush.bf16.msra.mxu2 %v21152_v3  ;;  %v21183_v3 = vld [vmem:[#allocation2 + $0xb80] sm:$0xff] }
 0x176   :  { %3949 = vmatpush.bf16.msra.mxu3 %v21160_v7  ;;  %v2999_v7 = vunpack.c.h.b16 %v2719_v59  ;;  %v21223_v0 = vld [vmem:[#allocation2 + $0xcc0] sm:$0xff] }
 0x177   :  { %3911 = vmatpush.bf16.msra.mxu0 %v21135_v8  ;;  %v2617_v33 = vpop.f32.mrf.mxu0  ;;  %v21222_v8 = vld [vmem:[#allocation2 + $0xcb8] sm:$0xff] }
 0x178   :  { %3924 = vmatpush.bf16.msra.mxu1 %v21143_v12  ;;  %v2618_v35 = vadd.f32 %v2617_v33, %v22611_v60  ;;  %v2630_v38 = vpop.f32.mrf.mxu1  ;;  %v21230_v12 = vld [vmem:[#allocation2 + $0xcf8] sm:$0xff]  ;;  %v22640_v14 = vpack.c.b16 %v2999_v7, %v2999_v7  ;;  %v21245_v7 = vld [vmem:[#allocation2 + $0xd70] sm:$0xff] }
 0x179   :  { %3937 = vmatpush.bf16.msra.mxu2 %v21151_v13  ;;  %v22638_v13 = vpack.c.b16 %v2997_v4, %v2997_v4  ;;  %v21202_v33 = vld [vmem:[#allocation2 + $0xc18] sm:$0xff] }
 0x17a   :  { %3950 = vmatpush.bf16.msra.mxu3 %v21159_v19  ;;  %3912 = vmatmul.bf16.vlgmr.msra.gmra.mxu0 %v3008_v20  ;;  %v2631_v39 = vadd.f32 %v2630_v38, %v2618_v35  ;;  %v21204_v19 = vld [vmem:[#allocation2 + $0xc28] sm:$0xff]  ;;  %v21218_v35 = vld [vmem:[#allocation2 + $0xc98] sm:$0xff] }
 0x17b   :  { %3956 = vmatpush.bf16.msrb.mxu0 %v21174_v15  ;;  %3925 = vmatmul.bf16.vlgmr.msra.gmra.mxu1 %v3009_v23  ;;  %v21205_v15 = vld [vmem:[#allocation2 + $0xc30] sm:$0xff]  ;;  %v21212_v20 = vld [vmem:[#allocation2 + $0xc68] sm:$0xff]  ;;  %v21226_v38 = vld [vmem:[#allocation2 + $0xcd8] sm:$0xff] }
 0x17c   :  { %3969 = vmatpush.bf16.msrb.mxu1 %v21182_v16  ;;  %3938 = vmatmul.bf16.vlgmr.msra.gmra.mxu2 %v22619_v21  ;;  %v21213_v16 = vld [vmem:[#allocation2 + $0xc70] sm:$0xff]  ;;  %v21228_v23 = vld [vmem:[#allocation2 + $0xce8] sm:$0xff] }
 0x17d   :  { %3982 = vmatpush.bf16.msrb.mxu2 %v21190_v18  ;;  %3951 = vmatmul.bf16.vlgmr.msra.gmra.mxu3 %v22621_v24  ;;  %v21229_v18 = vld [vmem:[#allocation2 + $0xcf0] sm:$0xff] }
 0x17e   :  { %3995 = vmatpush.bf16.msrb.mxu3 %v21198_v22  ;;  %v21220_v22 = vld [vmem:[#allocation2 + $0xca8] sm:$0xff] }
 0x17f   :  { %3957 = vmatpush.bf16.msrb.mxu0 %v21173_v25  ;;  %v2643_v44 = vpop.f32.mrf.mxu2  ;;  %v2619_v49 = vpop.f32.mrf.mxu0 }
 0x180   :  { %3970 = vmatpush.bf16.msrb.mxu1 %v21181_v26  ;;  %v2644_v45 = vadd.f32 %v2643_v44, %v2631_v39  ;;  %v2656_v47 = vpop.f32.mrf.mxu3  ;;  %v2632_v53 = vpop.f32.mrf.mxu1  ;;  %v21203_v26 = vld [vmem:[#allocation2 + $0xc20] sm:$0xff]  ;;  %v21217_v44 = vld [vmem:[#allocation2 + $0xc90] sm:$0xff]  ;;  %v21216_v49 = vld [vmem:[#allocation2 + $0xc88] sm:$0xff] }
 0x181   :  { %3983 = vmatpush.bf16.msrb.mxu2 %v21189_v27  ;;  %v21224_v53 = vld [vmem:[#allocation2 + $0xcc8] sm:$0xff] }
 0x182   :  { %3996 = vmatpush.bf16.msrb.mxu3 %v21197_v28  ;;  %v22626_v50 = vadd.f32 %v2656_v47, %v2644_v45  ;;  %v21211_v28 = vld [vmem:[#allocation2 + $0xc60] sm:$0xff]  ;;  %v21200_v47 = vld [vmem:[#allocation2 + $0xc08] sm:$0xff] }
 0x183   :  { %3958 = vmatpush.bf16.msrb.mxu0 %v21172_v29  ;;  %v21219_v29 = vld [vmem:[#allocation2 + $0xca0] sm:$0xff] }
 0x184   :  { %3971 = vmatpush.bf16.msrb.mxu1 %v21180_v30 }
 0x185   :  { %3984 = vmatpush.bf16.msrb.mxu2 %v21188_v31 }
 0x186   :  { %3997 = vmatpush.bf16.msrb.mxu3 %v21196_v32  ;;  %v21227_v32 = vld [vmem:[#allocation2 + $0xce0] sm:$0xff] }
 0x187   :  { %3959 = vmatpush.bf16.msrb.mxu0 %v21171_v34  ;;  %v2645_v60 = vpop.f32.mrf.mxu2  ;;  %v21210_v34 = vld [vmem:[#allocation2 + $0xc58] sm:$0xff] }
 0x188   :  { %3972 = vmatpush.bf16.msrb.mxu1 %v21179_v36  ;;  %v2658_v1 = vpop.f32.mrf.mxu3 }
 0x189   :  { %3985 = vmatpush.bf16.msrb.mxu2 %v21187_v37 }
 0x18a   :  { %3998 = vmatpush.bf16.msrb.mxu3 %v21195_v40  ;;  %v21201_v40 = vld [vmem:[#allocation2 + $0xc10] sm:$0xff] }
 0x18b   :  { %3960 = vmatpush.bf16.msrb.mxu0 %v21170_v41 }
 0x18c   :  { %3973 = vmatpush.bf16.msrb.mxu1 %v21178_v42 }
 0x18d   :  { %3986 = vmatpush.bf16.msrb.mxu2 %v21186_v43  ;;  %v21209_v43 = vld [vmem:[#allocation2 + $0xc50] sm:$0xff] }
 0x18e   :  { %3999 = vmatpush.bf16.msrb.mxu3 %v21194_v46  ;;  %v21225_v46 = vld [vmem:[#allocation2 + $0xcd0] sm:$0xff] }
 0x18f   :  { %3961 = vmatpush.bf16.msrb.mxu0 %v21169_v48  ;;  %v21208_v48 = vld [vmem:[#allocation2 + $0xc48] sm:$0xff] }
 0x190   :  { %3974 = vmatpush.bf16.msrb.mxu1 %v21177_v51  ;;  %v4009_v51 = vld [vmem:[%s23011_s0 + $0xc0] sm:$0xff] }
 0x191   :  { %3987 = vmatpush.bf16.msrb.mxu2 %v21185_v52  ;;  %v4281_v59 = vunpack.c.l.b16 %v4009_v51  ;;  %v4282_v60 = vunpack.c.h.b16 %v4009_v51  ;;  %v21231_v51 = vld [vmem:[#allocation2 + $0xd00] sm:$0xff] }
 0x192   :  { %4000 = vmatpush.bf16.msrb.mxu3 %v21193_v54  ;;  %v21199_v54 = vld [vmem:[#allocation2 + $0xc00] sm:$0xff] }
 0x193   :  { %3962 = vmatpush.bf16.msrb.mxu0 %v21168_v55  ;;  %v4297_v4 = vpack.c.b16 %v4281_v59, %v4281_v59  ;;  %v21286_v59 = vld [vmem:[#allocation2 + $0xeb8] sm:$0xff] }
 0x194   :  { %3975 = vmatpush.bf16.msrb.mxu1 %v21176_v56 }
 0x195   :  { %3988 = vmatpush.bf16.msrb.mxu2 %v21184_v57  ;;  %v21207_v57 = vld [vmem:[#allocation2 + $0xc40] sm:$0xff] }
 0x196   :  { %4001 = vmatpush.bf16.msrb.mxu3 %v21192_v61  ;;  %v21238_v61 = vld [vmem:[#allocation2 + $0xd38] sm:$0xff] }
 0x197   :  { %3963 = vmatpush.bf16.msrb.mxu0 %v21167_v62  ;;  %v2669_v25 = vpop.f32.mrf.mxu0  ;;  %v21246_v62 = vld [vmem:[#allocation2 + $0xd78] sm:$0xff] }
 0x198   :  { %3976 = vmatpush.bf16.msrb.mxu1 %v21175_v2  ;;  %v2670_v27 = vadd.f32 %v2669_v25, %v22626_v50  ;;  %v2682_v30 = vpop.f32.mrf.mxu1  ;;  %v4010_v50 = vld [vmem:[%s23011_s0 + $0xc8] sm:$0xff]  ;;  %v21262_v2 = vld [vmem:[#allocation2 + $0xdf8] sm:$0xff] }
 0x199   :  { %3989 = vmatpush.bf16.msrb.mxu2 %v21183_v3  ;;  %v4283_v55 = vunpack.c.l.b16 %v4010_v50  ;;  %v4284_v1 = vunpack.c.h.b16 %v4010_v50 }
 0x19a   :  { %4002 = vmatpush.bf16.msrb.mxu3 %v21191_v9  ;;  %3964 = vmatmul.bf16.vlgmr.msrb.gmra.mxu0 %v22634_v10  ;;  %v2683_v31 = vadd.f32 %v2682_v30, %v2670_v27  ;;  %v21250_v30 = vld [vmem:[#allocation2 + $0xd98] sm:$0xff] }
 0x19b   :  { %5097 = vmatpush.bf16.msra.mxu0 %v21206_v5  ;;  %3977 = vmatmul.bf16.vlgmr.msrb.gmra.mxu1 %v22638_v13  ;;  %v4299_v3 = vpack.c.b16 %v4283_v55, %v4283_v55  ;;  %v4298_v5 = vpack.c.b16 %v4282_v60, %v4282_v60  ;;  %v4300_v9 = vpack.c.b16 %v4284_v1, %v4284_v1  ;;  %v21270_v55 = vld [vmem:[#allocation2 + $0xe38] sm:$0xff]  ;;  %v21255_v60 = vld [vmem:[#allocation2 + $0xdc0] sm:$0xff]  ;;  %v21269_v1 = vld [vmem:[#allocation2 + $0xe30] sm:$0xff] }
 0x19c   :  { %5110 = vmatpush.bf16.msra.mxu1 %v21214_v6  ;;  %3990 = vmatmul.bf16.vlgmr.msrb.gmra.mxu2 %v22636_v11  ;;  %v21237_v6 = vld [vmem:[#allocation2 + $0xd30] sm:$0xff] }
 0x19d   :  { %5123 = vmatpush.bf16.msra.mxu2 %v21222_v8  ;;  %4003 = vmatmul.bf16.vlgmr.msrb.gmra.mxu3 %v22640_v14  ;;  %v21253_v8 = vld [vmem:[#allocation2 + $0xdb0] sm:$0xff] }
 0x19e   :  { %5136 = vmatpush.bf16.msra.mxu3 %v21230_v12  ;;  %v21261_v12 = vld [vmem:[#allocation2 + $0xdf0] sm:$0xff] }
 0x19f   :  { %5098 = vmatpush.bf16.msra.mxu0 %v21205_v15  ;;  %v2695_v36 = vpop.f32.mrf.mxu2  ;;  %v2671_v41 = vpop.f32.mrf.mxu0  ;;  %v21236_v15 = vld [vmem:[#allocation2 + $0xd28] sm:$0xff] }
 0x1a0   :  { %5111 = vmatpush.bf16.msra.mxu1 %v21213_v16  ;;  %v2696_v37 = vadd.f32 %v2695_v36, %v2683_v31  ;;  %v2708_v39 = vpop.f32.mrf.mxu3  ;;  %v2684_v45 = vpop.f32.mrf.mxu1  ;;  %v21244_v16 = vld [vmem:[#allocation2 + $0xd68] sm:$0xff]  ;;  %v21258_v31 = vld [vmem:[#allocation2 + $0xdd8] sm:$0xff]  ;;  %v21249_v36 = vld [vmem:[#allocation2 + $0xd90] sm:$0xff] }
 0x1a1   :  { %5124 = vmatpush.bf16.msra.mxu2 %v21221_v17  ;;  %v21252_v17 = vld [vmem:[#allocation2 + $0xda8] sm:$0xff]  ;;  %v4011_v45 = vld [vmem:[%s23011_s0 + $0xd0] sm:$0xff] }
 0x1a2   :  { %5137 = vmatpush.bf16.msra.mxu3 %v21229_v18  ;;  %v22647_v42 = vadd.f32 %v2708_v39, %v2696_v37  ;;  %v21260_v18 = vld [vmem:[#allocation2 + $0xde8] sm:$0xff]  ;;  %v21257_v39 = vld [vmem:[#allocation2 + $0xdd0] sm:$0xff]  ;;  %v4285_v50 = vunpack.c.l.b16 %v4011_v45 }
 0x1a3   :  { %5099 = vmatpush.bf16.msra.mxu0 %v21204_v19  ;;  %v21235_v19 = vld [vmem:[#allocation2 + $0xd20] sm:$0xff] }
 0x1a4   :  { %5112 = vmatpush.bf16.msra.mxu1 %v21212_v20  ;;  %v21243_v20 = vld [vmem:[#allocation2 + $0xd60] sm:$0xff] }
 0x1a5   :  { %5125 = vmatpush.bf16.msra.mxu2 %v21220_v22  ;;  %v21251_v22 = vld [vmem:[#allocation2 + $0xda0] sm:$0xff] }
 0x1a6   :  { %5138 = vmatpush.bf16.msra.mxu3 %v21228_v23 }
 0x1a7   :  { %5100 = vmatpush.bf16.msra.mxu0 %v21203_v26  ;;  %v2697_v52 = vpop.f32.mrf.mxu2  ;;  %v21259_v26 = vld [vmem:[#allocation2 + $0xde0] sm:$0xff] }
 0x1a8   :  { %5113 = vmatpush.bf16.msra.mxu1 %v21211_v28  ;;  %v2710_v56 = vpop.f32.mrf.mxu3  ;;  %v21234_v28 = vld [vmem:[#allocation2 + $0xd18] sm:$0xff]  ;;  %v21239_v52 = vld [vmem:[#allocation2 + $0xd40] sm:$0xff] }
 0x1a9   :  { %5126 = vmatpush.bf16.msra.mxu2 %v21219_v29  ;;  %v21242_v29 = vld [vmem:[#allocation2 + $0xd58] sm:$0xff]  ;;  %v4286_v56 = vunpack.c.h.b16 %v4011_v45  ;;  %v21288_v45 = vld [vmem:[#allocation2 + $0xec8] sm:$0xff] }
 0x1aa   :  { %5139 = vmatpush.bf16.msra.mxu3 %v21227_v32 }
 0x1ab   :  { %5101 = vmatpush.bf16.msra.mxu0 %v21202_v33 }
 0x1ac   :  { %5114 = vmatpush.bf16.msra.mxu1 %v21210_v34  ;;  %v21233_v34 = vld [vmem:[#allocation2 + $0xd10] sm:$0xff] }
 0x1ad   :  { %5127 = vmatpush.bf16.msra.mxu2 %v21218_v35  ;;  %v21241_v35 = vld [vmem:[#allocation2 + $0xd50] sm:$0xff] }
 0x1ae   :  { %5140 = vmatpush.bf16.msra.mxu3 %v21226_v38 }
 0x1af   :  { %5102 = vmatpush.bf16.msra.mxu0 %v21201_v40 }
 0x1b0   :  { %5115 = vmatpush.bf16.msra.mxu1 %v21209_v43  ;;  %v21232_v43 = vld [vmem:[#allocation2 + $0xd08] sm:$0xff] }
 0x1b1   :  { %5128 = vmatpush.bf16.msra.mxu2 %v21217_v44  ;;  %v21240_v44 = vld [vmem:[#allocation2 + $0xd48] sm:$0xff] }
 0x1b2   :  { %5141 = vmatpush.bf16.msra.mxu3 %v21225_v46  ;;  %v21248_v46 = vld [vmem:[#allocation2 + $0xd88] sm:$0xff] }
 0x1b3   :  { %5103 = vmatpush.bf16.msra.mxu0 %v21200_v47  ;;  %v4012_v47 = vld [vmem:[%s23011_s0 + $0xd8] sm:$0xff] }
 0x1b4   :  { %5116 = vmatpush.bf16.msra.mxu1 %v21208_v48  ;;  %v21256_v48 = vld [vmem:[#allocation2 + $0xdc8] sm:$0xff] }
 0x1b5   :  { %5129 = vmatpush.bf16.msra.mxu2 %v21216_v49 }
 0x1b6   :  { %5142 = vmatpush.bf16.msra.mxu3 %v21224_v53  ;;  %v4287_v53 = vunpack.c.l.b16 %v4012_v47 }
 0x1b7   :  { %5104 = vmatpush.bf16.msra.mxu0 %v21199_v54  ;;  %v3809_v23 = vpop.f32.mrf.mxu0  ;;  %v21247_v54 = vld [vmem:[#allocation2 + $0xd80] sm:$0xff] }
 0x1b8   :  { %5117 = vmatpush.bf16.msra.mxu1 %v21207_v57  ;;  %v3822_v25 = vpop.f32.mrf.mxu1 }
 0x1b9   :  { %5130 = vmatpush.bf16.msra.mxu2 %v21215_v58  ;;  %v3823_v27 = vadd.f32 %v3822_v25, %v3809_v23  ;;  %v21278_v58 = vld [vmem:[#allocation2 + $0xe78] sm:$0xff] }
 0x1ba   :  { %5143 = vmatpush.bf16.msra.mxu3 %v21223_v0  ;;  %5105 = vmatmul.bf16.vlgmr.msra.gmra.mxu0 %v4297_v4  ;;  %v4303_v0 = vpack.c.b16 %v4287_v53, %v4287_v53  ;;  %v21285_v4 = vld [vmem:[#allocation2 + $0xeb0] sm:$0xff]  ;;  %v21266_v25 = vld [vmem:[#allocation2 + $0xe18] sm:$0xff] }
 0x1bb   :  { %5149 = vmatpush.bf16.msrb.mxu0 %v21238_v61  ;;  %5118 = vmatmul.bf16.vlgmr.msra.gmra.mxu1 %v4298_v5  ;;  %v4301_v61 = vpack.c.b16 %v4285_v50, %v4285_v50  ;;  %v21271_v50 = vld [vmem:[#allocation2 + $0xe40] sm:$0xff]  ;;  %v21302_v53 = vld [vmem:[#allocation2 + $0xf38] sm:$0xff] }
 0x1bc   :  { %5162 = vmatpush.bf16.msrb.mxu1 %v21246_v62  ;;  %5131 = vmatmul.bf16.vlgmr.msra.gmra.mxu2 %v4299_v3  ;;  %v4288_v62 = vunpack.c.h.b16 %v4012_v47  ;;  %v21277_v3 = vld [vmem:[#allocation2 + $0xe70] sm:$0xff]  ;;  %v21263_v47 = vld [vmem:[#allocation2 + $0xe00] sm:$0xff] }
 0x1bd   :  { %5175 = vmatpush.bf16.msrb.mxu2 %v21254_v63  ;;  %5144 = vmatmul.bf16.vlgmr.msra.gmra.mxu3 %v4300_v9  ;;  %v21294_v63 = vld [vmem:[#allocation2 + $0xef8] sm:$0xff]  ;;  %v21284_v9 = vld [vmem:[#allocation2 + $0xea8] sm:$0xff] }
 0x1be   :  { %5188 = vmatpush.bf16.msrb.mxu3 %v21262_v2  ;;  %v4302_v2 = vpack.c.b16 %v4286_v56, %v4286_v56  ;;  %v4304_v5 = vpack.c.b16 %v4288_v62, %v4288_v62 }
 0x1bf   :  { %5150 = vmatpush.bf16.msrb.mxu0 %v21237_v6  ;;  %v3835_v32 = vpop.f32.mrf.mxu2  ;;  %v3811_v38 = vpop.f32.mrf.mxu0  ;;  %v21293_v6 = vld [vmem:[#allocation2 + $0xef0] sm:$0xff] }
 0x1c0   :  { %5163 = vmatpush.bf16.msrb.mxu1 %v21245_v7  ;;  %v3836_v33 = vadd.f32 %v3835_v32, %v3823_v27  ;;  %v3848_v37 = vpop.f32.mrf.mxu3  ;;  %v3824_v41 = vpop.f32.mrf.mxu1  ;;  %v21268_v7 = vld [vmem:[#allocation2 + $0xe28] sm:$0xff]  ;;  %v21282_v27 = vld [vmem:[#allocation2 + $0xe98] sm:$0xff]  ;;  %v21289_v38 = vld [vmem:[#allocation2 + $0xed0] sm:$0xff] }
 0x1c1   :  { %5176 = vmatpush.bf16.msrb.mxu2 %v21253_v8  ;;  %v21276_v8 = vld [vmem:[#allocation2 + $0xe68] sm:$0xff] }
 0x1c2   :  { %5189 = vmatpush.bf16.msrb.mxu3 %v21261_v12  ;;  %v22655_v40 = vadd.f32 %v3848_v37, %v3836_v33  ;;  %v21292_v12 = vld [vmem:[#allocation2 + $0xee8] sm:$0xff]  ;;  %v21273_v33 = vld [vmem:[#allocation2 + $0xe50] sm:$0xff] }
 0x1c3   :  { %5151 = vmatpush.bf16.msrb.mxu0 %v21236_v15  ;;  %v21267_v15 = vld [vmem:[#allocation2 + $0xe20] sm:$0xff]  ;;  %v21280_v41 = vld [vmem:[#allocation2 + $0xe88] sm:$0xff] }
 0x1c4   :  { %5164 = vmatpush.bf16.msrb.mxu1 %v21244_v16 }
 0x1c5   :  { %5177 = vmatpush.bf16.msrb.mxu2 %v21252_v17  ;;  %v21275_v17 = vld [vmem:[#allocation2 + $0xe60] sm:$0xff] }
 0x1c6   :  { %5190 = vmatpush.bf16.msrb.mxu3 %v21260_v18  ;;  %v21283_v18 = vld [vmem:[#allocation2 + $0xea0] sm:$0xff] }
 0x1c7   :  { %5152 = vmatpush.bf16.msrb.mxu0 %v21235_v19  ;;  %v3837_v49 = vpop.f32.mrf.mxu2 }
 0x1c8   :  { %5165 = vmatpush.bf16.msrb.mxu1 %v21243_v20  ;;  %v3850_v57 = vpop.f32.mrf.mxu3 }
 0x1c9   :  { %5178 = vmatpush.bf16.msrb.mxu2 %v21251_v22  ;;  %v21291_v22 = vld [vmem:[#allocation2 + $0xee0] sm:$0xff]  ;;  %v21318_v57 = vld [vmem:[#allocation2 + $0xfb8] sm:$0xff] }
 0x1ca   :  { %5191 = vmatpush.bf16.msrb.mxu3 %v21259_v26  ;;  %v21274_v26 = vld [vmem:[#allocation2 + $0xe58] sm:$0xff] }
 0x1cb   :  { %5153 = vmatpush.bf16.msrb.mxu0 %v21234_v28  ;;  %v21290_v28 = vld [vmem:[#allocation2 + $0xed8] sm:$0xff] }
 0x1cc   :  { %5166 = vmatpush.bf16.msrb.mxu1 %v21242_v29 }
 0x1cd   :  { %5179 = vmatpush.bf16.msrb.mxu2 %v21250_v30 }
 0x1ce   :  { %5192 = vmatpush.bf16.msrb.mxu3 %v21258_v31  ;;  %v21265_v31 = vld [vmem:[#allocation2 + $0xe10] sm:$0xff] }
 0x1cf   :  { %5154 = vmatpush.bf16.msrb.mxu0 %v21233_v34  ;;  %v21281_v34 = vld [vmem:[#allocation2 + $0xe90] sm:$0xff] }
 0x1d0   :  { %5167 = vmatpush.bf16.msrb.mxu1 %v21241_v35 }
 0x1d1   :  { %5180 = vmatpush.bf16.msrb.mxu2 %v21249_v36 }
 0x1d2   :  { %5193 = vmatpush.bf16.msrb.mxu3 %v21257_v39  ;;  %v21264_v39 = vld [vmem:[#allocation2 + $0xe08] sm:$0xff] }
 0x1d3   :  { %5155 = vmatpush.bf16.msrb.mxu0 %v21232_v43  ;;  %v4013_v43 = vld [vmem:[%s23011_s0 + $0xe0] sm:$0xff] }
 0x1d4   :  { %5168 = vmatpush.bf16.msrb.mxu1 %v21240_v44  ;;  %v4014_v44 = vld [vmem:[%s23011_s0 + $0xe8] sm:$0xff] }
 0x1d5   :  { %5181 = vmatpush.bf16.msrb.mxu2 %v21248_v46  ;;  %v4291_v49 = vunpack.c.l.b16 %v4014_v44 }
 0x1d6   :  { %5194 = vmatpush.bf16.msrb.mxu3 %v21256_v48  ;;  %v4289_v48 = vunpack.c.l.b16 %v4013_v43 }
 0x1d7   :  { %5156 = vmatpush.bf16.msrb.mxu0 %v21231_v51  ;;  %v3861_v16 = vpop.f32.mrf.mxu0  ;;  %v21279_v51 = vld [vmem:[#allocation2 + $0xe80] sm:$0xff] }
 0x1d8   :  { %5169 = vmatpush.bf16.msrb.mxu1 %v21239_v52  ;;  %v3862_v19 = vadd.f32 %v3861_v16, %v22655_v40  ;;  %v3874_v20 = vpop.f32.mrf.mxu1  ;;  %v21272_v40 = vld [vmem:[#allocation2 + $0xe48] sm:$0xff]  ;;  %v4290_v52 = vunpack.c.h.b16 %v4013_v43  ;;  %v21315_v16 = vld [vmem:[#allocation2 + $0xfa0] sm:$0xff] }
 0x1d9   :  { %5182 = vmatpush.bf16.msrb.mxu2 %v21247_v54  ;;  %v21310_v54 = vld [vmem:[#allocation2 + $0xf78] sm:$0xff]  ;;  %v21320_v43 = vld [vmem:[#allocation2 + $0xfc8] sm:$0xff] }
 0x1da   :  { %5195 = vmatpush.bf16.msrb.mxu3 %v21255_v60  ;;  %5157 = vmatmul.bf16.vlgmr.msrb.gmra.mxu0 %v4301_v61  ;;  %v3875_v23 = vadd.f32 %v3874_v20, %v3862_v19  ;;  %v4307_v60 = vpack.c.b16 %v4291_v49, %v4291_v49  ;;  %v21326_v61 = vld [vmem:[#allocation2 + $0xff8] sm:$0xff]  ;;  %v4306_v62 = vpack.c.b16 %v4290_v52, %v4290_v52  ;;  %v21323_v19 = vld [vmem:[#allocation2 + $0xfe0] sm:$0xff] }
 0x1db   :  { %5201 = vmatpush.bf16.msra.mxu0 %v21270_v55  ;;  %5170 = vmatmul.bf16.vlgmr.msrb.gmra.mxu1 %v4302_v2  ;;  %v4292_v55 = vunpack.c.h.b16 %v4014_v44  ;;  %v21317_v2 = vld [vmem:[#allocation2 + $0xfb0] sm:$0xff]  ;;  %v21298_v20 = vld [vmem:[#allocation2 + $0xf18] sm:$0xff]  ;;  %v21295_v44 = vld [vmem:[#allocation2 + $0xf00] sm:$0xff] }
 0x1dc   :  { %5214 = vmatpush.bf16.msra.mxu1 %v21278_v58  ;;  %5183 = vmatmul.bf16.vlgmr.msrb.gmra.mxu2 %v4303_v0  ;;  %v21287_v58 = vld [vmem:[#allocation2 + $0xec0] sm:$0xff]  ;;  %v21301_v0 = vld [vmem:[#allocation2 + $0xf30] sm:$0xff]  ;;  %v21342_v52 = vld [vmem:[#allocation2 + $0x1078] sm:$0xff] }
 0x1dd   :  { %5227 = vmatpush.bf16.msra.mxu2 %v21286_v59  ;;  %5196 = vmatmul.bf16.vlgmr.msrb.gmra.mxu3 %v4304_v5  ;;  %v4305_v59 = vpack.c.b16 %v4289_v48, %v4289_v48  ;;  %v21308_v5 = vld [vmem:[#allocation2 + $0xf68] sm:$0xff]  ;;  %v21303_v48 = vld [vmem:[#allocation2 + $0xf40] sm:$0xff] }
 0x1de   :  { %5240 = vmatpush.bf16.msra.mxu3 %v21294_v63  ;;  %v4308_v63 = vpack.c.b16 %v4292_v55, %v4292_v55  ;;  %v21311_v49 = vld [vmem:[#allocation2 + $0xf80] sm:$0xff] }
 0x1df   :  { %5202 = vmatpush.bf16.msra.mxu0 %v21269_v1  ;;  %v3887_v29 = vpop.f32.mrf.mxu2  ;;  %v3863_v32 = vpop.f32.mrf.mxu0  ;;  %v21309_v1 = vld [vmem:[#allocation2 + $0xf70] sm:$0xff]  ;;  %v21319_v55 = vld [vmem:[#allocation2 + $0xfc0] sm:$0xff] }
 0x1e0   :  { %5215 = vmatpush.bf16.msra.mxu1 %v21277_v3  ;;  %v3888_v30 = vadd.f32 %v3887_v29, %v3875_v23  ;;  %v3900_v35 = vpop.f32.mrf.mxu3  ;;  %v3876_v36 = vpop.f32.mrf.mxu1  ;;  %v21325_v3 = vld [vmem:[#allocation2 + $0xff0] sm:$0xff]  ;;  %v21314_v23 = vld [vmem:[#allocation2 + $0xf98] sm:$0xff] }
 0x1e1   :  { %5228 = vmatpush.bf16.msra.mxu2 %v21285_v4  ;;  %v21300_v4 = vld [vmem:[#allocation2 + $0xf28] sm:$0xff]  ;;  %v21297_v29 = vld [vmem:[#allocation2 + $0xf10] sm:$0xff] }
 0x1e2   :  { %5241 = vmatpush.bf16.msra.mxu3 %v21293_v6  ;;  %v22664_v37 = vadd.f32 %v3900_v35, %v3888_v30  ;;  %v21316_v6 = vld [vmem:[#allocation2 + $0xfa8] sm:$0xff]  ;;  %v21305_v32 = vld [vmem:[#allocation2 + $0xf50] sm:$0xff] }
 0x1e3   :  { %5203 = vmatpush.bf16.msra.mxu0 %v21268_v7  ;;  %v21324_v7 = vld [vmem:[#allocation2 + $0xfe8] sm:$0xff]  ;;  %v21321_v35 = vld [vmem:[#allocation2 + $0xfd0] sm:$0xff] }
 0x1e4   :  { %5216 = vmatpush.bf16.msra.mxu1 %v21276_v8  ;;  %v21296_v36 = vld [vmem:[#allocation2 + $0xf08] sm:$0xff] }
 0x1e5   :  { %5229 = vmatpush.bf16.msra.mxu2 %v21284_v9  ;;  %v21299_v9 = vld [vmem:[#allocation2 + $0xf20] sm:$0xff] }
 0x1e6   :  { %5242 = vmatpush.bf16.msra.mxu3 %v21292_v12 }
 0x1e7   :  { %5204 = vmatpush.bf16.msra.mxu0 %v21267_v15  ;;  %v3889_v46 = vpop.f32.mrf.mxu2  ;;  %v21307_v15 = vld [vmem:[#allocation2 + $0xf60] sm:$0xff] }
 0x1e8   :  { %5217 = vmatpush.bf16.msra.mxu1 %v21275_v17  ;;  %v3902_v56 = vpop.f32.mrf.mxu3 }
 0x1e9   :  { %5230 = vmatpush.bf16.msra.mxu2 %v21283_v18 }
 0x1ea   :  { %5243 = vmatpush.bf16.msra.mxu3 %v21291_v22  ;;  %v21306_v22 = vld [vmem:[#allocation2 + $0xf58] sm:$0xff] }
 0x1eb   :  { %5205 = vmatpush.bf16.msra.mxu0 %v21266_v25 }
 0x1ec   :  { %5218 = vmatpush.bf16.msra.mxu1 %v21274_v26 }
 0x1ed   :  { %5231 = vmatpush.bf16.msra.mxu2 %v21282_v27  ;;  %v21322_v27 = vld [vmem:[#allocation2 + $0xfd8] sm:$0xff] }
 0x1ee   :  { %5244 = vmatpush.bf16.msra.mxu3 %v21290_v28 }
 0x1ef   :  { %5206 = vmatpush.bf16.msra.mxu0 %v21265_v31 }
 0x1f0   :  { %5219 = vmatpush.bf16.msra.mxu1 %v21273_v33  ;;  %v21313_v33 = vld [vmem:[#allocation2 + $0xf90] sm:$0xff] }
 0x1f1   :  { %5232 = vmatpush.bf16.msra.mxu2 %v21281_v34 }
 0x1f2   :  { %5245 = vmatpush.bf16.msra.mxu3 %v21289_v38  ;;  %v21312_v38 = vld [vmem:[#allocation2 + $0xf88] sm:$0xff] }
 0x1f3   :  { %5207 = vmatpush.bf16.msra.mxu0 %v21264_v39  ;;  %v4015_v39 = vld [vmem:[%s23011_s0 + $0xf0] sm:$0xff] }
 0x1f4   :  { %5220 = vmatpush.bf16.msra.mxu1 %v21272_v40  ;;  %v4016_v40 = vld [vmem:[%s23011_s0 + $0xf8] sm:$0xff] }
 0x1f5   :  { %5233 = vmatpush.bf16.msra.mxu2 %v21280_v41  ;;  %v4295_v46 = vunpack.c.l.b16 %v4016_v40 }
 0x1f6   :  { %5246 = vmatpush.bf16.msra.mxu3 %v21288_v45  ;;  %v4293_v45 = vunpack.c.l.b16 %v4015_v39 }
 0x1f7   :  { %5208 = vmatpush.bf16.msra.mxu0 %v21263_v47  ;;  %v3913_v8 = vpop.f32.mrf.mxu0 }
 0x1f8   :  { %5221 = vmatpush.bf16.msra.mxu1 %v21271_v50  ;;  %v3914_v12 = vadd.f32 %v3913_v8, %v22664_v37  ;;  %v3926_v17 = vpop.f32.mrf.mxu1  ;;  %v21304_v37 = vld [vmem:[#allocation2 + $0xf48] sm:$0xff]  ;;  %v4294_v50 = vunpack.c.h.b16 %v4015_v39  ;;  %v4309_v56 = vpack.c.b16 %v4293_v45, %v4293_v45  ;;  %v21339_v8 = vld [vmem:[#allocation2 + $0x1060] sm:$0xff] }
 0x1f9   :  { %5234 = vmatpush.bf16.msra.mxu2 %v21279_v51  ;;  %v21334_v51 = vld [vmem:[#allocation2 + $0x1038] sm:$0xff]  ;;  %v21343_v45 = vld [vmem:[#allocation2 + $0x1080] sm:$0xff] }
 0x1fa   :  { %5247 = vmatpush.bf16.msra.mxu3 %v21287_v58  ;;  %5209 = vmatmul.bf16.vlgmr.msra.gmra.mxu0 %v4305_v59  ;;  %v3927_v18 = vadd.f32 %v3926_v17, %v3914_v12  ;;  %v21358_v58 = vld [vmem:[#allocation2 + $0x10f8] sm:$0xff]  ;;  %v4310_v59 = vpack.c.b16 %v4294_v50, %v4294_v50 }
 0x1fb   :  { %5253 = vmatpush.bf16.msrb.mxu0 %v21302_v53  ;;  %5222 = vmatmul.bf16.vlgmr.msra.gmra.mxu1 %v4306_v62  ;;  %v4296_v53 = vunpack.c.h.b16 %v4016_v40  ;;  %v21341_v62 = vld [vmem:[#allocation2 + $0x1070] sm:$0xff]  ;;  %v21330_v17 = vld [vmem:[#allocation2 + $0x1018] sm:$0xff]  ;;  %v21352_v40 = vld [vmem:[#allocation2 + $0x10c8] sm:$0xff] }
 0x1fc   :  { %5266 = vmatpush.bf16.msrb.mxu1 %v21310_v54  ;;  %5235 = vmatmul.bf16.vlgmr.msra.gmra.mxu2 %v4307_v60  ;;  %v21350_v54 = vld [vmem:[#allocation2 + $0x10b8] sm:$0xff] }
 0x1fd   :  { %5279 = vmatpush.bf16.msrb.mxu2 %v21318_v57  ;;  %5248 = vmatmul.bf16.vlgmr.msra.gmra.mxu3 %v4308_v63  ;;  %v4311_v57 = vpack.c.b16 %v4295_v46, %v4295_v46  ;;  %v4312_v60 = vpack.c.b16 %v4296_v53, %v4296_v53  ;;  %v21349_v63 = vld [vmem:[#allocation2 + $0x10b0] sm:$0xff]  ;;  %v21382_v50 = vld [vmem:[#allocation2 + $0x11b8] sm:$0xff] }
 0x1fe   :  { %5292 = vmatpush.bf16.msrb.mxu3 %v21326_v61  ;;  %v21333_v61 = vld [vmem:[#allocation2 + $0x1030] sm:$0xff]  ;;  %v21390_v53 = vld [vmem:[#allocation2 + $0x11f8] sm:$0xff] }
 0x1ff   :  { %5254 = vmatpush.bf16.msrb.mxu0 %v21301_v0  ;;  %v3939_v25 = vpop.f32.mrf.mxu2  ;;  %v3915_v30 = vpop.f32.mrf.mxu0  ;;  %v21357_v0 = vld [vmem:[#allocation2 + $0x10f0] sm:$0xff] }
 0x200   :  { %5267 = vmatpush.bf16.msrb.mxu1 %v21309_v1  ;;  %v3940_v26 = vadd.f32 %v3939_v25, %v3927_v18  ;;  %v3952_v28 = vpop.f32.mrf.mxu3  ;;  %v3928_v34 = vpop.f32.mrf.mxu1  ;;  %v21332_v1 = vld [vmem:[#allocation2 + $0x1028] sm:$0xff]  ;;  %v21338_v18 = vld [vmem:[#allocation2 + $0x1058] sm:$0xff]  ;;  %v21345_v30 = vld [vmem:[#allocation2 + $0x1090] sm:$0xff] }
 0x201   :  { %5280 = vmatpush.bf16.msrb.mxu2 %v21317_v2  ;;  %v21340_v2 = vld [vmem:[#allocation2 + $0x1068] sm:$0xff] }
 0x202   :  { %5293 = vmatpush.bf16.msrb.mxu3 %v21325_v3  ;;  %v22673_v31 = vadd.f32 %v3952_v28, %v3940_v26  ;;  %v21348_v3 = vld [vmem:[#allocation2 + $0x10a8] sm:$0xff]  ;;  %v21329_v26 = vld [vmem:[#allocation2 + $0x1010] sm:$0xff] }
 0x203   :  { %5255 = vmatpush.bf16.msrb.mxu0 %v21300_v4  ;;  %v21356_v4 = vld [vmem:[#allocation2 + $0x10e8] sm:$0xff] }
 0x204   :  { %5268 = vmatpush.bf16.msrb.mxu1 %v21308_v5  ;;  %v21328_v34 = vld [vmem:[#allocation2 + $0x1008] sm:$0xff] }
 0x205   :  { %5281 = vmatpush.bf16.msrb.mxu2 %v21316_v6  ;;  %v21331_v6 = vld [vmem:[#allocation2 + $0x1020] sm:$0xff] }
 0x206   :  { %5294 = vmatpush.bf16.msrb.mxu3 %v21324_v7 }
 0x207   :  { %5256 = vmatpush.bf16.msrb.mxu0 %v21299_v9  ;;  %v3941_v41 = vpop.f32.mrf.mxu2  ;;  %v21347_v9 = vld [vmem:[#allocation2 + $0x10a0] sm:$0xff] }
 0x208   :  { %5269 = vmatpush.bf16.msrb.mxu1 %v21307_v15  ;;  %v3954_v47 = vpop.f32.mrf.mxu3 }
 0x209   :  { %5282 = vmatpush.bf16.msrb.mxu2 %v21315_v16  ;;  %v21355_v16 = vld [vmem:[#allocation2 + $0x10e0] sm:$0xff] }
 0x20a   :  { %5295 = vmatpush.bf16.msrb.mxu3 %v21323_v19  ;;  %v21346_v19 = vld [vmem:[#allocation2 + $0x1098] sm:$0xff] }
 0x20b   :  { %5257 = vmatpush.bf16.msrb.mxu0 %v21298_v20 }
 0x20c   :  { %5270 = vmatpush.bf16.msrb.mxu1 %v21306_v22 }
 0x20d   :  { %5283 = vmatpush.bf16.msrb.mxu2 %v21314_v23  ;;  %v21354_v23 = vld [vmem:[#allocation2 + $0x10d8] sm:$0xff] }
 0x20e   :  { %5296 = vmatpush.bf16.msrb.mxu3 %v21322_v27 }
 0x20f   :  { %5258 = vmatpush.bf16.msrb.mxu0 %v21297_v29  ;;  %v21337_v29 = vld [vmem:[#allocation2 + $0x1050] sm:$0xff] }
 0x210   :  { %5271 = vmatpush.bf16.msrb.mxu1 %v21305_v32 }
 0x211   :  { %5284 = vmatpush.bf16.msrb.mxu2 %v21313_v33  ;;  %v21353_v33 = vld [vmem:[#allocation2 + $0x10d0] sm:$0xff] }
 0x212   :  { %5297 = vmatpush.bf16.msrb.mxu3 %v21321_v35  ;;  %v21336_v35 = vld [vmem:[#allocation2 + $0x1048] sm:$0xff] }
 0x213   :  { %5259 = vmatpush.bf16.msrb.mxu0 %v21296_v36  ;;  %v21344_v36 = vld [vmem:[#allocation2 + $0x1088] sm:$0xff] }
 0x214   :  { %5272 = vmatpush.bf16.msrb.mxu1 %v21304_v37  ;;  %v5307_v37 = vld [vmem:[%s23011_s0 + $0x108] sm:$0xff] }
 0x215   :  { %5285 = vmatpush.bf16.msrb.mxu2 %v21312_v38  ;;  %v5306_v38 = vld [vmem:[%s23011_s0 + $0x100] sm:$0xff]  ;;  %v5580_v41 = vunpack.c.l.b16 %v5307_v37 }
 0x216   :  { %5298 = vmatpush.bf16.msrb.mxu3 %v21320_v43  ;;  %v5578_v46 = vunpack.c.l.b16 %v5306_v38  ;;  %v5579_v47 = vunpack.c.h.b16 %v5306_v38  ;;  %v21359_v38 = vld [vmem:[#allocation2 + $0x1100] sm:$0xff] }
 0x217   :  { %5260 = vmatpush.bf16.msrb.mxu0 %v21295_v44  ;;  %v3965_v5 = vpop.f32.mrf.mxu0  ;;  %v21335_v44 = vld [vmem:[#allocation2 + $0x1040] sm:$0xff] }
 0x218   :  { %5273 = vmatpush.bf16.msrb.mxu1 %v21303_v48  ;;  %v3966_v7 = vadd.f32 %v3965_v5, %v22673_v31  ;;  %v3978_v12 = vpop.f32.mrf.mxu1  ;;  %v21366_v48 = vld [vmem:[#allocation2 + $0x1138] sm:$0xff] }
 0x219   :  { %5286 = vmatpush.bf16.msrb.mxu2 %v21311_v49  ;;  %v21374_v49 = vld [vmem:[#allocation2 + $0x1178] sm:$0xff] }
 0x21a   :  { %5299 = vmatpush.bf16.msrb.mxu3 %v21319_v55  ;;  %5261 = vmatmul.bf16.vlgmr.msrb.gmra.mxu0 %v4309_v56  ;;  %v3979_v15 = vadd.f32 %v3978_v12, %v3966_v7  ;;  %v5594_v55 = vpack.c.b16 %v5578_v46, %v5578_v46  ;;  %v5595_v56 = vpack.c.b16 %v5579_v47, %v5579_v47  ;;  %v21387_v7 = vld [vmem:[#allocation2 + $0x11e0] sm:$0xff]  ;;  %v21370_v12 = vld [vmem:[#allocation2 + $0x1158] sm:$0xff] }
 0x21b   :  { %6394 = vmatpush.bf16.msra.mxu0 %v21334_v51  ;;  %5274 = vmatmul.bf16.vlgmr.msrb.gmra.mxu1 %v4310_v59  ;;  %v21351_v51 = vld [vmem:[#allocation2 + $0x10c0] sm:$0xff]  ;;  %v21381_v59 = vld [vmem:[#allocation2 + $0x11b0] sm:$0xff]  ;;  %v21414_v46 = vld [vmem:[#allocation2 + $0x12b8] sm:$0xff] }
 0x21c   :  { %6407 = vmatpush.bf16.msra.mxu1 %v21342_v52  ;;  %5287 = vmatmul.bf16.vlgmr.msrb.gmra.mxu2 %v4311_v57  ;;  %v5581_v52 = vunpack.c.h.b16 %v5307_v37  ;;  %v21365_v57 = vld [vmem:[#allocation2 + $0x1130] sm:$0xff]  ;;  %v21383_v47 = vld [vmem:[#allocation2 + $0x11c0] sm:$0xff] }
 0x21d   :  { %6420 = vmatpush.bf16.msra.mxu2 %v21350_v54  ;;  %5300 = vmatmul.bf16.vlgmr.msrb.gmra.mxu3 %v4312_v60  ;;  %v5596_v54 = vpack.c.b16 %v5580_v41, %v5580_v41  ;;  %v21398_v41 = vld [vmem:[#allocation2 + $0x1238] sm:$0xff] }
 0x21e   :  { %6433 = vmatpush.bf16.msra.mxu3 %v21358_v58  ;;  %v21373_v58 = vld [vmem:[#allocation2 + $0x1170] sm:$0xff]  ;;  %v5597_v60 = vpack.c.b16 %v5581_v52, %v5581_v52 }
 0x21f   :  { %6395 = vmatpush.bf16.msra.mxu0 %v21333_v61  ;;  %v3991_v20 = vpop.f32.mrf.mxu2  ;;  %v3967_v27 = vpop.f32.mrf.mxu0  ;;  %v21389_v61 = vld [vmem:[#allocation2 + $0x11f0] sm:$0xff] }
 0x220   :  { %6408 = vmatpush.bf16.msra.mxu1 %v21341_v62  ;;  %v3992_v22 = vadd.f32 %v3991_v20, %v3979_v15  ;;  %v4004_v25 = vpop.f32.mrf.mxu3  ;;  %v3980_v31 = vpop.f32.mrf.mxu1  ;;  %v21364_v62 = vld [vmem:[#allocation2 + $0x1128] sm:$0xff]  ;;  %v21378_v15 = vld [vmem:[#allocation2 + $0x1198] sm:$0xff]  ;;  %v21369_v20 = vld [vmem:[#allocation2 + $0x1150] sm:$0xff] }
 0x221   :  { %6421 = vmatpush.bf16.msra.mxu2 %v21349_v63  ;;  %v21372_v63 = vld [vmem:[#allocation2 + $0x1168] sm:$0xff]  ;;  %v5308_v31 = vld [vmem:[%s23011_s0 + $0x110] sm:$0xff] }
 0x222   :  { %6434 = vmatpush.bf16.msra.mxu3 %v21357_v0  ;;  %v4005_v28 = vadd.f32 %v4004_v25, %v3992_v22  ;;  %v21380_v0 = vld [vmem:[#allocation2 + $0x11a8] sm:$0xff]  ;;  %v21377_v22 = vld [vmem:[#allocation2 + $0x1190] sm:$0xff]  ;;  %v5582_v37 = vunpack.c.l.b16 %v5308_v31 }
 0x223   :  { %6396 = vmatpush.bf16.msra.mxu0 %v21332_v1  ;;  %v21388_v1 = vld [vmem:[#allocation2 + $0x11e8] sm:$0xff]  ;;  %v21397_v52 = vld [vmem:[#allocation2 + $0x1230] sm:$0xff] }
 0x224   :  { %6409 = vmatpush.bf16.msra.mxu1 %v21340_v2  ;;  %v22683_v32 = vadd.f32 %v4005_v28, %v22647_v42  ;;  %v21327_v42 = vld [vmem:[#allocation2 + $0x1000] sm:$0xff] }
 0x225   :  { %6422 = vmatpush.bf16.msra.mxu2 %v21348_v3  ;;  %v21363_v2 = vld [vmem:[#allocation2 + $0x1120] sm:$0xff] }
 0x226   :  { %6435 = vmatpush.bf16.msra.mxu3 %v21356_v4  ;;  %v21371_v3 = vld [vmem:[#allocation2 + $0x1160] sm:$0xff] }
 0x227   :  { %6397 = vmatpush.bf16.msra.mxu0 %v21331_v6  ;;  %v3993_v39 = vpop.f32.mrf.mxu2  ;;  %v21379_v4 = vld [vmem:[#allocation2 + $0x11a0] sm:$0xff] }
 0x228   :  { %6410 = vmatpush.bf16.msra.mxu1 %v21339_v8  ;;  %v4006_v43 = vpop.f32.mrf.mxu3  ;;  %v21367_v39 = vld [vmem:[#allocation2 + $0x1140] sm:$0xff] }
 0x229   :  { %6423 = vmatpush.bf16.msra.mxu2 %v21347_v9  ;;  %v21362_v9 = vld [vmem:[#allocation2 + $0x1118] sm:$0xff]  ;;  %v5583_v43 = vunpack.c.h.b16 %v5308_v31  ;;  %v21416_v31 = vld [vmem:[#allocation2 + $0x12c8] sm:$0xff] }
 0x22a   :  { %6436 = vmatpush.bf16.msra.mxu3 %v21355_v16  ;;  %v21386_v16 = vld [vmem:[#allocation2 + $0x11d8] sm:$0xff] }
 0x22b   :  { %6398 = vmatpush.bf16.msra.mxu0 %v21330_v17 }
 0x22c   :  { %6411 = vmatpush.bf16.msra.mxu1 %v21338_v18 }
 0x22d   :  { %6424 = vmatpush.bf16.msra.mxu2 %v21346_v19  ;;  %v21361_v19 = vld [vmem:[#allocation2 + $0x1110] sm:$0xff] }
 0x22e   :  { %6437 = vmatpush.bf16.msra.mxu3 %v21354_v23 }
 0x22f   :  { %6399 = vmatpush.bf16.msra.mxu0 %v21329_v26  ;;  %v21385_v26 = vld [vmem:[#allocation2 + $0x11d0] sm:$0xff] }
 0x230   :  { %6412 = vmatpush.bf16.msra.mxu1 %v21337_v29  ;;  %v21360_v29 = vld [vmem:[#allocation2 + $0x1108] sm:$0xff] }
 0x231   :  { %6425 = vmatpush.bf16.msra.mxu2 %v21345_v30  ;;  %v21368_v30 = vld [vmem:[#allocation2 + $0x1148] sm:$0xff] }
 0x232   :  { %6438 = vmatpush.bf16.msra.mxu3 %v21353_v33  ;;  %v21376_v33 = vld [vmem:[#allocation2 + $0x1188] sm:$0xff] }
 0x233   :  { %6400 = vmatpush.bf16.msra.mxu0 %v21328_v34  ;;  %v5309_v34 = vld [vmem:[%s23011_s0 + $0x118] sm:$0xff] }
 0x234   :  { %6413 = vmatpush.bf16.msra.mxu1 %v21336_v35  ;;  %v21384_v35 = vld [vmem:[#allocation2 + $0x11c8] sm:$0xff] }
 0x235   :  { %6426 = vmatpush.bf16.msra.mxu2 %v21344_v36 }
 0x236   :  { %6439 = vmatpush.bf16.msra.mxu3 %v21352_v40  ;;  %v5584_v40 = vunpack.c.l.b16 %v5309_v34 }
 0x237   :  { %6401 = vmatpush.bf16.msra.mxu0 %v21327_v42  ;;  %v5106_v5 = vpop.f32.mrf.mxu0  ;;  %v21375_v42 = vld [vmem:[#allocation2 + $0x1180] sm:$0xff] }
 0x238   :  { %6414 = vmatpush.bf16.msra.mxu1 %v21335_v44  ;;  %v5119_v6 = vpop.f32.mrf.mxu1 }
 0x239   :  { %6427 = vmatpush.bf16.msra.mxu2 %v21343_v45  ;;  %v5120_v8 = vadd.f32 %v5119_v6, %v5106_v5  ;;  %v21406_v45 = vld [vmem:[#allocation2 + $0x1278] sm:$0xff] }
 0x23a   :  { %6440 = vmatpush.bf16.msra.mxu3 %v21351_v51  ;;  %6402 = vmatmul.bf16.vlgmr.msra.gmra.mxu0 %v5594_v55  ;;  %v5600_v51 = vpack.c.b16 %v5584_v40, %v5584_v40  ;;  %v21413_v55 = vld [vmem:[#allocation2 + $0x12b0] sm:$0xff]  ;;  %v21394_v6 = vld [vmem:[#allocation2 + $0x1218] sm:$0xff] }
 0x23b   :  { %6446 = vmatpush.bf16.msrb.mxu0 %v21366_v48  ;;  %6415 = vmatmul.bf16.vlgmr.msra.gmra.mxu1 %v5595_v56  ;;  %v5598_v48 = vpack.c.b16 %v5582_v37, %v5582_v37  ;;  %v21399_v37 = vld [vmem:[#allocation2 + $0x1240] sm:$0xff]  ;;  %v21430_v40 = vld [vmem:[#allocation2 + $0x1338] sm:$0xff] }
 0x23c   :  { %6459 = vmatpush.bf16.msrb.mxu1 %v21374_v49  ;;  %6428 = vmatmul.bf16.vlgmr.msra.gmra.mxu2 %v5596_v54  ;;  %v5585_v49 = vunpack.c.h.b16 %v5309_v34  ;;  %v21405_v54 = vld [vmem:[#allocation2 + $0x1270] sm:$0xff]  ;;  %v21391_v34 = vld [vmem:[#allocation2 + $0x1200] sm:$0xff] }
 0x23d   :  { %6472 = vmatpush.bf16.msrb.mxu2 %v21382_v50  ;;  %6441 = vmatmul.bf16.vlgmr.msra.gmra.mxu3 %v5597_v60  ;;  %v21422_v50 = vld [vmem:[#allocation2 + $0x12f8] sm:$0xff]  ;;  %v21412_v60 = vld [vmem:[#allocation2 + $0x12a8] sm:$0xff] }
 0x23e   :  { %6485 = vmatpush.bf16.msrb.mxu3 %v21390_v53  ;;  %v5599_v53 = vpack.c.b16 %v5583_v43, %v5583_v43  ;;  %v5601_v56 = vpack.c.b16 %v5585_v49, %v5585_v49 }
 0x23f   :  { %6447 = vmatpush.bf16.msrb.mxu0 %v21365_v57  ;;  %v5132_v17 = vpop.f32.mrf.mxu2  ;;  %v5108_v25 = vpop.f32.mrf.mxu0  ;;  %v21421_v57 = vld [vmem:[#allocation2 + $0x12f0] sm:$0xff] }
 0x240   :  { %6460 = vmatpush.bf16.msrb.mxu1 %v21373_v58  ;;  %v5133_v18 = vadd.f32 %v5132_v17, %v5120_v8  ;;  %v5145_v23 = vpop.f32.mrf.mxu3  ;;  %v5121_v28 = vpop.f32.mrf.mxu1  ;;  %v21396_v58 = vld [vmem:[#allocation2 + $0x1228] sm:$0xff]  ;;  %v21410_v8 = vld [vmem:[#allocation2 + $0x1298] sm:$0xff]  ;;  %v21417_v25 = vld [vmem:[#allocation2 + $0x12d0] sm:$0xff] }
 0x241   :  { %6473 = vmatpush.bf16.msrb.mxu2 %v21381_v59  ;;  %v21404_v59 = vld [vmem:[#allocation2 + $0x1268] sm:$0xff] }
 0x242   :  { %6486 = vmatpush.bf16.msrb.mxu3 %v21389_v61  ;;  %v22691_v27 = vadd.f32 %v5145_v23, %v5133_v18  ;;  %v21420_v61 = vld [vmem:[#allocation2 + $0x12e8] sm:$0xff]  ;;  %v21401_v18 = vld [vmem:[#allocation2 + $0x1250] sm:$0xff] }
 0x243   :  { %6448 = vmatpush.bf16.msrb.mxu0 %v21364_v62  ;;  %v21395_v62 = vld [vmem:[#allocation2 + $0x1220] sm:$0xff]  ;;  %v21408_v28 = vld [vmem:[#allocation2 + $0x1288] sm:$0xff] }
 0x244   :  { %6461 = vmatpush.bf16.msrb.mxu1 %v21372_v63 }
 0x245   :  { %6474 = vmatpush.bf16.msrb.mxu2 %v21380_v0  ;;  %v21403_v0 = vld [vmem:[#allocation2 + $0x1260] sm:$0xff] }
 0x246   :  { %6487 = vmatpush.bf16.msrb.mxu3 %v21388_v1  ;;  %v21411_v1 = vld [vmem:[#allocation2 + $0x12a0] sm:$0xff] }
 0x247   :  { %6449 = vmatpush.bf16.msrb.mxu0 %v21363_v2  ;;  %v5134_v36 = vpop.f32.mrf.mxu2 }
 0x248   :  { %6462 = vmatpush.bf16.msrb.mxu1 %v21371_v3  ;;  %v5147_v44 = vpop.f32.mrf.mxu3 }
 0x249   :  { %6475 = vmatpush.bf16.msrb.mxu2 %v21379_v4  ;;  %v21419_v4 = vld [vmem:[#allocation2 + $0x12e0] sm:$0xff]  ;;  %v21446_v44 = vld [vmem:[#allocation2 + $0x13b8] sm:$0xff] }
 0x24a   :  { %6488 = vmatpush.bf16.msrb.mxu3 %v21387_v7  ;;  %v21402_v7 = vld [vmem:[#allocation2 + $0x1258] sm:$0xff] }
 0x24b   :  { %6450 = vmatpush.bf16.msrb.mxu0 %v21362_v9  ;;  %v21418_v9 = vld [vmem:[#allocation2 + $0x12d8] sm:$0xff] }
 0x24c   :  { %6463 = vmatpush.bf16.msrb.mxu1 %v21370_v12 }
 0x24d   :  { %6476 = vmatpush.bf16.msrb.mxu2 %v21378_v15 }
 0x24e   :  { %6489 = vmatpush.bf16.msrb.mxu3 %v21386_v16  ;;  %v21393_v16 = vld [vmem:[#allocation2 + $0x1210] sm:$0xff] }
 0x24f   :  { %6451 = vmatpush.bf16.msrb.mxu0 %v21361_v19  ;;  %v21409_v19 = vld [vmem:[#allocation2 + $0x1290] sm:$0xff] }
 0x250   :  { %6464 = vmatpush.bf16.msrb.mxu1 %v21369_v20 }
 0x251   :  { %6477 = vmatpush.bf16.msrb.mxu2 %v21377_v22 }
 0x252   :  { %6490 = vmatpush.bf16.msrb.mxu3 %v21385_v26  ;;  %v21392_v26 = vld [vmem:[#allocation2 + $0x1208] sm:$0xff] }
 0x253   :  { %6452 = vmatpush.bf16.msrb.mxu0 %v21360_v29  ;;  %v5310_v29 = vld [vmem:[%s23011_s0 + $0x120] sm:$0xff] }
 0x254   :  { %6465 = vmatpush.bf16.msrb.mxu1 %v21368_v30  ;;  %v5311_v30 = vld [vmem:[%s23011_s0 + $0x128] sm:$0xff] }
 0x255   :  { %6478 = vmatpush.bf16.msrb.mxu2 %v21376_v33  ;;  %v5588_v36 = vunpack.c.l.b16 %v5311_v30 }
 0x256   :  { %6491 = vmatpush.bf16.msrb.mxu3 %v21384_v35  ;;  %v5586_v35 = vunpack.c.l.b16 %v5310_v29 }
 0x257   :  { %6453 = vmatpush.bf16.msrb.mxu0 %v21359_v38  ;;  %v5158_v63 = vpop.f32.mrf.mxu0  ;;  %v21407_v38 = vld [vmem:[#allocation2 + $0x1280] sm:$0xff] }
 0x258   :  { %6466 = vmatpush.bf16.msrb.mxu1 %v21367_v39  ;;  %v5159_v2 = vadd.f32 %v5158_v63, %v22691_v27  ;;  %v5171_v3 = vpop.f32.mrf.mxu1  ;;  %v21400_v27 = vld [vmem:[#allocation2 + $0x1248] sm:$0xff]  ;;  %v5587_v39 = vunpack.c.h.b16 %v5310_v29  ;;  %v21443_v63 = vld [vmem:[#allocation2 + $0x13a0] sm:$0xff] }
 0x259   :  { %6479 = vmatpush.bf16.msrb.mxu2 %v21375_v42  ;;  %v21438_v42 = vld [vmem:[#allocation2 + $0x1378] sm:$0xff]  ;;  %v21448_v29 = vld [vmem:[#allocation2 + $0x13c8] sm:$0xff] }
 0x25a   :  { %6492 = vmatpush.bf16.msrb.mxu3 %v21383_v47  ;;  %6454 = vmatmul.bf16.vlgmr.msrb.gmra.mxu0 %v5598_v48  ;;  %v5172_v5 = vadd.f32 %v5171_v3, %v5159_v2  ;;  %v5604_v47 = vpack.c.b16 %v5588_v36, %v5588_v36  ;;  %v21454_v48 = vld [vmem:[#allocation2 + $0x13f8] sm:$0xff]  ;;  %v5603_v49 = vpack.c.b16 %v5587_v39, %v5587_v39  ;;  %v21451_v2 = vld [vmem:[#allocation2 + $0x13e0] sm:$0xff] }
 0x25b   :  { %6498 = vmatpush.bf16.msra.mxu0 %v21398_v41  ;;  %6467 = vmatmul.bf16.vlgmr.msrb.gmra.mxu1 %v5599_v53  ;;  %v5589_v41 = vunpack.c.h.b16 %v5311_v30  ;;  %v21445_v53 = vld [vmem:[#allocation2 + $0x13b0] sm:$0xff]  ;;  %v21426_v3 = vld [vmem:[#allocation2 + $0x1318] sm:$0xff]  ;;  %v21423_v30 = vld [vmem:[#allocation2 + $0x1300] sm:$0xff] }
 0x25c   :  { %6511 = vmatpush.bf16.msra.mxu1 %v21406_v45  ;;  %6480 = vmatmul.bf16.vlgmr.msrb.gmra.mxu2 %v5600_v51  ;;  %v21415_v45 = vld [vmem:[#allocation2 + $0x12c0] sm:$0xff]  ;;  %v21429_v51 = vld [vmem:[#allocation2 + $0x1330] sm:$0xff]  ;;  %v21470_v39 = vld [vmem:[#allocation2 + $0x1478] sm:$0xff] }
 0x25d   :  { %6524 = vmatpush.bf16.msra.mxu2 %v21414_v46  ;;  %6493 = vmatmul.bf16.vlgmr.msrb.gmra.mxu3 %v5601_v56  ;;  %v5602_v46 = vpack.c.b16 %v5586_v35, %v5586_v35  ;;  %v21436_v56 = vld [vmem:[#allocation2 + $0x1368] sm:$0xff]  ;;  %v21431_v35 = vld [vmem:[#allocation2 + $0x1340] sm:$0xff] }
 0x25e   :  { %6537 = vmatpush.bf16.msra.mxu3 %v21422_v50  ;;  %v5605_v50 = vpack.c.b16 %v5589_v41, %v5589_v41  ;;  %v21439_v36 = vld [vmem:[#allocation2 + $0x1380] sm:$0xff] }
 0x25f   :  { %6499 = vmatpush.bf16.msra.mxu0 %v21397_v52  ;;  %v5184_v12 = vpop.f32.mrf.mxu2  ;;  %v5160_v17 = vpop.f32.mrf.mxu0  ;;  %v21437_v52 = vld [vmem:[#allocation2 + $0x1370] sm:$0xff]  ;;  %v21447_v41 = vld [vmem:[#allocation2 + $0x13c0] sm:$0xff] }
 0x260   :  { %6512 = vmatpush.bf16.msra.mxu1 %v21405_v54  ;;  %v5185_v15 = vadd.f32 %v5184_v12, %v5172_v5  ;;  %v5197_v20 = vpop.f32.mrf.mxu3  ;;  %v5173_v22 = vpop.f32.mrf.mxu1  ;;  %v21453_v54 = vld [vmem:[#allocation2 + $0x13f0] sm:$0xff]  ;;  %v21442_v5 = vld [vmem:[#allocation2 + $0x1398] sm:$0xff] }
 0x261   :  { %6525 = vmatpush.bf16.msra.mxu2 %v21413_v55  ;;  %v21428_v55 = vld [vmem:[#allocation2 + $0x1328] sm:$0xff]  ;;  %v21425_v12 = vld [vmem:[#allocation2 + $0x1310] sm:$0xff] }
 0x262   :  { %6538 = vmatpush.bf16.msra.mxu3 %v21421_v57  ;;  %v22700_v23 = vadd.f32 %v5197_v20, %v5185_v15  ;;  %v21444_v57 = vld [vmem:[#allocation2 + $0x13a8] sm:$0xff]  ;;  %v21433_v17 = vld [vmem:[#allocation2 + $0x1350] sm:$0xff] }
 0x263   :  { %6500 = vmatpush.bf16.msra.mxu0 %v21396_v58  ;;  %v21452_v58 = vld [vmem:[#allocation2 + $0x13e8] sm:$0xff]  ;;  %v21449_v20 = vld [vmem:[#allocation2 + $0x13d0] sm:$0xff] }
 0x264   :  { %6513 = vmatpush.bf16.msra.mxu1 %v21404_v59  ;;  %v21424_v22 = vld [vmem:[#allocation2 + $0x1308] sm:$0xff] }
 0x265   :  { %6526 = vmatpush.bf16.msra.mxu2 %v21412_v60  ;;  %v21427_v60 = vld [vmem:[#allocation2 + $0x1320] sm:$0xff] }
 0x266   :  { %6539 = vmatpush.bf16.msra.mxu3 %v21420_v61 }
 0x267   :  { %6501 = vmatpush.bf16.msra.mxu0 %v21395_v62  ;;  %v5186_v33 = vpop.f32.mrf.mxu2  ;;  %v21435_v62 = vld [vmem:[#allocation2 + $0x1360] sm:$0xff] }
 0x268   :  { %6514 = vmatpush.bf16.msra.mxu1 %v21403_v0  ;;  %v5199_v43 = vpop.f32.mrf.mxu3 }
 0x269   :  { %6527 = vmatpush.bf16.msra.mxu2 %v21411_v1 }
 0x26a   :  { %6540 = vmatpush.bf16.msra.mxu3 %v21419_v4  ;;  %v21434_v4 = vld [vmem:[#allocation2 + $0x1358] sm:$0xff] }
 0x26b   :  { %6502 = vmatpush.bf16.msra.mxu0 %v21394_v6 }
 0x26c   :  { %6515 = vmatpush.bf16.msra.mxu1 %v21402_v7 }
 0x26d   :  { %6528 = vmatpush.bf16.msra.mxu2 %v21410_v8  ;;  %v21450_v8 = vld [vmem:[#allocation2 + $0x13d8] sm:$0xff] }
 0x26e   :  { %6541 = vmatpush.bf16.msra.mxu3 %v21418_v9 }
 0x26f   :  { %6503 = vmatpush.bf16.msra.mxu0 %v21393_v16 }
 0x270   :  { %6516 = vmatpush.bf16.msra.mxu1 %v21401_v18  ;;  %v21441_v18 = vld [vmem:[#allocation2 + $0x1390] sm:$0xff] }
 0x271   :  { %6529 = vmatpush.bf16.msra.mxu2 %v21409_v19 }
 0x272   :  { %6542 = vmatpush.bf16.msra.mxu3 %v21417_v25  ;;  %v21440_v25 = vld [vmem:[#allocation2 + $0x1388] sm:$0xff] }
 0x273   :  { %6504 = vmatpush.bf16.msra.mxu0 %v21392_v26  ;;  %v5312_v26 = vld [vmem:[%s23011_s0 + $0x130] sm:$0xff] }
 0x274   :  { %6517 = vmatpush.bf16.msra.mxu1 %v21400_v27  ;;  %v5313_v27 = vld [vmem:[%s23011_s0 + $0x138] sm:$0xff] }
 0x275   :  { %6530 = vmatpush.bf16.msra.mxu2 %v21408_v28  ;;  %v5592_v33 = vunpack.c.l.b16 %v5313_v27 }
 0x276   :  { %6543 = vmatpush.bf16.msra.mxu3 %v21416_v31  ;;  %v5590_v31 = vunpack.c.l.b16 %v5312_v26 }
 0x277   :  { %6505 = vmatpush.bf16.msra.mxu0 %v21391_v34  ;;  %v5210_v59 = vpop.f32.mrf.mxu0 }
 0x278   :  { %6518 = vmatpush.bf16.msra.mxu1 %v21399_v37  ;;  %v5211_v61 = vadd.f32 %v5210_v59, %v22700_v23  ;;  %v5223_v0 = vpop.f32.mrf.mxu1  ;;  %v21432_v23 = vld [vmem:[#allocation2 + $0x1348] sm:$0xff]  ;;  %v5591_v37 = vunpack.c.h.b16 %v5312_v26  ;;  %v5606_v43 = vpack.c.b16 %v5590_v31, %v5590_v31  ;;  %v21467_v59 = vld [vmem:[#allocation2 + $0x1460] sm:$0xff] }
 0x279   :  { %6531 = vmatpush.bf16.msra.mxu2 %v21407_v38  ;;  %v21462_v38 = vld [vmem:[#allocation2 + $0x1438] sm:$0xff]  ;;  %v21471_v31 = vld [vmem:[#allocation2 + $0x1480] sm:$0xff] }
 0x27a   :  { %6544 = vmatpush.bf16.msra.mxu3 %v21415_v45  ;;  %6506 = vmatmul.bf16.vlgmr.msra.gmra.mxu0 %v5602_v46  ;;  %v5224_v1 = vadd.f32 %v5223_v0, %v5211_v61  ;;  %v21486_v45 = vld [vmem:[#allocation2 + $0x14f8] sm:$0xff]  ;;  %v5607_v46 = vpack.c.b16 %v5591_v37, %v5591_v37 }
 0x27b   :  { %6550 = vmatpush.bf16.msrb.mxu0 %v21430_v40  ;;  %6519 = vmatmul.bf16.vlgmr.msra.gmra.mxu1 %v5603_v49  ;;  %v5593_v40 = vunpack.c.h.b16 %v5313_v27  ;;  %v21469_v49 = vld [vmem:[#allocation2 + $0x1470] sm:$0xff]  ;;  %v21458_v0 = vld [vmem:[#allocation2 + $0x1418] sm:$0xff]  ;;  %v21480_v27 = vld [vmem:[#allocation2 + $0x14c8] sm:$0xff] }
 0x27c   :  { %6563 = vmatpush.bf16.msrb.mxu1 %v21438_v42  ;;  %6532 = vmatmul.bf16.vlgmr.msra.gmra.mxu2 %v5604_v47  ;;  %v21478_v42 = vld [vmem:[#allocation2 + $0x14b8] sm:$0xff] }
 0x27d   :  { %6576 = vmatpush.bf16.msrb.mxu2 %v21446_v44  ;;  %6545 = vmatmul.bf16.vlgmr.msra.gmra.mxu3 %v5605_v50  ;;  %v5608_v44 = vpack.c.b16 %v5592_v33, %v5592_v33  ;;  %v5609_v47 = vpack.c.b16 %v5593_v40, %v5593_v40  ;;  %v21477_v50 = vld [vmem:[#allocation2 + $0x14b0] sm:$0xff]  ;;  %v21510_v37 = vld [vmem:[#allocation2 + $0x15b8] sm:$0xff] }
 0x27e   :  { %6589 = vmatpush.bf16.msrb.mxu3 %v21454_v48  ;;  %v21461_v48 = vld [vmem:[#allocation2 + $0x1430] sm:$0xff]  ;;  %v21518_v40 = vld [vmem:[#allocation2 + $0x15f8] sm:$0xff] }
 0x27f   :  { %6551 = vmatpush.bf16.msrb.mxu0 %v21429_v51  ;;  %v5236_v6 = vpop.f32.mrf.mxu2  ;;  %v5212_v15 = vpop.f32.mrf.mxu0  ;;  %v21485_v51 = vld [vmem:[#allocation2 + $0x14f0] sm:$0xff] }
 0x280   :  { %6564 = vmatpush.bf16.msrb.mxu1 %v21437_v52  ;;  %v5237_v7 = vadd.f32 %v5236_v6, %v5224_v1  ;;  %v5249_v9 = vpop.f32.mrf.mxu3  ;;  %v5225_v19 = vpop.f32.mrf.mxu1  ;;  %v21460_v52 = vld [vmem:[#allocation2 + $0x1428] sm:$0xff]  ;;  %v21466_v1 = vld [vmem:[#allocation2 + $0x1458] sm:$0xff]  ;;  %v21473_v15 = vld [vmem:[#allocation2 + $0x1490] sm:$0xff] }
 0x281   :  { %6577 = vmatpush.bf16.msrb.mxu2 %v21445_v53  ;;  %v21468_v53 = vld [vmem:[#allocation2 + $0x1468] sm:$0xff] }
 0x282   :  { %6590 = vmatpush.bf16.msrb.mxu3 %v21453_v54  ;;  %v22709_v16 = vadd.f32 %v5249_v9, %v5237_v7  ;;  %v21476_v54 = vld [vmem:[#allocation2 + $0x14a8] sm:$0xff]  ;;  %v21457_v7 = vld [vmem:[#allocation2 + $0x1410] sm:$0xff] }
 0x283   :  { %6552 = vmatpush.bf16.msrb.mxu0 %v21428_v55  ;;  %v21484_v55 = vld [vmem:[#allocation2 + $0x14e8] sm:$0xff] }
 0x284   :  { %6565 = vmatpush.bf16.msrb.mxu1 %v21436_v56  ;;  %v21456_v19 = vld [vmem:[#allocation2 + $0x1408] sm:$0xff] }
 0x285   :  { %6578 = vmatpush.bf16.msrb.mxu2 %v21444_v57  ;;  %v21459_v57 = vld [vmem:[#allocation2 + $0x1420] sm:$0xff] }
 0x286   :  { %6591 = vmatpush.bf16.msrb.mxu3 %v21452_v58 }
 0x287   :  { %6553 = vmatpush.bf16.msrb.mxu0 %v21427_v60  ;;  %v5238_v28 = vpop.f32.mrf.mxu2  ;;  %v21475_v60 = vld [vmem:[#allocation2 + $0x14a0] sm:$0xff] }
 0x288   :  { %6566 = vmatpush.bf16.msrb.mxu1 %v21435_v62  ;;  %v5251_v34 = vpop.f32.mrf.mxu3 }
 0x289   :  { %6579 = vmatpush.bf16.msrb.mxu2 %v21443_v63  ;;  %v21483_v63 = vld [vmem:[#allocation2 + $0x14e0] sm:$0xff] }
 0x28a   :  { %6592 = vmatpush.bf16.msrb.mxu3 %v21451_v2  ;;  %v21474_v2 = vld [vmem:[#allocation2 + $0x1498] sm:$0xff] }
 0x28b   :  { %6554 = vmatpush.bf16.msrb.mxu0 %v21426_v3 }
 0x28c   :  { %6567 = vmatpush.bf16.msrb.mxu1 %v21434_v4 }
 0x28d   :  { %6580 = vmatpush.bf16.msrb.mxu2 %v21442_v5  ;;  %v21482_v5 = vld [vmem:[#allocation2 + $0x14d8] sm:$0xff] }
 0x28e   :  { %6593 = vmatpush.bf16.msrb.mxu3 %v21450_v8 }
 0x28f   :  { %6555 = vmatpush.bf16.msrb.mxu0 %v21425_v12  ;;  %v21465_v12 = vld [vmem:[#allocation2 + $0x1450] sm:$0xff] }
 0x290   :  { %6568 = vmatpush.bf16.msrb.mxu1 %v21433_v17 }
 0x291   :  { %6581 = vmatpush.bf16.msrb.mxu2 %v21441_v18  ;;  %v21481_v18 = vld [vmem:[#allocation2 + $0x14d0] sm:$0xff] }
 0x292   :  { %6594 = vmatpush.bf16.msrb.mxu3 %v21449_v20  ;;  %v21464_v20 = vld [vmem:[#allocation2 + $0x1448] sm:$0xff] }
 0x293   :  { %6556 = vmatpush.bf16.msrb.mxu0 %v21424_v22  ;;  %v21472_v22 = vld [vmem:[#allocation2 + $0x1488] sm:$0xff] }
 0x294   :  { %6569 = vmatpush.bf16.msrb.mxu1 %v21432_v23  ;;  %v6604_v23 = vld [vmem:[%s23011_s0 + $0x148] sm:$0xff] }
 0x295   :  { %6582 = vmatpush.bf16.msrb.mxu2 %v21440_v25  ;;  %v6603_v25 = vld [vmem:[%s23011_s0 + $0x140] sm:$0xff]  ;;  %v6775_v28 = vunpack.c.l.b16 %v6604_v23 }
 0x296   :  { %6595 = vmatpush.bf16.msrb.mxu3 %v21448_v29  ;;  %v6773_v33 = vunpack.c.l.b16 %v6603_v25  ;;  %v6774_v34 = vunpack.c.h.b16 %v6603_v25  ;;  %v21487_v25 = vld [vmem:[#allocation2 + $0x1500] sm:$0xff] }
 0x297   :  { %6557 = vmatpush.bf16.msrb.mxu0 %v21423_v30  ;;  %v5262_v56 = vpop.f32.mrf.mxu0  ;;  %v21463_v30 = vld [vmem:[#allocation2 + $0x1440] sm:$0xff] }
 0x298   :  { %6570 = vmatpush.bf16.msrb.mxu1 %v21431_v35  ;;  %v5263_v58 = vadd.f32 %v5262_v56, %v22709_v16  ;;  %v5275_v61 = vpop.f32.mrf.mxu1  ;;  %v21494_v35 = vld [vmem:[#allocation2 + $0x1538] sm:$0xff] }
 0x299   :  { %6583 = vmatpush.bf16.msrb.mxu2 %v21439_v36  ;;  %v21502_v36 = vld [vmem:[#allocation2 + $0x1578] sm:$0xff] }
 0x29a   :  { %6596 = vmatpush.bf16.msrb.mxu3 %v21447_v41  ;;  %6558 = vmatmul.bf16.vlgmr.msrb.gmra.mxu0 %v5606_v43  ;;  %v5276_v62 = vadd.f32 %v5275_v61, %v5263_v58  ;;  %v6783_v41 = vpack.c.b16 %v6773_v33, %v6773_v33  ;;  %v6784_v43 = vpack.c.b16 %v6774_v34, %v6774_v34  ;;  %v21515_v58 = vld [vmem:[#allocation2 + $0x15e0] sm:$0xff]  ;;  %v21498_v61 = vld [vmem:[#allocation2 + $0x1558] sm:$0xff] }
 0x29b   :  { %7283 = vmatpush.bf16.msra.mxu0 %v21462_v38  ;;  %6571 = vmatmul.bf16.vlgmr.msrb.gmra.mxu1 %v5607_v46  ;;  %v21479_v38 = vld [vmem:[#allocation2 + $0x14c0] sm:$0xff]  ;;  %v21509_v46 = vld [vmem:[#allocation2 + $0x15b0] sm:$0xff]  ;;  %v21670_v33 = vld [vmem:[#allocation4 + $0x438] sm:$0xff] }
 0x29c   :  { %7296 = vmatpush.bf16.msra.mxu1 %v21470_v39  ;;  %6584 = vmatmul.bf16.vlgmr.msrb.gmra.mxu2 %v5608_v44  ;;  %v6776_v39 = vunpack.c.h.b16 %v6604_v23  ;;  %v21493_v44 = vld [vmem:[#allocation2 + $0x1530] sm:$0xff]  ;;  %v21511_v34 = vld [vmem:[#allocation2 + $0x15c0] sm:$0xff] }
 0x29d   :  { %7309 = vmatpush.bf16.msra.mxu2 %v21478_v42  ;;  %6597 = vmatmul.bf16.vlgmr.msrb.gmra.mxu3 %v5609_v47  ;;  %v6785_v42 = vpack.c.b16 %v6775_v28, %v6775_v28  ;;  %v21526_v28 = vld [vmem:[#allocation2 + $0x1638] sm:$0xff] }
 0x29e   :  { %7322 = vmatpush.bf16.msra.mxu3 %v21486_v45  ;;  %v21501_v45 = vld [vmem:[#allocation2 + $0x1570] sm:$0xff]  ;;  %v6786_v47 = vpack.c.b16 %v6776_v39, %v6776_v39 }
 0x29f   :  { %7284 = vmatpush.bf16.msra.mxu0 %v21461_v48  ;;  %v5288_v3 = vpop.f32.mrf.mxu2  ;;  %v5264_v8 = vpop.f32.mrf.mxu0  ;;  %v21517_v48 = vld [vmem:[#allocation2 + $0x15f0] sm:$0xff] }
 0x2a0   :  { %7297 = vmatpush.bf16.msra.mxu1 %v21469_v49  ;;  %v5289_v4 = vadd.f32 %v5288_v3, %v5276_v62  ;;  %v5301_v6 = vpop.f32.mrf.mxu3  ;;  %v5277_v16 = vpop.f32.mrf.mxu1  ;;  %v21492_v49 = vld [vmem:[#allocation2 + $0x1528] sm:$0xff]  ;;  %v21506_v62 = vld [vmem:[#allocation2 + $0x1598] sm:$0xff]  ;;  %v21497_v3 = vld [vmem:[#allocation2 + $0x1550] sm:$0xff] }
 0x2a1   :  { %7310 = vmatpush.bf16.msra.mxu2 %v21477_v50  ;;  %v21500_v50 = vld [vmem:[#allocation2 + $0x1568] sm:$0xff]  ;;  %v6605_v16 = vld [vmem:[%s23011_s0 + $0x150] sm:$0xff] }
 0x2a2   :  { %7323 = vmatpush.bf16.msra.mxu3 %v21485_v51  ;;  %v5302_v9 = vadd.f32 %v5301_v6, %v5289_v4  ;;  %v21508_v51 = vld [vmem:[#allocation2 + $0x15a8] sm:$0xff]  ;;  %v21505_v4 = vld [vmem:[#allocation2 + $0x1590] sm:$0xff]  ;;  %v6777_v23 = vunpack.c.l.b16 %v6605_v16 }
 0x2a3   :  { %7285 = vmatpush.bf16.msra.mxu0 %v21460_v52  ;;  %v21516_v52 = vld [vmem:[#allocation2 + $0x15e8] sm:$0xff]  ;;  %v21525_v39 = vld [vmem:[#allocation2 + $0x1630] sm:$0xff] }
 0x2a4   :  { %7298 = vmatpush.bf16.msra.mxu1 %v21468_v53  ;;  %v22719_v17 = vadd.f32 %v5302_v9, %v22683_v32  ;;  %v21455_v32 = vld [vmem:[#allocation2 + $0x1400] sm:$0xff] }
 0x2a5   :  { %7311 = vmatpush.bf16.msra.mxu2 %v21476_v54  ;;  %v21491_v53 = vld [vmem:[#allocation2 + $0x1520] sm:$0xff] }
 0x2a6   :  { %7324 = vmatpush.bf16.msra.mxu3 %v21484_v55  ;;  %v21499_v54 = vld [vmem:[#allocation2 + $0x1560] sm:$0xff] }
 0x2a7   :  { %7286 = vmatpush.bf16.msra.mxu0 %v21459_v57  ;;  %v5290_v26 = vpop.f32.mrf.mxu2  ;;  %v21507_v55 = vld [vmem:[#allocation2 + $0x15a0] sm:$0xff] }
 0x2a8   :  { %7299 = vmatpush.bf16.msra.mxu1 %v21467_v59  ;;  %v5303_v29 = vpop.f32.mrf.mxu3  ;;  %v21495_v26 = vld [vmem:[#allocation2 + $0x1540] sm:$0xff] }
 0x2a9   :  { %7312 = vmatpush.bf16.msra.mxu2 %v21475_v60  ;;  %v21490_v60 = vld [vmem:[#allocation2 + $0x1518] sm:$0xff]  ;;  %v6778_v29 = vunpack.c.h.b16 %v6605_v16 }
 0x2aa   :  { %7325 = vmatpush.bf16.msra.mxu3 %v21483_v63  ;;  %v21514_v63 = vld [vmem:[#allocation2 + $0x15d8] sm:$0xff] }
 0x2ab   :  { %7287 = vmatpush.bf16.msra.mxu0 %v21458_v0 }
 0x2ac   :  { %7300 = vmatpush.bf16.msra.mxu1 %v21466_v1 }
 0x2ad   :  { %7313 = vmatpush.bf16.msra.mxu2 %v21474_v2  ;;  %v21489_v2 = vld [vmem:[#allocation2 + $0x1510] sm:$0xff] }
 0x2ae   :  { %7326 = vmatpush.bf16.msra.mxu3 %v21482_v5 }
 0x2af   :  { %7288 = vmatpush.bf16.msra.mxu0 %v21457_v7  ;;  %v21513_v7 = vld [vmem:[#allocation2 + $0x15d0] sm:$0xff] }
 0x2b0   :  { %7301 = vmatpush.bf16.msra.mxu1 %v21465_v12  ;;  %v21488_v12 = vld [vmem:[#allocation2 + $0x1508] sm:$0xff] }
 0x2b1   :  { %7314 = vmatpush.bf16.msra.mxu2 %v21473_v15  ;;  %v21496_v15 = vld [vmem:[#allocation2 + $0x1548] sm:$0xff] }
 0x2b2   :  { %7327 = vmatpush.bf16.msra.mxu3 %v21481_v18  ;;  %v21504_v18 = vld [vmem:[#allocation2 + $0x1588] sm:$0xff] }
 0x2b3   :  { %7289 = vmatpush.bf16.msra.mxu0 %v21456_v19  ;;  %v6606_v19 = vld [vmem:[%s23011_s0 + $0x158] sm:$0xff] }
 0x2b4   :  { %7302 = vmatpush.bf16.msra.mxu1 %v21464_v20  ;;  %v21512_v20 = vld [vmem:[#allocation2 + $0x15c8] sm:$0xff] }
 0x2b5   :  { %7315 = vmatpush.bf16.msra.mxu2 %v21472_v22 }
 0x2b6   :  { %7328 = vmatpush.bf16.msra.mxu3 %v21480_v27  ;;  %v6779_v27 = vunpack.c.l.b16 %v6606_v19 }
 0x2b7   :  { %7290 = vmatpush.bf16.msra.mxu0 %v21455_v32  ;;  %v6403_v56 = vpop.f32.mrf.mxu0  ;;  %v21503_v32 = vld [vmem:[#allocation2 + $0x1580] sm:$0xff] }
 0x2b8   :  { %7303 = vmatpush.bf16.msra.mxu1 %v21463_v30  ;;  %v6416_v57 = vpop.f32.mrf.mxu1 }
 0x2b9   :  { %7316 = vmatpush.bf16.msra.mxu2 %v21471_v31  ;;  %v6417_v59 = vadd.f32 %v6416_v57, %v6403_v56  ;;  %v21534_v31 = vld [vmem:[#allocation2 + $0x1678] sm:$0xff] }
 0x2ba   :  { %7329 = vmatpush.bf16.msra.mxu3 %v21479_v38  ;;  %7291 = vmatmul.bf16.vlgmr.msra.gmra.mxu0 %v6783_v41  ;;  %v6789_v38 = vpack.c.b16 %v6779_v27, %v6779_v27  ;;  %v21669_v41 = vld [vmem:[#allocation4 + $0x430] sm:$0xff]  ;;  %v21522_v57 = vld [vmem:[#allocation2 + $0x1618] sm:$0xff] }
 0x2bb   :  { %7335 = vmatpush.bf16.msrb.mxu0 %v21494_v35  ;;  %7304 = vmatmul.bf16.vlgmr.msra.gmra.mxu1 %v6784_v43  ;;  %v6787_v35 = vpack.c.b16 %v6777_v23, %v6777_v23  ;;  %v21663_v23 = vld [vmem:[#allocation4 + $0x400] sm:$0xff]  ;;  %v21686_v27 = vld [vmem:[#allocation4 + $0x4b8] sm:$0xff] }
 0x2bc   :  { %7348 = vmatpush.bf16.msrb.mxu1 %v21502_v36  ;;  %7317 = vmatmul.bf16.vlgmr.msra.gmra.mxu2 %v6785_v42  ;;  %v6780_v36 = vunpack.c.h.b16 %v6606_v19  ;;  %v21533_v42 = vld [vmem:[#allocation2 + $0x1670] sm:$0xff]  ;;  %v21519_v19 = vld [vmem:[#allocation2 + $0x1600] sm:$0xff] }
 0x2bd   :  { %7361 = vmatpush.bf16.msrb.mxu2 %v21510_v37  ;;  %7330 = vmatmul.bf16.vlgmr.msra.gmra.mxu3 %v6786_v47  ;;  %v21678_v37 = vld [vmem:[#allocation4 + $0x478] sm:$0xff]  ;;  %v21668_v47 = vld [vmem:[#allocation4 + $0x428] sm:$0xff] }
 0x2be   :  { %7374 = vmatpush.bf16.msrb.mxu3 %v21518_v40  ;;  %v6788_v40 = vpack.c.b16 %v6778_v29, %v6778_v29  ;;  %v6790_v43 = vpack.c.b16 %v6780_v36, %v6780_v36  ;;  %v21702_v29 = vld [vmem:[#allocation4 + $0x538] sm:$0xff] }
 0x2bf   :  { %7336 = vmatpush.bf16.msrb.mxu0 %v21493_v44  ;;  %v6429_v0 = vpop.f32.mrf.mxu2  ;;  %v6405_v6 = vpop.f32.mrf.mxu0  ;;  %v21677_v44 = vld [vmem:[#allocation4 + $0x470] sm:$0xff] }
 0x2c0   :  { %7349 = vmatpush.bf16.msrb.mxu1 %v21501_v45  ;;  %v6430_v1 = vadd.f32 %v6429_v0, %v6417_v59  ;;  %v6442_v5 = vpop.f32.mrf.mxu3  ;;  %v6418_v9 = vpop.f32.mrf.mxu1  ;;  %v21524_v45 = vld [vmem:[#allocation2 + $0x1628] sm:$0xff]  ;;  %v21666_v59 = vld [vmem:[#allocation4 + $0x418] sm:$0xff]  ;;  %v21673_v6 = vld [vmem:[#allocation4 + $0x450] sm:$0xff] }
 0x2c1   :  { %7362 = vmatpush.bf16.msrb.mxu2 %v21509_v46  ;;  %v21532_v46 = vld [vmem:[#allocation2 + $0x1668] sm:$0xff] }
 0x2c2   :  { %7375 = vmatpush.bf16.msrb.mxu3 %v21517_v48  ;;  %v22727_v8 = vadd.f32 %v6442_v5, %v6430_v1  ;;  %v21676_v48 = vld [vmem:[#allocation4 + $0x468] sm:$0xff]  ;;  %v21529_v1 = vld [vmem:[#allocation2 + $0x1650] sm:$0xff] }
 0x2c3   :  { %7337 = vmatpush.bf16.msrb.mxu0 %v21492_v49  ;;  %v21523_v49 = vld [vmem:[#allocation2 + $0x1620] sm:$0xff]  ;;  %v21664_v9 = vld [vmem:[#allocation4 + $0x408] sm:$0xff] }
 0x2c4   :  { %7350 = vmatpush.bf16.msrb.mxu1 %v21500_v50 }
 0x2c5   :  { %7363 = vmatpush.bf16.msrb.mxu2 %v21508_v51  ;;  %v21531_v51 = vld [vmem:[#allocation2 + $0x1660] sm:$0xff] }
 0x2c6   :  { %7376 = vmatpush.bf16.msrb.mxu3 %v21516_v52  ;;  %v21667_v52 = vld [vmem:[#allocation4 + $0x420] sm:$0xff] }
 0x2c7   :  { %7338 = vmatpush.bf16.msrb.mxu0 %v21491_v53  ;;  %v6431_v22 = vpop.f32.mrf.mxu2 }
 0x2c8   :  { %7351 = vmatpush.bf16.msrb.mxu1 %v21499_v54  ;;  %v6444_v30 = vpop.f32.mrf.mxu3  ;;  %v21527_v22 = vld [vmem:[#allocation2 + $0x1640] sm:$0xff] }
 0x2c9   :  { %7364 = vmatpush.bf16.msrb.mxu2 %v21507_v55  ;;  %v21675_v55 = vld [vmem:[#allocation4 + $0x460] sm:$0xff] }
 0x2ca   :  { %7377 = vmatpush.bf16.msrb.mxu3 %v21515_v58  ;;  %v21530_v58 = vld [vmem:[#allocation2 + $0x1658] sm:$0xff]  ;;  %v21671_v30 = vld [vmem:[#allocation4 + $0x440] sm:$0xff] }
 0x2cb   :  { %7339 = vmatpush.bf16.msrb.mxu0 %v21490_v60  ;;  %v21674_v60 = vld [vmem:[#allocation4 + $0x458] sm:$0xff] }
 0x2cc   :  { %7352 = vmatpush.bf16.msrb.mxu1 %v21498_v61 }
 0x2cd   :  { %7365 = vmatpush.bf16.msrb.mxu2 %v21506_v62 }
 0x2ce   :  { %7378 = vmatpush.bf16.msrb.mxu3 %v21514_v63  ;;  %v21521_v63 = vld [vmem:[#allocation2 + $0x1610] sm:$0xff] }
 0x2cf   :  { %7340 = vmatpush.bf16.msrb.mxu0 %v21489_v2  ;;  %v21665_v2 = vld [vmem:[#allocation4 + $0x410] sm:$0xff] }
 0x2d0   :  { %7353 = vmatpush.bf16.msrb.mxu1 %v21497_v3 }
 0x2d1   :  { %7366 = vmatpush.bf16.msrb.mxu2 %v21505_v4 }
 0x2d2   :  { %7379 = vmatpush.bf16.msrb.mxu3 %v21513_v7  ;;  %v21520_v7 = vld [vmem:[#allocation2 + $0x1608] sm:$0xff] }
 0x2d3   :  { %7341 = vmatpush.bf16.msrb.mxu0 %v21488_v12  ;;  %v6607_v12 = vld [vmem:[%s23011_s0 + $0x160] sm:$0xff] }
 0x2d4   :  { %7354 = vmatpush.bf16.msrb.mxu1 %v21496_v15  ;;  %v21672_v15 = vld [vmem:[#allocation4 + $0x448] sm:$0xff] }
 0x2d5   :  { %7367 = vmatpush.bf16.msrb.mxu2 %v21504_v18  ;;  %v7696_v18 = vld [vmem:[%s23011_s0 + $0x98] sm:$0xff] }
 0x2d6   :  { %7380 = vmatpush.bf16.msrb.mxu3 %v21512_v20  ;;  %v6781_v20 = vunpack.c.l.b16 %v6607_v12 }
 0x2d7   :  { %7342 = vmatpush.bf16.msrb.mxu0 %v21487_v25  ;;  %v6455_v50 = vpop.f32.mrf.mxu0  ;;  %v6782_v25 = vunpack.c.h.b16 %v6607_v12 }
 0x2d8   :  { %7355 = vmatpush.bf16.msrb.mxu1 %v21495_v26  ;;  %v6456_v53 = vadd.f32 %v6455_v50, %v22727_v8  ;;  %v6468_v54 = vpop.f32.mrf.mxu1  ;;  %v21528_v8 = vld [vmem:[#allocation2 + $0x1648] sm:$0xff]  ;;  %v7968_v26 = vunpack.c.l.b16 %v7696_v18  ;;  %v21699_v50 = vld [vmem:[#allocation4 + $0x520] sm:$0xff] }
 0x2d9   :  { %7368 = vmatpush.bf16.msrb.mxu2 %v21503_v32  ;;  %v21694_v32 = vld [vmem:[#allocation4 + $0x4f8] sm:$0xff] }
 0x2da   :  { %7381 = vmatpush.bf16.msrb.mxu3 %v21511_v34  ;;  %7343 = vmatmul.bf16.vlgmr.msrb.gmra.mxu0 %v6787_v35  ;;  %v6469_v56 = vadd.f32 %v6468_v54, %v6456_v53  ;;  %v21710_v34 = vld [vmem:[#allocation4 + $0x578] sm:$0xff]  ;;  %v6792_v35 = vpack.c.b16 %v6782_v25, %v6782_v25  ;;  %v7984_v36 = vpack.c.b16 %v7968_v26, %v7968_v26 }
 0x2db   :  { %7387 = vmatpush.bf16.msra.mxu0 %v21526_v28  ;;  %7356 = vmatmul.bf16.vlgmr.msrb.gmra.mxu1 %v6788_v40  ;;  %v21682_v54 = vld [vmem:[#allocation4 + $0x498] sm:$0xff] }
 0x2dc   :  { %7400 = vmatpush.bf16.msra.mxu1 %v21534_v31  ;;  %7369 = vmatmul.bf16.vlgmr.msrb.gmra.mxu2 %v6789_v38  ;;  %v7969_v31 = vunpack.c.h.b16 %v7696_v18  ;;  %v21693_v38 = vld [vmem:[#allocation4 + $0x4f0] sm:$0xff]  ;;  %v21687_v18 = vld [vmem:[#allocation4 + $0x4c0] sm:$0xff]  ;;  %v21726_v26 = vld [vmem:[#allocation4 + $0x5f8] sm:$0xff] }
 0x2dd   :  { %8784 = vmatpush.bf16.msra.mxu2 %v21670_v33  ;;  %7382 = vmatmul.bf16.vlgmr.msrb.gmra.mxu3 %v6790_v43  ;;  %v6791_v33 = vpack.c.b16 %v6781_v20, %v6781_v20  ;;  %v21692_v43 = vld [vmem:[#allocation4 + $0x4e8] sm:$0xff] }
 0x2de   :  { %8797 = vmatpush.bf16.msra.mxu3 %v21678_v37  ;;  %v21685_v37 = vld [vmem:[#allocation4 + $0x4b0] sm:$0xff]  ;;  %v7985_v40 = vpack.c.b16 %v7969_v31, %v7969_v31 }
 0x2df   :  { %7388 = vmatpush.bf16.msra.mxu0 %v21525_v39  ;;  %v6481_v61 = vpop.f32.mrf.mxu2  ;;  %v6457_v0 = vpop.f32.mrf.mxu0  ;;  %v21701_v39 = vld [vmem:[#allocation4 + $0x530] sm:$0xff] }
 0x2e0   :  { %7401 = vmatpush.bf16.msra.mxu1 %v21533_v42  ;;  %v6482_v62 = vadd.f32 %v6481_v61, %v6469_v56  ;;  %v6494_v3 = vpop.f32.mrf.mxu3  ;;  %v6470_v4 = vpop.f32.mrf.mxu1  ;;  %v21709_v42 = vld [vmem:[#allocation4 + $0x570] sm:$0xff]  ;;  %v21698_v56 = vld [vmem:[#allocation4 + $0x518] sm:$0xff] }
 0x2e1   :  { %8785 = vmatpush.bf16.msra.mxu2 %v21669_v41  ;;  %v21684_v41 = vld [vmem:[#allocation4 + $0x4a8] sm:$0xff]  ;;  %v21681_v61 = vld [vmem:[#allocation4 + $0x490] sm:$0xff] }
 0x2e2   :  { %8798 = vmatpush.bf16.msra.mxu3 %v21677_v44  ;;  %v22736_v5 = vadd.f32 %v6494_v3, %v6482_v62  ;;  %v21700_v44 = vld [vmem:[#allocation4 + $0x528] sm:$0xff]  ;;  %v21689_v62 = vld [vmem:[#allocation4 + $0x4d0] sm:$0xff] }
 0x2e3   :  { %7389 = vmatpush.bf16.msra.mxu0 %v21524_v45  ;;  %v21708_v45 = vld [vmem:[#allocation4 + $0x568] sm:$0xff]  ;;  %v21705_v3 = vld [vmem:[#allocation4 + $0x550] sm:$0xff] }
 0x2e4   :  { %7402 = vmatpush.bf16.msra.mxu1 %v21532_v46  ;;  %v21680_v4 = vld [vmem:[#allocation4 + $0x488] sm:$0xff] }
 0x2e5   :  { %8786 = vmatpush.bf16.msra.mxu2 %v21668_v47  ;;  %v21683_v47 = vld [vmem:[#allocation4 + $0x4a0] sm:$0xff] }
 0x2e6   :  { %8799 = vmatpush.bf16.msra.mxu3 %v21676_v48  ;;  %v21691_v48 = vld [vmem:[#allocation4 + $0x4e0] sm:$0xff] }
 0x2e7   :  { %7390 = vmatpush.bf16.msra.mxu0 %v21523_v49  ;;  %v6483_v16 = vpop.f32.mrf.mxu2 }
 0x2e8   :  { %7403 = vmatpush.bf16.msra.mxu1 %v21531_v51  ;;  %v6496_v28 = vpop.f32.mrf.mxu3  ;;  %v21679_v16 = vld [vmem:[#allocation4 + $0x480] sm:$0xff] }
 0x2e9   :  { %8787 = vmatpush.bf16.msra.mxu2 %v21667_v52  ;;  %v21707_v52 = vld [vmem:[#allocation4 + $0x560] sm:$0xff] }
 0x2ea   :  { %8800 = vmatpush.bf16.msra.mxu3 %v21675_v55  ;;  %v21690_v55 = vld [vmem:[#allocation4 + $0x4d8] sm:$0xff] }
 0x2eb   :  { %7391 = vmatpush.bf16.msra.mxu0 %v21522_v57 }
 0x2ec   :  { %7404 = vmatpush.bf16.msra.mxu1 %v21530_v58  ;;  %v21706_v58 = vld [vmem:[#allocation4 + $0x558] sm:$0xff] }
 0x2ed   :  { %8788 = vmatpush.bf16.msra.mxu2 %v21666_v59 }
 0x2ee   :  { %8801 = vmatpush.bf16.msra.mxu3 %v21674_v60 }
 0x2ef   :  { %7392 = vmatpush.bf16.msra.mxu0 %v21521_v63 }
 0x2f0   :  { %7405 = vmatpush.bf16.msra.mxu1 %v21529_v1  ;;  %v21697_v1 = vld [vmem:[#allocation4 + $0x510] sm:$0xff] }
 0x2f1   :  { %8789 = vmatpush.bf16.msra.mxu2 %v21665_v2 }
 0x2f2   :  { %8802 = vmatpush.bf16.msra.mxu3 %v21673_v6  ;;  %v7697_v6 = vld [vmem:[%s23011_s0 + $0xa0] sm:$0xff] }
 0x2f3   :  { %7393 = vmatpush.bf16.msra.mxu0 %v21520_v7  ;;  %v21696_v7 = vld [vmem:[#allocation4 + $0x508] sm:$0xff]  ;;  %v7971_v25 = vunpack.c.h.b16 %v7697_v6 }
 0x2f4   :  { %7406 = vmatpush.bf16.msra.mxu1 %v21528_v8  ;;  %v7698_v8 = vld [vmem:[%s23011_s0 + $0xa8] sm:$0xff] }
 0x2f5   :  { %8790 = vmatpush.bf16.msra.mxu2 %v21664_v9  ;;  %v21704_v9 = vld [vmem:[#allocation4 + $0x548] sm:$0xff]  ;;  %v7972_v20 = vunpack.c.l.b16 %v7698_v8 }
 0x2f6   :  { %8803 = vmatpush.bf16.msra.mxu3 %v21672_v15  ;;  %v7970_v15 = vunpack.c.l.b16 %v7697_v6  ;;  %v7699_v6 = vld [vmem:[%s23011_s0 + $0xb0] sm:$0xff] }
 0x2f7   :  { %7394 = vmatpush.bf16.msra.mxu0 %v21519_v19  ;;  %v6507_v46 = vpop.f32.mrf.mxu0  ;;  %v7988_v31 = vpack.c.b16 %v7972_v20, %v7972_v20  ;;  %v21750_v20 = vld [vmem:[#allocation4 + $0x6b8] sm:$0xff] }
 0x2f8   :  { %7407 = vmatpush.bf16.msra.mxu1 %v21527_v22  ;;  %v6508_v49 = vadd.f32 %v6507_v46, %v22736_v5  ;;  %v6520_v51 = vpop.f32.mrf.mxu1  ;;  %v21688_v5 = vld [vmem:[#allocation4 + $0x4c8] sm:$0xff]  ;;  %v21695_v22 = vld [vmem:[#allocation4 + $0x500] sm:$0xff]  ;;  %v7986_v28 = vpack.c.b16 %v7970_v15, %v7970_v15 }
 0x2f9   :  { %8791 = vmatpush.bf16.msra.mxu2 %v21663_v23  ;;  %v21718_v23 = vld [vmem:[#allocation4 + $0x5b8] sm:$0xff]  ;;  %v21731_v46 = vld [vmem:[#allocation4 + $0x620] sm:$0xff] }
 0x2fa   :  { %8804 = vmatpush.bf16.msra.mxu3 %v21671_v30  ;;  %7395 = vmatmul.bf16.vlgmr.msra.gmra.mxu0 %v6791_v33  ;;  %v6521_v53 = vadd.f32 %v6520_v51, %v6508_v49  ;;  %v21742_v30 = vld [vmem:[#allocation4 + $0x678] sm:$0xff]  ;;  %v21717_v33 = vld [vmem:[#allocation4 + $0x5b0] sm:$0xff]  ;;  %v21739_v49 = vld [vmem:[#allocation4 + $0x660] sm:$0xff] }
 0x2fb   :  { %8810 = vmatpush.bf16.msrb.mxu0 %v21686_v27  ;;  %7408 = vmatmul.bf16.vlgmr.msra.gmra.mxu1 %v6792_v35  ;;  %v21734_v27 = vld [vmem:[#allocation4 + $0x638] sm:$0xff]  ;;  %v21725_v35 = vld [vmem:[#allocation4 + $0x5f0] sm:$0xff]  ;;  %v21727_v15 = vld [vmem:[#allocation4 + $0x600] sm:$0xff] }
 0x2fc   :  { %8823 = vmatpush.bf16.msrb.mxu1 %v21694_v32  ;;  %8792 = vmatmul.bf16.vlgmr.msra.gmra.mxu2 %v7984_v36  ;;  %v21703_v32 = vld [vmem:[#allocation4 + $0x540] sm:$0xff]  ;;  %v21733_v36 = vld [vmem:[#allocation4 + $0x630] sm:$0xff]  ;;  %v21714_v51 = vld [vmem:[#allocation4 + $0x598] sm:$0xff] }
 0x2fd   :  { %8836 = vmatpush.bf16.msrb.mxu2 %v21702_v29  ;;  %8805 = vmatmul.bf16.vlgmr.msra.gmra.mxu3 %v7985_v40  ;;  %v7973_v29 = vunpack.c.h.b16 %v7698_v8  ;;  %v21724_v40 = vld [vmem:[#allocation4 + $0x5e8] sm:$0xff] }
 0x2fe   :  { %8849 = vmatpush.bf16.msrb.mxu3 %v21710_v34  ;;  %v7987_v34 = vpack.c.b16 %v7971_v25, %v7971_v25  ;;  %v21735_v25 = vld [vmem:[#allocation4 + $0x640] sm:$0xff] }
 0x2ff   :  { %8811 = vmatpush.bf16.msrb.mxu0 %v21685_v37  ;;  %v6533_v57 = vpop.f32.mrf.mxu2  ;;  %v6509_v63 = vpop.f32.mrf.mxu0  ;;  %v7989_v37 = vpack.c.b16 %v7973_v29, %v7973_v29 }
 0x300   :  { %8824 = vmatpush.bf16.msrb.mxu1 %v21693_v38  ;;  %v6534_v59 = vadd.f32 %v6533_v57, %v6521_v53  ;;  %v6546_v60 = vpop.f32.mrf.mxu3  ;;  %v6522_v2 = vpop.f32.mrf.mxu1  ;;  %v21741_v38 = vld [vmem:[#allocation4 + $0x670] sm:$0xff]  ;;  %v21730_v53 = vld [vmem:[#allocation4 + $0x618] sm:$0xff] }
 0x301   :  { %8837 = vmatpush.bf16.msrb.mxu2 %v21701_v39  ;;  %v21716_v39 = vld [vmem:[#allocation4 + $0x5a8] sm:$0xff]  ;;  %v21713_v57 = vld [vmem:[#allocation4 + $0x590] sm:$0xff] }
 0x302   :  { %8850 = vmatpush.bf16.msrb.mxu3 %v21709_v42  ;;  %v22745_v0 = vadd.f32 %v6546_v60, %v6534_v59  ;;  %v21732_v42 = vld [vmem:[#allocation4 + $0x628] sm:$0xff]  ;;  %v21721_v59 = vld [vmem:[#allocation4 + $0x5d0] sm:$0xff] }
 0x303   :  { %8812 = vmatpush.bf16.msrb.mxu0 %v21684_v41  ;;  %v21740_v41 = vld [vmem:[#allocation4 + $0x668] sm:$0xff]  ;;  %v21729_v60 = vld [vmem:[#allocation4 + $0x610] sm:$0xff] }
 0x304   :  { %8825 = vmatpush.bf16.msrb.mxu1 %v21692_v43  ;;  %v21715_v43 = vld [vmem:[#allocation4 + $0x5a0] sm:$0xff]  ;;  %v21712_v2 = vld [vmem:[#allocation4 + $0x588] sm:$0xff] }
 0x305   :  { %8838 = vmatpush.bf16.msrb.mxu2 %v21700_v44 }
 0x306   :  { %8851 = vmatpush.bf16.msrb.mxu3 %v21708_v45  ;;  %v21723_v45 = vld [vmem:[#allocation4 + $0x5e0] sm:$0xff] }
 0x307   :  { %8813 = vmatpush.bf16.msrb.mxu0 %v21683_v47  ;;  %v6535_v12 = vpop.f32.mrf.mxu2 }
 0x308   :  { %8826 = vmatpush.bf16.msrb.mxu1 %v21691_v48  ;;  %v6548_v19 = vpop.f32.mrf.mxu3  ;;  %v21719_v12 = vld [vmem:[#allocation4 + $0x5c0] sm:$0xff] }
 0x309   :  { %8839 = vmatpush.bf16.msrb.mxu2 %v21699_v50 }
 0x30a   :  { %8852 = vmatpush.bf16.msrb.mxu3 %v21707_v52  ;;  %v21722_v52 = vld [vmem:[#allocation4 + $0x5d8] sm:$0xff] }
 0x30b   :  { %8814 = vmatpush.bf16.msrb.mxu0 %v21682_v54 }
 0x30c   :  { %8827 = vmatpush.bf16.msrb.mxu1 %v21690_v55  ;;  %v21738_v55 = vld [vmem:[#allocation4 + $0x658] sm:$0xff] }
 0x30d   :  { %8840 = vmatpush.bf16.msrb.mxu2 %v21698_v56 }
 0x30e   :  { %8853 = vmatpush.bf16.msrb.mxu3 %v21706_v58 }
 0x30f   :  { %8815 = vmatpush.bf16.msrb.mxu0 %v21681_v61 }
 0x310   :  { %8828 = vmatpush.bf16.msrb.mxu1 %v21689_v62 }
 0x311   :  { %8841 = vmatpush.bf16.msrb.mxu2 %v21697_v1 }
 0x312   :  { %8854 = vmatpush.bf16.msrb.mxu3 %v21705_v3  ;;  %v21720_v3 = vld [vmem:[#allocation4 + $0x5c8] sm:$0xff] }
 0x313   :  { %8816 = vmatpush.bf16.msrb.mxu0 %v21680_v4  ;;  %v21728_v4 = vld [vmem:[#allocation4 + $0x608] sm:$0xff] }
 0x314   :  { %8829 = vmatpush.bf16.msrb.mxu1 %v21688_v5  ;;  %v7700_v5 = vld [vmem:[%s23011_s0 + $0xb8] sm:$0xff] }
 0x315   :  { %8842 = vmatpush.bf16.msrb.mxu2 %v21696_v7  ;;  %v21736_v7 = vld [vmem:[#allocation4 + $0x648] sm:$0xff] }
 0x316   :  { %8855 = vmatpush.bf16.msrb.mxu3 %v21704_v9  ;;  %v7976_v9 = vunpack.c.l.b16 %v7700_v5 }
 0x317   :  { %8817 = vmatpush.bf16.msrb.mxu0 %v21679_v16  ;;  %v6559_v44 = vpop.f32.mrf.mxu0  ;;  %v7974_v16 = vunpack.c.l.b16 %v7699_v6 }
 0x318   :  { %8830 = vmatpush.bf16.msrb.mxu1 %v21687_v18  ;;  %v6560_v47 = vadd.f32 %v6559_v44, %v22745_v0  ;;  %v6572_v48 = vpop.f32.mrf.mxu1  ;;  %v21737_v0 = vld [vmem:[#allocation4 + $0x650] sm:$0xff]  ;;  %v7975_v18 = vunpack.c.h.b16 %v7699_v6  ;;  %v21743_v6 = vld [vmem:[#allocation4 + $0x680] sm:$0xff] }
 0x319   :  { %8843 = vmatpush.bf16.msrb.mxu2 %v21695_v22  ;;  %v21758_v22 = vld [vmem:[#allocation4 + $0x6f8] sm:$0xff] }
 0x31a   :  { %8856 = vmatpush.bf16.msrb.mxu3 %v21703_v32  ;;  %8818 = vmatmul.bf16.vlgmr.msrb.gmra.mxu0 %v7986_v28  ;;  %v6573_v50 = vadd.f32 %v6572_v48, %v6560_v47  ;;  %v7992_v32 = vpack.c.b16 %v7976_v9, %v7976_v9  ;;  %v7990_v28 = vpack.c.b16 %v7974_v16, %v7974_v16  ;;  %v21746_v47 = vld [vmem:[#allocation4 + $0x698] sm:$0xff] }
 0x31b   :  { %8862 = vmatpush.bf16.msra.mxu0 %v21718_v23  ;;  %8831 = vmatmul.bf16.vlgmr.msrb.gmra.mxu1 %v7987_v34  ;;  %v21766_v23 = vld [vmem:[#allocation4 + $0x738] sm:$0xff]  ;;  %v7991_v29 = vpack.c.b16 %v7975_v18, %v7975_v18 }
 0x31c   :  { %8875 = vmatpush.bf16.msra.mxu1 %v21726_v26  ;;  %8844 = vmatmul.bf16.vlgmr.msrb.gmra.mxu2 %v7988_v31  ;;  %v7977_v26 = vunpack.c.h.b16 %v7700_v5  ;;  %v21757_v31 = vld [vmem:[#allocation4 + $0x6f0] sm:$0xff]  ;;  %v21754_v48 = vld [vmem:[#allocation4 + $0x6d8] sm:$0xff] }
 0x31d   :  { %8888 = vmatpush.bf16.msra.mxu2 %v21734_v27  ;;  %8857 = vmatmul.bf16.vlgmr.msrb.gmra.mxu3 %v7989_v37  ;;  %v21774_v27 = vld [vmem:[#allocation4 + $0x778] sm:$0xff]  ;;  %v21756_v37 = vld [vmem:[#allocation4 + $0x6e8] sm:$0xff] }
 0x31e   :  { %8901 = vmatpush.bf16.msra.mxu3 %v21742_v30  ;;  %v21749_v30 = vld [vmem:[#allocation4 + $0x6b0] sm:$0xff]  ;;  %v7993_v34 = vpack.c.b16 %v7977_v26, %v7977_v26  ;;  %v21782_v9 = vld [vmem:[#allocation4 + $0x7b8] sm:$0xff] }
 0x31f   :  { %8863 = vmatpush.bf16.msra.mxu0 %v21717_v33  ;;  %v6585_v54 = vpop.f32.mrf.mxu2  ;;  %v6561_v61 = vpop.f32.mrf.mxu0  ;;  %v21765_v33 = vld [vmem:[#allocation4 + $0x730] sm:$0xff]  ;;  %v21542_v16 = vld [vmem:[#allocation4 + $0x38] sm:$0xff] }
 0x320   :  { %8876 = vmatpush.bf16.msra.mxu1 %v21725_v35  ;;  %v6586_v56 = vadd.f32 %v6585_v54, %v6573_v50  ;;  %v6598_v58 = vpop.f32.mrf.mxu3  ;;  %v6574_v63 = vpop.f32.mrf.mxu1  ;;  %v21773_v35 = vld [vmem:[#allocation4 + $0x770] sm:$0xff]  ;;  %v21770_v50 = vld [vmem:[#allocation4 + $0x758] sm:$0xff]  ;;  %v21744_v61 = vld [vmem:[#allocation4 + $0x688] sm:$0xff] }
 0x321   :  { %8889 = vmatpush.bf16.msra.mxu2 %v21733_v36  ;;  %v21748_v36 = vld [vmem:[#allocation4 + $0x6a8] sm:$0xff]  ;;  %v7701_v63 = vld [vmem:[%s23011_s0 + $0xc0] sm:$0xff] }
 0x322   :  { %8902 = vmatpush.bf16.msra.mxu3 %v21741_v38  ;;  %v6599_v62 = vadd.f32 %v6598_v58, %v6586_v56  ;;  %v21764_v38 = vld [vmem:[#allocation4 + $0x728] sm:$0xff]  ;;  %v21769_v56 = vld [vmem:[#allocation4 + $0x750] sm:$0xff] }
 0x323   :  { %8864 = vmatpush.bf16.msra.mxu0 %v21716_v39  ;;  %v21772_v39 = vld [vmem:[#allocation4 + $0x768] sm:$0xff] }
 0x324   :  { %8877 = vmatpush.bf16.msra.mxu1 %v21724_v40  ;;  %v22755_v1 = vadd.f32 %v6599_v62, %v22719_v17  ;;  %v21711_v17 = vld [vmem:[#allocation4 + $0x580] sm:$0xff]  ;;  %v21752_v62 = vld [vmem:[#allocation4 + $0x6c8] sm:$0xff] }
 0x325   :  { %8890 = vmatpush.bf16.msra.mxu2 %v21732_v42  ;;  %v21747_v40 = vld [vmem:[#allocation4 + $0x6a0] sm:$0xff] }
 0x326   :  { %8903 = vmatpush.bf16.msra.mxu3 %v21740_v41  ;;  %v21755_v42 = vld [vmem:[#allocation4 + $0x6e0] sm:$0xff] }
 0x327   :  { %8865 = vmatpush.bf16.msra.mxu0 %v21715_v43  ;;  %v6587_v8 = vpop.f32.mrf.mxu2  ;;  %v21763_v41 = vld [vmem:[#allocation4 + $0x720] sm:$0xff] }
 0x328   :  { %8878 = vmatpush.bf16.msra.mxu1 %v21723_v45  ;;  %v6600_v19 = vpop.f32.mrf.mxu3  ;;  %v21771_v43 = vld [vmem:[#allocation4 + $0x760] sm:$0xff] }
 0x329   :  { %8891 = vmatpush.bf16.msra.mxu2 %v21731_v46 }
 0x32a   :  { %8904 = vmatpush.bf16.msra.mxu3 %v21739_v49  ;;  %v21762_v49 = vld [vmem:[#allocation4 + $0x718] sm:$0xff] }
 0x32b   :  { %8866 = vmatpush.bf16.msra.mxu0 %v21714_v51 }
 0x32c   :  { %8879 = vmatpush.bf16.msra.mxu1 %v21722_v52  ;;  %v21745_v52 = vld [vmem:[#allocation4 + $0x690] sm:$0xff] }
 0x32d   :  { %8892 = vmatpush.bf16.msra.mxu2 %v21730_v53  ;;  %v21753_v53 = vld [vmem:[#allocation4 + $0x6d0] sm:$0xff] }
 0x32e   :  { %8905 = vmatpush.bf16.msra.mxu3 %v21738_v55  ;;  %v21761_v55 = vld [vmem:[#allocation4 + $0x710] sm:$0xff] }
 0x32f   :  { %8867 = vmatpush.bf16.msra.mxu0 %v21713_v57 }
 0x330   :  { %8880 = vmatpush.bf16.msra.mxu1 %v21721_v59 }
 0x331   :  { %8893 = vmatpush.bf16.msra.mxu2 %v21729_v60 }
 0x332   :  { %8906 = vmatpush.bf16.msra.mxu3 %v21737_v0  ;;  %v21760_v0 = vld [vmem:[#allocation4 + $0x708] sm:$0xff] }
 0x333   :  { %8868 = vmatpush.bf16.msra.mxu0 %v21712_v2  ;;  %v7702_v2 = vld [vmem:[%s23011_s0 + $0xc8] sm:$0xff] }
 0x334   :  { %8881 = vmatpush.bf16.msra.mxu1 %v21720_v3  ;;  %v21768_v3 = vld [vmem:[#allocation4 + $0x748] sm:$0xff]  ;;  %v7980_v8 = vunpack.c.l.b16 %v7702_v2  ;;  %v7981_v18 = vunpack.c.h.b16 %v7702_v2 }
 0x335   :  { %8894 = vmatpush.bf16.msra.mxu2 %v21728_v4  ;;  %v7978_v4 = vunpack.c.l.b16 %v7701_v63 }
 0x336   :  { %8907 = vmatpush.bf16.msra.mxu3 %v21736_v7  ;;  %v21751_v7 = vld [vmem:[#allocation4 + $0x6c0] sm:$0xff] }
 0x337   :  { %8869 = vmatpush.bf16.msra.mxu0 %v21711_v17  ;;  %v7292_v44 = vpop.f32.mrf.mxu0  ;;  %v21759_v17 = vld [vmem:[#allocation4 + $0x700] sm:$0xff] }
 0x338   :  { %8882 = vmatpush.bf16.msra.mxu1 %v21719_v12  ;;  %v7305_v45 = vpop.f32.mrf.mxu1  ;;  %v7979_v12 = vunpack.c.h.b16 %v7701_v63  ;;  %v21544_v63 = vld [vmem:[#allocation4 + $0x48] sm:$0xff] }
 0x339   :  { %8895 = vmatpush.bf16.msra.mxu2 %v21727_v15  ;;  %v7306_v46 = vadd.f32 %v7305_v45, %v7292_v44  ;;  %v21790_v15 = vld [vmem:[#allocation4 + $0x7f8] sm:$0xff] }
 0x33a   :  { %8908 = vmatpush.bf16.msra.mxu3 %v21735_v25  ;;  %8870 = vmatmul.bf16.vlgmr.msra.gmra.mxu0 %v7990_v28  ;;  %v21550_v25 = vld [vmem:[#allocation4 + $0x78] sm:$0xff]  ;;  %v7995_v26 = vpack.c.b16 %v7979_v12, %v7979_v12  ;;  %v21789_v28 = vld [vmem:[#allocation4 + $0x7f0] sm:$0xff] }
 0x33b   :  { %8914 = vmatpush.bf16.msrb.mxu0 %v21750_v20  ;;  %8883 = vmatmul.bf16.vlgmr.msra.gmra.mxu1 %v7991_v29  ;;  %v21767_v20 = vld [vmem:[#allocation4 + $0x740] sm:$0xff]  ;;  %v21541_v29 = vld [vmem:[#allocation4 + $0x30] sm:$0xff]  ;;  %v21786_v45 = vld [vmem:[#allocation4 + $0x7d8] sm:$0xff] }
 0x33c   :  { %8927 = vmatpush.bf16.msrb.mxu1 %v21758_v22  ;;  %8896 = vmatmul.bf16.vlgmr.msra.gmra.mxu2 %v7992_v32  ;;  %v7994_v22 = vpack.c.b16 %v7978_v4, %v7978_v4  ;;  %v7997_v32 = vpack.c.b16 %v7981_v18, %v7981_v18  ;;  %v21783_v4 = vld [vmem:[#allocation4 + $0x7c0] sm:$0xff]  ;;  %v21574_v12 = vld [vmem:[#allocation4 + $0x138] sm:$0xff] }
 0x33d   :  { %8940 = vmatpush.bf16.msrb.mxu2 %v21766_v23  ;;  %8909 = vmatmul.bf16.vlgmr.msra.gmra.mxu3 %v7993_v34  ;;  %v7996_v23 = vpack.c.b16 %v7980_v8, %v7980_v8  ;;  %v21540_v34 = vld [vmem:[#allocation4 + $0x28] sm:$0xff]  ;;  %v21535_v8 = vld [vmem:[#allocation4] sm:$0xff] }
 0x33e   :  { %8953 = vmatpush.bf16.msrb.mxu3 %v21774_v27  ;;  %v21781_v27 = vld [vmem:[#allocation4 + $0x7b0] sm:$0xff] }
 0x33f   :  { %8915 = vmatpush.bf16.msrb.mxu0 %v21749_v30  ;;  %v7318_v51 = vpop.f32.mrf.mxu2  ;;  %v7294_v58 = vpop.f32.mrf.mxu0  ;;  %v21549_v30 = vld [vmem:[#allocation4 + $0x70] sm:$0xff] }
 0x340   :  { %8928 = vmatpush.bf16.msrb.mxu1 %v21757_v31  ;;  %v7319_v54 = vadd.f32 %v7318_v51, %v7306_v46  ;;  %v7331_v57 = vpop.f32.mrf.mxu3  ;;  %v7307_v60 = vpop.f32.mrf.mxu1  ;;  %v21780_v31 = vld [vmem:[#allocation4 + $0x7a8] sm:$0xff]  ;;  %v21538_v46 = vld [vmem:[#allocation4 + $0x18] sm:$0xff]  ;;  %v21785_v51 = vld [vmem:[#allocation4 + $0x7d0] sm:$0xff] }
 0x341   :  { %8941 = vmatpush.bf16.msrb.mxu2 %v21765_v33  ;;  %v21788_v33 = vld [vmem:[#allocation4 + $0x7e8] sm:$0xff]  ;;  %v7703_v60 = vld [vmem:[%s23011_s0 + $0xd0] sm:$0xff] }
 0x342   :  { %8954 = vmatpush.bf16.msrb.mxu3 %v21773_v35  ;;  %v22763_v59 = vadd.f32 %v7331_v57, %v7319_v54  ;;  %v21548_v35 = vld [vmem:[#allocation4 + $0x68] sm:$0xff]  ;;  %v7982_v2 = vunpack.c.l.b16 %v7703_v60 }
 0x343   :  { %8916 = vmatpush.bf16.msrb.mxu0 %v21748_v36  ;;  %v21779_v36 = vld [vmem:[#allocation4 + $0x7a0] sm:$0xff]  ;;  %v21776_v58 = vld [vmem:[#allocation4 + $0x788] sm:$0xff] }
 0x344   :  { %8929 = vmatpush.bf16.msrb.mxu1 %v21756_v37  ;;  %v21787_v37 = vld [vmem:[#allocation4 + $0x7e0] sm:$0xff]  ;;  %v7998_v18 = vpack.c.b16 %v7982_v2, %v7982_v2 }
 0x345   :  { %8942 = vmatpush.bf16.msrb.mxu2 %v21764_v38  ;;  %v21567_v2 = vld [vmem:[#allocation4 + $0x100] sm:$0xff] }
 0x346   :  { %8955 = vmatpush.bf16.msrb.mxu3 %v21772_v39  ;;  %v21539_v39 = vld [vmem:[#allocation4 + $0x20] sm:$0xff] }
 0x347   :  { %8917 = vmatpush.bf16.msrb.mxu0 %v21747_v40  ;;  %v7320_v5 = vpop.f32.mrf.mxu2 }
 0x348   :  { %8930 = vmatpush.bf16.msrb.mxu1 %v21755_v42  ;;  %v7333_v19 = vpop.f32.mrf.mxu3  ;;  %v21547_v42 = vld [vmem:[#allocation4 + $0x60] sm:$0xff]  ;;  %v21558_v5 = vld [vmem:[#allocation4 + $0xb8] sm:$0xff] }
 0x349   :  { %8943 = vmatpush.bf16.msrb.mxu2 %v21763_v41  ;;  %v21582_v19 = vld [vmem:[#allocation4 + $0x178] sm:$0xff] }
 0x34a   :  { %8956 = vmatpush.bf16.msrb.mxu3 %v21771_v43  ;;  %v21778_v43 = vld [vmem:[#allocation4 + $0x798] sm:$0xff] }
 0x34b   :  { %8918 = vmatpush.bf16.msrb.mxu0 %v21746_v47  ;;  %v21546_v47 = vld [vmem:[#allocation4 + $0x58] sm:$0xff] }
 0x34c   :  { %8931 = vmatpush.bf16.msrb.mxu1 %v21754_v48 }
 0x34d   :  { %8944 = vmatpush.bf16.msrb.mxu2 %v21762_v49  ;;  %v21777_v49 = vld [vmem:[#allocation4 + $0x790] sm:$0xff] }
 0x34e   :  { %8957 = vmatpush.bf16.msrb.mxu3 %v21770_v50 }
 0x34f   :  { %8919 = vmatpush.bf16.msrb.mxu0 %v21745_v52 }
 0x350   :  { %8932 = vmatpush.bf16.msrb.mxu1 %v21753_v53  ;;  %v21537_v53 = vld [vmem:[#allocation4 + $0x10] sm:$0xff] }
 0x351   :  { %8945 = vmatpush.bf16.msrb.mxu2 %v21761_v55  ;;  %v21545_v55 = vld [vmem:[#allocation4 + $0x50] sm:$0xff] }
 0x352   :  { %8958 = vmatpush.bf16.msrb.mxu3 %v21769_v56 }
 0x353   :  { %8920 = vmatpush.bf16.msrb.mxu0 %v21744_v61  ;;  %v21536_v61 = vld [vmem:[#allocation4 + $0x8] sm:$0xff] }
 0x354   :  { %8933 = vmatpush.bf16.msrb.mxu1 %v21752_v62  ;;  %v7432_v62 = vld [vmem:[%s23011_s0 + $0x58] sm:$0xff] }
 0x355   :  { %8946 = vmatpush.bf16.msrb.mxu2 %v21760_v0  ;;  %v21775_v0 = vld [vmem:[#allocation4 + $0x780] sm:$0xff] }
 0x356   :  { %8959 = vmatpush.bf16.msrb.mxu3 %v21768_v3 }
 0x357   :  { %8921 = vmatpush.bf16.msrb.mxu0 %v21743_v6  ;;  %v7344_v38 = vpop.f32.mrf.mxu0  ;;  %v9000_v6 = vunpack.c.l.b16 %v7432_v62 }
 0x358   :  { %8934 = vmatpush.bf16.msrb.mxu1 %v21751_v7  ;;  %v7345_v40 = vadd.f32 %v7344_v38, %v22763_v59  ;;  %v7357_v41 = vpop.f32.mrf.mxu1  ;;  %v21784_v59 = vld [vmem:[#allocation4 + $0x7c8] sm:$0xff]  ;;  %v7983_v7 = vunpack.c.h.b16 %v7703_v60  ;;  %v21551_v60 = vld [vmem:[#allocation4 + $0x80] sm:$0xff] }
 0x359   :  { %8947 = vmatpush.bf16.msrb.mxu2 %v21759_v17  ;;  %v21566_v17 = vld [vmem:[#allocation4 + $0xf8] sm:$0xff] }
 0x35a   :  { %8960 = vmatpush.bf16.msrb.mxu3 %v21767_v20  ;;  %8922 = vmatmul.bf16.vlgmr.msrb.gmra.mxu0 %v7994_v22  ;;  %v7358_v44 = vadd.f32 %v7357_v41, %v7345_v40  ;;  %v9016_v20 = vpack.c.b16 %v9000_v6, %v9000_v6  ;;  %v7999_v22 = vpack.c.b16 %v7983_v7, %v7983_v7  ;;  %v21562_v41 = vld [vmem:[#allocation4 + $0xd8] sm:$0xff] }
 0x35b   :  { %8966 = vmatpush.bf16.msra.mxu0 %v21782_v9  ;;  %8935 = vmatmul.bf16.vlgmr.msrb.gmra.mxu1 %v7995_v26  ;;  %v9001_v9 = vunpack.c.h.b16 %v7432_v62  ;;  %v21565_v26 = vld [vmem:[#allocation4 + $0xf0] sm:$0xff] }
 0x35c   :  { %8979 = vmatpush.bf16.msra.mxu1 %v21790_v15  ;;  %8948 = vmatmul.bf16.vlgmr.msrb.gmra.mxu2 %v7996_v23  ;;  %v21543_v15 = vld [vmem:[#allocation4 + $0x40] sm:$0xff] }
 0x35d   :  { %9816 = vmatpush.bf16.msra.mxu2 %v21542_v16  ;;  %8961 = vmatmul.bf16.vlgmr.msrb.gmra.mxu3 %v7997_v32  ;;  %v9017_v23 = vpack.c.b16 %v9001_v9, %v9001_v9  ;;  %v21581_v32 = vld [vmem:[#allocation4 + $0x170] sm:$0xff] }
 0x35e   :  { %9829 = vmatpush.bf16.msra.mxu3 %v21550_v25  ;;  %v21557_v25 = vld [vmem:[#allocation4 + $0xb0] sm:$0xff] }
 0x35f   :  { %8967 = vmatpush.bf16.msra.mxu0 %v21781_v27  ;;  %v7370_v48 = vpop.f32.mrf.mxu2  ;;  %v7346_v52 = vpop.f32.mrf.mxu0  ;;  %v21573_v27 = vld [vmem:[#allocation4 + $0x130] sm:$0xff] }
 0x360   :  { %8980 = vmatpush.bf16.msra.mxu1 %v21789_v28  ;;  %v7371_v50 = vadd.f32 %v7370_v48, %v7358_v44  ;;  %v7383_v54 = vpop.f32.mrf.mxu3  ;;  %v7359_v56 = vpop.f32.mrf.mxu1  ;;  %v21556_v28 = vld [vmem:[#allocation4 + $0xa8] sm:$0xff]  ;;  %v21561_v48 = vld [vmem:[#allocation4 + $0xd0] sm:$0xff] }
 0x361   :  { %9817 = vmatpush.bf16.msra.mxu2 %v21541_v29  ;;  %v21564_v29 = vld [vmem:[#allocation4 + $0xe8] sm:$0xff] }
 0x362   :  { %9830 = vmatpush.bf16.msra.mxu3 %v21549_v30  ;;  %v22772_v57 = vadd.f32 %v7383_v54, %v7371_v50  ;;  %v21572_v30 = vld [vmem:[#allocation4 + $0x128] sm:$0xff] }
 0x363   :  { %8968 = vmatpush.bf16.msra.mxu0 %v21780_v31  ;;  %v21580_v31 = vld [vmem:[#allocation4 + $0x168] sm:$0xff] }
 0x364   :  { %8981 = vmatpush.bf16.msra.mxu1 %v21788_v33  ;;  %v21555_v33 = vld [vmem:[#allocation4 + $0xa0] sm:$0xff]  ;;  %v21568_v56 = vld [vmem:[#allocation4 + $0x108] sm:$0xff] }
 0x365   :  { %9818 = vmatpush.bf16.msra.mxu2 %v21540_v34 }
 0x366   :  { %9831 = vmatpush.bf16.msra.mxu3 %v21548_v35  ;;  %v21563_v35 = vld [vmem:[#allocation4 + $0xe0] sm:$0xff] }
 0x367   :  { %8969 = vmatpush.bf16.msra.mxu0 %v21779_v36  ;;  %v7372_v3 = vpop.f32.mrf.mxu2  ;;  %v21571_v36 = vld [vmem:[#allocation4 + $0x120] sm:$0xff] }
 0x368   :  { %8982 = vmatpush.bf16.msra.mxu1 %v21787_v37  ;;  %v7385_v16 = vpop.f32.mrf.mxu3 }
 0x369   :  { %9819 = vmatpush.bf16.msra.mxu2 %v21539_v39  ;;  %v21579_v39 = vld [vmem:[#allocation4 + $0x160] sm:$0xff] }
 0x36a   :  { %9832 = vmatpush.bf16.msra.mxu3 %v21547_v42  ;;  %v21554_v42 = vld [vmem:[#allocation4 + $0x98] sm:$0xff] }
 0x36b   :  { %8970 = vmatpush.bf16.msra.mxu0 %v21778_v43  ;;  %v21570_v43 = vld [vmem:[#allocation4 + $0x118] sm:$0xff] }
 0x36c   :  { %8983 = vmatpush.bf16.msra.mxu1 %v21786_v45  ;;  %v21578_v45 = vld [vmem:[#allocation4 + $0x158] sm:$0xff] }
 0x36d   :  { %9820 = vmatpush.bf16.msra.mxu2 %v21538_v46  ;;  %v21553_v46 = vld [vmem:[#allocation4 + $0x90] sm:$0xff] }
 0x36e   :  { %9833 = vmatpush.bf16.msra.mxu3 %v21546_v47 }
 0x36f   :  { %8971 = vmatpush.bf16.msra.mxu0 %v21777_v49  ;;  %v21569_v49 = vld [vmem:[#allocation4 + $0x110] sm:$0xff] }
 0x370   :  { %8984 = vmatpush.bf16.msra.mxu1 %v21785_v51  ;;  %v21577_v51 = vld [vmem:[#allocation4 + $0x150] sm:$0xff] }
 0x371   :  { %9821 = vmatpush.bf16.msra.mxu2 %v21537_v53 }
 0x372   :  { %9834 = vmatpush.bf16.msra.mxu3 %v21545_v55  ;;  %v21552_v55 = vld [vmem:[#allocation4 + $0x88] sm:$0xff] }
 0x373   :  { %8972 = vmatpush.bf16.msra.mxu0 %v21776_v58  ;;  %v7434_v58 = vld [vmem:[%s23011_s0 + $0x68] sm:$0xff] }
 0x374   :  { %8985 = vmatpush.bf16.msra.mxu1 %v21784_v59  ;;  %v21576_v59 = vld [vmem:[#allocation4 + $0x148] sm:$0xff]  ;;  %v9004_v62 = vunpack.c.l.b16 %v7434_v58  ;;  %v9005_v6 = vunpack.c.h.b16 %v7434_v58  ;;  %v21583_v58 = vld [vmem:[#allocation4 + $0x180] sm:$0xff] }
 0x375   :  { %9822 = vmatpush.bf16.msra.mxu2 %v21536_v61 }
 0x376   :  { %9835 = vmatpush.bf16.msra.mxu3 %v21544_v63 }
 0x377   :  { %8973 = vmatpush.bf16.msra.mxu0 %v21775_v0  ;;  %v7396_v34 = vpop.f32.mrf.mxu0  ;;  %v21559_v0 = vld [vmem:[#allocation4 + $0xc0] sm:$0xff] }
 0x378   :  { %8986 = vmatpush.bf16.msra.mxu1 %v21783_v4  ;;  %v7397_v37 = vadd.f32 %v7396_v34, %v22772_v57  ;;  %v7409_v38 = vpop.f32.mrf.mxu1  ;;  %v7433_v57 = vld [vmem:[%s23011_s0 + $0x60] sm:$0xff]  ;;  %v21590_v4 = vld [vmem:[#allocation4 + $0x1b8] sm:$0xff] }
 0x379   :  { %9823 = vmatpush.bf16.msra.mxu2 %v21535_v8  ;;  %v9002_v61 = vunpack.c.l.b16 %v7433_v57  ;;  %v9003_v3 = vunpack.c.h.b16 %v7433_v57  ;;  %v21606_v8 = vld [vmem:[#allocation4 + $0x238] sm:$0xff] }
 0x37a   :  { %9836 = vmatpush.bf16.msra.mxu3 %v21543_v15  ;;  %8974 = vmatmul.bf16.vlgmr.msra.gmra.mxu0 %v7998_v18  ;;  %v7410_v40 = vadd.f32 %v7409_v38, %v7397_v37  ;;  %v21614_v15 = vld [vmem:[#allocation4 + $0x278] sm:$0xff]  ;;  %v9021_v18 = vpack.c.b16 %v9005_v6, %v9005_v6  ;;  %v21607_v6 = vld [vmem:[#allocation4 + $0x240] sm:$0xff] }
 0x37b   :  { %9842 = vmatpush.bf16.msrb.mxu0 %v21558_v5  ;;  %8987 = vmatmul.bf16.vlgmr.msra.gmra.mxu1 %v7999_v22  ;;  %v21598_v5 = vld [vmem:[#allocation4 + $0x1f8] sm:$0xff]  ;;  %v9018_v9 = vpack.c.b16 %v9002_v61, %v9002_v61  ;;  %v9019_v16 = vpack.c.b16 %v9003_v3, %v9003_v3  ;;  %v21605_v22 = vld [vmem:[#allocation4 + $0x230] sm:$0xff]  ;;  %v21591_v61 = vld [vmem:[#allocation4 + $0x1c0] sm:$0xff] }
 0x37c   :  { %9855 = vmatpush.bf16.msrb.mxu1 %v21566_v17  ;;  %9824 = vmatmul.bf16.vlgmr.msra.gmra.mxu2 %v9016_v20  ;;  %v22782_v44 = vadd.f32 %v7410_v40, %v22755_v1  ;;  %v21560_v1 = vld [vmem:[#allocation4 + $0xc8] sm:$0xff]  ;;  %v21575_v17 = vld [vmem:[#allocation4 + $0x140] sm:$0xff]  ;;  %v21597_v20 = vld [vmem:[#allocation4 + $0x1f0] sm:$0xff] }
 0x37d   :  { %9868 = vmatpush.bf16.msrb.mxu2 %v21574_v12  ;;  %9837 = vmatmul.bf16.vlgmr.msra.gmra.mxu3 %v9017_v23  ;;  %v9020_v12 = vpack.c.b16 %v9004_v62, %v9004_v62  ;;  %v21613_v23 = vld [vmem:[#allocation4 + $0x270] sm:$0xff]  ;;  %v21586_v37 = vld [vmem:[#allocation4 + $0x198] sm:$0xff]  ;;  %v21599_v62 = vld [vmem:[#allocation4 + $0x200] sm:$0xff] }
 0x37e   :  { %9881 = vmatpush.bf16.msrb.mxu3 %v21582_v19  ;;  %v21589_v19 = vld [vmem:[#allocation4 + $0x1b0] sm:$0xff]  ;;  %v21594_v38 = vld [vmem:[#allocation4 + $0x1d8] sm:$0xff] }
 0x37f   :  { %9843 = vmatpush.bf16.msrb.mxu0 %v21557_v25  ;;  %v8793_v47 = vpop.f32.mrf.mxu2  ;;  %v7398_v50 = vpop.f32.mrf.mxu0  ;;  %v21588_v25 = vld [vmem:[#allocation4 + $0x1a8] sm:$0xff]  ;;  %v21610_v40 = vld [vmem:[#allocation4 + $0x258] sm:$0xff] }
 0x380   :  { %9856 = vmatpush.bf16.msrb.mxu1 %v21565_v26  ;;  %v7411_v52 = vpop.f32.mrf.mxu1  ;;  %v8806_v53 = vpop.f32.mrf.mxu3  ;;  %v21596_v26 = vld [vmem:[#allocation4 + $0x1e8] sm:$0xff]  ;;  %v21609_v50 = vld [vmem:[#allocation4 + $0x250] sm:$0xff] }
 0x381   :  { %9869 = vmatpush.bf16.msrb.mxu2 %v21573_v27  ;;  %v22784_v54 = vadd.f32 %v8806_v53, %v8793_v47  ;;  %v21604_v27 = vld [vmem:[#allocation4 + $0x228] sm:$0xff]  ;;  %v21601_v47 = vld [vmem:[#allocation4 + $0x210] sm:$0xff] }
 0x382   :  { %9882 = vmatpush.bf16.msrb.mxu3 %v21581_v32  ;;  %v21612_v32 = vld [vmem:[#allocation4 + $0x268] sm:$0xff] }
 0x383   :  { %9844 = vmatpush.bf16.msrb.mxu0 %v21556_v28  ;;  %v21587_v28 = vld [vmem:[#allocation4 + $0x1a0] sm:$0xff]  ;;  %v21584_v52 = vld [vmem:[#allocation4 + $0x188] sm:$0xff] }
 0x384   :  { %9857 = vmatpush.bf16.msrb.mxu1 %v21564_v29  ;;  %v21592_v53 = vld [vmem:[#allocation4 + $0x1c8] sm:$0xff] }
 0x385   :  { %9870 = vmatpush.bf16.msrb.mxu2 %v21572_v30  ;;  %v21595_v30 = vld [vmem:[#allocation4 + $0x1e0] sm:$0xff] }
 0x386   :  { %9883 = vmatpush.bf16.msrb.mxu3 %v21580_v31  ;;  %v21603_v31 = vld [vmem:[#allocation4 + $0x220] sm:$0xff] }
 0x387   :  { %9845 = vmatpush.bf16.msrb.mxu0 %v21555_v33  ;;  %v8795_v63 = vpop.f32.mrf.mxu2 }
 0x388   :  { %9858 = vmatpush.bf16.msrb.mxu1 %v21563_v35  ;;  %v8808_v7 = vpop.f32.mrf.mxu3  ;;  %v21611_v35 = vld [vmem:[#allocation4 + $0x260] sm:$0xff] }
 0x389   :  { %9871 = vmatpush.bf16.msrb.mxu2 %v21571_v36 }
 0x38a   :  { %9884 = vmatpush.bf16.msrb.mxu3 %v21579_v39  ;;  %v21602_v39 = vld [vmem:[#allocation4 + $0x218] sm:$0xff] }
 0x38b   :  { %9846 = vmatpush.bf16.msrb.mxu0 %v21554_v42 }
 0x38c   :  { %9859 = vmatpush.bf16.msrb.mxu1 %v21562_v41  ;;  %v21585_v41 = vld [vmem:[#allocation4 + $0x190] sm:$0xff] }
 0x38d   :  { %9872 = vmatpush.bf16.msrb.mxu2 %v21570_v43 }
 0x38e   :  { %9885 = vmatpush.bf16.msrb.mxu3 %v21578_v45 }
 0x38f   :  { %9847 = vmatpush.bf16.msrb.mxu0 %v21553_v46  ;;  %v21593_v46 = vld [vmem:[#allocation4 + $0x1d0] sm:$0xff] }
 0x390   :  { %9860 = vmatpush.bf16.msrb.mxu1 %v21561_v48 }
 0x391   :  { %9873 = vmatpush.bf16.msrb.mxu2 %v21569_v49 }
 0x392   :  { %9886 = vmatpush.bf16.msrb.mxu3 %v21577_v51 }
 0x393   :  { %9848 = vmatpush.bf16.msrb.mxu0 %v21552_v55  ;;  %v7435_v55 = vld [vmem:[%s23011_s0 + $0x70] sm:$0xff] }
 0x394   :  { %9861 = vmatpush.bf16.msrb.mxu1 %v21560_v1  ;;  %v7436_v1 = vld [vmem:[%s23011_s0 + $0x78] sm:$0xff]  ;;  %v9007_v63 = vunpack.c.h.b16 %v7435_v55 }
 0x395   :  { %9874 = vmatpush.bf16.msrb.mxu2 %v21568_v56  ;;  %v21608_v56 = vld [vmem:[#allocation4 + $0x248] sm:$0xff]  ;;  %v9009_v3 = vunpack.c.h.b16 %v7436_v1 }
 0x396   :  { %9887 = vmatpush.bf16.msrb.mxu3 %v21576_v59  ;;  %v9006_v59 = vunpack.c.l.b16 %v7435_v55  ;;  %v21640_v55 = vld [vmem:[#allocation4 + $0x348] sm:$0xff] }
 0x397   :  { %9849 = vmatpush.bf16.msrb.mxu0 %v21551_v60  ;;  %v8819_v29 = vpop.f32.mrf.mxu0  ;;  %v9008_v60 = vunpack.c.l.b16 %v7436_v1  ;;  %v21615_v1 = vld [vmem:[#allocation4 + $0x280] sm:$0xff] }
 0x398   :  { %9862 = vmatpush.bf16.msrb.mxu1 %v21559_v0  ;;  %v8820_v33 = vadd.f32 %v8819_v29, %v22784_v54  ;;  %v8832_v34 = vpop.f32.mrf.mxu1  ;;  %v21600_v54 = vld [vmem:[#allocation4 + $0x208] sm:$0xff]  ;;  %v21622_v0 = vld [vmem:[#allocation4 + $0x2b8] sm:$0xff]  ;;  %v9022_v7 = vpack.c.b16 %v9006_v59, %v9006_v59  ;;  %v21631_v59 = vld [vmem:[#allocation4 + $0x300] sm:$0xff] }
 0x399   :  { %9875 = vmatpush.bf16.msrb.mxu2 %v21567_v2  ;;  %v21630_v2 = vld [vmem:[#allocation4 + $0x2f8] sm:$0xff] }
 0x39a   :  { %9888 = vmatpush.bf16.msrb.mxu3 %v21575_v17  ;;  %9850 = vmatmul.bf16.vlgmr.msrb.gmra.mxu0 %v9018_v9  ;;  %v8833_v36 = vadd.f32 %v8832_v34, %v8820_v33  ;;  %v21646_v17 = vld [vmem:[#allocation4 + $0x378] sm:$0xff]  ;;  %v9023_v9 = vpack.c.b16 %v9007_v63, %v9007_v63 }
 0x39b   :  { %9894 = vmatpush.bf16.msra.mxu0 %v21590_v4  ;;  %9863 = vmatmul.bf16.vlgmr.msrb.gmra.mxu1 %v9019_v16  ;;  %v21629_v16 = vld [vmem:[#allocation4 + $0x2f0] sm:$0xff]  ;;  %v21618_v33 = vld [vmem:[#allocation4 + $0x298] sm:$0xff] }
 0x39c   :  { %9907 = vmatpush.bf16.msra.mxu1 %v21598_v5  ;;  %9876 = vmatmul.bf16.vlgmr.msrb.gmra.mxu2 %v9020_v12  ;;  %v21638_v5 = vld [vmem:[#allocation4 + $0x338] sm:$0xff]  ;;  %v9025_v12 = vpack.c.b16 %v9009_v3, %v9009_v3  ;;  %v21639_v3 = vld [vmem:[#allocation4 + $0x340] sm:$0xff] }
 0x39d   :  { %9920 = vmatpush.bf16.msra.mxu2 %v21606_v8  ;;  %9889 = vmatmul.bf16.vlgmr.msrb.gmra.mxu3 %v9021_v18  ;;  %v9024_v8 = vpack.c.b16 %v9008_v60, %v9008_v60  ;;  %v21637_v18 = vld [vmem:[#allocation4 + $0x330] sm:$0xff]  ;;  %v21662_v63 = vld [vmem:[#allocation4 + $0x3f8] sm:$0xff] }
 0x39e   :  { %9933 = vmatpush.bf16.msra.mxu3 %v21614_v15  ;;  %v21621_v15 = vld [vmem:[#allocation4 + $0x2b0] sm:$0xff] }
 0x39f   :  { %9895 = vmatpush.bf16.msra.mxu0 %v21589_v19  ;;  %v8845_v42 = vpop.f32.mrf.mxu2  ;;  %v8821_v45 = vpop.f32.mrf.mxu0  ;;  %v21645_v19 = vld [vmem:[#allocation4 + $0x370] sm:$0xff] }
 0x3a0   :  { %9908 = vmatpush.bf16.msra.mxu1 %v21597_v20  ;;  %v8846_v43 = vadd.f32 %v8845_v42, %v8833_v36  ;;  %v8858_v48 = vpop.f32.mrf.mxu3  ;;  %v8834_v49 = vpop.f32.mrf.mxu1  ;;  %v21620_v20 = vld [vmem:[#allocation4 + $0x2a8] sm:$0xff]  ;;  %v21634_v36 = vld [vmem:[#allocation4 + $0x318] sm:$0xff]  ;;  %v21625_v42 = vld [vmem:[#allocation4 + $0x2d0] sm:$0xff] }
 0x3a1   :  { %9921 = vmatpush.bf16.msra.mxu2 %v21605_v22  ;;  %v21628_v22 = vld [vmem:[#allocation4 + $0x2e8] sm:$0xff] }
 0x3a2   :  { %9934 = vmatpush.bf16.msra.mxu3 %v21613_v23  ;;  %v22793_v51 = vadd.f32 %v8858_v48, %v8846_v43  ;;  %v21636_v23 = vld [vmem:[#allocation4 + $0x328] sm:$0xff]  ;;  %v21641_v48 = vld [vmem:[#allocation4 + $0x350] sm:$0xff] }
 0x3a3   :  { %9896 = vmatpush.bf16.msra.mxu0 %v21588_v25  ;;  %v21644_v25 = vld [vmem:[#allocation4 + $0x368] sm:$0xff] }
 0x3a4   :  { %9909 = vmatpush.bf16.msra.mxu1 %v21596_v26  ;;  %v21619_v26 = vld [vmem:[#allocation4 + $0x2a0] sm:$0xff]  ;;  %v21616_v49 = vld [vmem:[#allocation4 + $0x288] sm:$0xff] }
 0x3a5   :  { %9922 = vmatpush.bf16.msra.mxu2 %v21604_v27  ;;  %v21627_v27 = vld [vmem:[#allocation4 + $0x2e0] sm:$0xff] }
 0x3a6   :  { %9935 = vmatpush.bf16.msra.mxu3 %v21612_v32  ;;  %v21635_v32 = vld [vmem:[#allocation4 + $0x320] sm:$0xff] }
 0x3a7   :  { %9897 = vmatpush.bf16.msra.mxu0 %v21587_v28  ;;  %v8847_v57 = vpop.f32.mrf.mxu2 }
 0x3a8   :  { %9910 = vmatpush.bf16.msra.mxu1 %v21595_v30  ;;  %v8860_v4 = vpop.f32.mrf.mxu3 }
 0x3a9   :  { %9923 = vmatpush.bf16.msra.mxu2 %v21603_v31  ;;  %v21643_v31 = vld [vmem:[#allocation4 + $0x360] sm:$0xff] }
 0x3aa   :  { %9936 = vmatpush.bf16.msra.mxu3 %v21611_v35  ;;  %v21626_v35 = vld [vmem:[#allocation4 + $0x2d8] sm:$0xff] }
 0x3ab   :  { %9898 = vmatpush.bf16.msra.mxu0 %v21586_v37 }
 0x3ac   :  { %9911 = vmatpush.bf16.msra.mxu1 %v21594_v38  ;;  %v21642_v38 = vld [vmem:[#allocation4 + $0x358] sm:$0xff] }
 0x3ad   :  { %9924 = vmatpush.bf16.msra.mxu2 %v21602_v39 }
 0x3ae   :  { %9937 = vmatpush.bf16.msra.mxu3 %v21610_v40  ;;  %v21617_v40 = vld [vmem:[#allocation4 + $0x290] sm:$0xff] }
 0x3af   :  { %9899 = vmatpush.bf16.msra.mxu0 %v21585_v41  ;;  %v21633_v41 = vld [vmem:[#allocation4 + $0x310] sm:$0xff] }
 0x3b0   :  { %9912 = vmatpush.bf16.msra.mxu1 %v21593_v46 }
 0x3b1   :  { %9925 = vmatpush.bf16.msra.mxu2 %v21601_v47 }
 0x3b2   :  { %9938 = vmatpush.bf16.msra.mxu3 %v21609_v50  ;;  %v21624_v50 = vld [vmem:[#allocation4 + $0x2c8] sm:$0xff] }
 0x3b3   :  { %9900 = vmatpush.bf16.msra.mxu0 %v21584_v52  ;;  %v7437_v52 = vld [vmem:[%s23011_s0 + $0x80] sm:$0xff] }
 0x3b4   :  { %9913 = vmatpush.bf16.msra.mxu1 %v21592_v53  ;;  %v7438_v53 = vld [vmem:[%s23011_s0 + $0x88] sm:$0xff]  ;;  %v9011_v60 = vunpack.c.h.b16 %v7437_v52 }
 0x3b5   :  { %9926 = vmatpush.bf16.msra.mxu2 %v21600_v54  ;;  %v9012_v57 = vunpack.c.l.b16 %v7438_v53 }
 0x3b6   :  { %9939 = vmatpush.bf16.msra.mxu3 %v21608_v56  ;;  %v9010_v56 = vunpack.c.l.b16 %v7437_v52  ;;  %v10024_v52 = vld [vmem:[%s23011_s0 + $0xd8] sm:$0xff] }
 0x3b7   :  { %9901 = vmatpush.bf16.msra.mxu0 %v21583_v58  ;;  %v8871_v28 = vpop.f32.mrf.mxu0  ;;  %v21623_v58 = vld [vmem:[#allocation4 + $0x2c0] sm:$0xff] }
 0x3b8   :  { %9914 = vmatpush.bf16.msra.mxu1 %v21591_v61  ;;  %v8884_v29 = vpop.f32.mrf.mxu1  ;;  %v8872_v30 = vadd.f32 %v8871_v28, %v22793_v51  ;;  %v21632_v51 = vld [vmem:[#allocation4 + $0x308] sm:$0xff]  ;;  %v9026_v4 = vpack.c.b16 %v9010_v56, %v9010_v56  ;;  %v21791_v56 = vld [vmem:[#allocation4 + $0x800] sm:$0xff] }
 0x3b9   :  { %9927 = vmatpush.bf16.msra.mxu2 %v21599_v62  ;;  %v21654_v62 = vld [vmem:[#allocation4 + $0x3b8] sm:$0xff] }
 0x3ba   :  { %9940 = vmatpush.bf16.msra.mxu3 %v21607_v6  ;;  %9902 = vmatmul.bf16.vlgmr.msra.gmra.mxu0 %v9022_v7  ;;  %v8885_v34 = vadd.f32 %v8884_v29, %v8872_v30  ;;  %v21806_v6 = vld [vmem:[#allocation4 + $0x878] sm:$0xff]  ;;  %v9027_v7 = vpack.c.b16 %v9011_v60, %v9011_v60  ;;  %v21803_v29 = vld [vmem:[#allocation4 + $0x860] sm:$0xff] }
 0x3bb   :  { %9946 = vmatpush.bf16.msrb.mxu0 %v21622_v0  ;;  %9915 = vmatmul.bf16.vlgmr.msra.gmra.mxu1 %v9023_v9  ;;  %v9013_v0 = vunpack.c.h.b16 %v7438_v53  ;;  %v21661_v9 = vld [vmem:[#allocation4 + $0x3f0] sm:$0xff]  ;;  %v21650_v30 = vld [vmem:[#allocation4 + $0x398] sm:$0xff]  ;;  %v21647_v53 = vld [vmem:[#allocation4 + $0x380] sm:$0xff] }
 0x3bc   :  { %9959 = vmatpush.bf16.msrb.mxu1 %v21630_v2  ;;  %9928 = vmatmul.bf16.vlgmr.msra.gmra.mxu2 %v9024_v8  ;;  %v21798_v2 = vld [vmem:[#allocation4 + $0x838] sm:$0xff] }
 0x3bd   :  { %9972 = vmatpush.bf16.msrb.mxu2 %v21638_v5  ;;  %9941 = vmatmul.bf16.vlgmr.msra.gmra.mxu3 %v9025_v12  ;;  %v9028_v5 = vpack.c.b16 %v9012_v57, %v9012_v57  ;;  %v9029_v8 = vpack.c.b16 %v9013_v0, %v9013_v0  ;;  %v21797_v12 = vld [vmem:[#allocation4 + $0x830] sm:$0xff]  ;;  %v21822_v60 = vld [vmem:[#allocation4 + $0x8f8] sm:$0xff] }
 0x3be   :  { %9985 = vmatpush.bf16.msrb.mxu3 %v21646_v17  ;;  %v21653_v17 = vld [vmem:[#allocation4 + $0x3b0] sm:$0xff] }
 0x3bf   :  { %9947 = vmatpush.bf16.msrb.mxu0 %v21621_v15  ;;  %v8897_v37 = vpop.f32.mrf.mxu2  ;;  %v8873_v45 = vpop.f32.mrf.mxu0  ;;  %v21805_v15 = vld [vmem:[#allocation4 + $0x870] sm:$0xff] }
 0x3c0   :  { %9960 = vmatpush.bf16.msrb.mxu1 %v21629_v16  ;;  %v8898_v39 = vadd.f32 %v8897_v37, %v8885_v34  ;;  %v8910_v43 = vpop.f32.mrf.mxu3  ;;  %v8886_v47 = vpop.f32.mrf.mxu1  ;;  %v21652_v16 = vld [vmem:[#allocation4 + $0x3a8] sm:$0xff]  ;;  %v21801_v45 = vld [vmem:[#allocation4 + $0x850] sm:$0xff] }
 0x3c1   :  { %9973 = vmatpush.bf16.msrb.mxu2 %v21637_v18  ;;  %v21660_v18 = vld [vmem:[#allocation4 + $0x3e8] sm:$0xff] }
 0x3c2   :  { %9986 = vmatpush.bf16.msrb.mxu3 %v21645_v19  ;;  %v8911_v46 = vadd.f32 %v8910_v43, %v8898_v39  ;;  %v21796_v19 = vld [vmem:[#allocation4 + $0x828] sm:$0xff]  ;;  %v21649_v39 = vld [vmem:[#allocation4 + $0x390] sm:$0xff] }
 0x3c3   :  { %9948 = vmatpush.bf16.msrb.mxu0 %v21620_v20  ;;  %v21804_v20 = vld [vmem:[#allocation4 + $0x868] sm:$0xff] }
 0x3c4   :  { %9961 = vmatpush.bf16.msrb.mxu1 %v21628_v22  ;;  %v21656_v47 = vld [vmem:[#allocation4 + $0x3c8] sm:$0xff] }
 0x3c5   :  { %9974 = vmatpush.bf16.msrb.mxu2 %v21636_v23 }
 0x3c6   :  { %9987 = vmatpush.bf16.msrb.mxu3 %v21644_v25  ;;  %v21651_v25 = vld [vmem:[#allocation4 + $0x3a0] sm:$0xff] }
 0x3c7   :  { %9949 = vmatpush.bf16.msrb.mxu0 %v21619_v26  ;;  %v8899_v54 = vpop.f32.mrf.mxu2  ;;  %v21659_v26 = vld [vmem:[#allocation4 + $0x3e0] sm:$0xff] }
 0x3c8   :  { %9962 = vmatpush.bf16.msrb.mxu1 %v21627_v27  ;;  %v8912_v61 = vpop.f32.mrf.mxu3  ;;  %v21795_v27 = vld [vmem:[#allocation4 + $0x820] sm:$0xff] }
 0x3c9   :  { %9975 = vmatpush.bf16.msrb.mxu2 %v21635_v32  ;;  %v21830_v61 = vld [vmem:[#allocation4 + $0x938] sm:$0xff] }
 0x3ca   :  { %9988 = vmatpush.bf16.msrb.mxu3 %v21643_v31  ;;  %v21658_v31 = vld [vmem:[#allocation4 + $0x3d8] sm:$0xff] }
 0x3cb   :  { %9950 = vmatpush.bf16.msrb.mxu0 %v21618_v33  ;;  %v21794_v33 = vld [vmem:[#allocation4 + $0x818] sm:$0xff] }
 0x3cc   :  { %9963 = vmatpush.bf16.msrb.mxu1 %v21626_v35 }
 0x3cd   :  { %9976 = vmatpush.bf16.msrb.mxu2 %v21634_v36  ;;  %v21802_v36 = vld [vmem:[#allocation4 + $0x858] sm:$0xff] }
 0x3ce   :  { %9989 = vmatpush.bf16.msrb.mxu3 %v21642_v38 }
 0x3cf   :  { %9951 = vmatpush.bf16.msrb.mxu0 %v21617_v40 }
 0x3d0   :  { %9964 = vmatpush.bf16.msrb.mxu1 %v21625_v42  ;;  %v21657_v42 = vld [vmem:[#allocation4 + $0x3d0] sm:$0xff] }
 0x3d1   :  { %9977 = vmatpush.bf16.msrb.mxu2 %v21633_v41  ;;  %v21793_v41 = vld [vmem:[#allocation4 + $0x810] sm:$0xff] }
 0x3d2   :  { %9990 = vmatpush.bf16.msrb.mxu3 %v21641_v48  ;;  %v21792_v48 = vld [vmem:[#allocation4 + $0x808] sm:$0xff] }
 0x3d3   :  { %9952 = vmatpush.bf16.msrb.mxu0 %v21616_v49  ;;  %v7439_v49 = vld [vmem:[%s23011_s0 + $0x90] sm:$0xff] }
 0x3d4   :  { %9965 = vmatpush.bf16.msrb.mxu1 %v21624_v50  ;;  %v9014_v54 = vunpack.c.l.b16 %v7439_v49  ;;  %v9015_v57 = vunpack.c.h.b16 %v7439_v49 }
 0x3d5   :  { %9978 = vmatpush.bf16.msrb.mxu2 %v21632_v51  ;;  %v21800_v51 = vld [vmem:[#allocation4 + $0x848] sm:$0xff] }
 0x3d6   :  { %9991 = vmatpush.bf16.msrb.mxu3 %v21640_v55  ;;  %v9030_v0 = vpack.c.b16 %v9014_v54, %v9014_v54 }
 0x3d7   :  { %9953 = vmatpush.bf16.msrb.mxu0 %v21615_v1  ;;  %v8923_v22 = vpop.f32.mrf.mxu0  ;;  %v21655_v1 = vld [vmem:[#allocation4 + $0x3c0] sm:$0xff] }
 0x3d8   :  { %9966 = vmatpush.bf16.msrb.mxu1 %v21623_v58  ;;  %v8924_v23 = vadd.f32 %v8923_v22, %v8911_v46  ;;  %v8936_v32 = vpop.f32.mrf.mxu1  ;;  %v21648_v46 = vld [vmem:[#allocation4 + $0x388] sm:$0xff]  ;;  %v10262_v58 = vunpack.c.l.b16 %v10024_v52  ;;  %v21819_v22 = vld [vmem:[#allocation4 + $0x8e0] sm:$0xff] }
 0x3d9   :  { %9979 = vmatpush.bf16.msrb.mxu2 %v21631_v59  ;;  %v21814_v59 = vld [vmem:[#allocation4 + $0x8b8] sm:$0xff] }
 0x3da   :  { %9992 = vmatpush.bf16.msrb.mxu3 %v21639_v3  ;;  %9954 = vmatmul.bf16.vlgmr.msrb.gmra.mxu0 %v9026_v4  ;;  %v8937_v28 = vadd.f32 %v8936_v32, %v8924_v23  ;;  %v9031_v3 = vpack.c.b16 %v9015_v57, %v9015_v57  ;;  %v10276_v4 = vpack.c.b16 %v10262_v58, %v10262_v58  ;;  %v21810_v32 = vld [vmem:[#allocation4 + $0x898] sm:$0xff] }
 0x3db   :  { %9998 = vmatpush.bf16.msra.mxu0 %v21654_v62  ;;  %9967 = vmatmul.bf16.vlgmr.msrb.gmra.mxu1 %v9027_v7  ;;  %v21799_v62 = vld [vmem:[#allocation4 + $0x840] sm:$0xff]  ;;  %v21829_v7 = vld [vmem:[#allocation4 + $0x930] sm:$0xff]  ;;  %v21854_v57 = vld [vmem:[#allocation4 + $0x9f8] sm:$0xff] }
 0x3dc   :  { %10011 = vmatpush.bf16.msra.mxu1 %v21662_v63  ;;  %9980 = vmatmul.bf16.vlgmr.msrb.gmra.mxu2 %v9028_v5  ;;  %v10263_v63 = vunpack.c.h.b16 %v10024_v52  ;;  %v21813_v5 = vld [vmem:[#allocation4 + $0x8b0] sm:$0xff]  ;;  %v21807_v52 = vld [vmem:[#allocation4 + $0x880] sm:$0xff]  ;;  %v21862_v58 = vld [vmem:[#allocation4 + $0xa38] sm:$0xff] }
 0x3dd   :  { %10976 = vmatpush.bf16.msra.mxu2 %v21798_v2  ;;  %9993 = vmatmul.bf16.vlgmr.msrb.gmra.mxu3 %v9029_v8  ;;  %v21838_v2 = vld [vmem:[#allocation4 + $0x978] sm:$0xff] }
 0x3de   :  { %10989 = vmatpush.bf16.msra.mxu3 %v21806_v6  ;;  %v21821_v6 = vld [vmem:[#allocation4 + $0x8f0] sm:$0xff]  ;;  %v10277_v8 = vpack.c.b16 %v10263_v63, %v10263_v63 }
 0x3df   :  { %9999 = vmatpush.bf16.msra.mxu0 %v21653_v17  ;;  %v8949_v34 = vpop.f32.mrf.mxu2  ;;  %v8925_v37 = vpop.f32.mrf.mxu0  ;;  %v21837_v17 = vld [vmem:[#allocation4 + $0x970] sm:$0xff] }
 0x3e0   :  { %10012 = vmatpush.bf16.msra.mxu1 %v21661_v9  ;;  %v8950_v35 = vadd.f32 %v8949_v34, %v8937_v28  ;;  %v8962_v38 = vpop.f32.mrf.mxu3  ;;  %v8938_v43 = vpop.f32.mrf.mxu1  ;;  %v21812_v9 = vld [vmem:[#allocation4 + $0x8a8] sm:$0xff]  ;;  %v21818_v28 = vld [vmem:[#allocation4 + $0x8d8] sm:$0xff]  ;;  %v21817_v37 = vld [vmem:[#allocation4 + $0x8d0] sm:$0xff] }
 0x3e1   :  { %10977 = vmatpush.bf16.msra.mxu2 %v21797_v12  ;;  %v21820_v12 = vld [vmem:[#allocation4 + $0x8e8] sm:$0xff] }
 0x3e2   :  { %10990 = vmatpush.bf16.msra.mxu3 %v21805_v15  ;;  %v22808_v40 = vadd.f32 %v8962_v38, %v8950_v35  ;;  %v21828_v15 = vld [vmem:[#allocation4 + $0x928] sm:$0xff] }
 0x3e3   :  { %10000 = vmatpush.bf16.msra.mxu0 %v21652_v16  ;;  %v21836_v16 = vld [vmem:[#allocation4 + $0x968] sm:$0xff] }
 0x3e4   :  { %10013 = vmatpush.bf16.msra.mxu1 %v21660_v18  ;;  %v21816_v43 = vld [vmem:[#allocation4 + $0x8c8] sm:$0xff] }
 0x3e5   :  { %10978 = vmatpush.bf16.msra.mxu2 %v21796_v19 }
 0x3e6   :  { %10991 = vmatpush.bf16.msra.mxu3 %v21804_v20  ;;  %v21811_v20 = vld [vmem:[#allocation4 + $0x8a0] sm:$0xff] }
 0x3e7   :  { %10001 = vmatpush.bf16.msra.mxu0 %v21651_v25  ;;  %v8951_v50 = vpop.f32.mrf.mxu2  ;;  %v21827_v25 = vld [vmem:[#allocation4 + $0x920] sm:$0xff] }
 0x3e8   :  { %10014 = vmatpush.bf16.msra.mxu1 %v21659_v26  ;;  %v8964_v55 = vpop.f32.mrf.mxu3 }
 0x3e9   :  { %10979 = vmatpush.bf16.msra.mxu2 %v21795_v27  ;;  %v21835_v27 = vld [vmem:[#allocation4 + $0x960] sm:$0xff] }
 0x3ea   :  { %10992 = vmatpush.bf16.msra.mxu3 %v21803_v29  ;;  %v21826_v29 = vld [vmem:[#allocation4 + $0x918] sm:$0xff]  ;;  %v21823_v55 = vld [vmem:[#allocation4 + $0x900] sm:$0xff] }
 0x3eb   :  { %10002 = vmatpush.bf16.msra.mxu0 %v21650_v30 }
 0x3ec   :  { %10015 = vmatpush.bf16.msra.mxu1 %v21658_v31  ;;  %v21834_v31 = vld [vmem:[#allocation4 + $0x958] sm:$0xff] }
 0x3ed   :  { %10980 = vmatpush.bf16.msra.mxu2 %v21794_v33 }
 0x3ee   :  { %10993 = vmatpush.bf16.msra.mxu3 %v21802_v36  ;;  %v21809_v36 = vld [vmem:[#allocation4 + $0x890] sm:$0xff] }
 0x3ef   :  { %10003 = vmatpush.bf16.msra.mxu0 %v21649_v39 }
 0x3f0   :  { %10016 = vmatpush.bf16.msra.mxu1 %v21657_v42  ;;  %v21833_v42 = vld [vmem:[#allocation4 + $0x950] sm:$0xff] }
 0x3f1   :  { %10981 = vmatpush.bf16.msra.mxu2 %v21793_v41  ;;  %v21808_v41 = vld [vmem:[#allocation4 + $0x888] sm:$0xff] }
 0x3f2   :  { %10994 = vmatpush.bf16.msra.mxu3 %v21801_v45  ;;  %v10025_v45 = vld [vmem:[%s23011_s0 + $0xe0] sm:$0xff] }
 0x3f3   :  { %10004 = vmatpush.bf16.msra.mxu0 %v21648_v46  ;;  %v21824_v46 = vld [vmem:[#allocation4 + $0x908] sm:$0xff] }
 0x3f4   :  { %10017 = vmatpush.bf16.msra.mxu1 %v21656_v47  ;;  %v10026_v47 = vld [vmem:[%s23011_s0 + $0xe8] sm:$0xff] }
 0x3f5   :  { %10982 = vmatpush.bf16.msra.mxu2 %v21792_v48  ;;  %v21832_v48 = vld [vmem:[#allocation4 + $0x948] sm:$0xff]  ;;  %v10266_v54 = vunpack.c.l.b16 %v10026_v47 }
 0x3f6   :  { %10995 = vmatpush.bf16.msra.mxu3 %v21800_v51  ;;  %v10264_v51 = vunpack.c.l.b16 %v10025_v45 }
 0x3f7   :  { %10005 = vmatpush.bf16.msra.mxu0 %v21647_v53  ;;  %v8975_v18 = vpop.f32.mrf.mxu0  ;;  %v21815_v53 = vld [vmem:[#allocation4 + $0x8c0] sm:$0xff]  ;;  %v10280_v63 = vpack.c.b16 %v10266_v54, %v10266_v54  ;;  %v21878_v54 = vld [vmem:[#allocation4 + $0xab8] sm:$0xff] }
 0x3f8   :  { %10018 = vmatpush.bf16.msra.mxu1 %v21655_v1  ;;  %v8976_v19 = vadd.f32 %v8975_v18, %v22808_v40  ;;  %v8988_v23 = vpop.f32.mrf.mxu1  ;;  %v21825_v40 = vld [vmem:[#allocation4 + $0x910] sm:$0xff]  ;;  %v21846_v1 = vld [vmem:[#allocation4 + $0x9b8] sm:$0xff]  ;;  %v21851_v18 = vld [vmem:[#allocation4 + $0x9e0] sm:$0xff] }
 0x3f9   :  { %10983 = vmatpush.bf16.msra.mxu2 %v21791_v56  ;;  %v10265_v56 = vunpack.c.h.b16 %v10025_v45 }
 0x3fa   :  { %10996 = vmatpush.bf16.msra.mxu3 %v21799_v62  ;;  %10006 = vmatmul.bf16.vlgmr.msra.gmra.mxu0 %v9030_v0  ;;  %v8989_v26 = vadd.f32 %v8988_v23, %v8976_v19  ;;  %v21870_v62 = vld [vmem:[#allocation4 + $0xa78] sm:$0xff]  ;;  %v21845_v0 = vld [vmem:[#allocation4 + $0x9b0] sm:$0xff]  ;;  %v21859_v19 = vld [vmem:[#allocation4 + $0xa20] sm:$0xff] }
 0x3fb   :  { %11002 = vmatpush.bf16.msrb.mxu0 %v21814_v59  ;;  %10019 = vmatmul.bf16.vlgmr.msra.gmra.mxu1 %v9031_v3  ;;  %v21831_v59 = vld [vmem:[#allocation4 + $0x940] sm:$0xff]  ;;  %v21853_v3 = vld [vmem:[#allocation4 + $0x9f0] sm:$0xff] }
 0x3fc   :  { %11015 = vmatpush.bf16.msrb.mxu1 %v21822_v60  ;;  %10984 = vmatmul.bf16.vlgmr.msra.gmra.mxu2 %v10276_v4  ;;  %v10278_v60 = vpack.c.b16 %v10264_v51, %v10264_v51  ;;  %v21861_v4 = vld [vmem:[#allocation4 + $0xa30] sm:$0xff]  ;;  %v21867_v23 = vld [vmem:[#allocation4 + $0xa60] sm:$0xff] }
 0x3fd   :  { %11028 = vmatpush.bf16.msrb.mxu2 %v21830_v61  ;;  %10997 = vmatmul.bf16.vlgmr.msra.gmra.mxu3 %v10277_v8  ;;  %v10267_v61 = vunpack.c.h.b16 %v10026_v47  ;;  %v21852_v8 = vld [vmem:[#allocation4 + $0x9e8] sm:$0xff]  ;;  %v21839_v47 = vld [vmem:[#allocation4 + $0x980] sm:$0xff] }
 0x3fe   :  { %11041 = vmatpush.bf16.msrb.mxu3 %v21838_v2  ;;  %v10279_v2 = vpack.c.b16 %v10265_v56, %v10265_v56  ;;  %v21855_v51 = vld [vmem:[#allocation4 + $0xa00] sm:$0xff] }
 0x3ff   :  { %11003 = vmatpush.bf16.msrb.mxu0 %v21813_v5  ;;  %v9825_v30 = vpop.f32.mrf.mxu2  ;;  %v8977_v35 = vpop.f32.mrf.mxu0  ;;  %v10281_v5 = vpack.c.b16 %v10267_v61, %v10267_v61  ;;  %v21863_v56 = vld [vmem:[#allocation4 + $0xa40] sm:$0xff] }
 0x400   :  { %11016 = vmatpush.bf16.msrb.mxu1 %v21821_v6  ;;  %v9826_v33 = vadd.f32 %v9825_v30, %v8989_v26  ;;  %v9838_v34 = vpop.f32.mrf.mxu3  ;;  %v8990_v38 = vpop.f32.mrf.mxu1  ;;  %v21869_v6 = vld [vmem:[#allocation4 + $0xa70] sm:$0xff]  ;;  %v21850_v26 = vld [vmem:[#allocation4 + $0x9d8] sm:$0xff] }
 0x401   :  { %11029 = vmatpush.bf16.msrb.mxu2 %v21829_v7  ;;  %v21844_v7 = vld [vmem:[#allocation4 + $0x9a8] sm:$0xff]  ;;  %v21849_v35 = vld [vmem:[#allocation4 + $0x9d0] sm:$0xff] }
 0x402   :  { %11042 = vmatpush.bf16.msrb.mxu3 %v21837_v17  ;;  %v22817_v39 = vadd.f32 %v9838_v34, %v9826_v33  ;;  %v21860_v17 = vld [vmem:[#allocation4 + $0xa28] sm:$0xff]  ;;  %v21865_v38 = vld [vmem:[#allocation4 + $0xa50] sm:$0xff] }
 0x403   :  { %11004 = vmatpush.bf16.msrb.mxu0 %v21812_v9  ;;  %v21868_v9 = vld [vmem:[#allocation4 + $0xa68] sm:$0xff] }
 0x404   :  { %11017 = vmatpush.bf16.msrb.mxu1 %v21820_v12 }
 0x405   :  { %11030 = vmatpush.bf16.msrb.mxu2 %v21828_v15  ;;  %v21843_v15 = vld [vmem:[#allocation4 + $0x9a0] sm:$0xff] }
 0x406   :  { %11043 = vmatpush.bf16.msrb.mxu3 %v21836_v16 }
 0x407   :  { %11005 = vmatpush.bf16.msrb.mxu0 %v21811_v20  ;;  %v9827_v49 = vpop.f32.mrf.mxu2 }
 0x408   :  { %11018 = vmatpush.bf16.msrb.mxu1 %v21819_v22  ;;  %v9840_v50 = vpop.f32.mrf.mxu3 }
 0x409   :  { %11031 = vmatpush.bf16.msrb.mxu2 %v21827_v25  ;;  %v21842_v25 = vld [vmem:[#allocation4 + $0x998] sm:$0xff]  ;;  %v21847_v50 = vld [vmem:[#allocation4 + $0x9c0] sm:$0xff] }
 0x40a   :  { %11044 = vmatpush.bf16.msrb.mxu3 %v21835_v27  ;;  %v21858_v27 = vld [vmem:[#allocation4 + $0xa18] sm:$0xff] }
 0x40b   :  { %11006 = vmatpush.bf16.msrb.mxu0 %v21810_v32 }
 0x40c   :  { %11019 = vmatpush.bf16.msrb.mxu1 %v21818_v28 }
 0x40d   :  { %11032 = vmatpush.bf16.msrb.mxu2 %v21826_v29  ;;  %v21866_v29 = vld [vmem:[#allocation4 + $0xa58] sm:$0xff] }
 0x40e   :  { %11045 = vmatpush.bf16.msrb.mxu3 %v21834_v31  ;;  %v21841_v31 = vld [vmem:[#allocation4 + $0x990] sm:$0xff] }
 0x40f   :  { %11007 = vmatpush.bf16.msrb.mxu0 %v21809_v36  ;;  %v21857_v36 = vld [vmem:[#allocation4 + $0xa10] sm:$0xff] }
 0x410   :  { %11020 = vmatpush.bf16.msrb.mxu1 %v21817_v37 }
 0x411   :  { %11033 = vmatpush.bf16.msrb.mxu2 %v21825_v40  ;;  %v21848_v40 = vld [vmem:[#allocation4 + $0x9c8] sm:$0xff] }
 0x412   :  { %11046 = vmatpush.bf16.msrb.mxu3 %v21833_v42  ;;  %v21856_v42 = vld [vmem:[#allocation4 + $0xa08] sm:$0xff] }
 0x413   :  { %11008 = vmatpush.bf16.msrb.mxu0 %v21808_v41  ;;  %v10028_v41 = vld [vmem:[%s23011_s0 + $0xf8] sm:$0xff] }
 0x414   :  { %11021 = vmatpush.bf16.msrb.mxu1 %v21816_v43  ;;  %v10027_v43 = vld [vmem:[%s23011_s0 + $0xf0] sm:$0xff] }
 0x415   :  { %11034 = vmatpush.bf16.msrb.mxu2 %v21824_v46  ;;  %v21864_v46 = vld [vmem:[#allocation4 + $0xa48] sm:$0xff] }
 0x416   :  { %11047 = vmatpush.bf16.msrb.mxu3 %v21832_v48  ;;  %v10270_v48 = vunpack.c.l.b16 %v10028_v41 }
 0x417   :  { %11009 = vmatpush.bf16.msrb.mxu0 %v21807_v52  ;;  %v9851_v12 = vpop.f32.mrf.mxu0  ;;  %v10268_v52 = vunpack.c.l.b16 %v10027_v43 }
 0x418   :  { %11022 = vmatpush.bf16.msrb.mxu1 %v21815_v53  ;;  %v9852_v16 = vadd.f32 %v9851_v12, %v22817_v39  ;;  %v9864_v20 = vpop.f32.mrf.mxu1  ;;  %v21840_v39 = vld [vmem:[#allocation4 + $0x988] sm:$0xff]  ;;  %v10269_v53 = vunpack.c.h.b16 %v10027_v43 }
 0x419   :  { %11035 = vmatpush.bf16.msrb.mxu2 %v21823_v55  ;;  %v21886_v55 = vld [vmem:[#allocation4 + $0xaf8] sm:$0xff] }
 0x41a   :  { %11048 = vmatpush.bf16.msrb.mxu3 %v21831_v59  ;;  %11010 = vmatmul.bf16.vlgmr.msrb.gmra.mxu0 %v10278_v60  ;;  %v9865_v22 = vadd.f32 %v9864_v20, %v9852_v16  ;;  %v10284_v59 = vpack.c.b16 %v10270_v48, %v10270_v48  ;;  %v10282_v60 = vpack.c.b16 %v10268_v52, %v10268_v52  ;;  %v21874_v20 = vld [vmem:[#allocation4 + $0xa98] sm:$0xff] }
 0x41b   :  { %11054 = vmatpush.bf16.msra.mxu0 %v21846_v1  ;;  %11023 = vmatmul.bf16.vlgmr.msrb.gmra.mxu1 %v10279_v2  ;;  %v21894_v1 = vld [vmem:[#allocation4 + $0xb38] sm:$0xff]  ;;  %v10283_v61 = vpack.c.b16 %v10269_v53, %v10269_v53 }
 0x41c   :  { %11067 = vmatpush.bf16.msra.mxu1 %v21854_v57  ;;  %11036 = vmatmul.bf16.vlgmr.msrb.gmra.mxu2 %v10280_v63  ;;  %v10271_v57 = vunpack.c.h.b16 %v10028_v41  ;;  %v21885_v63 = vld [vmem:[#allocation4 + $0xaf0] sm:$0xff]  ;;  %v22046_v52 = vld [vmem:[#allocation6 + $0x478] sm:$0xff] }
 0x41d   :  { %11080 = vmatpush.bf16.msra.mxu2 %v21862_v58  ;;  %11049 = vmatmul.bf16.vlgmr.msrb.gmra.mxu3 %v10281_v5  ;;  %v21902_v58 = vld [vmem:[#allocation4 + $0xb78] sm:$0xff]  ;;  %v21884_v5 = vld [vmem:[#allocation4 + $0xae8] sm:$0xff] }
 0x41e   :  { %11093 = vmatpush.bf16.msra.mxu3 %v21870_v62  ;;  %v21877_v62 = vld [vmem:[#allocation4 + $0xab0] sm:$0xff]  ;;  %v10285_v2 = vpack.c.b16 %v10271_v57, %v10271_v57  ;;  %v22054_v53 = vld [vmem:[#allocation6 + $0x4b8] sm:$0xff] }
 0x41f   :  { %11055 = vmatpush.bf16.msra.mxu0 %v21845_v0  ;;  %v9877_v32 = vpop.f32.mrf.mxu2  ;;  %v9853_v33 = vpop.f32.mrf.mxu0  ;;  %v21893_v0 = vld [vmem:[#allocation4 + $0xb30] sm:$0xff]  ;;  %v22062_v57 = vld [vmem:[#allocation6 + $0x4f8] sm:$0xff] }
 0x420   :  { %11068 = vmatpush.bf16.msra.mxu1 %v21853_v3  ;;  %v9878_v28 = vadd.f32 %v9877_v32, %v9865_v22  ;;  %v9890_v30 = vpop.f32.mrf.mxu3  ;;  %v9866_v37 = vpop.f32.mrf.mxu1  ;;  %v21901_v3 = vld [vmem:[#allocation4 + $0xb70] sm:$0xff]  ;;  %v21882_v22 = vld [vmem:[#allocation4 + $0xad8] sm:$0xff] }
 0x421   :  { %11081 = vmatpush.bf16.msra.mxu2 %v21861_v4  ;;  %v21876_v4 = vld [vmem:[#allocation4 + $0xaa8] sm:$0xff]  ;;  %v21889_v33 = vld [vmem:[#allocation4 + $0xb10] sm:$0xff] }
 0x422   :  { %11094 = vmatpush.bf16.msra.mxu3 %v21869_v6  ;;  %v22826_v34 = vadd.f32 %v9890_v30, %v9878_v28  ;;  %v21892_v6 = vld [vmem:[#allocation4 + $0xb28] sm:$0xff]  ;;  %v21873_v28 = vld [vmem:[#allocation4 + $0xa90] sm:$0xff] }
 0x423   :  { %11056 = vmatpush.bf16.msra.mxu0 %v21844_v7  ;;  %v21900_v7 = vld [vmem:[#allocation4 + $0xb68] sm:$0xff] }
 0x424   :  { %11069 = vmatpush.bf16.msra.mxu1 %v21852_v8  ;;  %v21880_v37 = vld [vmem:[#allocation4 + $0xac8] sm:$0xff] }
 0x425   :  { %11082 = vmatpush.bf16.msra.mxu2 %v21860_v17  ;;  %v21875_v17 = vld [vmem:[#allocation4 + $0xaa0] sm:$0xff] }
 0x426   :  { %11095 = vmatpush.bf16.msra.mxu3 %v21868_v9  ;;  %v21883_v9 = vld [vmem:[#allocation4 + $0xae0] sm:$0xff] }
 0x427   :  { %11057 = vmatpush.bf16.msra.mxu0 %v21843_v15  ;;  %v9879_v45 = vpop.f32.mrf.mxu2  ;;  %v21891_v15 = vld [vmem:[#allocation4 + $0xb20] sm:$0xff] }
 0x428   :  { %11070 = vmatpush.bf16.msra.mxu1 %v21851_v18  ;;  %v9892_v49 = vpop.f32.mrf.mxu3  ;;  %v21899_v18 = vld [vmem:[#allocation4 + $0xb60] sm:$0xff] }
 0x429   :  { %11083 = vmatpush.bf16.msra.mxu2 %v21859_v19  ;;  %v21871_v45 = vld [vmem:[#allocation4 + $0xa80] sm:$0xff] }
 0x42a   :  { %11096 = vmatpush.bf16.msra.mxu3 %v21867_v23  ;;  %v21890_v23 = vld [vmem:[#allocation4 + $0xb18] sm:$0xff]  ;;  %v21887_v49 = vld [vmem:[#allocation4 + $0xb00] sm:$0xff] }
 0x42b   :  { %11058 = vmatpush.bf16.msra.mxu0 %v21842_v25 }
 0x42c   :  { %11071 = vmatpush.bf16.msra.mxu1 %v21850_v26  ;;  %v21898_v26 = vld [vmem:[#allocation4 + $0xb58] sm:$0xff] }
 0x42d   :  { %11084 = vmatpush.bf16.msra.mxu2 %v21858_v27 }
 0x42e   :  { %11097 = vmatpush.bf16.msra.mxu3 %v21866_v29  ;;  %v21881_v29 = vld [vmem:[#allocation4 + $0xad0] sm:$0xff] }
 0x42f   :  { %11059 = vmatpush.bf16.msra.mxu0 %v21841_v31 }
 0x430   :  { %11072 = vmatpush.bf16.msra.mxu1 %v21849_v35  ;;  %v21897_v35 = vld [vmem:[#allocation4 + $0xb50] sm:$0xff] }
 0x431   :  { %11085 = vmatpush.bf16.msra.mxu2 %v21857_v36  ;;  %v21872_v36 = vld [vmem:[#allocation4 + $0xa88] sm:$0xff] }
 0x432   :  { %11098 = vmatpush.bf16.msra.mxu3 %v21865_v38  ;;  %v10029_v38 = vld [vmem:[%s23011_s0 + $0x100] sm:$0xff] }
 0x433   :  { %11060 = vmatpush.bf16.msra.mxu0 %v21840_v39  ;;  %v21888_v39 = vld [vmem:[#allocation4 + $0xb08] sm:$0xff]  ;;  %v10272_v43 = vunpack.c.l.b16 %v10029_v38 }
 0x434   :  { %11073 = vmatpush.bf16.msra.mxu1 %v21848_v40  ;;  %v10030_v40 = vld [vmem:[%s23011_s0 + $0x108] sm:$0xff] }
 0x435   :  { %11086 = vmatpush.bf16.msra.mxu2 %v21856_v42  ;;  %v21896_v42 = vld [vmem:[#allocation4 + $0xb48] sm:$0xff] }
 0x436   :  { %11099 = vmatpush.bf16.msra.mxu3 %v21864_v46  ;;  %v21879_v46 = vld [vmem:[#allocation4 + $0xac0] sm:$0xff] }
 0x437   :  { %11061 = vmatpush.bf16.msra.mxu0 %v21839_v47  ;;  %v9903_v8 = vpop.f32.mrf.mxu0  ;;  %v10274_v47 = vunpack.c.l.b16 %v10030_v40 }
 0x438   :  { %11074 = vmatpush.bf16.msra.mxu1 %v21847_v50  ;;  %v9904_v12 = vadd.f32 %v9903_v8, %v22826_v34  ;;  %v9916_v16 = vpop.f32.mrf.mxu1  ;;  %v22038_v50 = vld [vmem:[#allocation6 + $0x438] sm:$0xff] }
 0x439   :  { %11087 = vmatpush.bf16.msra.mxu2 %v21855_v51  ;;  %v10273_v51 = vunpack.c.h.b16 %v10029_v38  ;;  %v22056_v38 = vld [vmem:[#allocation6 + $0x4c8] sm:$0xff] }
 0x43a   :  { %11100 = vmatpush.bf16.msra.mxu3 %v21863_v56  ;;  %11062 = vmatmul.bf16.vlgmr.msra.gmra.mxu0 %v10282_v60  ;;  %v9917_v19 = vadd.f32 %v9916_v16, %v9904_v12  ;;  %v10288_v56 = vpack.c.b16 %v10274_v47, %v10274_v47  ;;  %v22059_v12 = vld [vmem:[#allocation6 + $0x4e0] sm:$0xff]  ;;  %v22034_v16 = vld [vmem:[#allocation6 + $0x418] sm:$0xff] }
 0x43b   :  { %11106 = vmatpush.bf16.msrb.mxu0 %v21878_v54  ;;  %11075 = vmatmul.bf16.vlgmr.msra.gmra.mxu1 %v10283_v61  ;;  %v10275_v54 = vunpack.c.h.b16 %v10030_v40  ;;  %v22045_v61 = vld [vmem:[#allocation6 + $0x470] sm:$0xff]  ;;  %v22031_v40 = vld [vmem:[#allocation6 + $0x400] sm:$0xff] }
 0x43c   :  { %11119 = vmatpush.bf16.msrb.mxu1 %v21886_v55  ;;  %11088 = vmatmul.bf16.vlgmr.msra.gmra.mxu2 %v10284_v59  ;;  %v21895_v55 = vld [vmem:[#allocation4 + $0xb40] sm:$0xff]  ;;  %v22037_v59 = vld [vmem:[#allocation6 + $0x430] sm:$0xff] }
 0x43d   :  { %11132 = vmatpush.bf16.msrb.mxu2 %v21894_v1  ;;  %11101 = vmatmul.bf16.vlgmr.msra.gmra.mxu3 %v10285_v2  ;;  %v10286_v1 = vpack.c.b16 %v10272_v43, %v10272_v43  ;;  %v10289_v60 = vpack.c.b16 %v10275_v54, %v10275_v54  ;;  %v22044_v2 = vld [vmem:[#allocation6 + $0x468] sm:$0xff]  ;;  %v22070_v43 = vld [vmem:[#allocation6 + $0x538] sm:$0xff]  ;;  %v22047_v47 = vld [vmem:[#allocation6 + $0x480] sm:$0xff] }
 0x43e   :  { %11145 = vmatpush.bf16.msrb.mxu3 %v21902_v58  ;;  %v10287_v58 = vpack.c.b16 %v10273_v51, %v10273_v51  ;;  %v22055_v51 = vld [vmem:[#allocation6 + $0x4c0] sm:$0xff] }
 0x43f   :  { %11107 = vmatpush.bf16.msrb.mxu0 %v21877_v62  ;;  %v9929_v25 = vpop.f32.mrf.mxu2  ;;  %v9905_v30 = vpop.f32.mrf.mxu0  ;;  %v22053_v62 = vld [vmem:[#allocation6 + $0x4b0] sm:$0xff] }
 0x440   :  { %11120 = vmatpush.bf16.msrb.mxu1 %v21885_v63  ;;  %v9930_v27 = vadd.f32 %v9929_v25, %v9917_v19  ;;  %v9942_v32 = vpop.f32.mrf.mxu3  ;;  %v9918_v34 = vpop.f32.mrf.mxu1  ;;  %v22061_v63 = vld [vmem:[#allocation6 + $0x4f0] sm:$0xff]  ;;  %v22050_v19 = vld [vmem:[#allocation6 + $0x498] sm:$0xff] }
 0x441   :  { %11133 = vmatpush.bf16.msrb.mxu2 %v21893_v0  ;;  %v22036_v0 = vld [vmem:[#allocation6 + $0x428] sm:$0xff]  ;;  %v22033_v25 = vld [vmem:[#allocation6 + $0x410] sm:$0xff] }
 0x442   :  { %11146 = vmatpush.bf16.msrb.mxu3 %v21901_v3  ;;  %v22835_v31 = vadd.f32 %v9942_v32, %v9930_v27  ;;  %v22052_v3 = vld [vmem:[#allocation6 + $0x4a8] sm:$0xff]  ;;  %v22041_v27 = vld [vmem:[#allocation6 + $0x450] sm:$0xff] }
 0x443   :  { %11108 = vmatpush.bf16.msrb.mxu0 %v21876_v4  ;;  %v22060_v4 = vld [vmem:[#allocation6 + $0x4e8] sm:$0xff] }
 0x444   :  { %11121 = vmatpush.bf16.msrb.mxu1 %v21884_v5  ;;  %v22035_v5 = vld [vmem:[#allocation6 + $0x420] sm:$0xff]  ;;  %v22040_v34 = vld [vmem:[#allocation6 + $0x448] sm:$0xff] }
 0x445   :  { %11134 = vmatpush.bf16.msrb.mxu2 %v21892_v6 }
 0x446   :  { %11147 = vmatpush.bf16.msrb.mxu3 %v21900_v7  ;;  %v22043_v7 = vld [vmem:[#allocation6 + $0x460] sm:$0xff] }
 0x447   :  { %11109 = vmatpush.bf16.msrb.mxu0 %v21875_v17  ;;  %v9931_v41 = vpop.f32.mrf.mxu2  ;;  %v22051_v17 = vld [vmem:[#allocation6 + $0x4a0] sm:$0xff] }
 0x448   :  { %11122 = vmatpush.bf16.msrb.mxu1 %v21883_v9  ;;  %v9944_v48 = vpop.f32.mrf.mxu3  ;;  %v22039_v41 = vld [vmem:[#allocation6 + $0x440] sm:$0xff] }
 0x449   :  { %11135 = vmatpush.bf16.msrb.mxu2 %v21891_v15  ;;  %v22078_v48 = vld [vmem:[#allocation6 + $0x578] sm:$0xff] }
 0x44a   :  { %11148 = vmatpush.bf16.msrb.mxu3 %v21899_v18  ;;  %v22042_v18 = vld [vmem:[#allocation6 + $0x458] sm:$0xff] }
 0x44b   :  { %11110 = vmatpush.bf16.msrb.mxu0 %v21874_v20 }
 0x44c   :  { %11123 = vmatpush.bf16.msrb.mxu1 %v21882_v22  ;;  %v22058_v22 = vld [vmem:[#allocation6 + $0x4d8] sm:$0xff] }
 0x44d   :  { %11136 = vmatpush.bf16.msrb.mxu2 %v21890_v23 }
 0x44e   :  { %11149 = vmatpush.bf16.msrb.mxu3 %v21898_v26 }
 0x44f   :  { %11111 = vmatpush.bf16.msrb.mxu0 %v21873_v28 }
 0x450   :  { %11124 = vmatpush.bf16.msrb.mxu1 %v21881_v29  ;;  %v22049_v29 = vld [vmem:[#allocation6 + $0x490] sm:$0xff] }
 0x451   :  { %11137 = vmatpush.bf16.msrb.mxu2 %v21889_v33  ;;  %v22032_v33 = vld [vmem:[#allocation6 + $0x408] sm:$0xff] }
 0x452   :  { %11150 = vmatpush.bf16.msrb.mxu3 %v21897_v35  ;;  %v11441_v35 = vld [vmem:[%s23011_s0 + $0xc4] sm:$0xff] }
 0x453   :  { %11112 = vmatpush.bf16.msrb.mxu0 %v21872_v36  ;;  %v22048_v36 = vld [vmem:[#allocation6 + $0x488] sm:$0xff] }
 0x454   :  { %11125 = vmatpush.bf16.msrb.mxu1 %v21880_v37  ;;  %v11442_v37 = vld [vmem:[%s23011_s0 + $0xcc] sm:$0xff] }
 0x455   :  { %11138 = vmatpush.bf16.msrb.mxu2 %v21888_v39 }
 0x456   :  { %11151 = vmatpush.bf16.msrb.mxu3 %v21896_v42  ;;  %v11577_v42 = vunpack.c.l.b16 %v11441_v35 }
 0x457   :  { %11113 = vmatpush.bf16.msrb.mxu0 %v21871_v45  ;;  %v9955_v6 = vpop.f32.mrf.mxu0  ;;  %v11579_v45 = vunpack.c.l.b16 %v11442_v37 }
 0x458   :  { %11126 = vmatpush.bf16.msrb.mxu1 %v21879_v46  ;;  %v9956_v8 = vadd.f32 %v9955_v6, %v22835_v31  ;;  %v9968_v9 = vpop.f32.mrf.mxu1  ;;  %v22057_v31 = vld [vmem:[#allocation6 + $0x4d0] sm:$0xff]  ;;  %v11585_v54 = vpack.c.b16 %v11577_v42, %v11577_v42  ;;  %v22079_v42 = vld [vmem:[#allocation6 + $0x580] sm:$0xff] }
 0x459   :  { %11139 = vmatpush.bf16.msrb.mxu2 %v21887_v49  ;;  %v11580_v49 = vunpack.c.h.b16 %v11442_v37  ;;  %v22071_v37 = vld [vmem:[#allocation6 + $0x540] sm:$0xff] }
 0x45a   :  { %11152 = vmatpush.bf16.msrb.mxu3 %v21895_v55  ;;  %11114 = vmatmul.bf16.vlgmr.msrb.gmra.mxu0 %v10286_v1  ;;  %v9969_v15 = vadd.f32 %v9968_v9, %v9956_v8  ;;  %v22069_v55 = vld [vmem:[#allocation6 + $0x530] sm:$0xff]  ;;  %v11587_v1 = vpack.c.b16 %v11579_v45, %v11579_v45  ;;  %v22091_v8 = vld [vmem:[#allocation6 + $0x5e0] sm:$0xff]  ;;  %v21926_v45 = vld [vmem:[#allocation6 + $0xb8] sm:$0xff] }
 0x45b   :  { %11985 = vmatpush.bf16.msra.mxu0 %v22038_v50  ;;  %11127 = vmatmul.bf16.vlgmr.msrb.gmra.mxu1 %v10287_v58  ;;  %v22086_v50 = vld [vmem:[#allocation6 + $0x5b8] sm:$0xff]  ;;  %v22085_v58 = vld [vmem:[#allocation6 + $0x5b0] sm:$0xff] }
 0x45c   :  { %11998 = vmatpush.bf16.msra.mxu1 %v22046_v52  ;;  %11140 = vmatmul.bf16.vlgmr.msrb.gmra.mxu2 %v10288_v56  ;;  %v11578_v52 = vunpack.c.h.b16 %v11441_v35  ;;  %v22077_v56 = vld [vmem:[#allocation6 + $0x570] sm:$0xff]  ;;  %v22063_v35 = vld [vmem:[#allocation6 + $0x500] sm:$0xff] }
 0x45d   :  { %12011 = vmatpush.bf16.msra.mxu2 %v22054_v53  ;;  %11153 = vmatmul.bf16.vlgmr.msrb.gmra.mxu3 %v10289_v60  ;;  %v22094_v53 = vld [vmem:[#allocation6 + $0x5f8] sm:$0xff]  ;;  %v22093_v60 = vld [vmem:[#allocation6 + $0x5f0] sm:$0xff] }
 0x45e   :  { %12024 = vmatpush.bf16.msra.mxu3 %v22062_v57  ;;  %v11588_v57 = vpack.c.b16 %v11580_v49, %v11580_v49  ;;  %v21934_v49 = vld [vmem:[#allocation6 + $0xf8] sm:$0xff] }
 0x45f   :  { %11986 = vmatpush.bf16.msra.mxu0 %v22037_v59  ;;  %v9981_v20 = vpop.f32.mrf.mxu2  ;;  %v9957_v32 = vpop.f32.mrf.mxu0  ;;  %v11586_v59 = vpack.c.b16 %v11578_v52, %v11578_v52  ;;  %v21909_v52 = vld [vmem:[#allocation6 + $0x30] sm:$0xff] }
 0x460   :  { %11999 = vmatpush.bf16.msra.mxu1 %v22045_v61  ;;  %v9982_v23 = vadd.f32 %v9981_v20, %v9969_v15  ;;  %v9994_v26 = vpop.f32.mrf.mxu3  ;;  %v9970_v30 = vpop.f32.mrf.mxu1  ;;  %v22068_v61 = vld [vmem:[#allocation6 + $0x528] sm:$0xff]  ;;  %v22082_v15 = vld [vmem:[#allocation6 + $0x598] sm:$0xff] }
 0x461   :  { %12012 = vmatpush.bf16.msra.mxu2 %v22053_v62  ;;  %v22076_v62 = vld [vmem:[#allocation6 + $0x568] sm:$0xff]  ;;  %v11443_v30 = vld [vmem:[%s23011_s0 + $0xd4] sm:$0xff] }
 0x462   :  { %12025 = vmatpush.bf16.msra.mxu3 %v22061_v63  ;;  %v22844_v28 = vadd.f32 %v9994_v26, %v9982_v23  ;;  %v22084_v63 = vld [vmem:[#allocation6 + $0x5a8] sm:$0xff] }
 0x463   :  { %11987 = vmatpush.bf16.msra.mxu0 %v22036_v0  ;;  %v22092_v0 = vld [vmem:[#allocation6 + $0x5e8] sm:$0xff] }
 0x464   :  { %12000 = vmatpush.bf16.msra.mxu1 %v22044_v2  ;;  %v22067_v2 = vld [vmem:[#allocation6 + $0x520] sm:$0xff]  ;;  %v22064_v32 = vld [vmem:[#allocation6 + $0x508] sm:$0xff] }
 0x465   :  { %12013 = vmatpush.bf16.msra.mxu2 %v22052_v3  ;;  %v22075_v3 = vld [vmem:[#allocation6 + $0x560] sm:$0xff] }
 0x466   :  { %12026 = vmatpush.bf16.msra.mxu3 %v22060_v4 }
 0x467   :  { %11988 = vmatpush.bf16.msra.mxu0 %v22035_v5  ;;  %v9983_v39 = vpop.f32.mrf.mxu2  ;;  %v22083_v5 = vld [vmem:[#allocation6 + $0x5a0] sm:$0xff] }
 0x468   :  { %12001 = vmatpush.bf16.msra.mxu1 %v22043_v7  ;;  %v9996_v46 = vpop.f32.mrf.mxu3 }
 0x469   :  { %12014 = vmatpush.bf16.msra.mxu2 %v22051_v17  ;;  %v22066_v17 = vld [vmem:[#allocation6 + $0x518] sm:$0xff]  ;;  %v22087_v46 = vld [vmem:[#allocation6 + $0x5c0] sm:$0xff] }
 0x46a   :  { %12027 = vmatpush.bf16.msra.mxu3 %v22059_v12  ;;  %v22074_v12 = vld [vmem:[#allocation6 + $0x558] sm:$0xff] }
 0x46b   :  { %11989 = vmatpush.bf16.msra.mxu0 %v22034_v16  ;;  %v22090_v16 = vld [vmem:[#allocation6 + $0x5d8] sm:$0xff] }
 0x46c   :  { %12002 = vmatpush.bf16.msra.mxu1 %v22042_v18  ;;  %v22065_v18 = vld [vmem:[#allocation6 + $0x510] sm:$0xff] }
 0x46d   :  { %12015 = vmatpush.bf16.msra.mxu2 %v22050_v19  ;;  %v22073_v19 = vld [vmem:[#allocation6 + $0x550] sm:$0xff] }
 0x46e   :  { %12028 = vmatpush.bf16.msra.mxu3 %v22058_v22  ;;  %v22081_v22 = vld [vmem:[#allocation6 + $0x590] sm:$0xff] }
 0x46f   :  { %11990 = vmatpush.bf16.msra.mxu0 %v22033_v25  ;;  %v22089_v25 = vld [vmem:[#allocation6 + $0x5d0] sm:$0xff] }
 0x470   :  { %12003 = vmatpush.bf16.msra.mxu1 %v22041_v27 }
 0x471   :  { %12016 = vmatpush.bf16.msra.mxu2 %v22049_v29  ;;  %v22072_v29 = vld [vmem:[#allocation6 + $0x548] sm:$0xff] }
 0x472   :  { %12029 = vmatpush.bf16.msra.mxu3 %v22057_v31  ;;  %v22080_v31 = vld [vmem:[#allocation6 + $0x588] sm:$0xff] }
 0x473   :  { %11991 = vmatpush.bf16.msra.mxu0 %v22032_v33  ;;  %v11444_v33 = vld [vmem:[%s23011_s0 + $0xdc] sm:$0xff] }
 0x474   :  { %12004 = vmatpush.bf16.msra.mxu1 %v22040_v34  ;;  %v22088_v34 = vld [vmem:[#allocation6 + $0x5c8] sm:$0xff]  ;;  %v11583_v39 = vunpack.c.l.b16 %v11444_v33 }
 0x475   :  { %12017 = vmatpush.bf16.msra.mxu2 %v22048_v36  ;;  %v11581_v36 = vunpack.c.l.b16 %v11443_v30 }
 0x476   :  { %12030 = vmatpush.bf16.msra.mxu3 %v22056_v38  ;;  %v21910_v38 = vld [vmem:[#allocation6 + $0x38] sm:$0xff] }
 0x477   :  { %11992 = vmatpush.bf16.msra.mxu0 %v22031_v40  ;;  %v10007_v4 = vpop.f32.mrf.mxu0 }
 0x478   :  { %12005 = vmatpush.bf16.msra.mxu1 %v22039_v41  ;;  %v10008_v6 = vadd.f32 %v10007_v4, %v22844_v28  ;;  %v10020_v7 = vpop.f32.mrf.mxu1  ;;  %v21918_v41 = vld [vmem:[#allocation6 + $0x78] sm:$0xff] }
 0x479   :  { %12018 = vmatpush.bf16.msra.mxu2 %v22047_v47  ;;  %v11582_v47 = vunpack.c.h.b16 %v11443_v30 }
 0x47a   :  { %12031 = vmatpush.bf16.msra.mxu3 %v22055_v51  ;;  %11993 = vmatmul.bf16.vlgmr.msra.gmra.mxu0 %v11585_v54  ;;  %v22853_v9 = vadd.f32 %v10020_v7, %v10008_v6  ;;  %v11591_v51 = vpack.c.b16 %v11583_v39, %v11583_v39  ;;  %v21922_v6 = vld [vmem:[#allocation6 + $0x98] sm:$0xff] }
 0x47b   :  { %12037 = vmatpush.bf16.msrb.mxu0 %v22070_v43  ;;  %12006 = vmatmul.bf16.vlgmr.msra.gmra.mxu1 %v11586_v59  ;;  %v11584_v43 = vunpack.c.h.b16 %v11444_v33  ;;  %v21924_v59 = vld [vmem:[#allocation6 + $0xa8] sm:$0xff]  ;;  %v21930_v7 = vld [vmem:[#allocation6 + $0xd8] sm:$0xff] }
 0x47c   :  { %12050 = vmatpush.bf16.msrb.mxu1 %v22078_v48  ;;  %12019 = vmatmul.bf16.vlgmr.msra.gmra.mxu2 %v11587_v1  ;;  %v11590_v1 = vpack.c.b16 %v11582_v47, %v11582_v47  ;;  %v21942_v33 = vld [vmem:[#allocation6 + $0x138] sm:$0xff] }
 0x47d   :  { %12063 = vmatpush.bf16.msrb.mxu2 %v22086_v50  ;;  %12032 = vmatmul.bf16.vlgmr.msra.gmra.mxu3 %v11588_v57  ;;  %v11589_v50 = vpack.c.b16 %v11581_v36, %v11581_v36  ;;  %v11592_v54 = vpack.c.b16 %v11584_v43, %v11584_v43  ;;  %v21908_v57 = vld [vmem:[#allocation6 + $0x28] sm:$0xff]  ;;  %v21966_v43 = vld [vmem:[#allocation6 + $0x1f8] sm:$0xff] }
 0x47e   :  { %12076 = vmatpush.bf16.msrb.mxu3 %v22094_v53  ;;  %v21917_v53 = vld [vmem:[#allocation6 + $0x70] sm:$0xff] }
 0x47f   :  { %12038 = vmatpush.bf16.msrb.mxu0 %v22069_v55  ;;  %v10985_v20 = vpop.f32.mrf.mxu2  ;;  %v10009_v23 = vpop.f32.mrf.mxu0  ;;  %v21925_v55 = vld [vmem:[#allocation6 + $0xb0] sm:$0xff] }
 0x480   :  { %12051 = vmatpush.bf16.msrb.mxu1 %v22077_v56  ;;  %v10022_v26 = vpop.f32.mrf.mxu1  ;;  %v10998_v27 = vpop.f32.mrf.mxu3  ;;  %v21933_v56 = vld [vmem:[#allocation6 + $0xf0] sm:$0xff]  ;;  %v21912_v23 = vld [vmem:[#allocation6 + $0x48] sm:$0xff] }
 0x481   :  { %12064 = vmatpush.bf16.msrb.mxu2 %v22085_v58  ;;  %v22855_v28 = vadd.f32 %v10998_v27, %v10985_v20  ;;  %v21916_v58 = vld [vmem:[#allocation6 + $0x68] sm:$0xff] }
 0x482   :  { %12077 = vmatpush.bf16.msrb.mxu3 %v22093_v60  ;;  %v21932_v60 = vld [vmem:[#allocation6 + $0xe8] sm:$0xff] }
 0x483   :  { %12039 = vmatpush.bf16.msrb.mxu0 %v22068_v61  ;;  %v21907_v61 = vld [vmem:[#allocation6 + $0x20] sm:$0xff]  ;;  %v21920_v26 = vld [vmem:[#allocation6 + $0x88] sm:$0xff] }
 0x484   :  { %12052 = vmatpush.bf16.msrb.mxu1 %v22076_v62  ;;  %v21915_v62 = vld [vmem:[#allocation6 + $0x60] sm:$0xff]  ;;  %v11178_v27 = vld [vmem:[%s23011_s0 + $0x8c] sm:$0xff] }
 0x485   :  { %12065 = vmatpush.bf16.msrb.mxu2 %v22084_v63  ;;  %v21923_v63 = vld [vmem:[#allocation6 + $0xa0] sm:$0xff]  ;;  %v12100_v39 = vunpack.c.h.b16 %v11178_v27 }
 0x486   :  { %12078 = vmatpush.bf16.msrb.mxu3 %v22092_v0 }
 0x487   :  { %12040 = vmatpush.bf16.msrb.mxu0 %v22067_v2  ;;  %v10987_v40 = vpop.f32.mrf.mxu2  ;;  %v21931_v2 = vld [vmem:[#allocation6 + $0xe0] sm:$0xff] }
 0x488   :  { %12053 = vmatpush.bf16.msrb.mxu1 %v22075_v3  ;;  %v11000_v48 = vpop.f32.mrf.mxu3  ;;  %v21906_v3 = vld [vmem:[#allocation6 + $0x18] sm:$0xff] }
 0x489   :  { %12066 = vmatpush.bf16.msrb.mxu2 %v22083_v5  ;;  %v21914_v5 = vld [vmem:[#allocation6 + $0x58] sm:$0xff]  ;;  %v12116_v48 = vpack.c.b16 %v12100_v39, %v12100_v39 }
 0x48a   :  { %12079 = vmatpush.bf16.msrb.mxu3 %v22091_v8  ;;  %v21905_v8 = vld [vmem:[#allocation6 + $0x10] sm:$0xff]  ;;  %v21958_v40 = vld [vmem:[#allocation6 + $0x1b8] sm:$0xff] }
 0x48b   :  { %12041 = vmatpush.bf16.msrb.mxu0 %v22066_v17  ;;  %v21913_v17 = vld [vmem:[#allocation6 + $0x50] sm:$0xff] }
 0x48c   :  { %12054 = vmatpush.bf16.msrb.mxu1 %v22074_v12 }
 0x48d   :  { %12067 = vmatpush.bf16.msrb.mxu2 %v22082_v15  ;;  %v21921_v15 = vld [vmem:[#allocation6 + $0x90] sm:$0xff] }
 0x48e   :  { %12080 = vmatpush.bf16.msrb.mxu3 %v22090_v16 }
 0x48f   :  { %12042 = vmatpush.bf16.msrb.mxu0 %v22065_v18  ;;  %v21929_v18 = vld [vmem:[#allocation6 + $0xd0] sm:$0xff] }
 0x490   :  { %12055 = vmatpush.bf16.msrb.mxu1 %v22073_v19  ;;  %v21904_v19 = vld [vmem:[#allocation6 + $0x8] sm:$0xff] }
 0x491   :  { %12068 = vmatpush.bf16.msrb.mxu2 %v22081_v22 }
 0x492   :  { %12081 = vmatpush.bf16.msrb.mxu3 %v22089_v25  ;;  %v11177_v25 = vld [vmem:[%s23011_s0 + $0x84] sm:$0xff] }
 0x493   :  { %12043 = vmatpush.bf16.msrb.mxu0 %v22064_v32  ;;  %v21928_v32 = vld [vmem:[#allocation6 + $0xc8] sm:$0xff]  ;;  %v12097_v30 = vunpack.c.l.b16 %v11177_v25 }
 0x494   :  { %12056 = vmatpush.bf16.msrb.mxu1 %v22072_v29  ;;  %v21903_v29 = vld [vmem:[#allocation6] sm:$0xff] }
 0x495   :  { %12069 = vmatpush.bf16.msrb.mxu2 %v22080_v31  ;;  %v21911_v31 = vld [vmem:[#allocation6 + $0x40] sm:$0xff] }
 0x496   :  { %12082 = vmatpush.bf16.msrb.mxu3 %v22088_v34  ;;  %v12099_v34 = vunpack.c.l.b16 %v11178_v27 }
 0x497   :  { %12044 = vmatpush.bf16.msrb.mxu0 %v22063_v35  ;;  %v22863_v0 = vpop.f32.mrf.mxu0  ;;  %v12098_v35 = vunpack.c.h.b16 %v11177_v25  ;;  %v11179_v25 = vld [vmem:[%s23011_s0 + $0x94] sm:$0xff] }
 0x498   :  { %12057 = vmatpush.bf16.msrb.mxu1 %v22071_v37  ;;  %v22865_v4 = vpop.f32.mrf.mxu1  ;;  %v21919_v37 = vld [vmem:[#allocation6 + $0x80] sm:$0xff] }
 0x499   :  { %12070 = vmatpush.bf16.msrb.mxu2 %v22079_v42  ;;  %v21927_v42 = vld [vmem:[#allocation6 + $0xc0] sm:$0xff]  ;;  %v12114_v47 = vpack.c.b16 %v12098_v35, %v12098_v35  ;;  %v12102_v35 = vunpack.c.h.b16 %v11179_v25 }
 0x49a   :  { %12083 = vmatpush.bf16.msrb.mxu3 %v22087_v46  ;;  %12045 = vmatmul.bf16.vlgmr.msrb.gmra.mxu0 %v11589_v50  ;;  %v12115_v46 = vpack.c.b16 %v12099_v34, %v12099_v34  ;;  %v21949_v50 = vld [vmem:[#allocation6 + $0x170] sm:$0xff]  ;;  %v21951_v34 = vld [vmem:[#allocation6 + $0x180] sm:$0xff] }
 0x49b   :  { %12913 = vmatpush.bf16.msra.mxu0 %v21910_v38  ;;  %12058 = vmatmul.bf16.vlgmr.msrb.gmra.mxu1 %v11590_v1  ;;  %v21950_v38 = vld [vmem:[#allocation6 + $0x178] sm:$0xff]  ;;  %v21964_v1 = vld [vmem:[#allocation6 + $0x1e8] sm:$0xff] }
 0x49c   :  { %12926 = vmatpush.bf16.msra.mxu1 %v21918_v41  ;;  %12071 = vmatmul.bf16.vlgmr.msrb.gmra.mxu2 %v11591_v51  ;;  %v12113_v41 = vpack.c.b16 %v12097_v30, %v12097_v30  ;;  %v21957_v51 = vld [vmem:[#allocation6 + $0x1b0] sm:$0xff] }
 0x49d   :  { %12939 = vmatpush.bf16.msra.mxu2 %v21926_v45  ;;  %12084 = vmatmul.bf16.vlgmr.msrb.gmra.mxu3 %v11592_v54  ;;  %v21948_v54 = vld [vmem:[#allocation6 + $0x168] sm:$0xff] }
 0x49e   :  { %12952 = vmatpush.bf16.msra.mxu3 %v21934_v49  ;;  %v21941_v49 = vld [vmem:[#allocation6 + $0x130] sm:$0xff] }
 0x49f   :  { %12914 = vmatpush.bf16.msra.mxu0 %v21909_v52  ;;  %v22867_v12 = vpop.f32.mrf.mxu2  ;;  %v11013_v16 = vpop.f32.mrf.mxu0  ;;  %v21965_v52 = vld [vmem:[#allocation6 + $0x1f0] sm:$0xff] }
 0x4a0   :  { %12927 = vmatpush.bf16.msra.mxu1 %v21917_v53  ;;  %v22869_v20 = vpop.f32.mrf.mxu3  ;;  %v11026_v22 = vpop.f32.mrf.mxu1  ;;  %v21940_v53 = vld [vmem:[#allocation6 + $0x128] sm:$0xff] }
 0x4a1   :  { %12940 = vmatpush.bf16.msra.mxu2 %v21925_v55  ;;  %v21956_v55 = vld [vmem:[#allocation6 + $0x1a8] sm:$0xff] }
 0x4a2   :  { %12953 = vmatpush.bf16.msra.mxu3 %v21933_v56  ;;  %v21939_v56 = vld [vmem:[#allocation6 + $0x120] sm:$0xff]  ;;  %v21944_v22 = vld [vmem:[#allocation6 + $0x148] sm:$0xff] }
 0x4a3   :  { %12915 = vmatpush.bf16.msra.mxu0 %v21908_v57  ;;  %v21947_v57 = vld [vmem:[#allocation6 + $0x160] sm:$0xff] }
 0x4a4   :  { %12928 = vmatpush.bf16.msra.mxu1 %v21916_v58  ;;  %v21955_v58 = vld [vmem:[#allocation6 + $0x1a0] sm:$0xff] }
 0x4a5   :  { %12941 = vmatpush.bf16.msra.mxu2 %v21924_v59  ;;  %v21963_v59 = vld [vmem:[#allocation6 + $0x1e0] sm:$0xff] }
 0x4a6   :  { %12954 = vmatpush.bf16.msra.mxu3 %v21932_v60  ;;  %v11012_v60 = vadd.f32 %v22863_v0, %v22855_v28  ;;  %v21953_v28 = vld [vmem:[#allocation6 + $0x190] sm:$0xff] }
 0x4a7   :  { %12916 = vmatpush.bf16.msra.mxu0 %v21907_v61  ;;  %v11039_v36 = vpop.f32.mrf.mxu2  ;;  %v21961_v0 = vld [vmem:[#allocation6 + $0x1d0] sm:$0xff] }
 0x4a8   :  { %12929 = vmatpush.bf16.msra.mxu1 %v21915_v62  ;;  %v11052_v45 = vpop.f32.mrf.mxu3  ;;  %v21938_v62 = vld [vmem:[#allocation6 + $0x118] sm:$0xff] }
 0x4a9   :  { %12942 = vmatpush.bf16.msra.mxu2 %v21923_v63  ;;  %v21974_v36 = vld [vmem:[#allocation6 + $0x238] sm:$0xff] }
 0x4aa   :  { %12955 = vmatpush.bf16.msra.mxu3 %v21931_v2  ;;  %v21946_v2 = vld [vmem:[#allocation6 + $0x158] sm:$0xff] }
 0x4ab   :  { %12917 = vmatpush.bf16.msra.mxu0 %v21906_v3  ;;  %v21954_v3 = vld [vmem:[#allocation6 + $0x198] sm:$0xff] }
 0x4ac   :  { %12930 = vmatpush.bf16.msra.mxu1 %v21914_v5  ;;  %v21962_v5 = vld [vmem:[#allocation6 + $0x1d8] sm:$0xff] }
 0x4ad   :  { %12943 = vmatpush.bf16.msra.mxu2 %v21922_v6  ;;  %v11025_v6 = vadd.f32 %v22865_v4, %v11012_v60  ;;  %v21952_v4 = vld [vmem:[#allocation6 + $0x188] sm:$0xff]  ;;  %v21998_v45 = vld [vmem:[#allocation6 + $0x2f8] sm:$0xff]  ;;  %v21979_v60 = vld [vmem:[#allocation6 + $0x260] sm:$0xff] }
 0x4ae   :  { %12956 = vmatpush.bf16.msra.mxu3 %v21930_v7  ;;  %v21937_v7 = vld [vmem:[#allocation6 + $0x110] sm:$0xff] }
 0x4af   :  { %12918 = vmatpush.bf16.msra.mxu0 %v21905_v8 }
 0x4b0   :  { %12931 = vmatpush.bf16.msra.mxu1 %v21913_v17  ;;  %v21945_v17 = vld [vmem:[#allocation6 + $0x150] sm:$0xff] }
 0x4b1   :  { %12944 = vmatpush.bf16.msra.mxu2 %v21921_v15  ;;  %v11038_v15 = vadd.f32 %v22867_v12, %v11025_v6  ;;  %v21960_v12 = vld [vmem:[#allocation6 + $0x1c8] sm:$0xff]  ;;  %v21986_v6 = vld [vmem:[#allocation6 + $0x298] sm:$0xff] }
 0x4b2   :  { %12957 = vmatpush.bf16.msra.mxu3 %v21929_v18 }
 0x4b3   :  { %12919 = vmatpush.bf16.msra.mxu0 %v21904_v19  ;;  %v21936_v19 = vld [vmem:[#allocation6 + $0x108] sm:$0xff]  ;;  %v11051_v27 = vadd.f32 %v22869_v20, %v11038_v15  ;;  %v21977_v15 = vld [vmem:[#allocation6 + $0x250] sm:$0xff] }
 0x4b4   :  { %12932 = vmatpush.bf16.msra.mxu1 %v21912_v23 }
 0x4b5   :  { %12945 = vmatpush.bf16.msra.mxu2 %v21920_v26  ;;  %v11180_v26 = vld [vmem:[%s23011_s0 + $0x9c] sm:$0xff] }
 0x4b6   :  { %12958 = vmatpush.bf16.msra.mxu3 %v21928_v32  ;;  %v21935_v32 = vld [vmem:[#allocation6 + $0x100] sm:$0xff]  ;;  %v12103_v30 = vunpack.c.l.b16 %v11180_v26 }
 0x4b7   :  { %12920 = vmatpush.bf16.msra.mxu0 %v21903_v29  ;;  %v11063_v61 = vpop.f32.mrf.mxu0  ;;  %v12101_v29 = vunpack.c.l.b16 %v11179_v25  ;;  %v21968_v25 = vld [vmem:[#allocation6 + $0x208] sm:$0xff] }
 0x4b8   :  { %12933 = vmatpush.bf16.msra.mxu1 %v21911_v31  ;;  %v11076_v63 = vpop.f32.mrf.mxu1  ;;  %v11064_v39 = vadd.f32 %v11063_v61, %v11051_v27  ;;  %v21987_v61 = vld [vmem:[#allocation6 + $0x2a0] sm:$0xff] }
 0x4b9   :  { %12946 = vmatpush.bf16.msra.mxu2 %v21919_v37  ;;  %v21982_v37 = vld [vmem:[#allocation6 + $0x278] sm:$0xff]  ;;  %v12117_v20 = vpack.c.b16 %v12101_v29, %v12101_v29  ;;  %v11182_v29 = vld [vmem:[%s23011_s0 + $0xac] sm:$0xff] }
 0x4ba   :  { %12959 = vmatpush.bf16.msra.mxu3 %v21927_v42  ;;  %12921 = vmatmul.bf16.vlgmr.msra.gmra.mxu0 %v12113_v41  ;;  %v21959_v42 = vld [vmem:[#allocation6 + $0x1c0] sm:$0xff] }
 0x4bb   :  { %12965 = vmatpush.bf16.msrb.mxu0 %v21942_v33  ;;  %12934 = vmatmul.bf16.vlgmr.msra.gmra.mxu1 %v12114_v47  ;;  %v21943_v33 = vld [vmem:[#allocation6 + $0x140] sm:$0xff] }
 0x4bc   :  { %12978 = vmatpush.bf16.msrb.mxu1 %v21950_v38  ;;  %12947 = vmatmul.bf16.vlgmr.msra.gmra.mxu2 %v12115_v46  ;;  %v12104_v38 = vunpack.c.h.b16 %v11180_v26  ;;  %v12118_v46 = vpack.c.b16 %v12102_v35, %v12102_v35  ;;  %v21976_v26 = vld [vmem:[#allocation6 + $0x248] sm:$0xff]  ;;  %v12107_v35 = vunpack.c.l.b16 %v11182_v29 }
 0x4bd   :  { %12991 = vmatpush.bf16.msrb.mxu2 %v21958_v40  ;;  %12960 = vmatmul.bf16.vlgmr.msra.gmra.mxu3 %v12116_v48  ;;  %v21990_v40 = vld [vmem:[#allocation6 + $0x2b8] sm:$0xff]  ;;  %v21973_v48 = vld [vmem:[#allocation6 + $0x230] sm:$0xff] }
 0x4be   :  { %13004 = vmatpush.bf16.msrb.mxu3 %v21966_v43  ;;  %v12119_v43 = vpack.c.b16 %v12103_v30, %v12103_v30  ;;  %v12120_v47 = vpack.c.b16 %v12104_v38, %v12104_v38  ;;  %v21992_v30 = vld [vmem:[#allocation6 + $0x2c8] sm:$0xff] }
 0x4bf   :  { %12966 = vmatpush.bf16.msrb.mxu0 %v21941_v49  ;;  %v22880_v8 = vpop.f32.mrf.mxu2  ;;  %v11065_v18 = vpop.f32.mrf.mxu0  ;;  %v11077_v49 = vadd.f32 %v11076_v63, %v11064_v39  ;;  %v22006_v39 = vld [vmem:[#allocation6 + $0x338] sm:$0xff] }
 0x4c0   :  { %12979 = vmatpush.bf16.msrb.mxu1 %v21949_v50  ;;  %v22883_v16 = vpop.f32.mrf.mxu3  ;;  %v11078_v23 = vpop.f32.mrf.mxu1  ;;  %v21981_v50 = vld [vmem:[#allocation6 + $0x270] sm:$0xff] }
 0x4c1   :  { %12992 = vmatpush.bf16.msrb.mxu2 %v21957_v51  ;;  %v21989_v51 = vld [vmem:[#allocation6 + $0x2b0] sm:$0xff] }
 0x4c2   :  { %13005 = vmatpush.bf16.msrb.mxu3 %v21965_v52  ;;  %v21997_v52 = vld [vmem:[#allocation6 + $0x2f0] sm:$0xff] }
 0x4c3   :  { %12967 = vmatpush.bf16.msrb.mxu0 %v21940_v53  ;;  %v21972_v53 = vld [vmem:[#allocation6 + $0x228] sm:$0xff]  ;;  %v21993_v23 = vld [vmem:[#allocation6 + $0x2d0] sm:$0xff] }
 0x4c4   :  { %12980 = vmatpush.bf16.msrb.mxu1 %v21948_v54  ;;  %v11090_v54 = vadd.f32 %v22880_v8, %v11077_v49  ;;  %v21994_v8 = vld [vmem:[#allocation6 + $0x2d8] sm:$0xff] }
 0x4c5   :  { %12993 = vmatpush.bf16.msrb.mxu2 %v21956_v55  ;;  %v21980_v55 = vld [vmem:[#allocation6 + $0x268] sm:$0xff] }
 0x4c6   :  { %13006 = vmatpush.bf16.msrb.mxu3 %v21964_v1  ;;  %v21988_v1 = vld [vmem:[#allocation6 + $0x2a8] sm:$0xff] }
 0x4c7   :  { %12968 = vmatpush.bf16.msrb.mxu0 %v21939_v56  ;;  %v11091_v31 = vpop.f32.mrf.mxu2  ;;  %v21996_v56 = vld [vmem:[#allocation6 + $0x2e8] sm:$0xff] }
 0x4c8   :  { %12981 = vmatpush.bf16.msrb.mxu1 %v21947_v57  ;;  %v11104_v41 = vpop.f32.mrf.mxu3  ;;  %v21971_v57 = vld [vmem:[#allocation6 + $0x220] sm:$0xff] }
 0x4c9   :  { %12994 = vmatpush.bf16.msrb.mxu2 %v21955_v58  ;;  %v11103_v58 = vadd.f32 %v22883_v16, %v11090_v54  ;;  %v21985_v16 = vld [vmem:[#allocation6 + $0x290] sm:$0xff]  ;;  %v22004_v54 = vld [vmem:[#allocation6 + $0x328] sm:$0xff] }
 0x4ca   :  { %13007 = vmatpush.bf16.msrb.mxu3 %v21963_v59 }
 0x4cb   :  { %12969 = vmatpush.bf16.msrb.mxu0 %v21938_v62 }
 0x4cc   :  { %12982 = vmatpush.bf16.msrb.mxu1 %v21946_v2  ;;  %v21995_v2 = vld [vmem:[#allocation6 + $0x2e0] sm:$0xff] }
 0x4cd   :  { %12995 = vmatpush.bf16.msrb.mxu2 %v21954_v3  ;;  %v21970_v3 = vld [vmem:[#allocation6 + $0x218] sm:$0xff] }
 0x4ce   :  { %13008 = vmatpush.bf16.msrb.mxu3 %v21962_v5  ;;  %v21978_v5 = vld [vmem:[#allocation6 + $0x258] sm:$0xff] }
 0x4cf   :  { %12970 = vmatpush.bf16.msrb.mxu0 %v21937_v7 }
 0x4d0   :  { %12983 = vmatpush.bf16.msrb.mxu1 %v21945_v17 }
 0x4d1   :  { %12996 = vmatpush.bf16.msrb.mxu2 %v21953_v28  ;;  %v21969_v28 = vld [vmem:[#allocation6 + $0x210] sm:$0xff] }
 0x4d2   :  { %13009 = vmatpush.bf16.msrb.mxu3 %v21961_v0 }
 0x4d3   :  { %12971 = vmatpush.bf16.msrb.mxu0 %v21936_v19 }
 0x4d4   :  { %12984 = vmatpush.bf16.msrb.mxu1 %v21944_v22 }
 0x4d5   :  { %12997 = vmatpush.bf16.msrb.mxu2 %v21952_v4 }
 0x4d6   :  { %13010 = vmatpush.bf16.msrb.mxu3 %v21960_v12  ;;  %v21984_v12 = vld [vmem:[#allocation6 + $0x288] sm:$0xff] }
 0x4d7   :  { %12972 = vmatpush.bf16.msrb.mxu0 %v21935_v32  ;;  %v11115_v59 = vpop.f32.mrf.mxu0  ;;  %v11181_v32 = vld [vmem:[%s23011_s0 + $0xa4] sm:$0xff] }
 0x4d8   :  { %12985 = vmatpush.bf16.msrb.mxu1 %v21943_v33  ;;  %v11116_v62 = vadd.f32 %v11115_v59, %v11103_v58  ;;  %v11128_v63 = vpop.f32.mrf.mxu1  ;;  %v21967_v33 = vld [vmem:[#allocation6 + $0x200] sm:$0xff]  ;;  %v12106_v38 = vunpack.c.h.b16 %v11181_v32 }
 0x4d9   :  { %12998 = vmatpush.bf16.msrb.mxu2 %v21951_v34  ;;  %v12105_v34 = vunpack.c.l.b16 %v11181_v32  ;;  %v22011_v58 = vld [vmem:[#allocation6 + $0x360] sm:$0xff] }
 0x4da   :  { %13011 = vmatpush.bf16.msrb.mxu3 %v21959_v42  ;;  %12973 = vmatmul.bf16.vlgmr.msrb.gmra.mxu0 %v12117_v20  ;;  %v11129_v7 = vadd.f32 %v11128_v63, %v11116_v62  ;;  %v12108_v42 = vunpack.c.h.b16 %v11182_v29  ;;  %v22022_v20 = vld [vmem:[#allocation6 + $0x3b8] sm:$0xff]  ;;  %v22019_v59 = vld [vmem:[#allocation6 + $0x3a0] sm:$0xff] }
 0x4db   :  { %13017 = vmatpush.bf16.msra.mxu0 %v21974_v36  ;;  %12986 = vmatmul.bf16.vlgmr.msrb.gmra.mxu1 %v12118_v46  ;;  %v22907_v46 = vpack.c.b16 %v12107_v35, %v12107_v35  ;;  %v22002_v62 = vld [vmem:[#allocation6 + $0x318] sm:$0xff]  ;;  %v21999_v32 = vld [vmem:[#allocation6 + $0x300] sm:$0xff] }
 0x4dc   :  { %13030 = vmatpush.bf16.msra.mxu1 %v21982_v37  ;;  %12999 = vmatmul.bf16.vlgmr.msrb.gmra.mxu2 %v12119_v43  ;;  %v21983_v37 = vld [vmem:[#allocation6 + $0x280] sm:$0xff]  ;;  %v22911_v49 = vpack.c.b16 %v12108_v42, %v12108_v42 }
 0x4dd   :  { %13043 = vmatpush.bf16.msra.mxu2 %v21990_v40  ;;  %13012 = vmatmul.bf16.vlgmr.msrb.gmra.mxu3 %v12120_v47  ;;  %v22014_v40 = vld [vmem:[#allocation6 + $0x378] sm:$0xff]  ;;  %v21991_v43 = vld [vmem:[#allocation6 + $0x2c0] sm:$0xff] }
 0x4de   :  { %13056 = vmatpush.bf16.msra.mxu3 %v21998_v45  ;;  %v22905_v45 = vpack.c.b16 %v12105_v34, %v12105_v34  ;;  %v22030_v47 = vld [vmem:[#allocation6 + $0x3f8] sm:$0xff]  ;;  %v22007_v34 = vld [vmem:[#allocation6 + $0x340] sm:$0xff] }
 0x4df   :  { %13018 = vmatpush.bf16.msra.mxu0 %v21973_v48  ;;  %v11141_v17 = vpop.f32.mrf.mxu2  ;;  %v11117_v18 = vpop.f32.mrf.mxu0  ;;  %v22909_v48 = vpack.c.b16 %v12106_v38, %v12106_v38  ;;  %v22015_v35 = vld [vmem:[#allocation6 + $0x380] sm:$0xff]  ;;  %v22110_v38 = vld [vmem:[#allocation7 + $0x78] sm:$0xff] }
 0x4e0   :  { %13031 = vmatpush.bf16.msra.mxu1 %v21981_v50  ;;  %v11142_v0 = vadd.f32 %v11141_v17, %v11129_v7  ;;  %v11154_v19 = vpop.f32.mrf.mxu3  ;;  %v11130_v4 = vpop.f32.mrf.mxu1  ;;  %v22005_v50 = vld [vmem:[#allocation6 + $0x330] sm:$0xff]  ;;  %v22023_v42 = vld [vmem:[#allocation6 + $0x3c0] sm:$0xff] }
 0x4e1   :  { %13044 = vmatpush.bf16.msra.mxu2 %v21989_v51  ;;  %v22013_v51 = vld [vmem:[#allocation6 + $0x370] sm:$0xff] }
 0x4e2   :  { %13057 = vmatpush.bf16.msra.mxu3 %v21997_v52  ;;  %v11155_v22 = vadd.f32 %v11154_v19, %v11142_v0  ;;  %v22021_v52 = vld [vmem:[#allocation6 + $0x3b0] sm:$0xff] }
 0x4e3   :  { %13019 = vmatpush.bf16.msra.mxu0 %v21972_v53  ;;  %v22029_v53 = vld [vmem:[#allocation6 + $0x3f0] sm:$0xff] }
 0x4e4   :  { %13032 = vmatpush.bf16.msra.mxu1 %v21980_v55  ;;  %v11158_v27 = vadd.f32 %v11155_v22, %v22853_v9  ;;  %v21975_v9 = vld [vmem:[#allocation6 + $0x240] sm:$0xff]  ;;  %v22012_v55 = vld [vmem:[#allocation6 + $0x368] sm:$0xff]  ;;  %v22001_v7 = vld [vmem:[#allocation6 + $0x310] sm:$0xff] }
 0x4e5   :  { %13045 = vmatpush.bf16.msra.mxu2 %v21988_v1  ;;  %v22020_v1 = vld [vmem:[#allocation6 + $0x3a8] sm:$0xff]  ;;  %v22009_v17 = vld [vmem:[#allocation6 + $0x350] sm:$0xff] }
 0x4e6   :  { %13058 = vmatpush.bf16.msra.mxu3 %v21996_v56  ;;  %v22901_v31 = vmul.f32 %v11158_v27, %v11158_v27  ;;  %v22028_v56 = vld [vmem:[#allocation6 + $0x3e8] sm:$0xff]  ;;  %v22025_v18 = vld [vmem:[#allocation6 + $0x3d0] sm:$0xff] }
 0x4e7   :  { %13020 = vmatpush.bf16.msra.mxu0 %v21971_v57  ;;  %v11143_v36 = vpop.f32.mrf.mxu2  ;;  %v22003_v57 = vld [vmem:[#allocation6 + $0x320] sm:$0xff]  ;;  %v22000_v22 = vld [vmem:[#allocation6 + $0x308] sm:$0xff] }
 0x4e8   :  { %13033 = vmatpush.bf16.msra.mxu1 %v21979_v60  ;;  %11161 = vrot.lane.b32.xlu0 %v22901_v31, %s22457_s2  ;;  %v11156_v41 = vpop.f32.mrf.mxu3  ;;  %v22024_v27 = vld [vmem:[#allocation6 + $0x3c8] sm:$0xff] }
 0x4e9   :  { %13046 = vmatpush.bf16.msra.mxu2 %v21987_v61  ;;  %v22027_v61 = vld [vmem:[#allocation6 + $0x3e0] sm:$0xff] }
 0x4ea   :  { %13059 = vmatpush.bf16.msra.mxu3 %v21995_v2  ;;  %v22010_v2 = vld [vmem:[#allocation6 + $0x358] sm:$0xff] }
 0x4eb   :  { %13021 = vmatpush.bf16.msra.mxu0 %v21970_v3  ;;  %v22018_v3 = vld [vmem:[#allocation6 + $0x398] sm:$0xff] }
 0x4ec   :  { %13034 = vmatpush.bf16.msra.mxu1 %v21978_v5 }
 0x4ed   :  { %13047 = vmatpush.bf16.msra.mxu2 %v21986_v6  ;;  %v22026_v6 = vld [vmem:[#allocation6 + $0x3d8] sm:$0xff] }
 0x4ee   :  { %13060 = vmatpush.bf16.msra.mxu3 %v21994_v8 }
 0x4ef   :  { %13022 = vmatpush.bf16.msra.mxu0 %v21969_v28  ;;  %v22017_v28 = vld [vmem:[#allocation6 + $0x390] sm:$0xff] }
 0x4f0   :  { %13035 = vmatpush.bf16.msra.mxu1 %v21977_v15 }
 0x4f1   :  { %13048 = vmatpush.bf16.msra.mxu2 %v21985_v16 }
 0x4f2   :  { %13061 = vmatpush.bf16.msra.mxu3 %v21993_v23  ;;  %v22008_v23 = vld [vmem:[#allocation6 + $0x348] sm:$0xff] }
 0x4f3   :  { %13023 = vmatpush.bf16.msra.mxu0 %v21968_v25  ;;  %v22016_v25 = vld [vmem:[#allocation6 + $0x388] sm:$0xff] }
 0x4f4   :  { %13036 = vmatpush.bf16.msra.mxu1 %v21976_v26  ;;  %v11183_v26 = vld [vmem:[%s23011_s0 + $0xb4] sm:$0xff] }
 0x4f5   :  { %13049 = vmatpush.bf16.msra.mxu2 %v21984_v12  ;;  %v11184_v12 = vld [vmem:[%s23011_s0 + $0xbc] sm:$0xff]  ;;  %v12109_v29 = vunpack.c.l.b16 %v11183_v26  ;;  %v12110_v36 = vunpack.c.h.b16 %v11183_v26  ;;  %v22104_v26 = vld [vmem:[#allocation7 + $0x48] sm:$0xff] }
 0x4f6   :  { %13062 = vmatpush.bf16.msra.mxu3 %v21992_v30  ;;  %v12111_v30 = vunpack.c.l.b16 %v11184_v12 }
 0x4f7   :  { %13024 = vmatpush.bf16.msra.mxu0 %v21967_v33  ;;  %v11994_v60 = vpop.f32.mrf.mxu0  ;;  %v22925_v41 = vpack.c.b16 %v12109_v29, %v12109_v29 }
 0x4f8   :  { %13037 = vmatpush.bf16.msra.mxu1 %v21975_v9  ;;  %v12007_v63 = vpop.f32.mrf.mxu1 }
 0x4f9   :  { %13050 = vmatpush.bf16.msra.mxu2 %v21983_v37  ;;  %v12008_v5 = vadd.f32 %v12007_v63, %v11994_v60  ;;  %v22102_v37 = vld [vmem:[#allocation7 + $0x38] sm:$0xff]  ;;  %v22107_v60 = vld [vmem:[#allocation7 + $0x60] sm:$0xff] }
 0x4fa   :  { %13063 = vmatpush.bf16.msra.mxu3 %v21991_v43  ;;  %13025 = vmatmul.bf16.vlgmr.msra.gmra.mxu0 %v22905_v45  ;;  %v22126_v43 = vld [vmem:[#allocation7 + $0xf8] sm:$0xff]  ;;  %v22123_v63 = vld [vmem:[#allocation7 + $0xe0] sm:$0xff] }
 0x4fb   :  { %13069 = vmatpush.bf16.msrb.mxu0 %v22006_v39  ;;  %13038 = vmatmul.bf16.vlgmr.msra.gmra.mxu1 %v22909_v48  ;;  %v12112_v39 = vunpack.c.h.b16 %v11184_v12  ;;  %v22112_v12 = vld [vmem:[#allocation7 + $0x88] sm:$0xff] }
 0x4fc   :  { %13082 = vmatpush.bf16.msrb.mxu1 %v22014_v40  ;;  %13051 = vmatmul.bf16.vlgmr.msra.gmra.mxu2 %v22907_v46  ;;  %v22118_v40 = vld [vmem:[#allocation7 + $0xb8] sm:$0xff] }
 0x4fd   :  { %13095 = vmatpush.bf16.msrb.mxu2 %v22022_v20  ;;  %13064 = vmatmul.bf16.vlgmr.msra.gmra.mxu3 %v22911_v49  ;;  %v22927_v20 = vpack.c.b16 %v12111_v30, %v12111_v30  ;;  %v22095_v30 = vld [vmem:[#allocation7] sm:$0xff] }
 0x4fe   :  { %13108 = vmatpush.bf16.msrb.mxu3 %v22030_v47  ;;  %v22929_v47 = vpack.c.b16 %v12110_v36, %v12110_v36 }
 0x4ff   :  { %13070 = vmatpush.bf16.msrb.mxu0 %v22005_v50  ;;  %v12020_v8 = vpop.f32.mrf.mxu2  ;;  %v11996_v16 = vpop.f32.mrf.mxu0  ;;  %v22931_v50 = vpack.c.b16 %v12112_v39, %v12112_v39  ;;  %v22150_v39 = vld [vmem:[#allocation7 + $0x1b8] sm:$0xff] }
 0x500   :  { %13083 = vmatpush.bf16.msrb.mxu1 %v22013_v51  ;;  %v12021_v0 = vadd.f32 %v12020_v8, %v12008_v5  ;;  %v12033_v15 = vpop.f32.mrf.mxu3  ;;  %v12009_v4 = vpop.f32.mrf.mxu1  ;;  %v22101_v51 = vld [vmem:[#allocation7 + $0x30] sm:$0xff]  ;;  %v22122_v8 = vld [vmem:[#allocation7 + $0xd8] sm:$0xff] }
 0x501   :  { %13096 = vmatpush.bf16.msrb.mxu2 %v22021_v52  ;;  %v22109_v52 = vld [vmem:[#allocation7 + $0x70] sm:$0xff] }
 0x502   :  { %13109 = vmatpush.bf16.msrb.mxu3 %v22029_v53  ;;  %v22917_v19 = vadd.f32 %v12033_v15, %v12021_v0  ;;  %v22117_v53 = vld [vmem:[#allocation7 + $0xb0] sm:$0xff] }
 0x503   :  { %13071 = vmatpush.bf16.msrb.mxu0 %v22004_v54  ;;  %v22125_v54 = vld [vmem:[#allocation7 + $0xf0] sm:$0xff] }
 0x504   :  { %13084 = vmatpush.bf16.msrb.mxu1 %v22012_v55  ;;  %v22100_v55 = vld [vmem:[#allocation7 + $0x28] sm:$0xff]  ;;  %v22097_v0 = vld [vmem:[#allocation7 + $0x10] sm:$0xff] }
 0x505   :  { %13097 = vmatpush.bf16.msrb.mxu2 %v22020_v1  ;;  %v22108_v1 = vld [vmem:[#allocation7 + $0x68] sm:$0xff] }
 0x506   :  { %13110 = vmatpush.bf16.msrb.mxu3 %v22028_v56  ;;  %v22116_v56 = vld [vmem:[#allocation7 + $0xa8] sm:$0xff] }
 0x507   :  { %13072 = vmatpush.bf16.msrb.mxu0 %v22003_v57  ;;  %v12022_v33 = vpop.f32.mrf.mxu2  ;;  %v22124_v57 = vld [vmem:[#allocation7 + $0xe8] sm:$0xff] }
 0x508   :  { %13085 = vmatpush.bf16.msrb.mxu1 %v22011_v58  ;;  %v12035_v9 = vpop.f32.mrf.mxu3  ;;  %v22099_v58 = vld [vmem:[#allocation7 + $0x20] sm:$0xff] }
 0x509   :  { %13098 = vmatpush.bf16.msrb.mxu2 %v22019_v59 }
 0x50a   :  { %13111 = vmatpush.bf16.msrb.mxu3 %v22027_v61  ;;  %v22115_v61 = vld [vmem:[#allocation7 + $0xa0] sm:$0xff] }
 0x50b   :  { %13073 = vmatpush.bf16.msrb.mxu0 %v22002_v62 }
 0x50c   :  { %13086 = vmatpush.bf16.msrb.mxu1 %v22010_v2 }
 0x50d   :  { %13099 = vmatpush.bf16.msrb.mxu2 %v22018_v3  ;;  %v22098_v3 = vld [vmem:[#allocation7 + $0x18] sm:$0xff] }
 0x50e   :  { %13112 = vmatpush.bf16.msrb.mxu3 %v22026_v6  ;;  %v22106_v6 = vld [vmem:[#allocation7 + $0x58] sm:$0xff] }
 0x50f   :  { %13074 = vmatpush.bf16.msrb.mxu0 %v22001_v7  ;;  %v22114_v7 = vld [vmem:[#allocation7 + $0x98] sm:$0xff] }
 0x510   :  { %13087 = vmatpush.bf16.msrb.mxu1 %v22009_v17 }
 0x511   :  { %13100 = vmatpush.bf16.msrb.mxu2 %v22017_v28 }
 0x512   :  { %13113 = vmatpush.bf16.msrb.mxu3 %v22025_v18  ;;  %v22105_v18 = vld [vmem:[#allocation7 + $0x50] sm:$0xff] }
 0x513   :  { %13075 = vmatpush.bf16.msrb.mxu0 %v22000_v22 }
 0x514   :  { %13088 = vmatpush.bf16.msrb.mxu1 %v22008_v23  ;;  %v22121_v23 = vld [vmem:[#allocation7 + $0xd0] sm:$0xff] }
 0x515   :  { %13101 = vmatpush.bf16.msrb.mxu2 %v22016_v25  ;;  %v22096_v25 = vld [vmem:[#allocation7 + $0x8] sm:$0xff] }
 0x516   :  { %13114 = vmatpush.bf16.msrb.mxu3 %v22024_v27  ;;  %v13139_v27 = vld [vmem:[%s23011_s0 + $0x9c] sm:$0xff] }
 0x517   :  { %13076 = vmatpush.bf16.msrb.mxu0 %v21999_v32  ;;  %v12046_v59 = vpop.f32.mrf.mxu0  ;;  %v22120_v32 = vld [vmem:[#allocation7 + $0xc8] sm:$0xff]  ;;  %v13343_v36 = vunpack.c.l.b16 %v13139_v27  ;;  %v13344_v9 = vunpack.c.h.b16 %v13139_v27 }
 0x518   :  { %13089 = vmatpush.bf16.msrb.mxu1 %v22007_v34  ;;  %v12047_v62 = vadd.f32 %v12046_v59, %v22917_v19  ;;  %v12059_v2 = vpop.f32.mrf.mxu1  ;;  %v22113_v19 = vld [vmem:[#allocation7 + $0x90] sm:$0xff]  ;;  %v22103_v34 = vld [vmem:[#allocation7 + $0x40] sm:$0xff] }
 0x519   :  { %13102 = vmatpush.bf16.msrb.mxu2 %v22015_v35  ;;  %v22111_v35 = vld [vmem:[#allocation7 + $0x80] sm:$0xff] }
 0x51a   :  { %13115 = vmatpush.bf16.msrb.mxu3 %v22023_v42  ;;  %13077 = vmatmul.bf16.vlgmr.msrb.gmra.mxu0 %v22925_v41  ;;  %v12060_v5 = vadd.f32 %v12059_v2, %v12047_v62  ;;  %v22158_v42 = vld [vmem:[#allocation7 + $0x1f8] sm:$0xff]  ;;  %v22139_v62 = vld [vmem:[#allocation7 + $0x160] sm:$0xff] }
 0x51b   :  { %13955 = vmatpush.bf16.msra.mxu0 %v22102_v37  ;;  %13090 = vmatmul.bf16.vlgmr.msrb.gmra.mxu1 %v22929_v47  ;;  %v22134_v37 = vld [vmem:[#allocation7 + $0x138] sm:$0xff] }
 0x51c   :  { %13968 = vmatpush.bf16.msra.mxu1 %v22110_v38  ;;  %13103 = vmatmul.bf16.vlgmr.msrb.gmra.mxu2 %v22927_v20  ;;  %v22142_v38 = vld [vmem:[#allocation7 + $0x178] sm:$0xff] }
 0x51d   :  { %13981 = vmatpush.bf16.msra.mxu2 %v22118_v40  ;;  %13116 = vmatmul.bf16.vlgmr.msrb.gmra.mxu3 %v22931_v50  ;;  %v22119_v40 = vld [vmem:[#allocation7 + $0xc0] sm:$0xff] }
 0x51e   :  { %13994 = vmatpush.bf16.msra.mxu3 %v22126_v43  ;;  %v13355_v43 = vpack.c.b16 %v13343_v36, %v13343_v36  ;;  %v22182_v36 = vld [vmem:[#allocation7 + $0x2b8] sm:$0xff] }
 0x51f   :  { %13956 = vmatpush.bf16.msra.mxu0 %v22101_v51  ;;  %v12072_v17 = vpop.f32.mrf.mxu2  ;;  %v12048_v16 = vpop.f32.mrf.mxu0  ;;  %v13356_v51 = vpack.c.b16 %v13344_v9, %v13344_v9  ;;  %v22151_v9 = vld [vmem:[#allocation7 + $0x1c0] sm:$0xff] }
 0x520   :  { %13969 = vmatpush.bf16.msra.mxu1 %v22109_v52  ;;  %v12073_v28 = vadd.f32 %v12072_v17, %v12060_v5  ;;  %v12085_v15 = vpop.f32.mrf.mxu3  ;;  %v12061_v4 = vpop.f32.mrf.mxu1  ;;  %v22133_v52 = vld [vmem:[#allocation7 + $0x130] sm:$0xff]  ;;  %v22130_v5 = vld [vmem:[#allocation7 + $0x118] sm:$0xff] }
 0x521   :  { %13982 = vmatpush.bf16.msra.mxu2 %v22117_v53  ;;  %v22141_v53 = vld [vmem:[#allocation7 + $0x170] sm:$0xff]  ;;  %v22128_v4 = vld [vmem:[#allocation7 + $0x108] sm:$0xff] }
 0x522   :  { %13995 = vmatpush.bf16.msra.mxu3 %v22125_v54  ;;  %v12086_v22 = vadd.f32 %v12085_v15, %v12073_v28  ;;  %v22149_v54 = vld [vmem:[#allocation7 + $0x1b0] sm:$0xff] }
 0x523   :  { %13957 = vmatpush.bf16.msra.mxu0 %v22100_v55  ;;  %v22157_v55 = vld [vmem:[#allocation7 + $0x1f0] sm:$0xff] }
 0x524   :  { %13970 = vmatpush.bf16.msra.mxu1 %v22108_v1  ;;  %v22132_v1 = vld [vmem:[#allocation7 + $0x128] sm:$0xff]  ;;  %v22129_v15 = vld [vmem:[#allocation7 + $0x110] sm:$0xff] }
 0x525   :  { %13983 = vmatpush.bf16.msra.mxu2 %v22116_v56  ;;  %v22140_v56 = vld [vmem:[#allocation7 + $0x168] sm:$0xff]  ;;  %v22137_v16 = vld [vmem:[#allocation7 + $0x150] sm:$0xff] }
 0x526   :  { %13996 = vmatpush.bf16.msra.mxu3 %v22124_v57  ;;  %v22148_v57 = vld [vmem:[#allocation7 + $0x1a8] sm:$0xff] }
 0x527   :  { %13958 = vmatpush.bf16.msra.mxu0 %v22099_v58  ;;  %v12074_v29 = vpop.f32.mrf.mxu2  ;;  %v22156_v58 = vld [vmem:[#allocation7 + $0x1e8] sm:$0xff] }
 0x528   :  { %13971 = vmatpush.bf16.msra.mxu1 %v22107_v60  ;;  %v12087_v33 = vpop.f32.mrf.mxu3  ;;  %v22127_v29 = vld [vmem:[#allocation7 + $0x100] sm:$0xff] }
 0x529   :  { %13984 = vmatpush.bf16.msra.mxu2 %v22115_v61  ;;  %v22131_v61 = vld [vmem:[#allocation7 + $0x120] sm:$0xff] }
 0x52a   :  { %13997 = vmatpush.bf16.msra.mxu3 %v22123_v63  ;;  %v22143_v33 = vld [vmem:[#allocation7 + $0x180] sm:$0xff] }
 0x52b   :  { %13959 = vmatpush.bf16.msra.mxu0 %v22098_v3  ;;  %v22155_v3 = vld [vmem:[#allocation7 + $0x1e0] sm:$0xff] }
 0x52c   :  { %13972 = vmatpush.bf16.msra.mxu1 %v22106_v6  ;;  %v22138_v6 = vld [vmem:[#allocation7 + $0x158] sm:$0xff] }
 0x52d   :  { %13985 = vmatpush.bf16.msra.mxu2 %v22114_v7 }
 0x52e   :  { %13998 = vmatpush.bf16.msra.mxu3 %v22122_v8  ;;  %v22154_v8 = vld [vmem:[#allocation7 + $0x1d8] sm:$0xff] }
 0x52f   :  { %13960 = vmatpush.bf16.msra.mxu0 %v22097_v0 }
 0x530   :  { %13973 = vmatpush.bf16.msra.mxu1 %v22105_v18 }
 0x531   :  { %13986 = vmatpush.bf16.msra.mxu2 %v22113_v19 }
 0x532   :  { %13999 = vmatpush.bf16.msra.mxu3 %v22121_v23  ;;  %v22153_v23 = vld [vmem:[#allocation7 + $0x1d0] sm:$0xff] }
 0x533   :  { %13961 = vmatpush.bf16.msra.mxu0 %v22096_v25  ;;  %v22136_v25 = vld [vmem:[#allocation7 + $0x148] sm:$0xff] }
 0x534   :  { %13974 = vmatpush.bf16.msra.mxu1 %v22104_v26  ;;  %v22144_v26 = vld [vmem:[#allocation7 + $0x188] sm:$0xff] }
 0x535   :  { %13987 = vmatpush.bf16.msra.mxu2 %v22112_v12  ;;  %v22152_v12 = vld [vmem:[#allocation7 + $0x1c8] sm:$0xff] }
 0x536   :  { %14000 = vmatpush.bf16.msra.mxu3 %v22120_v32 }
 0x537   :  { %13962 = vmatpush.bf16.msra.mxu0 %v22095_v30  ;;  %v12922_v59 = vpop.f32.mrf.mxu0  ;;  %v22135_v30 = vld [vmem:[#allocation7 + $0x140] sm:$0xff] }
 0x538   :  { %13975 = vmatpush.bf16.msra.mxu1 %v22103_v34  ;;  %v12923_v60 = vadd.f32 %v12922_v59, %v12086_v22  ;;  %v12935_v63 = vpop.f32.mrf.mxu1  ;;  %v22145_v22 = vld [vmem:[#allocation7 + $0x190] sm:$0xff]  ;;  %v22166_v34 = vld [vmem:[#allocation7 + $0x238] sm:$0xff] }
 0x539   :  { %13988 = vmatpush.bf16.msra.mxu2 %v22111_v35  ;;  %v22174_v35 = vld [vmem:[#allocation7 + $0x278] sm:$0xff] }
 0x53a   :  { %14001 = vmatpush.bf16.msra.mxu3 %v22119_v40  ;;  %13963 = vmatmul.bf16.vlgmr.msra.gmra.mxu0 %v13355_v43  ;;  %v12936_v2 = vadd.f32 %v12935_v63, %v12923_v60  ;;  %v22181_v40 = vld [vmem:[#allocation7 + $0x2b0] sm:$0xff]  ;;  %v22164_v43 = vld [vmem:[#allocation7 + $0x228] sm:$0xff]  ;;  %v22186_v59 = vld [vmem:[#allocation7 + $0x2d8] sm:$0xff] }
 0x53b   :  { %14007 = vmatpush.bf16.msrb.mxu0 %v22134_v37  ;;  %13976 = vmatmul.bf16.vlgmr.msra.gmra.mxu1 %v13356_v51  ;;  %v22190_v37 = vld [vmem:[#allocation7 + $0x2f8] sm:$0xff]  ;;  %v22172_v51 = vld [vmem:[#allocation7 + $0x268] sm:$0xff]  ;;  %v22169_v63 = vld [vmem:[#allocation7 + $0x250] sm:$0xff] }
 0x53c   :  { %14020 = vmatpush.bf16.msrb.mxu1 %v22142_v38  ;;  %13989 = vmatmul.bf16.vlgmr.msra.gmra.mxu2 %v22905_v45  ;;  %v22147_v45 = vld [vmem:[#allocation7 + $0x1a0] sm:$0xff]  ;;  %v22165_v38 = vld [vmem:[#allocation7 + $0x230] sm:$0xff] }
 0x53d   :  { %14033 = vmatpush.bf16.msrb.mxu2 %v22150_v39  ;;  %14002 = vmatmul.bf16.vlgmr.msra.gmra.mxu3 %v22909_v48  ;;  %v22146_v48 = vld [vmem:[#allocation7 + $0x198] sm:$0xff]  ;;  %v22173_v39 = vld [vmem:[#allocation7 + $0x270] sm:$0xff] }
 0x53e   :  { %14046 = vmatpush.bf16.msrb.mxu3 %v22158_v42  ;;  %v22189_v42 = vld [vmem:[#allocation7 + $0x2f0] sm:$0xff] }
 0x53f   :  { %14008 = vmatpush.bf16.msrb.mxu0 %v22133_v52  ;;  %v12948_v7 = vpop.f32.mrf.mxu2  ;;  %v12924_v0 = vpop.f32.mrf.mxu0  ;;  %v22180_v52 = vld [vmem:[#allocation7 + $0x2a8] sm:$0xff] }
 0x540   :  { %14021 = vmatpush.bf16.msrb.mxu1 %v22141_v53  ;;  %v12949_v17 = vadd.f32 %v12948_v7, %v12936_v2  ;;  %v12961_v28 = vpop.f32.mrf.mxu3  ;;  %v12937_v18 = vpop.f32.mrf.mxu1  ;;  %v22188_v53 = vld [vmem:[#allocation7 + $0x2e8] sm:$0xff] }
 0x541   :  { %14034 = vmatpush.bf16.msrb.mxu2 %v22149_v54  ;;  %v13144_v7 = vld [vmem:[%s23011_s0 + $0xc4] sm:$0xff] }
 0x542   :  { %14047 = vmatpush.bf16.msrb.mxu3 %v22157_v55  ;;  %v22943_v19 = vadd.f32 %v12961_v28, %v12949_v17  ;;  %v22179_v55 = vld [vmem:[#allocation7 + $0x2a0] sm:$0xff]  ;;  %v22184_v17 = vld [vmem:[#allocation7 + $0x2c8] sm:$0xff]  ;;  %v13353_v0 = vunpack.c.l.b16 %v13144_v7 }
 0x543   :  { %14009 = vmatpush.bf16.msrb.mxu0 %v22132_v1  ;;  %v22159_v28 = vld [vmem:[#allocation7 + $0x200] sm:$0xff] }
 0x544   :  { %14022 = vmatpush.bf16.msrb.mxu1 %v22140_v56  ;;  %v22162_v56 = vld [vmem:[#allocation7 + $0x218] sm:$0xff]  ;;  %v22175_v18 = vld [vmem:[#allocation7 + $0x280] sm:$0xff] }
 0x545   :  { %14035 = vmatpush.bf16.msrb.mxu2 %v22148_v57  ;;  %v22170_v57 = vld [vmem:[#allocation7 + $0x258] sm:$0xff] }
 0x546   :  { %14048 = vmatpush.bf16.msrb.mxu3 %v22156_v58 }
 0x547   :  { %14010 = vmatpush.bf16.msrb.mxu0 %v22131_v61  ;;  %v12950_v27 = vpop.f32.mrf.mxu2  ;;  %v22161_v61 = vld [vmem:[#allocation7 + $0x210] sm:$0xff] }
 0x548   :  { %14023 = vmatpush.bf16.msrb.mxu1 %v22139_v62  ;;  %v12963_v32 = vpop.f32.mrf.mxu3  ;;  %v22222_v27 = vld [vmem:[#allocation9 + $0xf8] sm:$0xff] }
 0x549   :  { %14036 = vmatpush.bf16.msrb.mxu2 %v22147_v45  ;;  %v22177_v45 = vld [vmem:[#allocation7 + $0x290] sm:$0xff] }
 0x54a   :  { %14049 = vmatpush.bf16.msrb.mxu3 %v22155_v3  ;;  %v22185_v3 = vld [vmem:[#allocation7 + $0x2d0] sm:$0xff] }
 0x54b   :  { %14011 = vmatpush.bf16.msrb.mxu0 %v22130_v5  ;;  %v22160_v5 = vld [vmem:[#allocation7 + $0x208] sm:$0xff] }
 0x54c   :  { %14024 = vmatpush.bf16.msrb.mxu1 %v22138_v6  ;;  %v22168_v6 = vld [vmem:[#allocation7 + $0x248] sm:$0xff] }
 0x54d   :  { %14037 = vmatpush.bf16.msrb.mxu2 %v22146_v48  ;;  %v22176_v48 = vld [vmem:[#allocation7 + $0x288] sm:$0xff] }
 0x54e   :  { %14050 = vmatpush.bf16.msrb.mxu3 %v22154_v8 }
 0x54f   :  { %14012 = vmatpush.bf16.msrb.mxu0 %v22129_v15 }
 0x550   :  { %14025 = vmatpush.bf16.msrb.mxu1 %v22137_v16  ;;  %v22167_v16 = vld [vmem:[#allocation7 + $0x240] sm:$0xff] }
 0x551   :  { %14038 = vmatpush.bf16.msrb.mxu2 %v22145_v22  ;;  %v22198_v22 = vld [vmem:[#allocation9 + $0x38] sm:$0xff] }
 0x552   :  { %14051 = vmatpush.bf16.msrb.mxu3 %v22153_v23  ;;  %v22206_v23 = vld [vmem:[#allocation9 + $0x78] sm:$0xff] }
 0x553   :  { %14013 = vmatpush.bf16.msrb.mxu0 %v22128_v4  ;;  %v13354_v4 = vunpack.c.h.b16 %v13144_v7  ;;  %v22199_v7 = vld [vmem:[#allocation9 + $0x40] sm:$0xff] }
 0x554   :  { %14026 = vmatpush.bf16.msrb.mxu1 %v22136_v25  ;;  %v22183_v25 = vld [vmem:[#allocation7 + $0x2c0] sm:$0xff] }
 0x555   :  { %14039 = vmatpush.bf16.msrb.mxu2 %v22144_v26  ;;  %v13365_v26 = vpack.c.b16 %v13353_v0, %v13353_v0  ;;  %v13366_v32 = vpack.c.b16 %v13354_v4, %v13354_v4 }
 0x556   :  { %14052 = vmatpush.bf16.msrb.mxu3 %v22152_v12  ;;  %v22214_v12 = vld [vmem:[#allocation9 + $0xb8] sm:$0xff] }
 0x557   :  { %14014 = vmatpush.bf16.msrb.mxu0 %v22127_v29  ;;  %v22949_v54 = vpop.f32.mrf.mxu0  ;;  %v22197_v29 = vld [vmem:[#allocation9 + $0x30] sm:$0xff] }
 0x558   :  { %14027 = vmatpush.bf16.msrb.mxu1 %v22135_v30  ;;  %v22951_v1 = vpop.f32.mrf.mxu1  ;;  %v22205_v30 = vld [vmem:[#allocation9 + $0x70] sm:$0xff] }
 0x559   :  { %14040 = vmatpush.bf16.msrb.mxu2 %v22143_v33  ;;  %v22213_v33 = vld [vmem:[#allocation9 + $0xb0] sm:$0xff] }
 0x55a   :  { %14053 = vmatpush.bf16.msrb.mxu3 %v22151_v9  ;;  %14015 = vmatmul.bf16.vlgmr.msrb.gmra.mxu0 %v22907_v46  ;;  %v22163_v46 = vld [vmem:[#allocation7 + $0x220] sm:$0xff]  ;;  %v22212_v9 = vld [vmem:[#allocation9 + $0xa8] sm:$0xff] }
 0x55b   :  { %14059 = vmatpush.bf16.msra.mxu0 %v22166_v34  ;;  %14028 = vmatmul.bf16.vlgmr.msrb.gmra.mxu1 %v22911_v49  ;;  %v22187_v49 = vld [vmem:[#allocation7 + $0x2e0] sm:$0xff]  ;;  %v22221_v34 = vld [vmem:[#allocation9 + $0xf0] sm:$0xff] }
 0x55c   :  { %14072 = vmatpush.bf16.msra.mxu1 %v22174_v35  ;;  %14041 = vmatmul.bf16.vlgmr.msrb.gmra.mxu2 %v22925_v41  ;;  %v22171_v41 = vld [vmem:[#allocation7 + $0x260] sm:$0xff]  ;;  %v22196_v35 = vld [vmem:[#allocation9 + $0x28] sm:$0xff] }
 0x55d   :  { %14085 = vmatpush.bf16.msra.mxu2 %v22182_v36  ;;  %14054 = vmatmul.bf16.vlgmr.msrb.gmra.mxu3 %v22929_v47  ;;  %v22178_v47 = vld [vmem:[#allocation7 + $0x298] sm:$0xff]  ;;  %v22204_v36 = vld [vmem:[#allocation9 + $0x68] sm:$0xff] }
 0x55e   :  { %14098 = vmatpush.bf16.msra.mxu3 %v22190_v37  ;;  %v22220_v37 = vld [vmem:[#allocation9 + $0xe8] sm:$0xff] }
 0x55f   :  { %14060 = vmatpush.bf16.msra.mxu0 %v22165_v38  ;;  %v22953_v58 = vpop.f32.mrf.mxu2  ;;  %v12976_v62 = vpop.f32.mrf.mxu0 }
 0x560   :  { %14073 = vmatpush.bf16.msra.mxu1 %v22173_v39  ;;  %v22955_v60 = vpop.f32.mrf.mxu3  ;;  %v12989_v2 = vpop.f32.mrf.mxu1  ;;  %v22203_v39 = vld [vmem:[#allocation9 + $0x60] sm:$0xff] }
 0x561   :  { %14086 = vmatpush.bf16.msra.mxu2 %v22181_v40  ;;  %v22200_v2 = vld [vmem:[#allocation9 + $0x48] sm:$0xff] }
 0x562   :  { %14099 = vmatpush.bf16.msra.mxu3 %v22189_v42  ;;  %v22219_v42 = vld [vmem:[#allocation9 + $0xe0] sm:$0xff] }
 0x563   :  { %14061 = vmatpush.bf16.msra.mxu0 %v22164_v43  ;;  %v22194_v43 = vld [vmem:[#allocation9 + $0x18] sm:$0xff] }
 0x564   :  { %14074 = vmatpush.bf16.msra.mxu1 %v22172_v51  ;;  %v22202_v51 = vld [vmem:[#allocation9 + $0x58] sm:$0xff] }
 0x565   :  { %14087 = vmatpush.bf16.msra.mxu2 %v22180_v52 }
 0x566   :  { %14100 = vmatpush.bf16.msra.mxu3 %v22188_v53  ;;  %v12975_v53 = vadd.f32 %v22949_v54, %v22943_v19  ;;  %v22209_v19 = vld [vmem:[#allocation9 + $0x90] sm:$0xff] }
 0x567   :  { %14062 = vmatpush.bf16.msra.mxu0 %v22163_v46  ;;  %v13002_v8 = vpop.f32.mrf.mxu2  ;;  %v11162_v46 = vpop.permute.xlu0 %11161  ;;  %v22217_v54 = vld [vmem:[#allocation9 + $0xd0] sm:$0xff] }
 0x568   :  { %14075 = vmatpush.bf16.msra.mxu1 %v22171_v41  ;;  %v13015_v15 = vpop.f32.mrf.mxu3  ;;  %v22210_v41 = vld [vmem:[#allocation9 + $0x98] sm:$0xff]  ;;  %v12988_v62 = vadd.f32 %v22951_v1, %v12975_v53  ;;  %v22233_v53 = vld [vmem:[#allocation9 + $0x150] sm:$0xff] }
 0x569   :  { %14088 = vmatpush.bf16.msra.mxu2 %v22179_v55  ;;  %v22218_v55 = vld [vmem:[#allocation9 + $0xd8] sm:$0xff]  ;;  %v22215_v15 = vld [vmem:[#allocation9 + $0xc0] sm:$0xff] }
 0x56a   :  { %14101 = vmatpush.bf16.msra.mxu3 %v22187_v49  ;;  %v22230_v8 = vld [vmem:[#allocation9 + $0x138] sm:$0xff] }
 0x56b   :  { %14063 = vmatpush.bf16.msra.mxu0 %v22162_v56  ;;  %v22193_v56 = vld [vmem:[#allocation9 + $0x10] sm:$0xff] }
 0x56c   :  { %14076 = vmatpush.bf16.msra.mxu1 %v22170_v57 }
 0x56d   :  { %14089 = vmatpush.bf16.msra.mxu2 %v22178_v47  ;;  %v22201_v47 = vld [vmem:[#allocation9 + $0x50] sm:$0xff] }
 0x56e   :  { %14102 = vmatpush.bf16.msra.mxu3 %v22186_v59 }
 0x56f   :  { %14064 = vmatpush.bf16.msra.mxu0 %v22161_v61  ;;  %v22967_v61 = vadd.f32 %v11162_v46, %v22901_v31  ;;  %v22216_v31 = vld [vmem:[#allocation9 + $0xc8] sm:$0xff]  ;;  %v22250_v46 = vld [vmem:[#allocation10 + $0x58] sm:$0xff] }
 0x570   :  { %14077 = vmatpush.bf16.msra.mxu1 %v22169_v63  ;;  %v22192_v63 = vld [vmem:[#allocation9 + $0x8] sm:$0xff] }
 0x571   :  { %14090 = vmatpush.bf16.msra.mxu2 %v22177_v45  ;;  %v13001_v45 = vadd.f32 %v22953_v58, %v12988_v62  ;;  %22285 = vrsqrt.f32 %v22967_v61  ;;  %v22207_v58 = vld [vmem:[#allocation9 + $0x80] sm:$0xff]  ;;  %v22232_v62 = vld [vmem:[#allocation9 + $0x148] sm:$0xff]  ;;  %vm11172_vm0 = vcmp.eq.f32.partialorder %v22967_v61, inf  ;;  %vm11174_vm1 = vcmp.eq.f32.partialorder %v22967_v61, 0.0 }
 0x572   :  { %14103 = vmatpush.bf16.msra.mxu3 %v22185_v3 }
 0x573   :  { %14065 = vmatpush.bf16.msra.mxu0 %v22160_v5  ;;  %v22208_v5 = vld [vmem:[#allocation9 + $0x88] sm:$0xff] }
 0x574   :  { %14078 = vmatpush.bf16.msra.mxu1 %v22168_v6  ;;  %v22191_v6 = vld [vmem:[#allocation9] sm:$0xff] }
 0x575   :  { %14091 = vmatpush.bf16.msra.mxu2 %v22176_v48  ;;  %v13014_v48 = vadd.f32 %v22955_v60, %v13001_v45  ;;  %v22223_v45 = vld [vmem:[#allocation9 + $0x100] sm:$0xff] }
 0x576   :  { %14104 = vmatpush.bf16.msra.mxu3 %v22184_v17  ;;  %v22238_v17 = vld [vmem:[#allocation9 + $0x178] sm:$0xff] }
 0x577   :  { %14066 = vmatpush.bf16.msra.mxu0 %v22159_v28  ;;  %v13026_v38 = vpop.f32.mrf.mxu0  ;;  %v22973_v0 = vpop.eup %22285 }
 0x578   :  { %14079 = vmatpush.bf16.msra.mxu1 %v22167_v16  ;;  %v13039_v40 = vpop.f32.mrf.mxu1  ;;  %v13027_v28 = vadd.f32 %v13026_v38, %v13014_v48  ;;  %v22229_v16 = vld [vmem:[#allocation9 + $0x130] sm:$0xff]  ;;  %v11166_v4 = vmul.f32 %v22973_v0, %v22967_v61  ;;  %v22234_v38 = vld [vmem:[#allocation9 + $0x158] sm:$0xff] }
 0x579   :  { %14092 = vmatpush.bf16.msra.mxu2 %v22175_v18  ;;  %v22246_v18 = vld [vmem:[#allocation10 + $0x38] sm:$0xff] }
 0x57a   :  { %14105 = vmatpush.bf16.msra.mxu3 %v22183_v25  ;;  %14067 = vmatmul.bf16.vlgmr.msra.gmra.mxu0 %v22927_v20  ;;  %v22195_v20 = vld [vmem:[#allocation9 + $0x20] sm:$0xff]  ;;  %v13040_v60 = vadd.f32 %v13039_v40, %v13027_v28 }
 0x57b   :  { %14513 = vmatpush.bf16.msrb.mxu0 %v22198_v22  ;;  %14080 = vmatmul.bf16.vlgmr.msra.gmra.mxu1 %v22931_v50  ;;  %v22211_v50 = vld [vmem:[#allocation9 + $0xa0] sm:$0xff]  ;;  %v22237_v22 = vld [vmem:[#allocation9 + $0x170] sm:$0xff] }
 0x57c   :  { %14526 = vmatpush.bf16.msrb.mxu1 %v22206_v23  ;;  %14093 = vmatmul.bf16.vlgmr.msra.gmra.mxu2 %v13365_v26  ;;  %v22254_v23 = vld [vmem:[#allocation10 + $0x78] sm:$0xff]  ;;  %v22228_v26 = vld [vmem:[#allocation9 + $0x128] sm:$0xff]  ;;  %v22239_v28 = vld [vmem:[#allocation10] sm:$0xff] }
 0x57d   :  { %14539 = vmatpush.bf16.msrb.mxu2 %v22214_v12  ;;  %14106 = vmatmul.bf16.vlgmr.msra.gmra.mxu3 %v13366_v32  ;;  %v22245_v12 = vld [vmem:[#allocation10 + $0x30] sm:$0xff] }
 0x57e   :  { %14552 = vmatpush.bf16.msrb.mxu3 %v22222_v27  ;;  %v22236_v27 = vld [vmem:[#allocation9 + $0x168] sm:$0xff]  ;;  %v22253_v32 = vld [vmem:[#allocation10 + $0x70] sm:$0xff] }
 0x57f   :  { %14514 = vmatpush.bf16.msrb.mxu0 %v22197_v29  ;;  %v13052_v52 = vpop.f32.mrf.mxu2  ;;  %v13028_v57 = vpop.f32.mrf.mxu0 }
 0x580   :  { %14527 = vmatpush.bf16.msrb.mxu1 %v22205_v30  ;;  %v22964_v49 = vpop.f32.mrf.mxu3  ;;  %v13041_v59 = vpop.f32.mrf.mxu1  ;;  %v13053_v25 = vadd.f32 %v13052_v52, %v13040_v60  ;;  %v22227_v30 = vld [vmem:[#allocation9 + $0x120] sm:$0xff] }
 0x581   :  { %14540 = vmatpush.bf16.msrb.mxu2 %v22213_v33  ;;  %v22241_v59 = vld [vmem:[#allocation10 + $0x10] sm:$0xff] }
 0x582   :  { %14553 = vmatpush.bf16.msrb.mxu3 %v22221_v34  ;;  %v13066_v29 = vadd.f32 %v22964_v49, %v13053_v25  ;;  %v22235_v34 = vld [vmem:[#allocation9 + $0x160] sm:$0xff] }
 0x583   :  { %14515 = vmatpush.bf16.msrb.mxu0 %v22196_v35  ;;  %v22252_v35 = vld [vmem:[#allocation10 + $0x68] sm:$0xff]  ;;  %v22267_v25 = vld [vmem:[#allocation10 + $0xe0] sm:$0xff] }
 0x584   :  { %14528 = vmatpush.bf16.msrb.mxu1 %v22204_v36 }
 0x585   :  { %14541 = vmatpush.bf16.msrb.mxu2 %v22212_v9 }
 0x586   :  { %14554 = vmatpush.bf16.msrb.mxu3 %v22220_v37 }
 0x587   :  { %14516 = vmatpush.bf16.msrb.mxu0 %v22195_v20  ;;  %v13054_v3 = vpop.f32.mrf.mxu2  ;;  %v22251_v20 = vld [vmem:[#allocation10 + $0x60] sm:$0xff] }
 0x588   :  { %14529 = vmatpush.bf16.msrb.mxu1 %v22203_v39  ;;  %v13067_v1 = vpop.f32.mrf.mxu3  ;;  %v14609_v3 = vld [vmem:[%s23011_s0 + $0xac] sm:$0xff] }
 0x589   :  { %14542 = vmatpush.bf16.msrb.mxu2 %v22211_v50  ;;  %v22270_v1 = vld [vmem:[#allocation10 + $0xf8] sm:$0xff] }
 0x58a   :  { %14555 = vmatpush.bf16.msrb.mxu3 %v22219_v42 }
 0x58b   :  { %14517 = vmatpush.bf16.msrb.mxu0 %v22194_v43  ;;  %v22225_v43 = vld [vmem:[#allocation9 + $0x110] sm:$0xff] }
 0x58c   :  { %14530 = vmatpush.bf16.msrb.mxu1 %v22202_v51  ;;  %v22242_v51 = vld [vmem:[#allocation10 + $0x18] sm:$0xff] }
 0x58d   :  { %14543 = vmatpush.bf16.msrb.mxu2 %v22210_v41 }
 0x58e   :  { %14556 = vmatpush.bf16.msrb.mxu3 %v22218_v55 }
 0x58f   :  { %14518 = vmatpush.bf16.msrb.mxu0 %v22193_v56 }
 0x590   :  { %14531 = vmatpush.bf16.msrb.mxu1 %v22201_v47  ;;  %v22224_v47 = vld [vmem:[#allocation9 + $0x108] sm:$0xff] }
 0x591   :  { %14544 = vmatpush.bf16.msrb.mxu2 %v22209_v19  ;;  %v22249_v19 = vld [vmem:[#allocation10 + $0x50] sm:$0xff] }
 0x592   :  { %14557 = vmatpush.bf16.msrb.mxu3 %v22217_v54 }
 0x593   :  { %14519 = vmatpush.bf16.msrb.mxu0 %v22192_v63 }
 0x594   :  { %14532 = vmatpush.bf16.msrb.mxu1 %v22200_v2  ;;  %v22240_v2 = vld [vmem:[#allocation10 + $0x8] sm:$0xff] }
 0x595   :  { %14545 = vmatpush.bf16.msrb.mxu2 %v22208_v5  ;;  %v22231_v5 = vld [vmem:[#allocation9 + $0x140] sm:$0xff] }
 0x596   :  { %14558 = vmatpush.bf16.msrb.mxu3 %v22216_v31  ;;  %v22262_v31 = vld [vmem:[#allocation10 + $0xb8] sm:$0xff] }
 0x597   :  { %14520 = vmatpush.bf16.msrb.mxu0 %v22191_v6  ;;  %v13078_v33 = vpop.f32.mrf.mxu0 }
 0x598   :  { %14533 = vmatpush.bf16.msrb.mxu1 %v22199_v7  ;;  %v13079_v36 = vadd.f32 %v13078_v33, %v13066_v29  ;;  %v13091_v9 = vpop.f32.mrf.mxu1  ;;  %v11175_v7 = vand.u32 2147483648, %v22967_v61  ;;  %v14610_v33 = vld [vmem:[%s23011_s0 + $0xb4] sm:$0xff]  ;;  %s22459_s0 = smov 24  }
 0x599   :  { %14546 = vmatpush.bf16.msrb.mxu2 %v22207_v58 }
 0x59a   :  { %14521 = vmatmul.bf16.vlgmr.msrb.gmra.mxu0 %v22619_v21  ;;  %14559 = vmatpush.bf16.msrb.mxu3 %v22215_v15  ;;  %v11167_v21 = vmul.f32 %v22973_v0, %v11166_v4  ;;  %v13092_v39 = vadd.f32 %v13091_v9, %v13079_v36  ;;  %v22269_v15 = vld [vmem:[#allocation10 + $0xf0] sm:$0xff]  ;;  %v22259_v4 = vld [vmem:[#allocation10 + $0xa0] sm:$0xff]  ;;  %v14679_v36 = vunpack.c.l.b16 %v14610_v33 }
 0x59b   :  { %14565 = vmatpush.bf16.msra.mxu0 %v22230_v8  ;;  %14534 = vmatmul.bf16.vlgmr.msrb.gmra.mxu1 %v22621_v24  ;;  %v22244_v24 = vld [vmem:[#allocation10 + $0x28] sm:$0xff]  ;;  %v22255_v9 = vld [vmem:[#allocation10 + $0x80] sm:$0xff] }
 0x59c   :  { %14578 = vmatpush.bf16.msra.mxu1 %v22238_v17  ;;  %14547 = vmatmul.bf16.vlgmr.msrb.gmra.mxu2 %v22634_v10  ;;  %v11168_v37 = vmul.f32 0.5, %v11167_v21  ;;  %v22226_v10 = vld [vmem:[#allocation9 + $0x118] sm:$0xff]  ;;  %v22248_v8 = vld [vmem:[#allocation10 + $0x48] sm:$0xff]  ;;  %v14677_v17 = vunpack.c.l.b16 %v14609_v3  ;;  %v22265_v21 = vld [vmem:[#allocation10 + $0xd0] sm:$0xff] }
 0x59d   :  { %14881 = vmatpush.bf16.msra.mxu2 %v22246_v18  ;;  %14560 = vmatmul.bf16.vlgmr.msrb.gmra.mxu3 %v22638_v13  ;;  %v22243_v13 = vld [vmem:[#allocation10 + $0x20] sm:$0xff] }
 0x59e   :  { %14894 = vmatpush.bf16.msra.mxu3 %v22254_v23  ;;  %v11169_v40 = vsub.f32 1.5, %v11168_v37  ;;  %v22247_v18 = vld [vmem:[#allocation10 + $0x40] sm:$0xff]  ;;  %v22268_v23 = vld [vmem:[#allocation10 + $0xe8] sm:$0xff]  ;;  %v14680_v37 = vunpack.c.h.b16 %v14610_v33 }
 0x59f   :  { %14566 = vmatpush.bf16.msra.mxu0 %v22229_v16  ;;  %v13104_v50 = vpop.f32.mrf.mxu2  ;;  %v13080_v41 = vpop.f32.mrf.mxu0  ;;  %v14678_v16 = vunpack.c.h.b16 %v14609_v3 }
 0x5a0   :  { %14579 = vmatpush.bf16.msra.mxu1 %v22237_v22  ;;  %v13105_v42 = vadd.f32 %v13104_v50, %v13092_v39  ;;  %v13117_v52 = vpop.f32.mrf.mxu3  ;;  %v11170_v49 = vmul.f32 %v22973_v0, %v11169_v40  ;;  %v13093_v56 = vpop.f32.mrf.mxu1  ;;  %v22261_v0 = vld [vmem:[#allocation10 + $0xb0] sm:$0xff]  ;;  %v14681_v22 = vpack.c.b16 %v14677_v17, %v14677_v17  ;;  %v14684_v39 = vpack.c.b16 %v14680_v37, %v14680_v37 }
 0x5a1   :  { %14882 = vmatpush.bf16.msra.mxu2 %v22245_v12  ;;  %v14682_v60 = vpack.c.b16 %v14678_v16, %v14678_v16  ;;  %v22258_v12 = vld [vmem:[#allocation10 + $0x98] sm:$0xff] }
 0x5a2   :  { %14895 = vmatpush.bf16.msra.mxu3 %v22253_v32  ;;  %v13118_v55 = vadd.f32 %v13117_v52, %v13105_v42  ;;  %v11171_v54 = vmul.f32 %v11170_v49, %v22967_v61 }
 0x5a3   :  { %14567 = vmatpush.bf16.msra.mxu0 %v22228_v26 }
 0x5a4   :  { %14580 = vmatpush.bf16.msra.mxu1 %v22236_v27  ;;  %v22984_v57 = vmul.f32 %v13118_v55, %v13118_v55  ;;  %v11173_v48 = vsel %vm11172_vm0, %v22967_v61, %v11171_v54  ;;  %v22260_v61 = vld [vmem:[#allocation10 + $0xa8] sm:$0xff]  ;;  %v22266_v27 = vld [vmem:[#allocation10 + $0xd8] sm:$0xff]  ;;  %vm14979_vm0 = vcmask 490496  }
 0x5a5   :  { %14883 = vmatpush.bf16.msra.mxu2 %v22244_v24  ;;  %v11176_v58 = vsel %vm11174_vm1, %v11175_v7, %v11173_v48  ;;  %v22256_v24 = vld [vmem:[#allocation10 + $0x88] sm:$0xff]  ;;  %vm14981_vm1 = vcmask 588800  }
 0x5a6   :  { %14896 = vmatpush.bf16.msra.mxu3 %v22252_v35  ;;  %13123 = vrot.lane.b32.xlu0 %v22984_v57, %s22457_s2  ;;  %v22264_v35 = vld [vmem:[#allocation10 + $0xc8] sm:$0xff] }
 0x5a7   :  { %14568 = vmatpush.bf16.msra.mxu0 %v22227_v30  ;;  %v13106_v63 = vpop.f32.mrf.mxu2 }
 0x5a8   :  { %14581 = vmatpush.bf16.msra.mxu1 %v22235_v34  ;;  %v13119_v6 = vpop.f32.mrf.mxu3 }
 0x5a9   :  { %14884 = vmatpush.bf16.msra.mxu2 %v22243_v13  ;;  %v22263_v13 = vld [vmem:[#allocation10 + $0xc0] sm:$0xff] }
 0x5aa   :  { %14897 = vmatpush.bf16.msra.mxu3 %v22251_v20 }
 0x5ab   :  { %14569 = vmatpush.bf16.msra.mxu0 %v22226_v10 }
 0x5ac   :  { %14582 = vmatpush.bf16.msra.mxu1 %v22234_v38  ;;  %v14683_v38 = vpack.c.b16 %v14679_v36, %v14679_v36 }
 0x5ad   :  { %14885 = vmatpush.bf16.msra.mxu2 %v22242_v51 }
 0x5ae   :  { %14898 = vmatpush.bf16.msra.mxu3 %v22250_v46  ;;  %14952 = vrot.lane.b32.xlu0 %v11176_v58, %s22458_s3 }
 0x5af   :  { %14570 = vmatpush.bf16.msra.mxu0 %v22225_v43 }
 0x5b0   :  { %14583 = vmatpush.bf16.msra.mxu1 %v22233_v53 }
 0x5b1   :  { %14886 = vmatpush.bf16.msra.mxu2 %v22241_v59 }
 0x5b2   :  { %14899 = vmatpush.bf16.msra.mxu3 %v22249_v19 }
 0x5b3   :  { %14571 = vmatpush.bf16.msra.mxu0 %v22224_v47 }
 0x5b4   :  { %14584 = vmatpush.bf16.msra.mxu1 %v22232_v62 }
 0x5b5   :  { %14887 = vmatpush.bf16.msra.mxu2 %v22240_v2 }
 0x5b6   :  { %14900 = vmatpush.bf16.msra.mxu3 %v22248_v8 }
 0x5b7   :  { %14572 = vmatpush.bf16.msra.mxu0 %v22223_v45  ;;  %v13964_v26 = vpop.f32.mrf.mxu0 }
 0x5b8   :  { %14585 = vmatpush.bf16.msra.mxu1 %v22231_v5 }
 0x5b9   :  { %14888 = vmatpush.bf16.msra.mxu2 %v22239_v28 }
 0x5ba   :  { %14573 = vmatmul.bf16.vlgmr.msra.gmra.mxu0 %v22636_v11  ;;  %14901 = vmatpush.bf16.msra.mxu3 %v22247_v18  ;;  %v13977_v11 = vpop.f32.mrf.mxu1 }
 0x5bb   :  { %14907 = vmatpush.bf16.msrb.mxu0 %v22262_v31  ;;  %14586 = vmatmul.bf16.vlgmr.msra.gmra.mxu1 %v22640_v14  ;;  %v22257_v14 = vld [vmem:[#allocation10 + $0x90] sm:$0xff]  ;;  %v13978_v42 = vadd.f32 %v13977_v11, %v13964_v26 }
 0x5bc   :  { %14920 = vmatpush.bf16.msrb.mxu1 %v22270_v1  ;;  %14889 = vmatmul.bf16.vlgmr.msra.gmra.mxu2 %v14681_v22 }
 0x5bd   :  { %14902 = vmatmul.bf16.vlgmr.msra.gmra.mxu3 %v14682_v60 }
 0x5bf   :  { %14908 = vmatpush.bf16.msrb.mxu0 %v22261_v0  ;;  %v13990_v32 = vpop.f32.mrf.mxu2  ;;  %v13966_v30 = vpop.f32.mrf.mxu0 }
 0x5c0   :  { %14921 = vmatpush.bf16.msrb.mxu1 %v22269_v15  ;;  %v14003_v29 = vpop.f32.mrf.mxu3  ;;  %v13991_v52 = vadd.f32 %v13990_v32, %v13978_v42 }
 0x5c2   :  { %v13979_v34 = vpop.f32.mrf.mxu1  ;;  %v14004_v41 = vadd.f32 %v14003_v29, %v13991_v52 }
 0x5c3   :  { %14909 = vmatpush.bf16.msrb.mxu0 %v22260_v61 }
 0x5c4   :  { %14922 = vmatpush.bf16.msrb.mxu1 %v22268_v23 }
 0x5c7   :  { %14910 = vmatpush.bf16.msrb.mxu0 %v22259_v4  ;;  %v13992_v10 = vpop.f32.mrf.mxu2 }
 0x5c8   :  { %14923 = vmatpush.bf16.msrb.mxu1 %v22267_v25  ;;  %v14005_v20 = vpop.f32.mrf.mxu3 }
 0x5cb   :  { %14911 = vmatpush.bf16.msrb.mxu0 %v22258_v12 }
 0x5cc   :  { %14924 = vmatpush.bf16.msrb.mxu1 %v22266_v27 }
 0x5cf   :  { %14912 = vmatpush.bf16.msrb.mxu0 %v22257_v14 }
 0x5d0   :  { %14925 = vmatpush.bf16.msrb.mxu1 %v22265_v21 }
 0x5d3   :  { %14913 = vmatpush.bf16.msrb.mxu0 %v22256_v24 }
 0x5d4   :  { %14926 = vmatpush.bf16.msrb.mxu1 %v22264_v35 }
 0x5d7   :  { %14914 = vmatpush.bf16.msrb.mxu0 %v22255_v9  ;;  %v14016_v40 = vpop.f32.mrf.mxu0 }
 0x5d8   :  { %14927 = vmatpush.bf16.msrb.mxu1 %v22263_v13  ;;  %v14029_v50 = vpop.f32.mrf.mxu1  ;;  %v14017_v49 = vadd.f32 %v14016_v40, %v14004_v41 }
 0x5da   :  { %14915 = vmatmul.bf16.vlgmr.msrb.gmra.mxu0 %v14683_v38  ;;  %v14030_v47 = vadd.f32 %v14029_v50, %v14017_v49 }
 0x5db   :  { %14928 = vmatmul.bf16.vlgmr.msrb.gmra.mxu1 %v14684_v39 }
 0x5df   :  { %v14042_v43 = vpop.f32.mrf.mxu2  ;;  %v14018_v51 = vpop.f32.mrf.mxu0 }
 0x5e0   :  { %v14055_v53 = vpop.f32.mrf.mxu3  ;;  %v14031_v46 = vpop.f32.mrf.mxu1  ;;  %v14043_v59 = vadd.f32 %v14042_v43, %v14030_v47 }
 0x5e1   :  { %v7414_v46 = vmul.f32 %v22782_v44, %v22782_v44 }
 0x5e2   :  { %v14056_v62 = vadd.f32 %v14055_v53, %v14043_v59 }
 0x5e7   :  { %v14044_v55 = vpop.f32.mrf.mxu2 }
 0x5e8   :  { %v14057_v56 = vpop.f32.mrf.mxu3 }
 0x5f7   :  { %v14068_v19 = vpop.f32.mrf.mxu0 }
 0x5f8   :  { %v14081_v54 = vpop.f32.mrf.mxu1  ;;  %v14069_v63 = vadd.f32 %v14068_v19, %v14056_v62 }
 0x5fa   :  { %v14082_v45 = vadd.f32 %v14081_v54, %v14069_v63 }
 0x5ff   :  { %v14094_v2 = vpop.f32.mrf.mxu2  ;;  %v14070_v5 = vpop.f32.mrf.mxu0 }
 0x600   :  { %v14095_v3 = vadd.f32 %v14094_v2, %v14082_v45  ;;  %v14107_v31 = vpop.f32.mrf.mxu3  ;;  %v14083_v6 = vpop.f32.mrf.mxu1 }
 0x602   :  { %v14108_v1 = vadd.f32 %v14107_v31, %v14095_v3 }
 0x604   :  { %v14111_v48 = vmul.f32 %v14108_v1, %v14108_v1 }
 0x606   :  { %14113 = vrot.lane.b32.xlu1 %v14111_v48, %s22457_s2 }
 0x607   :  { %v14096_v7 = vpop.f32.mrf.mxu2 }
 0x608   :  { %v14109_v8 = vpop.f32.mrf.mxu3 }
 0x617   :  { %v14522_v17 = vpop.f32.mrf.mxu0 }
 0x618   :  { %v14535_v28 = vpop.f32.mrf.mxu1  ;;  %v13124_v0 = vpop.permute.xlu0 %13123 }
 0x619   :  { %v13126_v16 = vadd.f32 %v13124_v0, %v22984_v57  ;;  %v14536_v25 = vadd.f32 %v14535_v28, %v14522_v17 }
 0x61b   :  { %22287 = vrsqrt.f32 %v13126_v16  ;;  %vm13134_vm2 = vcmp.eq.f32.partialorder %v13126_v16, inf  ;;  %v13137_v37 = vand.u32 2147483648, %v13126_v16  ;;  %vm13136_vm3 = vcmp.eq.f32.partialorder %v13126_v16, 0.0 }
 0x61f   :  { %v14524_v58 = vpop.f32.mrf.mxu0  ;;  %v14548_v18 = vpop.f32.mrf.mxu2 }
 0x620   :  { %v14537_v15 = vpop.f32.mrf.mxu1  ;;  %v14561_v22 = vpop.f32.mrf.mxu3  ;;  %v14549_v11 = vadd.f32 %v14548_v18, %v14536_v25 }
 0x621   :  { %v22288_v61 = vpop.eup %22287 }
 0x622   :  { %v13128_v4 = vmul.f32 %v22288_v61, %v13126_v16  ;;  %v14562_v27 = vadd.f32 %v14561_v22, %v14549_v11 }
 0x624   :  { %v13129_v26 = vmul.f32 %v22288_v61, %v13128_v4 }
 0x626   :  { %v13130_v12 = vmul.f32 0.5, %v13129_v26 }
 0x627   :  { %v14550_v23 = vpop.f32.mrf.mxu2 }
 0x628   :  { %v14563_v60 = vpop.f32.mrf.mxu3  ;;  %v13131_v14 = vsub.f32 1.5, %v13130_v12 }
 0x62a   :  { %v13132_v24 = vmul.f32 %v22288_v61, %v13131_v14 }
 0x62c   :  { %v13133_v57 = vmul.f32 %v13132_v24, %v13126_v16 }
 0x62e   :  { %v13135_v9 = vsel %vm13134_vm2, %v13126_v16, %v13133_v57  ;;  %v14953_v57 = vpop.permute.xlu0 %14952 }
 0x62f   :  { %v13138_v13 = vsel %vm13136_vm3, %v13137_v37, %v13135_v9 }
 0x637   :  { %v14574_v32 = vpop.f32.mrf.mxu0 }
 0x638   :  { %v14575_v21 = vadd.f32 %v14574_v32, %v14562_v27  ;;  %v14587_v29 = vpop.f32.mrf.mxu1 }
 0x63a   :  { %v14588_v30 = vadd.f32 %v14587_v29, %v14575_v21 }
 0x63c   :  { %v14591_v33 = vmul.f32 %v14588_v30, %v14588_v30 }
 0x63e   :  { %14593 = vrot.lane.b32.xlu1 %v14591_v33, %s22457_s2 }
 0x63f   :  { %v14576_v34 = vpop.f32.mrf.mxu0  ;;  %v14890_v36 = vpop.f32.mrf.mxu2 }
 0x640   :  { %v14589_v35 = vpop.f32.mrf.mxu1  ;;  %v14903_v10 = vpop.f32.mrf.mxu3 }
 0x641   :  { %v14904_v39 = vadd.f32 %v14903_v10, %v14890_v36 }
 0x646   :  { %14956 = vrot.lane.b32.xlu1 %v13138_v13, %s22459_s0 }
 0x647   :  { %v14892_v38 = vpop.f32.mrf.mxu2 }
 0x648   :  { %v14905_v20 = vpop.f32.mrf.mxu3 }
 0x657   :  { %v14916_v40 = vpop.f32.mrf.mxu0 }
 0x658   :  { %v14917_v50 = vadd.f32 %v14916_v40, %v14904_v39  ;;  %v14929_v42 = vpop.f32.mrf.mxu1 }
 0x65a   :  { %v14930_v43 = vadd.f32 %v14929_v42, %v14917_v50 }
 0x65c   :  { %v14933_v51 = vmul.f32 %v14930_v43, %v14930_v43 }
 0x65e   :  { %14935 = vrot.lane.b32.xlu2 %v14933_v51, %s22457_s2 }
 0x65f   :  { %v14918_v52 = vpop.f32.mrf.mxu0 }
 0x660   :  { %v14931_v53 = vpop.f32.mrf.mxu1 }
 0x666   :  { %7416 = vrot.lane.b32.xlu2 %v7414_v46, %s22457_s2 }
 0x678   :  { %v14114_v41 = vpop.permute.xlu1 %14113 }
 0x679   :  { %v14116_v55 = vadd.f32 %v14114_v41, %v14111_v48 }
 0x67b   :  { %22289 = vrsqrt.f32 %v14116_v55  ;;  %vm14124_vm4 = vcmp.eq.f32.partialorder %v14116_v55, inf  ;;  %v14127_v63 = vand.u32 2147483648, %v14116_v55  ;;  %vm14126_vm5 = vcmp.eq.f32.partialorder %v14116_v55, 0.0 }
 0x681   :  { %v22290_v49 = vpop.eup %22289 }
 0x682   :  { %v14118_v56 = vmul.f32 %v22290_v49, %v14116_v55 }
 0x684   :  { %v14119_v47 = vmul.f32 %v22290_v49, %v14118_v56 }
 0x686   :  { %v14120_v59 = vmul.f32 0.5, %v14119_v47 }
 0x688   :  { %v14121_v62 = vsub.f32 1.5, %v14120_v59 }
 0x68a   :  { %v14122_v19 = vmul.f32 %v22290_v49, %v14121_v62 }
 0x68c   :  { %v14123_v54 = vmul.f32 %v14122_v19, %v14116_v55 }
 0x68e   :  { %v14125_v45 = vsel %vm14124_vm4, %v14116_v55, %v14123_v54 }
 0x68f   :  { %v14128_v2 = vsel %vm14126_vm5, %v14127_v63, %v14125_v45 }
 0x690   :  { %14960 = vrot.lane.b32.xlu2 %v14128_v2, %s22460_s25 }
 0x6b0   :  { %v14594_v44 = vpop.permute.xlu1 %14593 }
 0x6b1   :  { %v14596_v3 = vadd.f32 %v14594_v44, %v14591_v33 }
 0x6b3   :  { %22291 = vrsqrt.f32 %v14596_v3  ;;  %vm14604_vm6 = vcmp.eq.f32.partialorder %v14596_v3, inf  ;;  %v14607_v18 = vand.u32 2147483648, %v14596_v3  ;;  %vm14606_vm7 = vcmp.eq.f32.partialorder %v14596_v3, 0.0 }
 0x6b8   :  { %v14936_v5 = vpop.permute.xlu2 %14935  ;;  %v14957_v36 = vpop.permute.xlu1 %14956 }
 0x6b9   :  { %v14938_v31 = vadd.f32 %v14936_v5, %v14933_v51  ;;  %v22292_v6 = vpop.eup %22291 }
 0x6ba   :  { %v14598_v1 = vmul.f32 %v22292_v6, %v14596_v3 }
 0x6bb   :  { %22293 = vrsqrt.f32 %v14938_v31  ;;  %vm14946_vm8 = vcmp.eq.f32.partialorder %v14938_v31, inf  ;;  %v14949_v25 = vand.u32 2147483648, %v14938_v31  ;;  %vm14948_vm9 = vcmp.eq.f32.partialorder %v14938_v31, 0.0 }
 0x6bc   :  { %v14599_v48 = vmul.f32 %v22292_v6, %v14598_v1 }
 0x6be   :  { %v14600_v8 = vmul.f32 0.5, %v14599_v48 }
 0x6c0   :  { %v14601_v28 = vsub.f32 1.5, %v14600_v8  ;;  %v7417_v12 = vpop.permute.xlu2 %7416 }
 0x6c1   :  { %v22294_v7 = vpop.eup %22293  ;;  %v7419_v27 = vadd.f32 %v7417_v12, %v7414_v46 }
 0x6c2   :  { %v14940_v17 = vmul.f32 %v22294_v7, %v14938_v31  ;;  %v14602_v0 = vmul.f32 %v22292_v6, %v14601_v28 }
 0x6c3   :  { %22295 = vrsqrt.f32 %v7419_v27  ;;  %vm7427_vm10 = vcmp.eq.f32.partialorder %v7419_v27, inf  ;;  %v7430_v35 = vand.u32 2147483648, %v7419_v27  ;;  %vm7429_vm11 = vcmp.eq.f32.partialorder %v7419_v27, 0.0 }
 0x6c4   :  { %v14941_v58 = vmul.f32 %v22294_v7, %v14940_v17  ;;  %v14603_v16 = vmul.f32 %v14602_v0, %v14596_v3 }
 0x6c6   :  { %v14942_v15 = vmul.f32 0.5, %v14941_v58  ;;  %v14605_v61 = vsel %vm14604_vm6, %v14596_v3, %v14603_v16 }
 0x6c7   :  { %v14608_v23 = vsel %vm14606_vm7, %v14607_v18, %v14605_v61 }
 0x6c8   :  { %v14943_v22 = vsub.f32 1.5, %v14942_v15  ;;  %14964 = vrot.lane.b32.xlu0 %v14608_v23, %s22461_s26 }
 0x6c9   :  { %v22296_v14 = vpop.eup %22295 }
 0x6ca   :  { %v14944_v60 = vmul.f32 %v22294_v7, %v14943_v22  ;;  %v7421_v32 = vmul.f32 %v22296_v14, %v7419_v27 }
 0x6cc   :  { %v14945_v4 = vmul.f32 %v14944_v60, %v14938_v31  ;;  %v7422_v21 = vmul.f32 %v22296_v14, %v7421_v32 }
 0x6ce   :  { %v14947_v26 = vsel %vm14946_vm8, %v14938_v31, %v14945_v4  ;;  %v7423_v29 = vmul.f32 0.5, %v7422_v21 }
 0x6cf   :  { %v14950_v11 = vsel %vm14948_vm9, %v14949_v25, %v14947_v26 }
 0x6d0   :  { %14968 = vrot.lane.b32.xlu1 %v14950_v11, %s22462_s27  ;;  %v7424_v30 = vsub.f32 1.5, %v7423_v29 }
 0x6d2   :  { %v7425_v24 = vmul.f32 %v22296_v14, %v7424_v30 }
 0x6d4   :  { %v7426_v33 = vmul.f32 %v7425_v24, %v7419_v27 }
 0x6d6   :  { %v7428_v34 = vsel %vm7427_vm10, %v7419_v27, %v7426_v33 }
 0x6d7   :  { %v7431_v9 = vsel %vm7429_vm11, %v7430_v35, %v7428_v34 }
 0x6d8   :  { %v14972_v37 = vsel %vm14971_vm12, %v7431_v9, %v14953_v57 }
 0x6d9   :  { %v14974_v38 = vsel %vm14973_vm13, %v14972_v37, %v14957_v36 }
 0x6ea   :  { %v14961_v10 = vpop.permute.xlu2 %14960 }
 0x6eb   :  { %v14976_v20 = vsel %vm14975_vm14, %v14974_v38, %v14961_v10 }
 0x73a   :  { %v14965_v13 = vpop.permute.xlu0 %14964 }
 0x73b   :  { %v14978_v39 = vsel %vm14977_vm15, %v14976_v20, %v14965_v13 }
 0x742   :  { %v14969_v40 = vpop.permute.xlu1 %14968 }
 0x743   :  { %v14980_v50 = vsel %vm14979_vm0, %v14978_v39, %v14969_v40 }
 0x744   :  { %14982 = vst.msk [vmem:[%s23018_s7] sm:$0xff] %vm14981_vm1, %v14980_v50 }
 0x745   :  { %14987 = vsyncpa [#allocation3], 1 }
 0x746   :  { %14988 = vsyncpa [#allocation5], 1 }
 0x747   :  { %14989 = vsyncpa [#allocation8], 1 }
 0x748   :  { %14990 = vsyncpa [#allocation11], 1 }

</bundles_post_ra>
